<compile_context>
chip_gen: v7x
topology: tpu7x:2x2x1
jax: 0.10.0
libtpu: 0.0.40
codegen_flags: <defaults>
</compile_context>

<pallas_src>
import functools
import math

import jax
import jax.numpy as jnp
from jax.experimental import pallas as pl
from jax.experimental.pallas import tpu as pltpu

_LN_EPS = 1e-5
_SQRT_2_OVER_PI = 0.7978845608028654


def _gelu_tanh(x):
    # TODO(synk): PyTorch nn.GELU() defaults to the exact erf formulation; we use the
    # tanh approximation (== jax.nn.gelu(approximate=True)), <1e-3 deviation, maps to EUP.
    return 0.5 * x * (1.0 + jnp.tanh(_SQRT_2_OVER_PI * (x + 0.044715 * x * x * x)))


def _layernorm(x, eps=_LN_EPS):
    mu = jnp.mean(x, axis=-1, keepdims=True)
    var = jnp.mean((x - mu) * (x - mu), axis=-1, keepdims=True)
    return (x - mu) * jax.lax.rsqrt(var + eps)


def _encoder_block_kernel(
    scale_ref, shift_ref, x_ref,
    w_qkv_ref, b_qkv_ref, wp_ref, bp_ref,
    g_ln2_ref, b_ln2_ref,
    w1_ref, b1_ref, w2_ref, b2_ref,
    out_ref, att_ref,
    *, n_head, mm_dtype,
):
    """Fused EncoderBlock forward for a block of `Bblk` batch elements.

    scale_ref/shift_ref : (Bblk, C)    precomputed AdaLayerNorm affine (hoisted matmul)
    x_ref               : (Bblk, T, C) input tokens
    out_ref             : (Bblk, T, C) block output
    att_ref             : (Bblk, T, T) attention averaged over heads
    """
    f32 = jnp.float32
    Bblk, T, C = x_ref.shape
    hd = C // n_head
    M = Bblk * T

    x = x_ref[...].astype(f32)                           # (Bblk, T, C)

    # ---------------- AdaLayerNorm (affine precomputed in the wrapper) ----------------
    scale = scale_ref[...].astype(f32)[:, None, :]       # (Bblk, 1, C)
    shift = shift_ref[...].astype(f32)[:, None, :]
    xn = _layernorm(x) * (1.0 + scale) + shift           # (Bblk, T, C)

    # ---------------- FullAttention: fused QKV projection (M=Bblk*T, N=3C) ------------
    xn2 = xn.reshape(M, C).astype(mm_dtype)
    qkv = jnp.dot(xn2, w_qkv_ref[...], preferred_element_type=f32)
    qkv = qkv + b_qkv_ref[...].astype(f32)               # (M, 3C); q already / sqrt(hd)
    q = qkv[:, :C].astype(mm_dtype).reshape(Bblk, T, C)      # lane-aligned 128-wide splits
    k = qkv[:, C:2 * C].astype(mm_dtype).reshape(Bblk, T, C)
    v = qkv[:, 2 * C:].astype(mm_dtype).reshape(Bblk, T, C)

    att_acc = jnp.zeros((Bblk, T, T), f32)
    proj = jnp.zeros((M, C), f32)                        # accumulates y_h @ Wp[h]
    for h in range(n_head):                              # static unroll; each iter batched over Bblk
        lo = h * hd
        q_h = q[:, :, lo:lo + hd]                        # (Bblk, T, hd)
        k_h = k[:, :, lo:lo + hd]
        v_h = v[:, :, lo:lo + hd]
        s = jnp.einsum("bqd,bkd->bqk", q_h, k_h, preferred_element_type=f32)   # (Bblk, T, T)
        s = s - jnp.max(s, axis=-1, keepdims=True)
        p = jnp.exp(s)
        denom = jnp.sum(p, axis=-1, keepdims=True)
        a_h = p * pl.reciprocal(denom, approx=True)      # softmax; divide on the EUP slot
        att_acc = att_acc + a_h
        y_h = jnp.einsum("bqk,bkd->bqd", a_h.astype(mm_dtype), v_h,
                         preferred_element_type=f32)     # (Bblk, T, hd)
        proj = proj + jnp.dot(y_h.reshape(M, hd).astype(mm_dtype), wp_ref[h],
                              preferred_element_type=f32)

    att_ref[...] = (att_acc * (1.0 / n_head)).astype(att_ref.dtype)

    x1 = x + (proj + bp_ref[...].astype(f32)).reshape(Bblk, T, C)   # first residual

    # ---------------- LayerNorm + MLP (flattened to M=Bblk*T rows) ----------------
    xl = _layernorm(x1) * g_ln2_ref[...].astype(f32) + b_ln2_ref[...].astype(f32)
    h1 = jnp.dot(xl.reshape(M, C).astype(mm_dtype), w1_ref[...],
                 preferred_element_type=f32) + b1_ref[...].astype(f32)
    h1 = _gelu_tanh(h1)
    mlp = jnp.dot(h1.astype(mm_dtype), w2_ref[...],
                  preferred_element_type=f32) + b2_ref[...].astype(f32)

    out_ref[...] = (x1 + mlp.reshape(Bblk, T, C)).astype(out_ref.dtype)


def _sinusoidal_emb(timestep, dim):
    """SinusoidalPosEmb: (B,) -> (B, dim). Tiny; done as wrapper glue."""
    half = dim // 2
    freq = jnp.exp(jnp.arange(half, dtype=jnp.float32) * (-math.log(10000.0) / (half - 1)))
    ang = timestep.astype(jnp.float32)[:, None] * freq[None, :]
    return jnp.concatenate([jnp.sin(ang), jnp.cos(ang)], axis=-1)


def _choose_batch_block(B, T, *, target_m=256, max_m=1024):
    """Batch elements per grid step: fill the MXU M dim (>=128 v5e / >=256 v6e,v7x)
    while keeping the grid length >= 2 when possible so both v7x TCs get a step."""
    divisors = [d for d in range(1, B + 1) if B % d == 0]
    cands = [d for d in divisors if d * T <= max_m] or [1]
    if B >= 2:
        multi = [d for d in cands if d < B]
        if multi:
            cands = multi
    good = [d for d in cands if d * T >= target_m]
    return min(good) if good else max(cands)


def encoder_block(x, timestep, params, *, n_head, label_emb=None,
                  att_dtype=jnp.float32, mm_dtype=jnp.bfloat16):
    """Pallas equivalent of PyTorch EncoderBlock.forward (eval mode)."""
    B, T, C = x.shape
    assert C % n_head == 0
    hd = C // n_head
    f32 = jnp.float32
    hi = jax.lax.Precision.HIGHEST

    # ---- Host-side prep (negligible traffic, done once per call) ----
    # AdaLayerNorm affine hoisted out of the kernel: one (B,C)x(C,2C) matmul for the
    # whole batch instead of an M=1 MXU push per grid step; drops w_ada from VMEM.
    emb = _sinusoidal_emb(timestep, C)
    if label_emb is not None:
        emb = emb + label_emb
    emb = emb * jax.nn.sigmoid(emb)                                    # SiLU
    se = jnp.dot(emb, params["w_ada"], precision=hi) + params["b_ada"]  # (B, 2C)
    scale, shift = se[:, :C], se[:, C:]

    # Fused QKV weight (one N=3C MXU push); 1/sqrt(hd) baked into the Q slice.
    inv = 1.0 / math.sqrt(hd)
    w_qkv = jnp.concatenate([params["wq"] * inv, params["wk"], params["wv"]],
                            axis=1).astype(mm_dtype)                   # (C, 3C)
    b_qkv = jnp.concatenate([params["bq"] * inv, params["bk"], params["bv"]],
                            axis=1).astype(f32)                        # (1, 3C)
    # Output projection split by head rows: kernel accumulates y_h @ wp_heads[h]
    # instead of concatenating head outputs.
    wp_heads = params["wp"].reshape(n_head, hd, C).astype(mm_dtype)    # (nh, hd, C)

    weights = (
        w_qkv, b_qkv, wp_heads, params["bp"].astype(f32),
        params["g_ln2"].astype(f32), params["b_ln2"].astype(f32),
        params["w1"].astype(mm_dtype), params["b1"].astype(f32),
        params["w2"].astype(mm_dtype), params["b2"].astype(f32),
    )

    bblk = _choose_batch_block(B, T)
    grid = (B // bblk,)

    kernel = functools.partial(_encoder_block_kernel, n_head=n_head, mm_dtype=mm_dtype)

    def _resident(a):
        # Full-array block, constant index_map: weight stays VMEM-resident across
        # all grid steps (no per-step re-fetch).
        nd = a.ndim
        return pl.BlockSpec(a.shape, lambda b, _nd=nd: (0,) * _nd)

    in_specs = [
        pl.BlockSpec((bblk, C), lambda b: (b, 0)),        # AdaLN scale
        pl.BlockSpec((bblk, C), lambda b: (b, 0)),        # AdaLN shift
        pl.BlockSpec((bblk, T, C), lambda b: (b, 0, 0)),  # x
    ] + [_resident(w) for w in weights]

    out_shape = (
        jax.ShapeDtypeStruct((B, T, C), x.dtype),
        jax.ShapeDtypeStruct((B, T, T), att_dtype),
    )
    out_specs = (
        pl.BlockSpec((bblk, T, C), lambda b: (b, 0, 0)),
        pl.BlockSpec((bblk, T, T), lambda b: (b, 0, 0)),
    )

    return pl.pallas_call(
        kernel,
        out_shape=out_shape,
        grid=grid,
        in_specs=in_specs,
        out_specs=out_specs,
        compiler_params=pltpu.CompilerParams(
            dimension_semantics=("parallel",),
            vmem_limit_bytes=32 * 1024 * 1024,
        ),
    )(scale, shift, x, *weights)


# ----------------------------------------------------------------------------
# Pure-JAX reference (mirrors the PyTorch forward in f32; same weight convention).
# ----------------------------------------------------------------------------
def _encoder_block_reference(x, timestep, params, *, n_head):
    B, T, C = x.shape
    hd = C // n_head
    dot = functools.partial(jnp.dot, precision=jax.lax.Precision.HIGHEST)

    # AdaLayerNorm
    emb = _sinusoidal_emb(timestep, C)
    emb = emb * jax.nn.sigmoid(emb)
    se = dot(emb, params["w_ada"]) + params["b_ada"]
    scale = se[:, None, :C]
    shift = se[:, None, C:]
    xn = _layernorm(x) * (1.0 + scale) + shift

    # FullAttention
    def proj(w, b):
        y = dot(xn.reshape(B * T, C), w) + b
        return y.reshape(B, T, n_head, hd).transpose(0, 2, 1, 3)

    q = proj(params["wq"], params["bq"])
    k = proj(params["wk"], params["bk"])
    v = proj(params["wv"], params["bv"])
    s = jnp.einsum("bhqd,bhkd->bhqk", q, k,
                   precision=jax.lax.Precision.HIGHEST) * (1.0 / math.sqrt(hd))
    s = s - jnp.max(s, axis=-1, keepdims=True)
    p = jnp.exp(s)
    att = p / jnp.sum(p, axis=-1, keepdims=True)               # (B, nh, T, T)
    y = jnp.einsum("bhqk,bhkd->bhqd", att, v,
                   precision=jax.lax.Precision.HIGHEST)
    y = y.transpose(0, 2, 1, 3).reshape(B, T, C)
    att_mean = att.mean(axis=1)                                # (B, T, T)
    y = dot(y.reshape(B * T, C), params["wp"]).reshape(B, T, C) + params["bp"]
    x1 = x + y

    # LayerNorm + MLP
    xl = _layernorm(x1) * params["g_ln2"] + params["b_ln2"]
    h = _gelu_tanh(dot(xl.reshape(B * T, C), params["w1"]) + params["b1"])
    mlp = dot(h, params["w2"]).reshape(B, T, C) + params["b2"]
    return x1 + mlp, att_mean


if __name__ == "__main__":
    # Small, deterministic example. B=16 so batch blocking kicks in (Bblk=8 -> M=128
    # per grid step, grid length 2); C=128 keeps the lane dim dense; 8 heads (hd=16).
    B, T, C, n_head = 16, 16, 128, 8
    H = 4 * C                                # mlp_hidden_times = 4
    key = jax.random.PRNGKey(0)
    ks = jax.random.split(key, 18)
    s = 0.05

    params = dict(
        w_ada=s * jax.random.normal(ks[0], (C, 2 * C), jnp.float32),
        b_ada=s * jax.random.normal(ks[1], (1, 2 * C), jnp.float32),
        wq=s * jax.random.normal(ks[2], (C, C), jnp.float32),
        bq=s * jax.random.normal(ks[3], (1, C), jnp.float32),
        wk=s * jax.random.normal(ks[4], (C, C), jnp.float32),
        bk=s * jax.random.normal(ks[5], (1, C), jnp.float32),
        wv=s * jax.random.normal(ks[6], (C, C), jnp.float32),
        bv=s * jax.random.normal(ks[7], (1, C), jnp.float32),
        wp=s * jax.random.normal(ks[8], (C, C), jnp.float32),
        bp=s * jax.random.normal(ks[9], (1, C), jnp.float32),
        g_ln2=1.0 + s * jax.random.normal(ks[10], (1, C), jnp.float32),
        b_ln2=s * jax.random.normal(ks[11], (1, C), jnp.float32),
        w1=s * jax.random.normal(ks[12], (C, H), jnp.float32),
        b1=s * jax.random.normal(ks[13], (1, H), jnp.float32),
        w2=s * jax.random.normal(ks[14], (H, C), jnp.float32),
        b2=s * jax.random.normal(ks[15], (1, C), jnp.float32),
    )
    x = jax.random.normal(ks[16], (B, T, C), jnp.float32)
    timestep = (jnp.arange(B, dtype=jnp.int32) * 61 + 7) % 1000

    y, att = encoder_block(x, timestep, params, n_head=n_head)
    y, att = jax.block_until_ready((y, att))

    y_ref, att_ref = _encoder_block_reference(x, timestep, params, n_head=n_head)
    assert y.shape == y_ref.shape, (y.shape, y_ref.shape)
    assert att.shape == att_ref.shape, (att.shape, att_ref.shape)
    err_y = float(jnp.max(jnp.abs(y - y_ref)))
    err_a = float(jnp.max(jnp.abs(att - att_ref)))
    # The kernel feeds bf16 operands to the MXU (f32 accumulation) per the perf review,
    # while the reference runs f32/HIGHEST, so the tolerance is widened from the former
    # 5e-3 to bf16-level agreement. Pass mm_dtype=jnp.float32 to recover ~5e-4 accuracy.
    assert jnp.allclose(y, y_ref, atol=4e-2, rtol=2e-2), err_y
    assert jnp.allclose(att, att_ref.astype(att.dtype), atol=5e-3, rtol=5e-3), err_a

    print("KERNEL_OK")
</pallas_src>

<mosaic_0001>
module attributes {stable_mosaic.version = 11 : i64} {
  func.func @_encoder_block_kernel(%arg0: i32, %arg1: memref<8x128xf32, #tpu.memory_space<vmem>>, %arg2: memref<8x128xf32, #tpu.memory_space<vmem>>, %arg3: memref<8x16x128xf32, #tpu.memory_space<vmem>>, %arg4: memref<128x384xbf16, #tpu.memory_space<vmem>>, %arg5: memref<1x384xf32, #tpu.memory_space<vmem>>, %arg6: memref<8x16x128xbf16, #tpu.memory_space<vmem>>, %arg7: memref<1x128xf32, #tpu.memory_space<vmem>>, %arg8: memref<1x128xf32, #tpu.memory_space<vmem>>, %arg9: memref<1x128xf32, #tpu.memory_space<vmem>>, %arg10: memref<128x512xbf16, #tpu.memory_space<vmem>>, %arg11: memref<1x512xf32, #tpu.memory_space<vmem>>, %arg12: memref<512x128xbf16, #tpu.memory_space<vmem>>, %arg13: memref<1x128xf32, #tpu.memory_space<vmem>>, %arg14: memref<8x16x128xf32, #tpu.memory_space<vmem>>, %arg15: memref<8x16x16xf32, #tpu.memory_space<vmem>>) attributes {dimension_semantics = [#tpu.dimension_semantics<parallel>], iteration_bounds = array<i64: 2>, scalar_prefetch = 0 : i64, scratch_operands = 0 : i64, tpu.core_type = #tpu.core_type<tc>, window_params = [{transform_indices = @transform_0, window_bounds = array<i64: 8, 128>}, {transform_indices = @transform_1, window_bounds = array<i64: 8, 128>}, {transform_indices = @transform_2, window_bounds = array<i64: 8, 16, 128>}, {pipeline_mode = #tpu.pipeline_mode<synchronous>, transform_indices = @transform_3, window_bounds = array<i64: 128, 384>}, {pipeline_mode = #tpu.pipeline_mode<synchronous>, transform_indices = @transform_4, window_bounds = array<i64: 1, 384>}, {pipeline_mode = #tpu.pipeline_mode<synchronous>, transform_indices = @transform_5, window_bounds = array<i64: 8, 16, 128>}, {pipeline_mode = #tpu.pipeline_mode<synchronous>, transform_indices = @transform_6, window_bounds = array<i64: 1, 128>}, {pipeline_mode = #tpu.pipeline_mode<synchronous>, transform_indices = @transform_7, window_bounds = array<i64: 1, 128>}, {pipeline_mode = #tpu.pipeline_mode<synchronous>, transform_indices = @transform_8, window_bounds = array<i64: 1, 128>}, {pipeline_mode = #tpu.pipeline_mode<synchronous>, transform_indices = @transform_9, window_bounds = array<i64: 128, 512>}, {pipeline_mode = #tpu.pipeline_mode<synchronous>, transform_indices = @transform_10, window_bounds = array<i64: 1, 512>}, {pipeline_mode = #tpu.pipeline_mode<synchronous>, transform_indices = @transform_11, window_bounds = array<i64: 512, 128>}, {pipeline_mode = #tpu.pipeline_mode<synchronous>, transform_indices = @transform_12, window_bounds = array<i64: 1, 128>}, {transform_indices = @transform_13, window_bounds = array<i64: 8, 16, 128>}, {transform_indices = @transform_14, window_bounds = array<i64: 8, 16, 16>}]} {
    %c0 = arith.constant 0 : index
    %c0_0 = arith.constant 0 : index
    %c0_1 = arith.constant 0 : index
    %0 = vector.load %arg3[%c0, %c0_0, %c0_1] : memref<8x16x128xf32, #tpu.memory_space<vmem>>, vector<8x16x128xf32>
    %c0_2 = arith.constant 0 : index
    %c0_3 = arith.constant 0 : index
    %1 = vector.load %arg1[%c0_2, %c0_3] : memref<8x128xf32, #tpu.memory_space<vmem>>, vector<8x128xf32>
    %2 = vector.shape_cast %1 : vector<8x128xf32> to vector<8x1x128xf32>
    %c0_4 = arith.constant 0 : index
    %c0_5 = arith.constant 0 : index
    %3 = vector.load %arg2[%c0_4, %c0_5] : memref<8x128xf32, #tpu.memory_space<vmem>>, vector<8x128xf32>
    %4 = vector.shape_cast %3 : vector<8x128xf32> to vector<8x1x128xf32>
    %cst = arith.constant dense<0.000000e+00> : vector<8x16xf32>
    %5 = vector.multi_reduction <add>, %0, %cst [2] : vector<8x16x128xf32> to vector<8x16xf32>
    %6 = vector.shape_cast %5 : vector<8x16xf32> to vector<8x16x1xf32>
    %cst_6 = arith.constant 1.280000e+02 : f32
    %7 = vector.broadcast %cst_6 : f32 to vector<8x16x1xf32>
    %8 = arith.divf %6, %7 : vector<8x16x1xf32>
    %9 = vector.broadcast %8 : vector<8x16x1xf32> to vector<8x16x128xf32>
    %10 = arith.subf %0, %9 : vector<8x16x128xf32>
    %11 = vector.broadcast %8 : vector<8x16x1xf32> to vector<8x16x128xf32>
    %12 = arith.subf %0, %11 : vector<8x16x128xf32>
    %13 = arith.mulf %10, %12 : vector<8x16x128xf32>
    %cst_7 = arith.constant dense<0.000000e+00> : vector<8x16xf32>
    %14 = vector.multi_reduction <add>, %13, %cst_7 [2] : vector<8x16x128xf32> to vector<8x16xf32>
    %15 = vector.shape_cast %14 : vector<8x16xf32> to vector<8x16x1xf32>
    %cst_8 = arith.constant 1.280000e+02 : f32
    %16 = vector.broadcast %cst_8 : f32 to vector<8x16x1xf32>
    %17 = arith.divf %15, %16 : vector<8x16x1xf32>
    %18 = vector.broadcast %8 : vector<8x16x1xf32> to vector<8x16x128xf32>
    %19 = arith.subf %0, %18 : vector<8x16x128xf32>
    %cst_9 = arith.constant 9.99999974E-6 : f32
    %20 = vector.broadcast %cst_9 : f32 to vector<8x16x1xf32>
    %21 = arith.addf %17, %20 : vector<8x16x1xf32>
    %22 = math.rsqrt %21 : vector<8x16x1xf32>
    %23 = vector.broadcast %22 : vector<8x16x1xf32> to vector<8x16x128xf32>
    %24 = arith.mulf %19, %23 : vector<8x16x128xf32>
    %cst_10 = arith.constant 1.000000e+00 : f32
    %25 = vector.broadcast %cst_10 : f32 to vector<8x1x128xf32>
    %26 = arith.addf %25, %2 : vector<8x1x128xf32>
    %27 = vector.broadcast %26 : vector<8x1x128xf32> to vector<8x16x128xf32>
    %28 = arith.mulf %24, %27 : vector<8x16x128xf32>
    %29 = vector.broadcast %4 : vector<8x1x128xf32> to vector<8x16x128xf32>
    %30 = arith.addf %28, %29 : vector<8x16x128xf32>
    %31 = vector.shape_cast %30 : vector<8x16x128xf32> to vector<128x128xf32>
    %32 = arith.truncf %31 : vector<128x128xf32> to vector<128x128xbf16>
    %c0_11 = arith.constant 0 : index
    %c0_12 = arith.constant 0 : index
    %33 = vector.load %arg4[%c0_11, %c0_12] : memref<128x384xbf16, #tpu.memory_space<vmem>>, vector<128x384xbf16>
    %cst_13 = arith.constant dense<0.000000e+00> : vector<128x384xf32>
    %34 = tpu.matmul %32, %33, %cst_13 {dimension_numbers = #tpu.dot_dimension_numbers<[1], [0], [0], [1], [0, 0, 1, 1], [], []>} : vector<128x128xbf16>, vector<128x384xbf16>, vector<128x384xf32> -> vector<128x384xf32>
    %c0_14 = arith.constant 0 : index
    %c0_15 = arith.constant 0 : index
    %35 = vector.load %arg5[%c0_14, %c0_15] : memref<1x384xf32, #tpu.memory_space<vmem>>, vector<1x384xf32>
    %36 = vector.broadcast %35 : vector<1x384xf32> to vector<128x384xf32>
    %37 = arith.addf %34, %36 : vector<128x384xf32>
    %38 = vector.extract_strided_slice %37 {offsets = [0, 0], sizes = [128, 128], strides = [1, 1]} : vector<128x384xf32> to vector<128x128xf32>
    %39 = arith.truncf %38 : vector<128x128xf32> to vector<128x128xbf16>
    %40 = vector.shape_cast %39 : vector<128x128xbf16> to vector<8x16x128xbf16>
    %41 = vector.extract_strided_slice %37 {offsets = [0, 128], sizes = [128, 128], strides = [1, 1]} : vector<128x384xf32> to vector<128x128xf32>
    %42 = arith.truncf %41 : vector<128x128xf32> to vector<128x128xbf16>
    %43 = vector.shape_cast %42 : vector<128x128xbf16> to vector<8x16x128xbf16>
    %44 = vector.extract_strided_slice %37 {offsets = [0, 256], sizes = [128, 128], strides = [1, 1]} : vector<128x384xf32> to vector<128x128xf32>
    %45 = arith.truncf %44 : vector<128x128xf32> to vector<128x128xbf16>
    %46 = vector.shape_cast %45 : vector<128x128xbf16> to vector<8x16x128xbf16>
    %cst_16 = arith.constant 0.000000e+00 : f32
    %47 = vector.broadcast %cst_16 : f32 to vector<8x16x16xf32>
    %cst_17 = arith.constant 0.000000e+00 : f32
    %48 = vector.broadcast %cst_17 : f32 to vector<128x128xf32>
    %49 = vector.extract_strided_slice %40 {offsets = [0, 0, 0], sizes = [8, 16, 16], strides = [1, 1, 1]} : vector<8x16x128xbf16> to vector<8x16x16xbf16>
    %50 = vector.extract_strided_slice %43 {offsets = [0, 0, 0], sizes = [8, 16, 16], strides = [1, 1, 1]} : vector<8x16x128xbf16> to vector<8x16x16xbf16>
    %51 = vector.extract_strided_slice %46 {offsets = [0, 0, 0], sizes = [8, 16, 16], strides = [1, 1, 1]} : vector<8x16x128xbf16> to vector<8x16x16xbf16>
    "tpu.trace_start"() <{level = 10 : i32, message = "bqd,bkd->bqk"}> : () -> ()
    %cst_18 = arith.constant dense<0.000000e+00> : vector<8x16x16xf32>
    %52 = tpu.matmul %49, %50, %cst_18 {dimension_numbers = #tpu.dot_dimension_numbers<[2], [2], [1], [1], [0, 0, 0, 1, 1, 1], [0], [0]>} : vector<8x16x16xbf16>, vector<8x16x16xbf16>, vector<8x16x16xf32> -> vector<8x16x16xf32>
    "tpu.trace_stop"() : () -> ()
    %cst_19 = arith.constant dense<0xFF800000> : vector<8x16xf32>
    %53 = vector.multi_reduction <maximumf>, %52, %cst_19 [2] : vector<8x16x16xf32> to vector<8x16xf32>
    %54 = vector.shape_cast %53 : vector<8x16xf32> to vector<8x16x1xf32>
    %55 = vector.broadcast %54 : vector<8x16x1xf32> to vector<8x16x16xf32>
    %56 = arith.subf %52, %55 : vector<8x16x16xf32>
    %57 = math.exp %56 : vector<8x16x16xf32>
    %cst_20 = arith.constant dense<0.000000e+00> : vector<8x16xf32>
    %58 = vector.multi_reduction <add>, %57, %cst_20 [2] : vector<8x16x16xf32> to vector<8x16xf32>
    %59 = vector.shape_cast %58 : vector<8x16xf32> to vector<8x16x1xf32>
    %60 = tpu.reciprocal %59 {approx = true} : vector<8x16x1xf32> -> vector<8x16x1xf32>
    %61 = vector.broadcast %60 : vector<8x16x1xf32> to vector<8x16x16xf32>
    %62 = arith.mulf %57, %61 : vector<8x16x16xf32>
    %63 = arith.addf %47, %62 : vector<8x16x16xf32>
    %64 = arith.truncf %62 : vector<8x16x16xf32> to vector<8x16x16xbf16>
    "tpu.trace_start"() <{level = 10 : i32, message = "bqk,bkd->bqd"}> : () -> ()
    %cst_21 = arith.constant dense<0.000000e+00> : vector<8x16x16xf32>
    %65 = tpu.matmul %64, %51, %cst_21 {dimension_numbers = #tpu.dot_dimension_numbers<[2], [1], [1], [2], [0, 0, 0, 1, 1, 2], [0], [0]>} : vector<8x16x16xbf16>, vector<8x16x16xbf16>, vector<8x16x16xf32> -> vector<8x16x16xf32>
    "tpu.trace_stop"() : () -> ()
    %66 = vector.shape_cast %65 : vector<8x16x16xf32> to vector<128x16xf32>
    %67 = arith.truncf %66 : vector<128x16xf32> to vector<128x16xbf16>
    %c0_22 = arith.constant 0 : index
    %c0_23 = arith.constant 0 : index
    %c0_24 = arith.constant 0 : index
    %68 = vector.load %arg6[%c0_22, %c0_23, %c0_24] : memref<8x16x128xbf16, #tpu.memory_space<vmem>>, vector<1x16x128xbf16>
    %69 = vector.shape_cast %68 : vector<1x16x128xbf16> to vector<16x128xbf16>
    %cst_25 = arith.constant dense<0.000000e+00> : vector<128x128xf32>
    %70 = tpu.matmul %67, %69, %cst_25 {dimension_numbers = #tpu.dot_dimension_numbers<[1], [0], [0], [1], [0, 0, 1, 1], [], []>} : vector<128x16xbf16>, vector<16x128xbf16>, vector<128x128xf32> -> vector<128x128xf32>
    %71 = arith.addf %48, %70 : vector<128x128xf32>
    %72 = vector.extract_strided_slice %40 {offsets = [0, 0, 16], sizes = [8, 16, 16], strides = [1, 1, 1]} : vector<8x16x128xbf16> to vector<8x16x16xbf16>
    %73 = vector.extract_strided_slice %43 {offsets = [0, 0, 16], sizes = [8, 16, 16], strides = [1, 1, 1]} : vector<8x16x128xbf16> to vector<8x16x16xbf16>
    %74 = vector.extract_strided_slice %46 {offsets = [0, 0, 16], sizes = [8, 16, 16], strides = [1, 1, 1]} : vector<8x16x128xbf16> to vector<8x16x16xbf16>
    "tpu.trace_start"() <{level = 10 : i32, message = "bqd,bkd->bqk"}> : () -> ()
    %cst_26 = arith.constant dense<0.000000e+00> : vector<8x16x16xf32>
    %75 = tpu.matmul %72, %73, %cst_26 {dimension_numbers = #tpu.dot_dimension_numbers<[2], [2], [1], [1], [0, 0, 0, 1, 1, 1], [0], [0]>} : vector<8x16x16xbf16>, vector<8x16x16xbf16>, vector<8x16x16xf32> -> vector<8x16x16xf32>
    "tpu.trace_stop"() : () -> ()
    %cst_27 = arith.constant dense<0xFF800000> : vector<8x16xf32>
    %76 = vector.multi_reduction <maximumf>, %75, %cst_27 [2] : vector<8x16x16xf32> to vector<8x16xf32>
    %77 = vector.shape_cast %76 : vector<8x16xf32> to vector<8x16x1xf32>
    %78 = vector.broadcast %77 : vector<8x16x1xf32> to vector<8x16x16xf32>
    %79 = arith.subf %75, %78 : vector<8x16x16xf32>
    %80 = math.exp %79 : vector<8x16x16xf32>
    %cst_28 = arith.constant dense<0.000000e+00> : vector<8x16xf32>
    %81 = vector.multi_reduction <add>, %80, %cst_28 [2] : vector<8x16x16xf32> to vector<8x16xf32>
    %82 = vector.shape_cast %81 : vector<8x16xf32> to vector<8x16x1xf32>
    %83 = tpu.reciprocal %82 {approx = true} : vector<8x16x1xf32> -> vector<8x16x1xf32>
    %84 = vector.broadcast %83 : vector<8x16x1xf32> to vector<8x16x16xf32>
    %85 = arith.mulf %80, %84 : vector<8x16x16xf32>
    %86 = arith.addf %63, %85 : vector<8x16x16xf32>
    %87 = arith.truncf %85 : vector<8x16x16xf32> to vector<8x16x16xbf16>
    "tpu.trace_start"() <{level = 10 : i32, message = "bqk,bkd->bqd"}> : () -> ()
    %cst_29 = arith.constant dense<0.000000e+00> : vector<8x16x16xf32>
    %88 = tpu.matmul %87, %74, %cst_29 {dimension_numbers = #tpu.dot_dimension_numbers<[2], [1], [1], [2], [0, 0, 0, 1, 1, 2], [0], [0]>} : vector<8x16x16xbf16>, vector<8x16x16xbf16>, vector<8x16x16xf32> -> vector<8x16x16xf32>
    "tpu.trace_stop"() : () -> ()
    %89 = vector.shape_cast %88 : vector<8x16x16xf32> to vector<128x16xf32>
    %90 = arith.truncf %89 : vector<128x16xf32> to vector<128x16xbf16>
    %c1 = arith.constant 1 : index
    %c0_30 = arith.constant 0 : index
    %c0_31 = arith.constant 0 : index
    %91 = vector.load %arg6[%c1, %c0_30, %c0_31] : memref<8x16x128xbf16, #tpu.memory_space<vmem>>, vector<1x16x128xbf16>
    %92 = vector.shape_cast %91 : vector<1x16x128xbf16> to vector<16x128xbf16>
    %cst_32 = arith.constant dense<0.000000e+00> : vector<128x128xf32>
    %93 = tpu.matmul %90, %92, %cst_32 {dimension_numbers = #tpu.dot_dimension_numbers<[1], [0], [0], [1], [0, 0, 1, 1], [], []>} : vector<128x16xbf16>, vector<16x128xbf16>, vector<128x128xf32> -> vector<128x128xf32>
    %94 = arith.addf %71, %93 : vector<128x128xf32>
    %95 = vector.extract_strided_slice %40 {offsets = [0, 0, 32], sizes = [8, 16, 16], strides = [1, 1, 1]} : vector<8x16x128xbf16> to vector<8x16x16xbf16>
    %96 = vector.extract_strided_slice %43 {offsets = [0, 0, 32], sizes = [8, 16, 16], strides = [1, 1, 1]} : vector<8x16x128xbf16> to vector<8x16x16xbf16>
    %97 = vector.extract_strided_slice %46 {offsets = [0, 0, 32], sizes = [8, 16, 16], strides = [1, 1, 1]} : vector<8x16x128xbf16> to vector<8x16x16xbf16>
    "tpu.trace_start"() <{level = 10 : i32, message = "bqd,bkd->bqk"}> : () -> ()
    %cst_33 = arith.constant dense<0.000000e+00> : vector<8x16x16xf32>
    %98 = tpu.matmul %95, %96, %cst_33 {dimension_numbers = #tpu.dot_dimension_numbers<[2], [2], [1], [1], [0, 0, 0, 1, 1, 1], [0], [0]>} : vector<8x16x16xbf16>, vector<8x16x16xbf16>, vector<8x16x16xf32> -> vector<8x16x16xf32>
    "tpu.trace_stop"() : () -> ()
    %cst_34 = arith.constant dense<0xFF800000> : vector<8x16xf32>
    %99 = vector.multi_reduction <maximumf>, %98, %cst_34 [2] : vector<8x16x16xf32> to vector<8x16xf32>
    %100 = vector.shape_cast %99 : vector<8x16xf32> to vector<8x16x1xf32>
    %101 = vector.broadcast %100 : vector<8x16x1xf32> to vector<8x16x16xf32>
    %102 = arith.subf %98, %101 : vector<8x16x16xf32>
    %103 = math.exp %102 : vector<8x16x16xf32>
    %cst_35 = arith.constant dense<0.000000e+00> : vector<8x16xf32>
    %104 = vector.multi_reduction <add>, %103, %cst_35 [2] : vector<8x16x16xf32> to vector<8x16xf32>
    %105 = vector.shape_cast %104 : vector<8x16xf32> to vector<8x16x1xf32>
    %106 = tpu.reciprocal %105 {approx = true} : vector<8x16x1xf32> -> vector<8x16x1xf32>
    %107 = vector.broadcast %106 : vector<8x16x1xf32> to vector<8x16x16xf32>
    %108 = arith.mulf %103, %107 : vector<8x16x16xf32>
    %109 = arith.addf %86, %108 : vector<8x16x16xf32>
    %110 = arith.truncf %108 : vector<8x16x16xf32> to vector<8x16x16xbf16>
    "tpu.trace_start"() <{level = 10 : i32, message = "bqk,bkd->bqd"}> : () -> ()
    %cst_36 = arith.constant dense<0.000000e+00> : vector<8x16x16xf32>
    %111 = tpu.matmul %110, %97, %cst_36 {dimension_numbers = #tpu.dot_dimension_numbers<[2], [1], [1], [2], [0, 0, 0, 1, 1, 2], [0], [0]>} : vector<8x16x16xbf16>, vector<8x16x16xbf16>, vector<8x16x16xf32> -> vector<8x16x16xf32>
    "tpu.trace_stop"() : () -> ()
    %112 = vector.shape_cast %111 : vector<8x16x16xf32> to vector<128x16xf32>
    %113 = arith.truncf %112 : vector<128x16xf32> to vector<128x16xbf16>
    %c2 = arith.constant 2 : index
    %c0_37 = arith.constant 0 : index
    %c0_38 = arith.constant 0 : index
    %114 = vector.load %arg6[%c2, %c0_37, %c0_38] : memref<8x16x128xbf16, #tpu.memory_space<vmem>>, vector<1x16x128xbf16>
    %115 = vector.shape_cast %114 : vector<1x16x128xbf16> to vector<16x128xbf16>
    %cst_39 = arith.constant dense<0.000000e+00> : vector<128x128xf32>
    %116 = tpu.matmul %113, %115, %cst_39 {dimension_numbers = #tpu.dot_dimension_numbers<[1], [0], [0], [1], [0, 0, 1, 1], [], []>} : vector<128x16xbf16>, vector<16x128xbf16>, vector<128x128xf32> -> vector<128x128xf32>
    %117 = arith.addf %94, %116 : vector<128x128xf32>
    %118 = vector.extract_strided_slice %40 {offsets = [0, 0, 48], sizes = [8, 16, 16], strides = [1, 1, 1]} : vector<8x16x128xbf16> to vector<8x16x16xbf16>
    %119 = vector.extract_strided_slice %43 {offsets = [0, 0, 48], sizes = [8, 16, 16], strides = [1, 1, 1]} : vector<8x16x128xbf16> to vector<8x16x16xbf16>
    %120 = vector.extract_strided_slice %46 {offsets = [0, 0, 48], sizes = [8, 16, 16], strides = [1, 1, 1]} : vector<8x16x128xbf16> to vector<8x16x16xbf16>
    "tpu.trace_start"() <{level = 10 : i32, message = "bqd,bkd->bqk"}> : () -> ()
    %cst_40 = arith.constant dense<0.000000e+00> : vector<8x16x16xf32>
    %121 = tpu.matmul %118, %119, %cst_40 {dimension_numbers = #tpu.dot_dimension_numbers<[2], [2], [1], [1], [0, 0, 0, 1, 1, 1], [0], [0]>} : vector<8x16x16xbf16>, vector<8x16x16xbf16>, vector<8x16x16xf32> -> vector<8x16x16xf32>
    "tpu.trace_stop"() : () -> ()
    %cst_41 = arith.constant dense<0xFF800000> : vector<8x16xf32>
    %122 = vector.multi_reduction <maximumf>, %121, %cst_41 [2] : vector<8x16x16xf32> to vector<8x16xf32>
    %123 = vector.shape_cast %122 : vector<8x16xf32> to vector<8x16x1xf32>
    %124 = vector.broadcast %123 : vector<8x16x1xf32> to vector<8x16x16xf32>
    %125 = arith.subf %121, %124 : vector<8x16x16xf32>
    %126 = math.exp %125 : vector<8x16x16xf32>
    %cst_42 = arith.constant dense<0.000000e+00> : vector<8x16xf32>
    %127 = vector.multi_reduction <add>, %126, %cst_42 [2] : vector<8x16x16xf32> to vector<8x16xf32>
    %128 = vector.shape_cast %127 : vector<8x16xf32> to vector<8x16x1xf32>
    %129 = tpu.reciprocal %128 {approx = true} : vector<8x16x1xf32> -> vector<8x16x1xf32>
    %130 = vector.broadcast %129 : vector<8x16x1xf32> to vector<8x16x16xf32>
    %131 = arith.mulf %126, %130 : vector<8x16x16xf32>
    %132 = arith.addf %109, %131 : vector<8x16x16xf32>
    %133 = arith.truncf %131 : vector<8x16x16xf32> to vector<8x16x16xbf16>
    "tpu.trace_start"() <{level = 10 : i32, message = "bqk,bkd->bqd"}> : () -> ()
    %cst_43 = arith.constant dense<0.000000e+00> : vector<8x16x16xf32>
    %134 = tpu.matmul %133, %120, %cst_43 {dimension_numbers = #tpu.dot_dimension_numbers<[2], [1], [1], [2], [0, 0, 0, 1, 1, 2], [0], [0]>} : vector<8x16x16xbf16>, vector<8x16x16xbf16>, vector<8x16x16xf32> -> vector<8x16x16xf32>
    "tpu.trace_stop"() : () -> ()
    %135 = vector.shape_cast %134 : vector<8x16x16xf32> to vector<128x16xf32>
    %136 = arith.truncf %135 : vector<128x16xf32> to vector<128x16xbf16>
    %c3 = arith.constant 3 : index
    %c0_44 = arith.constant 0 : index
    %c0_45 = arith.constant 0 : index
    %137 = vector.load %arg6[%c3, %c0_44, %c0_45] : memref<8x16x128xbf16, #tpu.memory_space<vmem>>, vector<1x16x128xbf16>
    %138 = vector.shape_cast %137 : vector<1x16x128xbf16> to vector<16x128xbf16>
    %cst_46 = arith.constant dense<0.000000e+00> : vector<128x128xf32>
    %139 = tpu.matmul %136, %138, %cst_46 {dimension_numbers = #tpu.dot_dimension_numbers<[1], [0], [0], [1], [0, 0, 1, 1], [], []>} : vector<128x16xbf16>, vector<16x128xbf16>, vector<128x128xf32> -> vector<128x128xf32>
    %140 = arith.addf %117, %139 : vector<128x128xf32>
    %141 = vector.extract_strided_slice %40 {offsets = [0, 0, 64], sizes = [8, 16, 16], strides = [1, 1, 1]} : vector<8x16x128xbf16> to vector<8x16x16xbf16>
    %142 = vector.extract_strided_slice %43 {offsets = [0, 0, 64], sizes = [8, 16, 16], strides = [1, 1, 1]} : vector<8x16x128xbf16> to vector<8x16x16xbf16>
    %143 = vector.extract_strided_slice %46 {offsets = [0, 0, 64], sizes = [8, 16, 16], strides = [1, 1, 1]} : vector<8x16x128xbf16> to vector<8x16x16xbf16>
    "tpu.trace_start"() <{level = 10 : i32, message = "bqd,bkd->bqk"}> : () -> ()
    %cst_47 = arith.constant dense<0.000000e+00> : vector<8x16x16xf32>
    %144 = tpu.matmul %141, %142, %cst_47 {dimension_numbers = #tpu.dot_dimension_numbers<[2], [2], [1], [1], [0, 0, 0, 1, 1, 1], [0], [0]>} : vector<8x16x16xbf16>, vector<8x16x16xbf16>, vector<8x16x16xf32> -> vector<8x16x16xf32>
    "tpu.trace_stop"() : () -> ()
    %cst_48 = arith.constant dense<0xFF800000> : vector<8x16xf32>
    %145 = vector.multi_reduction <maximumf>, %144, %cst_48 [2] : vector<8x16x16xf32> to vector<8x16xf32>
    %146 = vector.shape_cast %145 : vector<8x16xf32> to vector<8x16x1xf32>
    %147 = vector.broadcast %146 : vector<8x16x1xf32> to vector<8x16x16xf32>
    %148 = arith.subf %144, %147 : vector<8x16x16xf32>
    %149 = math.exp %148 : vector<8x16x16xf32>
    %cst_49 = arith.constant dense<0.000000e+00> : vector<8x16xf32>
    %150 = vector.multi_reduction <add>, %149, %cst_49 [2] : vector<8x16x16xf32> to vector<8x16xf32>
    %151 = vector.shape_cast %150 : vector<8x16xf32> to vector<8x16x1xf32>
    %152 = tpu.reciprocal %151 {approx = true} : vector<8x16x1xf32> -> vector<8x16x1xf32>
    %153 = vector.broadcast %152 : vector<8x16x1xf32> to vector<8x16x16xf32>
    %154 = arith.mulf %149, %153 : vector<8x16x16xf32>
    %155 = arith.addf %132, %154 : vector<8x16x16xf32>
    %156 = arith.truncf %154 : vector<8x16x16xf32> to vector<8x16x16xbf16>
    "tpu.trace_start"() <{level = 10 : i32, message = "bqk,bkd->bqd"}> : () -> ()
    %cst_50 = arith.constant dense<0.000000e+00> : vector<8x16x16xf32>
    %157 = tpu.matmul %156, %143, %cst_50 {dimension_numbers = #tpu.dot_dimension_numbers<[2], [1], [1], [2], [0, 0, 0, 1, 1, 2], [0], [0]>} : vector<8x16x16xbf16>, vector<8x16x16xbf16>, vector<8x16x16xf32> -> vector<8x16x16xf32>
    "tpu.trace_stop"() : () -> ()
    %158 = vector.shape_cast %157 : vector<8x16x16xf32> to vector<128x16xf32>
    %159 = arith.truncf %158 : vector<128x16xf32> to vector<128x16xbf16>
    %c4 = arith.constant 4 : index
    %c0_51 = arith.constant 0 : index
    %c0_52 = arith.constant 0 : index
    %160 = vector.load %arg6[%c4, %c0_51, %c0_52] : memref<8x16x128xbf16, #tpu.memory_space<vmem>>, vector<1x16x128xbf16>
    %161 = vector.shape_cast %160 : vector<1x16x128xbf16> to vector<16x128xbf16>
    %cst_53 = arith.constant dense<0.000000e+00> : vector<128x128xf32>
    %162 = tpu.matmul %159, %161, %cst_53 {dimension_numbers = #tpu.dot_dimension_numbers<[1], [0], [0], [1], [0, 0, 1, 1], [], []>} : vector<128x16xbf16>, vector<16x128xbf16>, vector<128x128xf32> -> vector<128x128xf32>
    %163 = arith.addf %140, %162 : vector<128x128xf32>
    %164 = vector.extract_strided_slice %40 {offsets = [0, 0, 80], sizes = [8, 16, 16], strides = [1, 1, 1]} : vector<8x16x128xbf16> to vector<8x16x16xbf16>
    %165 = vector.extract_strided_slice %43 {offsets = [0, 0, 80], sizes = [8, 16, 16], strides = [1, 1, 1]} : vector<8x16x128xbf16> to vector<8x16x16xbf16>
    %166 = vector.extract_strided_slice %46 {offsets = [0, 0, 80], sizes = [8, 16, 16], strides = [1, 1, 1]} : vector<8x16x128xbf16> to vector<8x16x16xbf16>
    "tpu.trace_start"() <{level = 10 : i32, message = "bqd,bkd->bqk"}> : () -> ()
    %cst_54 = arith.constant dense<0.000000e+00> : vector<8x16x16xf32>
    %167 = tpu.matmul %164, %165, %cst_54 {dimension_numbers = #tpu.dot_dimension_numbers<[2], [2], [1], [1], [0, 0, 0, 1, 1, 1], [0], [0]>} : vector<8x16x16xbf16>, vector<8x16x16xbf16>, vector<8x16x16xf32> -> vector<8x16x16xf32>
    "tpu.trace_stop"() : () -> ()
    %cst_55 = arith.constant dense<0xFF800000> : vector<8x16xf32>
    %168 = vector.multi_reduction <maximumf>, %167, %cst_55 [2] : vector<8x16x16xf32> to vector<8x16xf32>
    %169 = vector.shape_cast %168 : vector<8x16xf32> to vector<8x16x1xf32>
    %170 = vector.broadcast %169 : vector<8x16x1xf32> to vector<8x16x16xf32>
    %171 = arith.subf %167, %170 : vector<8x16x16xf32>
    %172 = math.exp %171 : vector<8x16x16xf32>
    %cst_56 = arith.constant dense<0.000000e+00> : vector<8x16xf32>
    %173 = vector.multi_reduction <add>, %172, %cst_56 [2] : vector<8x16x16xf32> to vector<8x16xf32>
    %174 = vector.shape_cast %173 : vector<8x16xf32> to vector<8x16x1xf32>
    %175 = tpu.reciprocal %174 {approx = true} : vector<8x16x1xf32> -> vector<8x16x1xf32>
    %176 = vector.broadcast %175 : vector<8x16x1xf32> to vector<8x16x16xf32>
    %177 = arith.mulf %172, %176 : vector<8x16x16xf32>
    %178 = arith.addf %155, %177 : vector<8x16x16xf32>
    %179 = arith.truncf %177 : vector<8x16x16xf32> to vector<8x16x16xbf16>
    "tpu.trace_start"() <{level = 10 : i32, message = "bqk,bkd->bqd"}> : () -> ()
    %cst_57 = arith.constant dense<0.000000e+00> : vector<8x16x16xf32>
    %180 = tpu.matmul %179, %166, %cst_57 {dimension_numbers = #tpu.dot_dimension_numbers<[2], [1], [1], [2], [0, 0, 0, 1, 1, 2], [0], [0]>} : vector<8x16x16xbf16>, vector<8x16x16xbf16>, vector<8x16x16xf32> -> vector<8x16x16xf32>
    "tpu.trace_stop"() : () -> ()
    %181 = vector.shape_cast %180 : vector<8x16x16xf32> to vector<128x16xf32>
    %182 = arith.truncf %181 : vector<128x16xf32> to vector<128x16xbf16>
    %c5 = arith.constant 5 : index
    %c0_58 = arith.constant 0 : index
    %c0_59 = arith.constant 0 : index
    %183 = vector.load %arg6[%c5, %c0_58, %c0_59] : memref<8x16x128xbf16, #tpu.memory_space<vmem>>, vector<1x16x128xbf16>
    %184 = vector.shape_cast %183 : vector<1x16x128xbf16> to vector<16x128xbf16>
    %cst_60 = arith.constant dense<0.000000e+00> : vector<128x128xf32>
    %185 = tpu.matmul %182, %184, %cst_60 {dimension_numbers = #tpu.dot_dimension_numbers<[1], [0], [0], [1], [0, 0, 1, 1], [], []>} : vector<128x16xbf16>, vector<16x128xbf16>, vector<128x128xf32> -> vector<128x128xf32>
    %186 = arith.addf %163, %185 : vector<128x128xf32>
    %187 = vector.extract_strided_slice %40 {offsets = [0, 0, 96], sizes = [8, 16, 16], strides = [1, 1, 1]} : vector<8x16x128xbf16> to vector<8x16x16xbf16>
    %188 = vector.extract_strided_slice %43 {offsets = [0, 0, 96], sizes = [8, 16, 16], strides = [1, 1, 1]} : vector<8x16x128xbf16> to vector<8x16x16xbf16>
    %189 = vector.extract_strided_slice %46 {offsets = [0, 0, 96], sizes = [8, 16, 16], strides = [1, 1, 1]} : vector<8x16x128xbf16> to vector<8x16x16xbf16>
    "tpu.trace_start"() <{level = 10 : i32, message = "bqd,bkd->bqk"}> : () -> ()
    %cst_61 = arith.constant dense<0.000000e+00> : vector<8x16x16xf32>
    %190 = tpu.matmul %187, %188, %cst_61 {dimension_numbers = #tpu.dot_dimension_numbers<[2], [2], [1], [1], [0, 0, 0, 1, 1, 1], [0], [0]>} : vector<8x16x16xbf16>, vector<8x16x16xbf16>, vector<8x16x16xf32> -> vector<8x16x16xf32>
    "tpu.trace_stop"() : () -> ()
    %cst_62 = arith.constant dense<0xFF800000> : vector<8x16xf32>
    %191 = vector.multi_reduction <maximumf>, %190, %cst_62 [2] : vector<8x16x16xf32> to vector<8x16xf32>
    %192 = vector.shape_cast %191 : vector<8x16xf32> to vector<8x16x1xf32>
    %193 = vector.broadcast %192 : vector<8x16x1xf32> to vector<8x16x16xf32>
    %194 = arith.subf %190, %193 : vector<8x16x16xf32>
    %195 = math.exp %194 : vector<8x16x16xf32>
    %cst_63 = arith.constant dense<0.000000e+00> : vector<8x16xf32>
    %196 = vector.multi_reduction <add>, %195, %cst_63 [2] : vector<8x16x16xf32> to vector<8x16xf32>
    %197 = vector.shape_cast %196 : vector<8x16xf32> to vector<8x16x1xf32>
    %198 = tpu.reciprocal %197 {approx = true} : vector<8x16x1xf32> -> vector<8x16x1xf32>
    %199 = vector.broadcast %198 : vector<8x16x1xf32> to vector<8x16x16xf32>
    %200 = arith.mulf %195, %199 : vector<8x16x16xf32>
    %201 = arith.addf %178, %200 : vector<8x16x16xf32>
    %202 = arith.truncf %200 : vector<8x16x16xf32> to vector<8x16x16xbf16>
    "tpu.trace_start"() <{level = 10 : i32, message = "bqk,bkd->bqd"}> : () -> ()
    %cst_64 = arith.constant dense<0.000000e+00> : vector<8x16x16xf32>
    %203 = tpu.matmul %202, %189, %cst_64 {dimension_numbers = #tpu.dot_dimension_numbers<[2], [1], [1], [2], [0, 0, 0, 1, 1, 2], [0], [0]>} : vector<8x16x16xbf16>, vector<8x16x16xbf16>, vector<8x16x16xf32> -> vector<8x16x16xf32>
    "tpu.trace_stop"() : () -> ()
    %204 = vector.shape_cast %203 : vector<8x16x16xf32> to vector<128x16xf32>
    %205 = arith.truncf %204 : vector<128x16xf32> to vector<128x16xbf16>
    %c6 = arith.constant 6 : index
    %c0_65 = arith.constant 0 : index
    %c0_66 = arith.constant 0 : index
    %206 = vector.load %arg6[%c6, %c0_65, %c0_66] : memref<8x16x128xbf16, #tpu.memory_space<vmem>>, vector<1x16x128xbf16>
    %207 = vector.shape_cast %206 : vector<1x16x128xbf16> to vector<16x128xbf16>
    %cst_67 = arith.constant dense<0.000000e+00> : vector<128x128xf32>
    %208 = tpu.matmul %205, %207, %cst_67 {dimension_numbers = #tpu.dot_dimension_numbers<[1], [0], [0], [1], [0, 0, 1, 1], [], []>} : vector<128x16xbf16>, vector<16x128xbf16>, vector<128x128xf32> -> vector<128x128xf32>
    %209 = arith.addf %186, %208 : vector<128x128xf32>
    %210 = vector.extract_strided_slice %40 {offsets = [0, 0, 112], sizes = [8, 16, 16], strides = [1, 1, 1]} : vector<8x16x128xbf16> to vector<8x16x16xbf16>
    %211 = vector.extract_strided_slice %43 {offsets = [0, 0, 112], sizes = [8, 16, 16], strides = [1, 1, 1]} : vector<8x16x128xbf16> to vector<8x16x16xbf16>
    %212 = vector.extract_strided_slice %46 {offsets = [0, 0, 112], sizes = [8, 16, 16], strides = [1, 1, 1]} : vector<8x16x128xbf16> to vector<8x16x16xbf16>
    "tpu.trace_start"() <{level = 10 : i32, message = "bqd,bkd->bqk"}> : () -> ()
    %cst_68 = arith.constant dense<0.000000e+00> : vector<8x16x16xf32>
    %213 = tpu.matmul %210, %211, %cst_68 {dimension_numbers = #tpu.dot_dimension_numbers<[2], [2], [1], [1], [0, 0, 0, 1, 1, 1], [0], [0]>} : vector<8x16x16xbf16>, vector<8x16x16xbf16>, vector<8x16x16xf32> -> vector<8x16x16xf32>
    "tpu.trace_stop"() : () -> ()
    %cst_69 = arith.constant dense<0xFF800000> : vector<8x16xf32>
    %214 = vector.multi_reduction <maximumf>, %213, %cst_69 [2] : vector<8x16x16xf32> to vector<8x16xf32>
    %215 = vector.shape_cast %214 : vector<8x16xf32> to vector<8x16x1xf32>
    %216 = vector.broadcast %215 : vector<8x16x1xf32> to vector<8x16x16xf32>
    %217 = arith.subf %213, %216 : vector<8x16x16xf32>
    %218 = math.exp %217 : vector<8x16x16xf32>
    %cst_70 = arith.constant dense<0.000000e+00> : vector<8x16xf32>
    %219 = vector.multi_reduction <add>, %218, %cst_70 [2] : vector<8x16x16xf32> to vector<8x16xf32>
    %220 = vector.shape_cast %219 : vector<8x16xf32> to vector<8x16x1xf32>
    %221 = tpu.reciprocal %220 {approx = true} : vector<8x16x1xf32> -> vector<8x16x1xf32>
    %222 = vector.broadcast %221 : vector<8x16x1xf32> to vector<8x16x16xf32>
    %223 = arith.mulf %218, %222 : vector<8x16x16xf32>
    %224 = arith.addf %201, %223 : vector<8x16x16xf32>
    %225 = arith.truncf %223 : vector<8x16x16xf32> to vector<8x16x16xbf16>
    "tpu.trace_start"() <{level = 10 : i32, message = "bqk,bkd->bqd"}> : () -> ()
    %cst_71 = arith.constant dense<0.000000e+00> : vector<8x16x16xf32>
    %226 = tpu.matmul %225, %212, %cst_71 {dimension_numbers = #tpu.dot_dimension_numbers<[2], [1], [1], [2], [0, 0, 0, 1, 1, 2], [0], [0]>} : vector<8x16x16xbf16>, vector<8x16x16xbf16>, vector<8x16x16xf32> -> vector<8x16x16xf32>
    "tpu.trace_stop"() : () -> ()
    %227 = vector.shape_cast %226 : vector<8x16x16xf32> to vector<128x16xf32>
    %228 = arith.truncf %227 : vector<128x16xf32> to vector<128x16xbf16>
    %c7 = arith.constant 7 : index
    %c0_72 = arith.constant 0 : index
    %c0_73 = arith.constant 0 : index
    %229 = vector.load %arg6[%c7, %c0_72, %c0_73] : memref<8x16x128xbf16, #tpu.memory_space<vmem>>, vector<1x16x128xbf16>
    %230 = vector.shape_cast %229 : vector<1x16x128xbf16> to vector<16x128xbf16>
    %cst_74 = arith.constant dense<0.000000e+00> : vector<128x128xf32>
    %231 = tpu.matmul %228, %230, %cst_74 {dimension_numbers = #tpu.dot_dimension_numbers<[1], [0], [0], [1], [0, 0, 1, 1], [], []>} : vector<128x16xbf16>, vector<16x128xbf16>, vector<128x128xf32> -> vector<128x128xf32>
    %232 = arith.addf %209, %231 : vector<128x128xf32>
    %cst_75 = arith.constant 1.250000e-01 : f32
    %233 = vector.broadcast %cst_75 : f32 to vector<8x16x16xf32>
    %234 = arith.mulf %224, %233 : vector<8x16x16xf32>
    %c0_76 = arith.constant 0 : index
    %c0_77 = arith.constant 0 : index
    %c0_78 = arith.constant 0 : index
    %235 = vector.load %arg15[%c0_76, %c0_77, %c0_78] : memref<8x16x16xf32, #tpu.memory_space<vmem>>, vector<8x16x16xf32>
    tpu.vector_store %arg15[%c0_76, %c0_77, %c0_78], %234 {strides = array<i32>} : memref<8x16x16xf32, #tpu.memory_space<vmem>>, vector<8x16x16xf32>,
    %c0_79 = arith.constant 0 : index
    %c0_80 = arith.constant 0 : index
    %236 = vector.load %arg7[%c0_79, %c0_80] : memref<1x128xf32, #tpu.memory_space<vmem>>, vector<1x128xf32>
    %237 = vector.broadcast %236 : vector<1x128xf32> to vector<128x128xf32>
    %238 = arith.addf %232, %237 : vector<128x128xf32>
    %239 = vector.shape_cast %238 : vector<128x128xf32> to vector<8x16x128xf32>
    %240 = arith.addf %0, %239 : vector<8x16x128xf32>
    %cst_81 = arith.constant dense<0.000000e+00> : vector<8x16xf32>
    %241 = vector.multi_reduction <add>, %240, %cst_81 [2] : vector<8x16x128xf32> to vector<8x16xf32>
    %242 = vector.shape_cast %241 : vector<8x16xf32> to vector<8x16x1xf32>
    %cst_82 = arith.constant 1.280000e+02 : f32
    %243 = vector.broadcast %cst_82 : f32 to vector<8x16x1xf32>
    %244 = arith.divf %242, %243 : vector<8x16x1xf32>
    %245 = vector.broadcast %244 : vector<8x16x1xf32> to vector<8x16x128xf32>
    %246 = arith.subf %240, %245 : vector<8x16x128xf32>
    %247 = vector.broadcast %244 : vector<8x16x1xf32> to vector<8x16x128xf32>
    %248 = arith.subf %240, %247 : vector<8x16x128xf32>
    %249 = arith.mulf %246, %248 : vector<8x16x128xf32>
    %cst_83 = arith.constant dense<0.000000e+00> : vector<8x16xf32>
    %250 = vector.multi_reduction <add>, %249, %cst_83 [2] : vector<8x16x128xf32> to vector<8x16xf32>
    %251 = vector.shape_cast %250 : vector<8x16xf32> to vector<8x16x1xf32>
    %cst_84 = arith.constant 1.280000e+02 : f32
    %252 = vector.broadcast %cst_84 : f32 to vector<8x16x1xf32>
    %253 = arith.divf %251, %252 : vector<8x16x1xf32>
    %254 = vector.broadcast %244 : vector<8x16x1xf32> to vector<8x16x128xf32>
    %255 = arith.subf %240, %254 : vector<8x16x128xf32>
    %cst_85 = arith.constant 9.99999974E-6 : f32
    %256 = vector.broadcast %cst_85 : f32 to vector<8x16x1xf32>
    %257 = arith.addf %253, %256 : vector<8x16x1xf32>
    %258 = math.rsqrt %257 : vector<8x16x1xf32>
    %259 = vector.broadcast %258 : vector<8x16x1xf32> to vector<8x16x128xf32>
    %260 = arith.mulf %255, %259 : vector<8x16x128xf32>
    %c0_86 = arith.constant 0 : index
    %c0_87 = arith.constant 0 : index
    %261 = vector.load %arg8[%c0_86, %c0_87] : memref<1x128xf32, #tpu.memory_space<vmem>>, vector<1x128xf32>
    %262 = vector.shape_cast %261 : vector<1x128xf32> to vector<1x1x128xf32>
    %263 = vector.broadcast %262 : vector<1x1x128xf32> to vector<8x16x128xf32>
    %264 = arith.mulf %260, %263 : vector<8x16x128xf32>
    %c0_88 = arith.constant 0 : index
    %c0_89 = arith.constant 0 : index
    %265 = vector.load %arg9[%c0_88, %c0_89] : memref<1x128xf32, #tpu.memory_space<vmem>>, vector<1x128xf32>
    %266 = vector.shape_cast %265 : vector<1x128xf32> to vector<1x1x128xf32>
    %267 = vector.broadcast %266 : vector<1x1x128xf32> to vector<8x16x128xf32>
    %268 = arith.addf %264, %267 : vector<8x16x128xf32>
    %269 = vector.shape_cast %268 : vector<8x16x128xf32> to vector<128x128xf32>
    %270 = arith.truncf %269 : vector<128x128xf32> to vector<128x128xbf16>
    %c0_90 = arith.constant 0 : index
    %c0_91 = arith.constant 0 : index
    %271 = vector.load %arg10[%c0_90, %c0_91] : memref<128x512xbf16, #tpu.memory_space<vmem>>, vector<128x512xbf16>
    %cst_92 = arith.constant dense<0.000000e+00> : vector<128x512xf32>
    %272 = tpu.matmul %270, %271, %cst_92 {dimension_numbers = #tpu.dot_dimension_numbers<[1], [0], [0], [1], [0, 0, 1, 1], [], []>} : vector<128x128xbf16>, vector<128x512xbf16>, vector<128x512xf32> -> vector<128x512xf32>
    %c0_93 = arith.constant 0 : index
    %c0_94 = arith.constant 0 : index
    %273 = vector.load %arg11[%c0_93, %c0_94] : memref<1x512xf32, #tpu.memory_space<vmem>>, vector<1x512xf32>
    %274 = vector.broadcast %273 : vector<1x512xf32> to vector<128x512xf32>
    %275 = arith.addf %272, %274 : vector<128x512xf32>
    %cst_95 = arith.constant 5.000000e-01 : f32
    %276 = vector.broadcast %cst_95 : f32 to vector<128x512xf32>
    %277 = arith.mulf %276, %275 : vector<128x512xf32>
    %cst_96 = arith.constant 4.471500e-02 : f32
    %278 = vector.broadcast %cst_96 : f32 to vector<128x512xf32>
    %279 = arith.mulf %278, %275 : vector<128x512xf32>
    %280 = arith.mulf %279, %275 : vector<128x512xf32>
    %281 = arith.mulf %280, %275 : vector<128x512xf32>
    %282 = arith.addf %275, %281 : vector<128x512xf32>
    %cst_97 = arith.constant 0.797884583 : f32
    %283 = vector.broadcast %cst_97 : f32 to vector<128x512xf32>
    %284 = arith.mulf %283, %282 : vector<128x512xf32>
    %285 = math.tanh %284 : vector<128x512xf32>
    %cst_98 = arith.constant 1.000000e+00 : f32
    %286 = vector.broadcast %cst_98 : f32 to vector<128x512xf32>
    %287 = arith.addf %286, %285 : vector<128x512xf32>
    %288 = arith.mulf %277, %287 : vector<128x512xf32>
    %289 = arith.truncf %288 : vector<128x512xf32> to vector<128x512xbf16>
    %c0_99 = arith.constant 0 : index
    %c0_100 = arith.constant 0 : index
    %290 = vector.load %arg12[%c0_99, %c0_100] : memref<512x128xbf16, #tpu.memory_space<vmem>>, vector<512x128xbf16>
    %cst_101 = arith.constant dense<0.000000e+00> : vector<128x128xf32>
    %291 = tpu.matmul %289, %290, %cst_101 {dimension_numbers = #tpu.dot_dimension_numbers<[1], [0], [0], [1], [0, 0, 1, 1], [], []>} : vector<128x512xbf16>, vector<512x128xbf16>, vector<128x128xf32> -> vector<128x128xf32>
    %c0_102 = arith.constant 0 : index
    %c0_103 = arith.constant 0 : index
    %292 = vector.load %arg13[%c0_102, %c0_103] : memref<1x128xf32, #tpu.memory_space<vmem>>, vector<1x128xf32>
    %293 = vector.broadcast %292 : vector<1x128xf32> to vector<128x128xf32>
    %294 = arith.addf %291, %293 : vector<128x128xf32>
    %295 = vector.shape_cast %294 : vector<128x128xf32> to vector<8x16x128xf32>
    %296 = arith.addf %240, %295 : vector<8x16x128xf32>
    %c0_104 = arith.constant 0 : index
    %c0_105 = arith.constant 0 : index
    %c0_106 = arith.constant 0 : index
    %297 = vector.load %arg14[%c0_104, %c0_105, %c0_106] : memref<8x16x128xf32, #tpu.memory_space<vmem>>, vector<8x16x128xf32>
    tpu.vector_store %arg14[%c0_104, %c0_105, %c0_106], %296 {strides = array<i32>} : memref<8x16x128xf32, #tpu.memory_space<vmem>>, vector<8x16x128xf32>,
    return
  }
  func.func @transform_0(%arg0: i32) -> (i32, i32) {
    %c0_i32 = arith.constant 0 : i32
    %c0_i32_0 = arith.constant 0 : i32
    return %arg0, %c0_i32 : i32, i32
  }
  func.func @transform_1(%arg0: i32) -> (i32, i32) {
    %c0_i32 = arith.constant 0 : i32
    %c0_i32_0 = arith.constant 0 : i32
    return %arg0, %c0_i32 : i32, i32
  }
  func.func @transform_2(%arg0: i32) -> (i32, i32, i32) {
    %c0_i32 = arith.constant 0 : i32
    %c0_i32_0 = arith.constant 0 : i32
    %c0_i32_1 = arith.constant 0 : i32
    return %arg0, %c0_i32, %c0_i32_0 : i32, i32, i32
  }
  func.func @transform_3(%arg0: i32) -> (i32, i32) {
    %c0_i32 = arith.constant 0 : i32
    %c0_i32_0 = arith.constant 0 : i32
    %c0_i32_1 = arith.constant 0 : i32
    return %c0_i32, %c0_i32_0 : i32, i32
  }
  func.func @transform_4(%arg0: i32) -> (i32, i32) {
    %c0_i32 = arith.constant 0 : i32
    %c0_i32_0 = arith.constant 0 : i32
    %c0_i32_1 = arith.constant 0 : i32
    return %c0_i32, %c0_i32_0 : i32, i32
  }
  func.func @transform_5(%arg0: i32) -> (i32, i32, i32) {
    %c0_i32 = arith.constant 0 : i32
    %c0_i32_0 = arith.constant 0 : i32
    %c0_i32_1 = arith.constant 0 : i32
    %c0_i32_2 = arith.constant 0 : i32
    return %c0_i32, %c0_i32_0, %c0_i32_1 : i32, i32, i32
  }
  func.func @transform_6(%arg0: i32) -> (i32, i32) {
    %c0_i32 = arith.constant 0 : i32
    %c0_i32_0 = arith.constant 0 : i32
    %c0_i32_1 = arith.constant 0 : i32
    return %c0_i32, %c0_i32_0 : i32, i32
  }
  func.func @transform_7(%arg0: i32) -> (i32, i32) {
    %c0_i32 = arith.constant 0 : i32
    %c0_i32_0 = arith.constant 0 : i32
    %c0_i32_1 = arith.constant 0 : i32
    return %c0_i32, %c0_i32_0 : i32, i32
  }
  func.func @transform_8(%arg0: i32) -> (i32, i32) {
    %c0_i32 = arith.constant 0 : i32
    %c0_i32_0 = arith.constant 0 : i32
    %c0_i32_1 = arith.constant 0 : i32
    return %c0_i32, %c0_i32_0 : i32, i32
  }
  func.func @transform_9(%arg0: i32) -> (i32, i32) {
    %c0_i32 = arith.constant 0 : i32
    %c0_i32_0 = arith.constant 0 : i32
    %c0_i32_1 = arith.constant 0 : i32
    return %c0_i32, %c0_i32_0 : i32, i32
  }
  func.func @transform_10(%arg0: i32) -> (i32, i32) {
    %c0_i32 = arith.constant 0 : i32
    %c0_i32_0 = arith.constant 0 : i32
    %c0_i32_1 = arith.constant 0 : i32
    return %c0_i32, %c0_i32_0 : i32, i32
  }
  func.func @transform_11(%arg0: i32) -> (i32, i32) {
    %c0_i32 = arith.constant 0 : i32
    %c0_i32_0 = arith.constant 0 : i32
    %c0_i32_1 = arith.constant 0 : i32
    return %c0_i32, %c0_i32_0 : i32, i32
  }
  func.func @transform_12(%arg0: i32) -> (i32, i32) {
    %c0_i32 = arith.constant 0 : i32
    %c0_i32_0 = arith.constant 0 : i32
    %c0_i32_1 = arith.constant 0 : i32
    return %c0_i32, %c0_i32_0 : i32, i32
  }
  func.func @transform_13(%arg0: i32) -> (i32, i32, i32) {
    %c0_i32 = arith.constant 0 : i32
    %c0_i32_0 = arith.constant 0 : i32
    %c0_i32_1 = arith.constant 0 : i32
    return %arg0, %c0_i32, %c0_i32_0 : i32, i32, i32
  }
  func.func @transform_14(%arg0: i32) -> (i32, i32, i32) {
    %c0_i32 = arith.constant 0 : i32
    %c0_i32_0 = arith.constant 0 : i32
    %c0_i32_1 = arith.constant 0 : i32
    return %arg0, %c0_i32, %c0_i32_0 : i32, i32, i32
  }
}

</mosaic_0001>

<bundles_post_ra>
// kernel: tpu_custom_call.1
= control target key start
LH: loop header
LB: loop body
LE: loop exit
PB: predicated region body
PF: predicated region fallthrough
CT: control target
= control target key end

     0   :  { %s20258_s0 = inlined_call_operand.hbm [shape: f32[16,128], index: 0, kind: input, shape index: {}]   ;;  %s20259_s1 = inlined_call_operand.hbm [shape: f32[16,128], index: 1, kind: input, shape index: {}]   ;;  %s20260_s2 = inlined_call_operand.hbm [shape: f32[16,16,128], index: 2, kind: input, shape index: {}]   ;;  %s20261_s3 = inlined_call_operand.hbm [shape: bf16[128,384], index: 3, kind: input, shape index: {}]   ;;  %s20262_s4 = inlined_call_operand.vmem [shape: f32[1,384], index: 4, kind: input, shape index: {}]   ;;  %s20263_s5 = inlined_call_operand.hbm [shape: bf16[8,16,128], index: 5, kind: input, shape index: {}]   ;;  %s20264_s6 = inlined_call_operand.vmem [shape: f32[1,128], index: 6, kind: input, shape index: {}]   ;;  %s20265_s7 = inlined_call_operand.vmem [shape: f32[1,128], index: 7, kind: input, shape index: {}]   ;;  %s20266_s8 = inlined_call_operand.vmem [shape: f32[1,128], index: 8, kind: input, shape index: {}]   ;;  %s20267_s9 = inlined_call_operand.hbm [shape: bf16[128,512], index: 9, kind: input, shape index: {}]   ;;  %s20268_s10 = inlined_call_operand.vmem [shape: f32[1,512], index: 10, kind: input, shape index: {}]   ;;  %s20269_s11 = inlined_call_operand.hbm [shape: bf16[512,128], index: 11, kind: input, shape index: {}]   ;;  %s20270_s12 = inlined_call_operand.vmem [shape: f32[1,128], index: 12, kind: input, shape index: {}]   ;;  %s20271_s13 = inlined_call_operand.hbm [shape: f32[16,16,128], index: 13, kind: output, shape index: {0}]   ;;  %s20272_s14 = inlined_call_operand.hbm [shape: f32[16,16,16], index: 14, kind: output, shape index: {1}]  }
   0x1   :  { %20398 = sst [smem:[#allocation80_spill]] %s20259_s1 }
   0x2   :  { %20399 = sst [smem:[#allocation81_spill]] %s20261_s3 }
   0x3   :  { %20400 = sst [smem:[#allocation82_spill]] %s20264_s6 }
   0x4   :  { %20401 = sst [smem:[#allocation83_spill]] %s20265_s7 }
   0x5   :  { %20402 = sst [smem:[#allocation84_spill]] %s20266_s8 }
   0x6   :  { %20403 = sst [smem:[#allocation85_spill]] %s20267_s9 }
   0x7   :  { %20404 = sst [smem:[#allocation86_spill]] %s20268_s10 }
   0x8   :  { %20405 = sst [smem:[#allocation87_spill]] %s20270_s12 }
   0x9   :  { %20406 = sst [smem:[#allocation88_spill]] %s20271_s13 }
   0xa   :  { %20407 = sst [smem:[#allocation89_spill]] %s20272_s14 }
   0xb   :  { %20 = vsyncpa [#allocation3], 0 }
   0xc   :  { %22 = vsyncpa [#allocation3 + $0x1], 0 }
   0xd   :  { %23 = vsyncpa [#allocation6], 0 }
   0xe   :  { %25 = vsyncpa [#allocation6 + $0x1], 0 }
   0xf   :  { %26 = vsyncpa [#allocation9], 0 }
  0x10   :  { %27 = vsyncpa [#allocation12], 0 }
  0x11   :  { %28 = vsyncpa [#allocation4], 0 }
  0x12   :  { %30 = vsyncpa [#allocation4 + $0x1], 0 }
  0x13   :  { %31 = vsyncpa [#allocation16], 0 }
  0x14   :  { %33 = vsyncpa [#allocation16 + $0x1], 0  ;;  %s15827_s29 = smov 0   ;;  %s15829_s30 = smov 0  }
  0x15   :  { %s15831_s15 = smov 0   ;;  %s15833_s16 = smov 0  }
  0x16 LB: > { %20408 = sst [smem:[#allocation23_spill]] %s15708_s29  ;;  %s15722_s17 = smov [#allocation8]   ;;  %s15720_s16 = sphi %s15833_s16, %s20651_s16   ;;  %s15716_s15 = sphi %s15831_s15, %s20653_s15   ;;  %s15712_s30 = sphi %s15829_s30, %s20655_s30   ;;  %s15708_s29 = sphi %s15827_s29, %s20654_s29  }
  0x17   : > { %20409 = sst [smem:[#allocation24_spill]] %s15716_s15  ;;  %s396_s18 = sshll.u32 %s15722_s17, 4  ;;  %s15853_s18 = int_to_ptr.vmem [resolvable:$true] %s396_s18 }
  0x18   : > { %s15848_s19 = sadd.s32 4294967295, %s15720_s16   ;;  %p12583_p0 = scmp.ge.s32.totalorder %s15720_s16, 1 }
  0x19   : > { %p20281_p1 = scmp.eq.s32.totalorder %s15848_s19, 0  ;;  %p384_p2 = scmp.lt.s32.totalorder %s15720_s16, 3 }
  0x1a   : > { %s15723_s21 = smov [#allocation11]   ;;  %s20412_s3 = sld [smem:[#allocation81_spill]] }
  0x1b   : > { %p15855_p3 = pnand %p12583_p0, %p384_p2  ;;  %s434_s22 = sshll.u32 %s15723_s21, 4  ;;  %s15868_s22 = int_to_ptr.vmem [resolvable:$true] %s434_s22 }
  0x1d   : > { %s20410_s20 = scalar_select %p15855_p3, 1, 0 }
  0x1e   : > { %p14469_p5 = pneg %p15855_p3 }
  0x20   : > { %p15864_p6 = pnand %p14469_p5, %p20281_p1  ;;  %s15408_s26 = scalar_lea.hbm %s20412_s3, 3072 }
  0x21   : > { %p15409_p7 = scmp.ne.s32.totalorder %s20412_s3, %s15408_s26  ;;  %p15415_p11 = scmp.lt.u32.totalorder %s15408_s26, %s20412_s3 }
  0x22   : > { %s20411_s23 = scalar_select %p15864_p6, 1, 0 }
  0x23   : > { %p15878_p8 = pneg %p15864_p6 }
  0x25   : > { %s20413_s17 = scalar_select %p15878_p8, 1, 0 }
  0x26   : > { %p15411_p9 = pnand %p15878_p8, %p15409_p7 }
  0x28   : > { %p15412_p10 = pneg %p15411_p9 }
  0x2a   : > { %p15417_p12 = pnand %p15415_p11, %p15412_p10 }
  0x2c   : > { %15420 = shalt.err (!%p15417_p12)
}
  0x2d   : > { %s15421_s24 = scalar_lea.vmem %s15853_s18, 3072  ;;  %p15429_p5 = scmp.lt.s32.totalorder %s15853_s18, %s15853_s18 }
  0x2e   : > { %p15422_p13 = scmp.ne.s32.totalorder %s15853_s18, %s15421_s24  ;;  %p15430_p4 = scmp.lt.s32.totalorder %s15421_s24, %s15421_s24 }
  0x30   : > { %p15424_p0 = pnand %p15422_p13, %p15878_p8  ;;  %p15431_p7 = por %p15430_p4, %p15429_p5 }
  0x32   : > { %p15425_p2 = pneg %p15424_p0 }
  0x34   : > { %p15432_p9 = pnand %p15431_p7, %p15425_p2 }
  0x36   : > { %15435 = shalt.err (!%p15432_p9)
}
  0x37   : > { %s15724_s25 = smov 192   ;;  %s15725_s13 = smov 12  }
  0x38   : > { %14472 = dma.hbm_to_vmem [thread:$0]  (!%p15864_p6), %s20412_s3, 3072, %s15853_s18, [#allocation9], %s15724_s25, %s15724_s25, %s15725_s13  }
  0x39   : > { %s20414_s9 = sld [smem:[#allocation85_spill]] }
  0x3f   : > { %s15436_s14 = scalar_lea.hbm %s20414_s9, 4096 }
  0x40   : > { %p15437_p4 = scmp.ne.s32.totalorder %s20414_s9, %s15436_s14  ;;  %p15443_p12 = scmp.lt.u32.totalorder %s15436_s14, %s20414_s9 }
  0x42   : > { %p15439_p10 = pnand %p15437_p4, %p15878_p8 }
  0x44   : > { %p15440_p11 = pneg %p15439_p10 }
  0x46   : > { %p15445_p13 = pnand %p15443_p12, %p15440_p11 }
  0x48   : > { %15448 = shalt.err (!%p15445_p13)
}
  0x49   : > { %s15449_s18 = scalar_lea.vmem %s15868_s22, 4096  ;;  %p15457_p7 = scmp.lt.s32.totalorder %s15868_s22, %s15868_s22 }
  0x4a   : > { %p15450_p0 = scmp.ne.s32.totalorder %s15868_s22, %s15449_s18  ;;  %p15458_p9 = scmp.lt.s32.totalorder %s15449_s18, %s15449_s18 }
  0x4c   : > { %p15452_p2 = pnand %p15450_p0, %p15878_p8  ;;  %p15459_p4 = por %p15458_p9, %p15457_p7 }
  0x4e   : > { %p15453_p5 = pneg %p15452_p2 }
  0x50   : > { %p15460_p10 = pnand %p15459_p4, %p15453_p5 }
  0x52   : > { %15463 = shalt.err (!%p15460_p10)
}
  0x53   : > { %s15726_s10 = smov 256   ;;  %s15727_s8 = smov 16  }
  0x54   : > { %14478 = dma.hbm_to_vmem [thread:$0]  (!%p15864_p6), %s20414_s9, 4096, %s15868_s22, [#allocation12], %s15726_s10, %s15726_s10, %s15727_s8  }
  0x55   : > { %s12582_s25 = sadd.s32 4294967294, %s15720_s16   ;;  %s15924_s13 = sadd.s32 1, %s15720_s16  }
  0x56   : > { %20415 = sst [smem:[#allocation25_spill]] %s15924_s13  ;;  %s43_s26 = ssub.s32 %s15720_s16, %s15924_s13 }
  0x57   : > { %s46_s27 = sadd.s32 1, %s15716_s15  ;;  %p44_p11 = scmp.eq.s32.totalorder %s43_s26, 0 }
  0x58   : > { %p53_p12 = scmp.ne.s32.totalorder %s15716_s15, %s15712_s30  ;;  %p54_p13 = scmp.eq.s32.totalorder %s15720_s16, 0 }
  0x59   : > { %p59_p0 = scmp.ne.s32.totalorder %s15712_s30, %s15708_s29  ;;  %p345_p7 = scmp.eq.s32.totalorder %s15848_s19, 1 }
  0x5a   : > { %s15935_s28 = scalar_select %p44_p11, %s15716_s15, %s46_s27  }
  0x5b   : > { %p55_p2 = por %p54_p13, %p53_p12  ;;  %p15939_p5 = por %p20281_p1, %p59_p0 }
  0x5c   : > { %20416 = sst [smem:[#allocation26_spill]] %s15935_s28  ;;  %p351_p9 = scmp.eq.s32.totalorder %s12582_s25, 1 }
  0x5d   : > { %s20417_s21 = scalar_select %p15939_p5, 1, 0 }
  0x5e   : > { %p14503_p4 = scmp.lt.s32.totalorder %s15720_s16, 2  ;;  %s15946_s22 = sand.u32 1, %s15716_s15  }
  0x5f   : > { %p15948_p10 = por %p345_p7, %p53_p12  ;;  %p15952_p11 = por %p351_p9, %p59_p0 }
  0x60   : > { %s20279_s10 = sshll.u32 %s15946_s22, 3  ;;  %s20280_s8 = sshll.u32 %s15720_s16, 7 }
  0x61   : > { %s20418_s24 = scalar_select %p15948_p10, 1, 0 }
  0x62   : > { %s20420_s18 = scalar_select %p15952_p11, 1, 0 }
  0x63   : > { %20419 = sst [smem:[#allocation27_spill]] %s20418_s24  ;;  %p15958_p13 = pnand %p14503_p4, %p55_p2 }
  0x64   : > { %20421 = sst [smem:[#allocation28_spill]] %s20420_s18  ;;  %s485_s14 = sand.u32 1, %s15720_s16  }
  0x65   : > { %s20422_s12 = scalar_select %p15958_p13, 1, 0 }
  0x66   : > { %s20423_s1 = sld [smem:[#allocation80_spill]]  ;;  %s489_s3 = scalar_lea.vmem [#allocation5], %s20279_s10 }
  0x67   : > { %s496_s9 = sshll.u32 %s489_s3, 4  ;;  %s12593_s28 = sshll.u32 %s15946_s22, 7  ;;  %s15973_s9 = int_to_ptr.vmem [resolvable:$true] %s496_s9 }
  0x68   : > { %s15975_s15 = scalar_lea.sflag [#allocation6], %s485_s14  ;;  %p15981_p0 = pneg %p15958_p13 }
  0x6a   : > { %s20424_s18 = scalar_select %p15981_p0, 1, 0 }
  0x6c   : > { %s15968_s27 = scalar_lea.hbm %s20423_s1, %s20280_s8  ;;  %s15469_s3 = scalar_lea.hbm %s20423_s1, 256 }
  0x6d   : > { %s15464_s13 = scalar_lea.hbm %s15968_s27, 128  ;;  %p15470_p9 = scmp.lt.u32.totalorder %s15968_s27, %s20423_s1 }
  0x6e   : > { %p15465_p12 = scmp.ne.s32.totalorder %s15968_s27, %s15464_s13  ;;  %p15471_p4 = scmp.lt.u32.totalorder %s15469_s3, %s15464_s13 }
  0x6f   : > { %p15473_p11 = scmp.lt.u32.totalorder %s15464_s13, %s15968_s27 }
  0x70   : > { %p15467_p2 = pnand %p15981_p0, %p15465_p12  ;;  %p15472_p1 = por %p15471_p4, %p15470_p9 }
  0x72   : > { %p15468_p7 = pneg %p15467_p2  ;;  %p15474_p10 = por %p15473_p11, %p15472_p1 }
  0x74   : > { %p15475_p5 = pnand %p15474_p10, %p15468_p7 }
  0x76   : > { %15478 = shalt.err (!%p15475_p5)
}
  0x77   : > { %s15479_s14 = scalar_lea.vmem %s15973_s9, 128  ;;  %s15728_s25 = smov [#allocation5]  }
  0x78   : > { %p15480_p12 = scmp.ne.s32.totalorder %s15973_s9, %s15479_s14  ;;  %s15484_s26 = sshll.u32 %s15728_s25, 4  ;;  %s15485_s26 = int_to_ptr.vmem [resolvable:$false] %s15484_s26 }
  0x79   : > { %s15486_s10 = scalar_lea.vmem %s15485_s26, 256  ;;  %p15487_p6 = scmp.lt.s32.totalorder %s15973_s9, %s15485_s26 }
  0x7a   : > { %p15482_p2 = pnand %p15480_p12, %p15981_p0  ;;  %p15488_p8 = scmp.lt.s32.totalorder %s15486_s10, %s15479_s14 }
  0x7c   : > { %p15483_p3 = pneg %p15482_p2  ;;  %p15489_p9 = por %p15488_p8, %p15487_p6 }
  0x7e   : > { %p15490_p4 = pnand %p15489_p9, %p15483_p3 }
  0x80   : > { %15493 = shalt.err (!%p15490_p4)
}
  0x81   : > { %14488 = dma.hbm_to_vmem [thread:$0]  (!%p15958_p13), %s15968_s27, 128, %s15973_s9, %s15975_s15  }
  0x82   : > { %s507_s13 = scalar_lea.vmem [#allocation7], %s12593_s28  ;;  %s15729_s3 = smov [#allocation10]  }
  0x83   : > { %s515_s8 = sshll.u32 %s507_s13, 4  ;;  %s412_s25 = sshll.u32 %s15729_s3, 4  ;;  %s16007_s8 = int_to_ptr.vmem [resolvable:$true] %s515_s8  ;;  %s413_s25 = int_to_ptr.vmem [resolvable:$true] %s412_s25 }
  0x84   : > { %s15494_s10 = scalar_lea.hbm %s20263_s5, 1024  ;;  %p20425_p3 = scmp.ne.s32.totalorder %s20413_s17, 0 }
  0x85   : > { %p15495_p1 = scmp.ne.s32.totalorder %s20263_s5, %s15494_s10  ;;  %p15501_p5 = scmp.lt.u32.totalorder %s15494_s10, %s20263_s5 }
  0x87   : > { %p15497_p6 = pnand %p15495_p1, %p20425_p3 }
  0x89   : > { %p15498_p8 = pneg %p15497_p6 }
  0x8b   : > { %p15503_p10 = pnand %p15501_p5, %p15498_p8 }
  0x8d   : > { %15506 = shalt.err (!%p15503_p10)
}
  0x8e   : > { %s15507_s28 = scalar_lea.vmem %s413_s25, 1024  ;;  %p15515_p2 = scmp.lt.s32.totalorder %s413_s25, %s413_s25 }
  0x8f   : > { %p15508_p11 = scmp.ne.s32.totalorder %s413_s25, %s15507_s28  ;;  %p15516_p9 = scmp.lt.s32.totalorder %s15507_s28, %s15507_s28 }
  0x91   : > { %p15510_p7 = pnand %p15508_p11, %p20425_p3  ;;  %p15517_p4 = por %p15516_p9, %p15515_p2 }
  0x93   : > { %p15511_p12 = pneg %p15510_p7 }
  0x95   : > { %p15518_p13 = pnand %p15517_p4, %p15511_p12 }
  0x97   : > { %15521 = shalt.err (!%p15518_p13)
}
  0x98   : > { %s15730_s1 = smov 64   ;;  %s15731_s29 = smov 4  }
  0x99   : > { %p20426_p1 = scmp.ne.s32.totalorder %s20411_s23, 0  ;;  %s15732_s14 = smov [#allocation13]  }
  0x9a   : > { %s450_s26 = sshll.u32 %s15732_s14, 4  ;;  %s15522_s27 = scalar_lea.hbm %s20269_s11, 4096  ;;  %s451_s26 = int_to_ptr.vmem [resolvable:$true] %s450_s26 }
  0x9b   : > { %14475 = dma.hbm_to_vmem [thread:$0]  (!%p20426_p1), %s20263_s5, 1024, %s413_s25, [#allocation9], %s15730_s1, %s15730_s1, %s15731_s29  }
  0x9c   : > { %p15523_p13 = scmp.ne.s32.totalorder %s20269_s11, %s15522_s27  ;;  %p15529_p5 = scmp.lt.u32.totalorder %s15522_s27, %s20269_s11 }
  0x9e   : > { %p15525_p6 = pnand %p15523_p13, %p20425_p3 }
  0xa0   : > { %p15526_p8 = pneg %p15525_p6 }
  0xa2   : > { %p15531_p10 = pnand %p15529_p5, %p15526_p8 }
  0xa4   : > { %15534 = shalt.err (!%p15531_p10)
}
  0xa5   : > { %s15535_s25 = scalar_lea.vmem %s451_s26, 4096  ;;  %p15543_p2 = scmp.lt.s32.totalorder %s451_s26, %s451_s26 }
  0xa6   : > { %p15536_p11 = scmp.ne.s32.totalorder %s451_s26, %s15535_s25  ;;  %p15544_p9 = scmp.lt.s32.totalorder %s15535_s25, %s15535_s25 }
  0xa8   : > { %p15538_p7 = pnand %p15536_p11, %p20425_p3  ;;  %p15545_p4 = por %p15544_p9, %p15543_p2 }
  0xaa   : > { %p15539_p12 = pneg %p15538_p7 }
  0xac   : > { %p15546_p0 = pnand %p15545_p4, %p15539_p12 }
  0xae   : > { %15549 = shalt.err (!%p15546_p0)
}
  0xaf   : > { %14481 = dma.hbm_to_vmem [thread:$0]  (!%p20426_p1), %s20269_s11, 4096, %s451_s26, [#allocation12], %s15730_s1, %s15730_s1, %s15731_s29  }
  0xb0   : > { %s20427_s6 = sshll.u32 %s15720_s16, 7  ;;  %s20428_s14 = sshll.u32 %s15946_s22, 3 }
  0xb1   : > { %s16050_s3 = scalar_lea.hbm %s20258_s0, %s20427_s6  ;;  %s471_s23 = scalar_lea.vmem [#allocation2], %s20428_s14 }
  0xb2   : > { %s478_s10 = sshll.u32 %s471_s23, 4  ;;  %s12910_s9 = sshll.u32 %s15720_s16, 11  ;;  %s16054_s10 = int_to_ptr.vmem [resolvable:$true] %s478_s10 }
  0xb3   : > { %s468_s27 = scalar_lea.sflag [#allocation3], %s15946_s22  ;;  %s15550_s28 = scalar_lea.hbm %s16050_s3, 128 }
  0xb4   : > { %p15551_p0 = scmp.ne.s32.totalorder %s16050_s3, %s15550_s28  ;;  %p20429_p3 = scmp.ne.s32.totalorder %s20424_s18, 0 }
  0xb5   : > { %s15555_s26 = scalar_lea.hbm %s20258_s0, 256  ;;  %p15556_p6 = scmp.lt.u32.totalorder %s16050_s3, %s20258_s0 }
  0xb6   : > { %p15553_p1 = pnand %p15551_p0, %p20429_p3  ;;  %p15557_p8 = scmp.lt.u32.totalorder %s15555_s26, %s15550_s28 }
  0xb7   : > { %p15559_p10 = scmp.lt.u32.totalorder %s15550_s28, %s16050_s3 }
  0xb8   : > { %p15554_p13 = pneg %p15553_p1  ;;  %p15558_p5 = por %p15557_p8, %p15556_p6 }
  0xba   : > { %p15560_p11 = por %p15559_p10, %p15558_p5 }
  0xbc   : > { %p15561_p7 = pnand %p15560_p11, %p15554_p13 }
  0xbe   : > { %15564 = shalt.err (!%p15561_p7)
}
  0xbf   : > { %s15565_s22 = scalar_lea.vmem %s16054_s10, 128  ;;  %s15733_s13 = smov [#allocation2]  }
  0xc0   : > { %p15566_p12 = scmp.ne.s32.totalorder %s16054_s10, %s15565_s22  ;;  %s15570_s6 = sshll.u32 %s15733_s13, 4  ;;  %s15571_s6 = int_to_ptr.vmem [resolvable:$false] %s15570_s6 }
  0xc1   : > { %s15572_s7 = scalar_lea.vmem %s15571_s6, 256  ;;  %p15573_p4 = scmp.lt.s32.totalorder %s16054_s10, %s15571_s6 }
  0xc2   : > { %p15568_p2 = pnand %p15566_p12, %p20429_p3  ;;  %p15574_p0 = scmp.lt.s32.totalorder %s15572_s7, %s15565_s22 }
  0xc4   : > { %p15569_p9 = pneg %p15568_p2  ;;  %p15575_p1 = por %p15574_p0, %p15573_p4 }
  0xc6   : > { %p15576_p6 = pnand %p15575_p1, %p15569_p9 }
  0xc8   : > { %15579 = shalt.err (!%p15576_p6)
}
  0xc9   : > { %p20430_p13 = scmp.ne.s32.totalorder %s20422_s12, 0  ;;  %s16084_s23 = scalar_lea.hbm %s20260_s2, %s12910_s9 }
  0xca   : > { %s15580_s28 = scalar_lea.hbm %s16084_s23, 2048  ;;  %s15585_s26 = scalar_lea.hbm %s20260_s2, 4096 }
  0xcb   : > { %14485 = dma.hbm_to_vmem [thread:$0]  (!%p20430_p13), %s16050_s3, 128, %s16054_s10, %s468_s27  }
  0xcc   : > { %p15581_p8 = scmp.ne.s32.totalorder %s16084_s23, %s15580_s28  ;;  %p15586_p11 = scmp.lt.u32.totalorder %s16084_s23, %s20260_s2 }
  0xcd   : > { %p15587_p7 = scmp.lt.u32.totalorder %s15585_s26, %s15580_s28  ;;  %p15589_p2 = scmp.lt.u32.totalorder %s15580_s28, %s16084_s23 }
  0xce   : > { %p15583_p5 = pnand %p15581_p8, %p20429_p3 }
  0xcf   : > { %p15588_p12 = por %p15587_p7, %p15586_p11 }
  0xd0   : > { %p15584_p10 = pneg %p15583_p5 }
  0xd1   : > { %p15590_p9 = por %p15589_p2, %p15588_p12 }
  0xd3   : > { %p15591_p4 = pnand %p15590_p9, %p15584_p10 }
  0xd5   : > { %15594 = shalt.err (!%p15591_p4)
}
  0xd6   : > { %s15595_s9 = scalar_lea.vmem %s16007_s8, 2048  ;;  %s15734_s27 = smov [#allocation7]  }
  0xd7   : > { %p15596_p0 = scmp.ne.s32.totalorder %s16007_s8, %s15595_s9  ;;  %s15600_s25 = sshll.u32 %s15734_s27, 4  ;;  %s15601_s25 = int_to_ptr.vmem [resolvable:$false] %s15600_s25 }
  0xd8   : > { %s15602_s24 = scalar_lea.vmem %s15601_s25, 4096  ;;  %p15603_p8 = scmp.lt.s32.totalorder %s16007_s8, %s15601_s25 }
  0xd9   : > { %p15598_p1 = pnand %p15596_p0, %p20429_p3  ;;  %p15604_p5 = scmp.lt.s32.totalorder %s15602_s24, %s15595_s9 }
  0xdb   : > { %p15599_p6 = pneg %p15598_p1  ;;  %p15605_p11 = por %p15604_p5, %p15603_p8 }
  0xdd   : > { %p15606_p7 = pnand %p15605_p11, %p15599_p6 }
  0xdf   : > { %15609 = shalt.err (!%p15606_p7)
}
  0xe0   : > { %s15735_s22 = smov 128   ;;  %s15736_s13 = smov 8  }
  0xe1   : > { %14491 = dma.hbm_to_vmem [thread:$0]  (!%p20430_p13), %s16084_s23, 2048, %s16007_s8, %s15975_s15, %s15735_s22, %s15735_s22, %s15736_s13  }
  0xe2   : > { %p20431_p3 = scmp.ne.s32.totalorder %s20410_s20, 0 }
  0xe4   : > { %527 = sbr.rel (%p20431_p3) target bundleno = 7995 (0x1f3b), region = 72 }
  0xeb   : > { %s16111_s18 = sand.u32 1, %s15712_s30   ;;  %p20432_p10 = scmp.ne.s32.totalorder %s20417_s21, 0 }
  0xec   : > { %s12598_s6 = sshll.u32 %s16111_s18, 3  ;;  %s530_s7 = scalar_lea.sflag [#allocation3], %s16111_s18 }
  0xed   : > { %s16115_s17 = scalar_lea.vmem [#allocation2], %s12598_s6 }
  0xee   : > { %15683 = dma.done.wait (%p20432_p10), %s530_s7, 128  }
  0xef   : > { %15685 = vsyncadd (%p20432_p10), %s530_s7, 4294967168  ;;  %s538_s15 = sand.u32 1, %s15848_s19   ;;  %s16122_s12 = scalar_lea.vmem [#allocation5], %s12598_s6 }
  0xf0   : > { %s539_s20 = scalar_lea.sflag [#allocation6], %s538_s15 }
  0xf1   : > { %15687 = dma.done.wait (%p20432_p10), %s539_s20, 2176  }
  0xf2   : > { %15689 = vsyncadd (%p20432_p10), %s539_s20, 4294965120  ;;  %s16129_s8 = sshll.u32 %s16111_s18, 7  ;;  %p20433_p13 = scmp.eq.s32.totalorder %s15848_s19, 0 }
  0xf3   : > { %s16132_s14 = scalar_lea.vmem [#allocation7], %s16129_s8 }
  0xf4   : > { %15691 = dma.done.wait (%p20433_p13), [#allocation9], 4096   ;;  %p20434_p12 = pmov %p20433_p13 }
  0xf6   : > { %15693 = vsyncadd (%p20434_p12), [#allocation9], 4294963200  ;;  %p20435_p2 = pmov %p20434_p12 }
  0xf8   : > { %15695 = dma.done.wait (%p20435_p2), [#allocation12], 8192   ;;  %p20436_p9 = pmov %p20435_p2 }
  0xf9   : > { %v631_v0 = vld [vmem:[%s16132_s14] sm:$0xff]  ;;  %v633_v1 = vld [vmem:[%s16132_s14 + $0x10] sm:$0xff]  ;;  %v632_v2 = vld [vmem:[%s16132_s14 + $0x8] sm:$0xff]  ;;  %vm15740_vm0 = vmmov 0   ;;  %vm1481_vm1 = vcmask 130048   ;;  %s15741_s28 = smov 112  }
  0xfa   : > { %15697 = vsyncadd (%p20436_p9), [#allocation12], 4294959104  ;;  %757 = vadd.xlane.f32.xlu0 %v631_v0  ;;  %761 = vadd.xlane.f32.xlu1 %v633_v1  ;;  %v634_v3 = vld [vmem:[%s16132_s14 + $0x18] sm:$0xff]  ;;  %v635_v4 = vld [vmem:[%s16132_s14 + $0x20] sm:$0xff]  ;;  %s15742_s1 = smov 96   ;;  %s15743_s29 = smov 80  }
  0xfb   : > { %v636_v5 = vld [vmem:[%s16132_s14 + $0x28] sm:$0xff]  ;;  %v16149_v6 = vld [vmem:[%s16132_s14 + $0x30] sm:$0xff]  ;;  %v16152_v7 = vld [vmem:[%s16132_s14 + $0x38] sm:$0xff]  ;;  %s15744_s26 = smov 64   ;;  %s15745_s3 = smov 48  }
  0xfc   : > { %v16155_v8 = vld [vmem:[%s16132_s14 + $0x40] sm:$0xff]  ;;  %v16158_v9 = vld [vmem:[%s16132_s14 + $0x48] sm:$0xff]  ;;  %v16163_v10 = vld [vmem:[%s16132_s14 + $0x50] sm:$0xff]  ;;  %s15746_s10 = smov 32   ;;  %s15747_s9 = smov 16  }
  0xfd   : > { %v16166_v11 = vld [vmem:[%s16132_s14 + $0x58] sm:$0xff]  ;;  %v16171_v12 = vld [vmem:[%s16132_s14 + $0x60] sm:$0xff]  ;;  %v16174_v13 = vld [vmem:[%s16132_s14 + $0x68] sm:$0xff]  ;;  %s19114_s27 = scalar_lea.vmem [#allocation15], %s16129_s8  ;;  %s20588_s22 = sld [smem:[#allocation82_spill]] }
  0xfe   : > { %759 = vadd.xlane.f32.xlu0 %v632_v2  ;;  %763 = vadd.xlane.f32.xlu1 %v634_v3  ;;  %v16179_v14 = vld [vmem:[%s16132_s14 + $0x70] sm:$0xff]  ;;  %v16182_v15 = vld [vmem:[%s16132_s14 + $0x78] sm:$0xff]  ;;  %v14568_v17 = vld [vmem:[#allocation8] ss:$12 sps:$4 sm:$0xff]   ;;  %s20605_s7 = sld [smem:[#allocation83_spill]]  ;;  %s20606_s20 = sld [smem:[#allocation84_spill]] }
  0xff   : > { %v14566_v16 = vld [vmem:[#allocation8 + $0x4] ss:$12 sps:$4 sm:$0xff]   ;;  %v14569_v18 = vld [vmem:[#allocation8 + $0x1c] ss:$12 sps:$4 sm:$0xff]   ;;  %s20607_s21 = sld [smem:[#allocation86_spill]]  ;;  %s12396_s24 = sshll.u32 %s19114_s27, 4  ;;  %s20126_s24 = int_to_ptr.vmem [resolvable:$true] %s12396_s24 }
 0x100   : > { %v14571_v19 = vld [vmem:[#allocation8 + $0x8] ss:$12 sps:$4 sm:$0xff]   ;;  %1247 = vmatprep.subr.bf16.mxu0 %v14566_v16  ;;  %v14572_v58 = vld [vmem:[#allocation8 + $0x18] ss:$12 sps:$4 sm:$0xff]   ;;  %s15610_s13 = scalar_lea.vmem %s20126_s24, 2048  ;;  %s15748_s6 = smov [#allocation15]  }
 0x101   : > { %1248 = vmatpush1.bf16.msra.mxu0 %v14568_v17  ;;  %13387 = vmatprep.subr.bf16.mxu1 %v14571_v19  ;;  %p15611_p4 = scmp.ne.s32.totalorder %s20126_s24, %s15610_s13 }
 0x102   : > { %765 = vadd.xlane.f32.xlu0 %v635_v4  ;;  %767 = vadd.xlane.f32.xlu1 %v636_v5 }
 0x103   : > { %1249 = vmatprep.subr.bf16.mxu0 %v14569_v18  ;;  %13388 = vmatpush3.bf16.msra.mxu1 %v14571_v19  ;;  %v14577_v18 = vld [vmem:[#allocation8 + $0x4c] ss:$12 sps:$4 sm:$0xff]  }
 0x104   : > { %v14579_v19 = vld [vmem:[#allocation8 + $0x38] ss:$12 sps:$4 sm:$0xff]  }
 0x105   : > { %1250 = vmatpush1.bf16.msra.mxu0 %v14572_v58 }
 0x106   : > { %769 = vadd.xlane.f32.xlu0 %v16149_v6  ;;  %771 = vadd.xlane.f32.xlu1 %v16152_v7 }
 0x10a   : > { %773 = vadd.xlane.f32.xlu0 %v16155_v8  ;;  %775 = vadd.xlane.f32.xlu1 %v16158_v9 }
 0x10e   : > { %777 = vadd.xlane.f32.xlu0 %v16163_v10  ;;  %779 = vadd.xlane.f32.xlu1 %v16166_v11 }
 0x112   : > { %781 = vadd.xlane.f32.xlu0 %v16171_v12  ;;  %783 = vadd.xlane.f32.xlu1 %v16174_v13 }
 0x116   : > { %785 = vadd.xlane.f32.xlu0 %v16179_v14  ;;  %787 = vadd.xlane.f32.xlu1 %v16182_v15 }
 0x187   : > { %v758_v20 = vpop.xlane.xlu0 %757  ;;  %v762_v21 = vpop.xlane.xlu1 %761 }
 0x188   : > { %v790_v22 = vmul.f32 0.0078125, %v758_v20  ;;  %v792_v23 = vmul.f32 0.0078125, %v762_v21 }
 0x18a   : > { %v16188_v24 = vsub.f32 %v631_v0, %v790_v22  ;;  %v16190_v25 = vsub.f32 %v633_v1, %v792_v23  ;;  %v14573_v0 = vld [vmem:[#allocation8 + $0x34] ss:$12 sps:$4 sm:$0xff]  }
 0x18b   : > { %v760_v26 = vpop.xlane.xlu0 %759  ;;  %v764_v27 = vpop.xlane.xlu1 %763  ;;  %v14575_v1 = vld [vmem:[#allocation8 + $0x20] ss:$12 sps:$4 sm:$0xff]   ;;  %1251 = vmatprep.subr.bf16.mxu0 %v14573_v0  ;;  %v14580_v22 = vld [vmem:[#allocation8 + $0x48] ss:$12 sps:$4 sm:$0xff]  }
 0x18c   : > { %v791_v28 = vmul.f32 0.0078125, %v760_v26  ;;  %v822_v29 = vmul.f32 %v16188_v24, %v16188_v24  ;;  %v793_v30 = vmul.f32 0.0078125, %v764_v27  ;;  %v824_v31 = vmul.f32 %v16190_v25, %v16190_v25  ;;  %13389 = vmatprep.subr.bf16.mxu1 %v14575_v1 }
 0x18d   : > { %13390 = vmatpush3.bf16.msra.mxu1 %v14575_v1 }
 0x18e   : > { %838 = vadd.xlane.f32.xlu0 %v822_v29  ;;  %v16196_v32 = vsub.f32 %v632_v2, %v791_v28  ;;  %v16198_v33 = vsub.f32 %v634_v3, %v793_v30  ;;  %13391 = vmatprep.subr.bf16.mxu1 %v14579_v19  ;;  %v14581_v29 = vld [vmem:[#allocation8 + $0x64] ss:$12 sps:$4 sm:$0xff]  }
 0x18f   : > { %v766_v34 = vpop.xlane.xlu0 %765  ;;  %v768_v35 = vpop.xlane.xlu1 %767  ;;  %v14583_v30 = vld [vmem:[#allocation8 + $0x50] ss:$12 sps:$4 sm:$0xff]  }
 0x190   : > { %v794_v36 = vmul.f32 0.0078125, %v766_v34  ;;  %v823_v37 = vmul.f32 %v16196_v32, %v16196_v32  ;;  %v795_v38 = vmul.f32 0.0078125, %v768_v35  ;;  %v825_v39 = vmul.f32 %v16198_v33, %v16198_v33 }
 0x191   : > { %13392 = vmatpush3.bf16.msra.mxu1 %v14579_v19 }
 0x192   : > { %842 = vadd.xlane.f32.xlu0 %v824_v31  ;;  %840 = vadd.xlane.f32.xlu1 %v823_v37  ;;  %v16204_v40 = vsub.f32 %v635_v4, %v794_v36  ;;  %v16206_v41 = vsub.f32 %v636_v5, %v795_v38  ;;  %v14584_v31 = vld [vmem:[#allocation8 + $0x60] ss:$12 sps:$4 sm:$0xff]   ;;  %v14587_v36 = vld [vmem:[#allocation8 + $0x68] ss:$12 sps:$4 sm:$0xff]   ;;  %v14588_v37 = vld [vmem:[#allocation8 + $0x78] ss:$12 sps:$4 sm:$0xff]  }
 0x193   : > { %v770_v42 = vpop.xlane.xlu0 %769  ;;  %v772_v43 = vpop.xlane.xlu1 %771  ;;  %13393 = vmatprep.subr.bf16.mxu1 %v14583_v30  ;;  %v14591_v38 = vld [vmem:[#allocation8 + $0x80] ss:$12 sps:$4 sm:$0xff]  }
 0x194   : > { %v796_v44 = vmul.f32 0.0078125, %v770_v42  ;;  %v826_v45 = vmul.f32 %v16204_v40, %v16204_v40  ;;  %v797_v46 = vmul.f32 0.0078125, %v772_v43  ;;  %v827_v47 = vmul.f32 %v16206_v41, %v16206_v41  ;;  %v14593_v42 = vld [vmem:[#allocation8 + $0xac] ss:$12 sps:$4 sm:$0xff]  }
 0x195   : > { %13394 = vmatpush3.bf16.msra.mxu1 %v14583_v30  ;;  %v14595_v43 = vld [vmem:[#allocation8 + $0x98] ss:$12 sps:$4 sm:$0xff]  }
 0x196   : > { %844 = vadd.xlane.f32.xlu1 %v825_v39  ;;  %846 = vadd.xlane.f32.xlu0 %v826_v45  ;;  %v16213_v48 = vsub.f32 %v16149_v6, %v796_v44  ;;  %v16216_v49 = vsub.f32 %v16152_v7, %v797_v46  ;;  %v14576_v7 = vld [vmem:[#allocation8 + $0x30] ss:$12 sps:$4 sm:$0xff]   ;;  %v14596_v44 = vld [vmem:[#allocation8 + $0xa8] ss:$12 sps:$4 sm:$0xff]   ;;  %v20298_v46 = vmov 0  }
 0x197   : > { %v774_v50 = vpop.xlane.xlu0 %773  ;;  %v776_v51 = vpop.xlane.xlu1 %775  ;;  %1252 = vmatpush1.bf16.msra.mxu0 %v14576_v7  ;;  %13395 = vmatprep.subr.bf16.mxu1 %v14587_v36  ;;  %v14592_v39 = vld [vmem:[#allocation8 + $0x90] ss:$12 sps:$4 sm:$0xff]  }
 0x198   : > { %v798_v52 = vmul.f32 0.0078125, %v774_v50  ;;  %v828_v53 = vmul.f32 %v16213_v48, %v16213_v48  ;;  %v799_v54 = vmul.f32 0.0078125, %v776_v51  ;;  %v829_v55 = vmul.f32 %v16216_v49, %v16216_v49  ;;  %1253 = vmatprep.subr.bf16.mxu0 %v14577_v18  ;;  %v14597_v45 = vld [vmem:[#allocation8 + $0xb0] ss:$12 sps:$4 sm:$0xff]   ;;  %1279 = vmatprep.mubr.bf16.mxu0 %v20298_v46 }
 0x199   : > { %13396 = vmatpush3.bf16.msra.mxu1 %v14587_v36  ;;  %v653_v51 = vlaneseq }
 0x19a   : > { %848 = vadd.xlane.f32.xlu1 %v827_v47  ;;  %850 = vadd.xlane.f32.xlu0 %v828_v53  ;;  %v16223_v56 = vsub.f32 %v16155_v8, %v798_v52  ;;  %v16226_v57 = vsub.f32 %v16158_v9, %v799_v54  ;;  %v15738_v47 = vmov 1966171168  }
 0x19b   : > { %v778_v59 = vpop.xlane.xlu0 %777  ;;  %v780_v60 = vpop.xlane.xlu1 %779  ;;  %1254 = vmatpush1.bf16.msra.mxu0 %v14580_v22  ;;  %13397 = vmatprep.subr.bf16.mxu1 %v14591_v38  ;;  %v651_v50 = vunpack.c.l.s4 %v15738_v47  ;;  %v16263_v53 = vshrl.u32 %v653_v51, 7 }
 0x19c   : > { %v800_v61 = vmul.f32 0.0078125, %v778_v59  ;;  %v830_v62 = vmul.f32 %v16223_v56, %v16223_v56  ;;  %v801_v63 = vmul.f32 0.0078125, %v780_v60  ;;  %v831_v2 = vmul.f32 %v16226_v57, %v16226_v57  ;;  %1255 = vmatprep.subr.bf16.mxu0 %v14581_v29 }
 0x19d   : > { %13398 = vmatpush3.bf16.msra.mxu1 %v14591_v38  ;;  %v652_v52 = vunpack.c.0.s8 %v651_v50  ;;  %20437 = vst [vmem:[#allocation29_spill] sm:$0xff] %v16263_v53 }
 0x19e   : > { %852 = vadd.xlane.f32.xlu1 %v829_v55  ;;  %854 = vadd.xlane.f32.xlu0 %v830_v62  ;;  %v16233_v3 = vsub.f32 %v16163_v10, %v800_v61  ;;  %v16236_v4 = vsub.f32 %v16166_v11, %v801_v63  ;;  %v647_v55 = vld [vmem:[%s16115_s17] sm:$0xff] }
 0x19f   : > { %v782_v5 = vpop.xlane.xlu0 %781  ;;  %v784_v6 = vpop.xlane.xlu1 %783  ;;  %1256 = vmatpush1.bf16.msra.mxu0 %v14584_v31  ;;  %13399 = vmatprep.subr.bf16.mxu1 %v14595_v43  ;;  %v16266_v54 = vsub.s32 %v652_v52, %v16263_v53  ;;  %v649_v18 = vcombine.high %v647_v55, %v647_v55 }
 0x1a0   : > { %v802_v8 = vmul.f32 0.0078125, %v782_v5  ;;  %v832_v9 = vmul.f32 %v16233_v3, %v16233_v3  ;;  %v803_v16 = vmul.f32 0.0078125, %v784_v6  ;;  %v833_v10 = vmul.f32 %v16236_v4, %v16236_v4 }
 0x1a1   : > { %13400 = vmatpush3.bf16.msra.mxu1 %v14595_v43  ;;  %v656_v60 = vrot.slane %v647_v55, %v16266_v54 }
 0x1a2   : > { %856 = vadd.xlane.f32.xlu1 %v831_v2  ;;  %858 = vadd.xlane.f32.xlu0 %v832_v9  ;;  %v16243_v11 = vsub.f32 %v16171_v12, %v802_v8  ;;  %v16246_v17 = vsub.f32 %v16174_v13, %v803_v16  ;;  %v706_v2 = vld [vmem:[%s16122_s12] sm:$0xff] }
 0x1a3   : > { %v786_v20 = vpop.xlane.xlu0 %785  ;;  %v788_v21 = vpop.xlane.xlu1 %787  ;;  %13401 = vmatprep.subr.bf16.mxu1 %v14597_v45  ;;  %v664_v5 = vcombine.high %v656_v60, %v656_v60  ;;  %v672_v6 = vrot.slane %v656_v60, %v16266_v54 }
 0x1a4   : > { %v804_v23 = vmul.f32 0.0078125, %v786_v20  ;;  %v834_v26 = vmul.f32 %v16243_v11, %v16243_v11  ;;  %v805_v27 = vmul.f32 0.0078125, %v788_v21  ;;  %v835_v12 = vmul.f32 %v16246_v17, %v16246_v17 }
 0x1a5   : > { %13402 = vmatpush3.bf16.msra.mxu1 %v14597_v45  ;;  %v686_v21 = vrot.slane %v664_v5, %v16266_v54  ;;  %v934_v22 = vadd.f32 1.0, %v672_v6  ;;  %v694_v29 = vcombine.high %v672_v6, %v672_v6 }
 0x1a6   : > { %860 = vadd.xlane.f32.xlu1 %v833_v10  ;;  %862 = vadd.xlane.f32.xlu0 %v834_v26  ;;  %v16253_v13 = vsub.f32 %v16179_v14, %v804_v23  ;;  %v16256_v28 = vsub.f32 %v16182_v15, %v805_v27  ;;  %v14585_v14 = vld [vmem:[#allocation8 + $0x7c] ss:$12 sps:$4 sm:$0xff]   ;;  %v14589_v15 = vld [vmem:[#allocation8 + $0x94] ss:$12 sps:$4 sm:$0xff]   ;;  %v715_v10 = vrot.slane %v706_v2, %v16266_v54  ;;  %v16275_v23 = vsub.s32 0, %v16263_v53 }
 0x1a7   : > { %1257 = vmatprep.subr.bf16.mxu0 %v14585_v14  ;;  %v936_v47 = vadd.f32 1.0, %v694_v29 }
 0x1a8   : > { %v836_v34 = vmul.f32 %v16253_v13, %v16253_v13  ;;  %v837_v35 = vmul.f32 %v16256_v28, %v16256_v28  ;;  %1258 = vmatpush1.bf16.msra.mxu0 %v14588_v37  ;;  %20438 = vst [vmem:[#allocation30_spill] sm:$0xff] %v16275_v23  ;;  %v723_v26 = vcombine.high %v715_v10, %v715_v10  ;;  %v935_v37 = vadd.f32 1.0, %v686_v21 }
 0x1a9   : > { %1259 = vmatprep.subr.bf16.mxu0 %v14589_v15  ;;  %v953_v15 = vrot.slane %v934_v22, %v16275_v23 }
 0x1aa   : > { %864 = vadd.xlane.f32.xlu1 %v835_v12  ;;  %866 = vadd.xlane.f32.xlu0 %v836_v34  ;;  %v731_v34 = vrot.slane %v715_v10, %v16266_v54  ;;  %v745_v38 = vrot.slane %v723_v26, %v16266_v54 }
 0x1ac   : > { %1260 = vmatpush1.bf16.msra.mxu0 %v14592_v39  ;;  %v696_v39 = vcombine.high %v686_v21, %v686_v21  ;;  %v753_v45 = vcombine.high %v731_v34, %v731_v34  ;;  %v1009_v55 = vrot.slane %v731_v34, %v16275_v23 }
 0x1ad   : > { %1261 = vmatprep.subr.bf16.mxu0 %v14593_v42 }
 0x1ae   : > { %868 = vadd.xlane.f32.xlu1 %v837_v35  ;;  %v16279_v35 = vrot.slane %v649_v18, %v16266_v54 }
 0x1b0   : > { %1262 = vmatpush1.bf16.msra.mxu0 %v14596_v44 }
 0x21b   : > { %v839_v58 = vpop.xlane.xlu0 %838 }
 0x21c   : > { %v870_v59 = vmul.f32 0.0078125, %v839_v58  ;;  %v16287_v58 = vrot.slane %v16279_v35, %v16266_v54 }
 0x21e   : > { %v886_v61 = vadd.f32 1e-05, %v870_v59  ;;  %v708_v59 = vcombine.high %v706_v2, %v706_v2 }
 0x21f   : > { %v841_v62 = vpop.xlane.xlu1 %840  ;;  %v843_v63 = vpop.xlane.xlu0 %842 }
 0x220   : > { %14688 = vrsqrt.f32 %v886_v61  ;;  %v871_v0 = vmul.f32 0.0078125, %v841_v62  ;;  %v872_v1 = vmul.f32 0.0078125, %v843_v63  ;;  %v957_v62 = vrot.slane %v935_v37, %v16275_v23 }
 0x221   : > { %v1013_v63 = vrot.slane %v745_v38, %v16275_v23 }
 0x222   : > { %v887_v7 = vadd.f32 1e-05, %v871_v0  ;;  %v888_v8 = vadd.f32 1e-05, %v872_v1  ;;  %v755_v0 = vcombine.high %v745_v38, %v745_v38  ;;  %v937_v1 = vadd.f32 1.0, %v696_v39 }
 0x223   : > { %v845_v9 = vpop.xlane.xlu1 %844  ;;  %v847_v16 = vpop.xlane.xlu0 %846 }
 0x224   : > { %14690 = vrsqrt.f32 %v887_v7  ;;  %v873_v19 = vmul.f32 0.0078125, %v845_v9  ;;  %v874_v20 = vmul.f32 0.0078125, %v847_v16  ;;  %v961_v7 = vrot.slane %v936_v47, %v16275_v23 }
 0x225   : > { %14692 = vrsqrt.f32 %v888_v8  ;;  %v16293_v8 = vrot.slane %v753_v45, %v16275_v23  ;;  %v16303_v29 = vrot.slane %v755_v0, %v16275_v23 }
 0x226   : > { %v889_v27 = vadd.f32 1e-05, %v873_v19  ;;  %v890_v12 = vadd.f32 1e-05, %v874_v20  ;;  %v16297_v19 = vrot.slane %v708_v59, %v16266_v54  ;;  %v938_v20 = vadd.f32 1.0, %v16287_v58 }
 0x227   : > { %v849_v30 = vpop.xlane.xlu1 %848  ;;  %v851_v31 = vpop.xlane.xlu0 %850 }
 0x228   : > { %14694 = vrsqrt.f32 %v889_v27  ;;  %v875_v14 = vmul.f32 0.0078125, %v849_v30  ;;  %v876_v36 = vmul.f32 0.0078125, %v851_v31  ;;  %v16313_v45 = vrot.slane %v938_v20, %v16275_v23 }
 0x229   : > { %14696 = vrsqrt.f32 %v890_v12  ;;  %v965_v12 = vrot.slane %v937_v1, %v16275_v23 }
 0x22a   : > { %v14689_v42 = vpop.eup %14688  ;;  %v891_v43 = vadd.f32 1e-05, %v875_v14  ;;  %v892_v44 = vadd.f32 1e-05, %v876_v36  ;;  %v665_v14 = vcombine.high %v16279_v35, %v16279_v35 }
 0x22b   : > { %v853_v50 = vpop.xlane.xlu1 %852  ;;  %v855_v51 = vpop.xlane.xlu0 %854  ;;  %v918_v52 = vmul.f32 %v14689_v42, %v16188_v24 }
 0x22c   : > { %14698 = vrsqrt.f32 %v891_v43  ;;  %v877_v60 = vmul.f32 0.0078125, %v853_v50  ;;  %v878_v61 = vmul.f32 0.0078125, %v855_v51 }
 0x22d   : > { %14700 = vrsqrt.f32 %v892_v44  ;;  %v990_v18 = vmul.f32 %v953_v15, %v918_v52 }
 0x22e   : > { %v14691_v5 = vpop.eup %14690  ;;  %v893_v6 = vadd.f32 1e-05, %v877_v60  ;;  %v894_v24 = vadd.f32 1e-05, %v878_v61 }
 0x22f   : > { %v14693_v9 = vpop.eup %14692  ;;  %v857_v2 = vpop.xlane.xlu1 %856  ;;  %v919_v10 = vmul.f32 %v14691_v5, %v16196_v32  ;;  %v1046_v39 = vadd.f32 %v1009_v55, %v990_v18 }
 0x230   : > { %v859_v16 = vpop.xlane.xlu0 %858  ;;  %14702 = vrsqrt.f32 %v893_v6  ;;  %v879_v21 = vmul.f32 0.0078125, %v857_v2  ;;  %v920_v26 = vmul.f32 %v14693_v9, %v16190_v25 }
 0x231   : > { %v880_v22 = vmul.f32 0.0078125, %v859_v16  ;;  %14704 = vrsqrt.f32 %v894_v24  ;;  %v991_v27 = vmul.f32 %v953_v15, %v919_v10  ;;  %v16310_v15 = vrot.slane %v16297_v19, %v16266_v54 }
 0x232   : > { %v14695_v30 = vpop.eup %14694  ;;  %v895_v32 = vadd.f32 1e-05, %v879_v21  ;;  %v992_v34 = vmul.f32 %v957_v62, %v920_v26  ;;  %v724_v16 = vcombine.high %v16297_v19, %v16297_v19 }
 0x233   : > { %v896_v31 = vadd.f32 1e-05, %v880_v22  ;;  %v14697_v36 = vpop.eup %14696  ;;  %v861_v37 = vpop.xlane.xlu1 %860  ;;  %v1047_v42 = vadd.f32 %v1009_v55, %v991_v27  ;;  %v921_v25 = vmul.f32 %v14695_v30, %v16198_v33  ;;  %v693_v33 = vrot.slane %v665_v14, %v16266_v54 }
 0x234   : > { %v863_v38 = vpop.xlane.xlu0 %862  ;;  %14706 = vrsqrt.f32 %v895_v32  ;;  %v881_v43 = vmul.f32 0.0078125, %v861_v37  ;;  %v922_v50 = vmul.f32 %v14697_v36, %v16204_v40  ;;  %v1048_v59 = vadd.f32 %v1013_v63, %v992_v34 }
 0x235   : > { %v882_v44 = vmul.f32 0.0078125, %v863_v38  ;;  %14708 = vrsqrt.f32 %v896_v31  ;;  %v1062_v47 = vpack.c.bf16 %v1047_v42, %v1046_v39  ;;  %v993_v35 = vmul.f32 %v957_v62, %v921_v25 }
 0x236   : > { %v14699_v51 = vpop.eup %14698  ;;  %v897_v52 = vadd.f32 1e-05, %v881_v43  ;;  %v994_v6 = vmul.f32 %v961_v7, %v922_v50  ;;  %v939_v21 = vadd.f32 1.0, %v693_v33  ;;  %v1025_v32 = vrot.slane %v16310_v15, %v16275_v23 }
 0x237   : > { %v898_v55 = vadd.f32 1e-05, %v882_v44  ;;  %v14701_v60 = vpop.eup %14700  ;;  %v865_v61 = vpop.xlane.xlu1 %864  ;;  %1280 = vmatmul.mubr.bf16.vlgmr.msra.gmra.mrb[0].mxu0 %v1062_v47  ;;  %13403 = vmatprep.mubr.bf16.mxu1 %v1062_v47  ;;  %v1049_v1 = vadd.f32 %v1013_v63, %v993_v35  ;;  %v923_v5 = vmul.f32 %v14699_v51, %v16206_v41  ;;  %v752_v14 = vrot.slane %v724_v16, %v16266_v54 }
 0x238   : > { %v867_v0 = vpop.xlane.xlu0 %866  ;;  %14710 = vrsqrt.f32 %v897_v52  ;;  %v883_v24 = vmul.f32 0.0078125, %v865_v61  ;;  %1289 = vmatprep.mubr.bf16.mxu0 %v20298_v46  ;;  %v924_v40 = vmul.f32 %v14701_v60, %v16213_v48  ;;  %v1050_v26 = vadd.f32 %v16293_v8, %v994_v6 }
 0x239   : > { %v884_v62 = vmul.f32 0.0078125, %v867_v0  ;;  %14712 = vrsqrt.f32 %v898_v55  ;;  %v1063_v9 = vpack.c.bf16 %v1049_v1, %v1048_v59  ;;  %v995_v2 = vmul.f32 %v961_v7, %v923_v5 }
 0x23a   : > { %v14703_v10 = vpop.eup %14702  ;;  %v899_v18 = vadd.f32 1e-05, %v883_v24  ;;  %v996_v63 = vmul.f32 %v965_v12, %v924_v40  ;;  %v695_v7 = vcombine.high %v16287_v58, %v16287_v58  ;;  %v697_v38 = vcombine.high %v693_v33, %v693_v33 }
 0x23b   : > { %v900_v20 = vadd.f32 1e-05, %v884_v62  ;;  %v14705_v41 = vpop.eup %14704  ;;  %v869_v22 = vpop.xlane.xlu1 %868  ;;  %13404 = vmatmul.mubr.bf16.vlgmr.msra.gmra.mrb[0].mxu1 %v1063_v9  ;;  %v1051_v27 = vadd.f32 %v16293_v8, %v995_v2  ;;  %v925_v48 = vmul.f32 %v14703_v10, %v16216_v49  ;;  %v973_v49 = vrot.slane %v939_v21, %v16275_v23 }
 0x23c   : > { %14714 = vrsqrt.f32 %v899_v18  ;;  %v885_v30 = vmul.f32 0.0078125, %v869_v22  ;;  %v926_v19 = vmul.f32 %v14705_v41, %v16223_v56  ;;  %v1052_v8 = vadd.f32 %v16303_v29, %v996_v63 }
 0x23d   : > { %14716 = vrsqrt.f32 %v900_v20  ;;  %v1064_v31 = vpack.c.bf16 %v1051_v27, %v1050_v26  ;;  %v997_v34 = vmul.f32 %v965_v12, %v925_v48  ;;  %v940_v25 = vadd.f32 1.0, %v695_v7  ;;  %v1102_v26 = vld [vmem:[%s20262_s4] sm:$0x7] }
 0x23e   : > { %v14707_v36 = vpop.eup %14706  ;;  %v901_v37 = vadd.f32 1e-05, %v885_v30  ;;  %v998_v42 = vmul.f32 %v16313_v45, %v926_v19  ;;  %v1029_v35 = vrot.slane %v752_v14, %v16275_v23  ;;  %v941_v50 = vadd.f32 1.0, %v697_v38 }
 0x23f   : > { %v14709_v58 = vpop.eup %14708  ;;  %1290 = vmatmul.mubr.bf16.gmra.mrb[4].mxu0 %v1063_v9  ;;  %13407 = vmatprep.mubr.bf16.mxu1 %v1064_v31  ;;  %v1053_v56 = vadd.f32 %v16303_v29, %v997_v34  ;;  %v927_v39 = vmul.f32 %v14707_v36, %v16226_v57  ;;  %v754_v29 = vcombine.high %v16310_v15, %v16310_v15  ;;  %v20296_v22 = vsub.s32 1, %v16263_v53 }
 0x240   : > { %14718 = vrsqrt.f32 %v901_v37  ;;  %1299 = vmatprep.mubr.bf16.mxu0 %v20298_v46  ;;  %v928_v54 = vmul.f32 %v14709_v58, %v16233_v3  ;;  %v1054_v51 = vadd.f32 %v1025_v32, %v998_v42  ;;  %v977_v59 = vrot.slane %v940_v25, %v16275_v23 }
 0x241   : > { %v1065_v12 = vpack.c.bf16 %v1053_v56, %v1052_v8  ;;  %v999_v43 = vmul.f32 %v16313_v45, %v927_v39  ;;  %v1033_v0 = vrot.slane %v754_v29, %v16275_v23  ;;  %v756_v1 = vcombine.high %v752_v14, %v752_v14 }
 0x242   : > { %v14711_v44 = vpop.eup %14710  ;;  %v1000_v47 = vmul.f32 %v973_v49, %v928_v54  ;;  %v981_v15 = vrot.slane %v941_v50, %v16275_v23  ;;  %v20297_v27 = vsub.s32 2, %v16263_v53  ;;  %v16369_v48 = vrot.slane %v1102_v26, %v20296_v22 }
 0x243   : > { %v14713_v57 = vpop.eup %14712  ;;  %13408 = vmatmul.mubr.bf16.gmra.mrb[4].mxu1 %v1065_v12  ;;  %v1055_v52 = vadd.f32 %v1025_v32, %v999_v43  ;;  %v929_v55 = vmul.f32 %v14711_v44, %v16236_v4  ;;  %v1037_v2 = vrot.slane %v756_v1, %v16275_v23  ;;  %v16372_v7 = vrot.slane %v1102_v26, %v16275_v23 }
 0x244   : > { %v930_v3 = vmul.f32 %v14713_v57, %v16243_v11  ;;  %v1056_v61 = vadd.f32 %v1029_v35, %v1000_v47  ;;  %v16376_v19 = vrot.slane %v1102_v26, %v20297_v27 }
 0x245   : > { %v1066_v33 = vpack.c.bf16 %v1055_v52, %v1054_v51  ;;  %v1001_v45 = vmul.f32 %v973_v49, %v929_v55 }
 0x246   : > { %v14715_v60 = vpop.eup %14714  ;;  %v1002_v4 = vmul.f32 %v977_v59, %v930_v3 }
 0x247   : > { %v14717_v5 = vpop.eup %14716  ;;  %1300 = vmatmul.mubr.bf16.gmra.mrb[8].mxu0 %v1064_v31  ;;  %13411 = vmatprep.mubr.bf16.mxu1 %v1066_v33  ;;  %v1057_v6 = vadd.f32 %v1029_v35, %v1001_v45  ;;  %v931_v24 = vmul.f32 %v14715_v60, %v16246_v17 }
 0x248   : > { %1309 = vmatprep.mubr.bf16.mxu0 %v20298_v46  ;;  %v932_v11 = vmul.f32 %v14717_v5, %v16253_v13  ;;  %v1058_v16 = vadd.f32 %v1033_v0, %v1002_v4 }
 0x249   : > { %v1067_v62 = vpack.c.bf16 %v1057_v6, %v1056_v61  ;;  %v1003_v40 = vmul.f32 %v977_v59, %v931_v24 }
 0x24a   : > { %v14719_v9 = vpop.eup %14718  ;;  %v1004_v20 = vmul.f32 %v981_v15, %v932_v11 }
 0x24b   : > { %13412 = vmatmul.mubr.bf16.gmra.mrb[8].mxu1 %v1067_v62  ;;  %v1059_v10 = vadd.f32 %v1033_v0, %v1003_v40  ;;  %v933_v18 = vmul.f32 %v14719_v9, %v16256_v28  ;;  %v20300_v28 = vmov 0.0  }
 0x24c   : > { %v1060_v17 = vadd.f32 %v1037_v2, %v1004_v20  ;;  %13419 = vmatprep.subr.bf16.mxu1 %v20300_v28  ;;  %13443 = vmatprep.subr.bf16.mxu0 %v20300_v28 }
 0x24d   : > { %v1068_v63 = vpack.c.bf16 %v1059_v10, %v1058_v16  ;;  %v1005_v21 = vmul.f32 %v981_v15, %v933_v18 }
 0x24f   : > { %1310 = vmatmul.mubr.bf16.gmra.mrb[12].mxu0 %v1065_v12  ;;  %13415 = vmatprep.mubr.bf16.mxu1 %v1068_v63  ;;  %v1061_v41 = vadd.f32 %v1037_v2, %v1005_v21 }
 0x250   : > { %1319 = vmatprep.mubr.bf16.mxu0 %v20298_v46 }
 0x251   : > { %v1069_v13 = vpack.c.bf16 %v1061_v41, %v1060_v17 }
 0x253   : > { %13416 = vmatmul.mubr.bf16.gmra.mrb[12].mxu1 %v1069_v13 }
 0x254   : > { %13421 = vmatprep.mubr.msk.bf16.mxu1 %vm15740_vm0, %v20300_v28 }
 0x257   : > { %1320 = vmatmul.mubr.bf16.gmra.mrb[16].mxu0 %v1066_v33 }
 0x258   : > { %1329 = vmatprep.mubr.bf16.mxu0 %v20298_v46 }
 0x25f   : > { %1330 = vmatmul.mubr.bf16.gmra.mrb[20].mxu0 %v1067_v62 }
 0x260   : > { %1339 = vmatprep.mubr.bf16.mxu0 %v20298_v46 }
 0x267   : > { %1340 = vmatmul.mubr.bf16.gmra.mrb[24].mxu0 %v1068_v63 }
 0x268   : > { %1349 = vmatprep.mubr.bf16.mxu0 %v20298_v46 }
 0x26f   : > { %1350 = vmatmul.mubr.bf16.gmra.mrb[28].mxu0 %v1069_v13 }
 0x270   : > { %13445 = vmatprep.mubr.msk.bf16.mxu0 %vm15740_vm0, %v20300_v28 }
 0x30a   : > { %v1281_v30 = vpop.f32.mrb[0].mxu0 }
 0x30b   : > { %v1283_v32 = vpop.f32.mrb[1].mxu0  ;;  %v1282_v14 = vadd.f32 %v1281_v30, %v16372_v7 }
 0x30c   : > { %v1284_v31 = vadd.f32 %v1283_v32, %v16369_v48  ;;  %v1285_v34 = vpop.f32.mrb[2].mxu0 }
 0x30d   : > { %v1286_v36 = vadd.f32 %v1285_v34, %v16372_v7  ;;  %v1287_v37 = vpop.f32.mrb[3].mxu0 }
 0x30e   : > { %v1288_v8 = vadd.f32 %v1287_v37, %v16369_v48  ;;  %v13405_v49 = vpop.f32.mrb[0].mxu1 }
 0x30f   : > { %v16382_v38 = vpack.c.bf16 %v1286_v36, %v1282_v14  ;;  %v1403_v58 = vadd.f32 %v13405_v49, %v16376_v19  ;;  %v1394_v56 = vpop.f32.mrb[1].mxu1 }
 0x310   : > { %v16385_v39 = vpack.c.bf16 %v1288_v8, %v1284_v31  ;;  %v1395_v42 = vadd.f32 %v1394_v56, %v16376_v19  ;;  %v13406_v25 = vpop.f32.mrb[2].mxu1 }
 0x311   : > { %20439 = vst [vmem:[#allocation31_spill] sm:$0xff] %v16382_v38  ;;  %v1406_v54 = vadd.f32 %v13406_v25, %v16376_v19  ;;  %v1397_v12 = vpop.f32.mrb[3].mxu1 }
 0x312   : > { %20440 = vst [vmem:[#allocation32_spill] sm:$0xff] %v16385_v39  ;;  %v1398_v43 = vadd.f32 %v1397_v12, %v16376_v19  ;;  %v1291_v44 = vpop.f32.mrb[4].mxu0  ;;  %v1486_v47 = vsel %vm1481_vm1, %v16385_v39, 0 }
 0x313   : > { %v16392_v35 = vpack.c.bf16 %v1406_v54, %v1403_v58  ;;  %v1293_v29 = vpop.f32.mrb[5].mxu0  ;;  %13420 = vmatpush3.bf16.xpose.msra.mxu1 %v1486_v47  ;;  %v1292_v52 = vadd.f32 %v1291_v44, %v16372_v7 }
 0x314   : > { %v16394_v50 = vpack.c.bf16 %v1398_v43, %v1395_v42  ;;  %v1294_v57 = vadd.f32 %v1293_v29, %v16369_v48  ;;  %v1295_v51 = vpop.f32.mrb[6].mxu0  ;;  %13425 = vmatprep.subr.bf16.mxu1 %v20300_v28 }
 0x315   : > { %20441 = vst [vmem:[#allocation33_spill] sm:$0xff] %v16392_v35  ;;  %v1296_v55 = vadd.f32 %v1295_v51, %v16372_v7  ;;  %v1297_v59 = vpop.f32.mrb[7].mxu0 }
 0x316   : > { %20442 = vst [vmem:[#allocation34_spill] sm:$0xff] %v16394_v50  ;;  %v1298_v3 = vadd.f32 %v1297_v59, %v16369_v48  ;;  %v13409_v33 = vpop.f32.mrb[4].mxu1 }
 0x317   : > { %v16401_v45 = vpack.c.bf16 %v1296_v55, %v1292_v52  ;;  %v1419_v60 = vadd.f32 %v13409_v33, %v16376_v19  ;;  %v1410_v61 = vpop.f32.mrb[5].mxu1 }
 0x318   : > { %v16404_v0 = vpack.c.bf16 %v1298_v3, %v1294_v57  ;;  %v1411_v1 = vadd.f32 %v1410_v61, %v16376_v19  ;;  %v13410_v15 = vpop.f32.mrb[6].mxu1 }
 0x319   : > { %20443 = vst [vmem:[#allocation35_spill] sm:$0xff] %v16401_v45  ;;  %v1422_v5 = vadd.f32 %v13410_v15, %v16376_v19  ;;  %v1413_v6 = vpop.f32.mrb[7].mxu1 }
 0x31a   : > { %20444 = vst [vmem:[#allocation36_spill] sm:$0xff] %v16404_v0  ;;  %v1414_v24 = vadd.f32 %v1413_v6, %v16376_v19  ;;  %v1301_v4 = vpop.f32.mrb[8].mxu0  ;;  %13422 = vmatmul.mubr.msk.bf16.vlgmr.msra.gmra.mrb[16].mxu1 %vm1481_vm1, %v16382_v38  ;;  %v1533_v11 = vsel %vm1481_vm1, %v16404_v0, 0 }
 0x31b   : > { %v16413_v62 = vpack.c.bf16 %v1422_v5, %v1419_v60  ;;  %v1303_v40 = vpop.f32.mrb[9].mxu0  ;;  %13426 = vmatpush3.bf16.xpose.msra.mxu1 %v1533_v11  ;;  %13427 = vmatprep.mubr.msk.bf16.mxu1 %vm15740_vm0, %v20300_v28  ;;  %v1302_v10 = vadd.f32 %v1301_v4, %v16372_v7 }
 0x31c   : > { %v16417_v9 = vpack.c.bf16 %v1414_v24, %v1411_v1  ;;  %v1304_v2 = vadd.f32 %v1303_v40, %v16369_v48  ;;  %v1305_v16 = vpop.f32.mrb[10].mxu0  ;;  %13431 = vmatprep.subr.bf16.mxu1 %v20300_v28 }
 0x31d   : > { %20445 = vst [vmem:[#allocation37_spill] sm:$0xff] %v16413_v62  ;;  %v1306_v18 = vadd.f32 %v1305_v16, %v16372_v7  ;;  %v1307_v20 = vpop.f32.mrb[11].mxu0 }
 0x31e   : > { %20446 = vst [vmem:[#allocation38_spill] sm:$0xff] %v16417_v9  ;;  %v1308_v63 = vadd.f32 %v1307_v20, %v16369_v48  ;;  %v13413_v21 = vpop.f32.mrb[8].mxu1 }
 0x31f   : > { %v16424_v17 = vpack.c.bf16 %v1306_v18, %v1302_v10  ;;  %v1435_v41 = vadd.f32 %v13413_v21, %v16376_v19  ;;  %v1426_v13 = vpop.f32.mrb[9].mxu1 }
 0x320   : > { %v16427_v26 = vpack.c.bf16 %v1308_v63, %v1304_v2  ;;  %v1427_v30 = vadd.f32 %v1426_v13, %v16376_v19  ;;  %v13414_v32 = vpop.f32.mrb[10].mxu1 }
 0x321   : > { %20447 = vst [vmem:[#allocation39_spill] sm:$0xff] %v16424_v17  ;;  %v1438_v31 = vadd.f32 %v13414_v32, %v16376_v19  ;;  %v1429_v34 = vpop.f32.mrb[11].mxu1 }
 0x322   : > { %20448 = vst [vmem:[#allocation40_spill] sm:$0xff] %v16427_v26  ;;  %v1430_v14 = vadd.f32 %v1429_v34, %v16376_v19  ;;  %v1311_v36 = vpop.f32.mrb[12].mxu0  ;;  %13428 = vmatmul.mubr.msk.bf16.vlgmr.msra.gmra.mrb[20].mxu1 %vm1481_vm1, %v16401_v45  ;;  %v1580_v37 = vsel %vm1481_vm1, %v16427_v26, 0 }
 0x323   : > { %v16436_v8 = vpack.c.bf16 %v1438_v31, %v1435_v41  ;;  %v1313_v49 = vpop.f32.mrb[13].mxu0  ;;  %13432 = vmatpush3.bf16.xpose.msra.mxu1 %v1580_v37  ;;  %13433 = vmatprep.mubr.msk.bf16.mxu1 %vm15740_vm0, %v20300_v28  ;;  %v1312_v25 = vadd.f32 %v1311_v36, %v16372_v7 }
 0x324   : > { %v16440_v58 = vpack.c.bf16 %v1430_v14, %v1427_v30  ;;  %v1314_v56 = vadd.f32 %v1313_v49, %v16369_v48  ;;  %v1315_v42 = vpop.f32.mrb[14].mxu0  ;;  %13437 = vmatprep.subr.bf16.mxu1 %v20300_v28 }
 0x325   : > { %20449 = vst [vmem:[#allocation41_spill] sm:$0xff] %v16436_v8  ;;  %v1316_v54 = vadd.f32 %v1315_v42, %v16372_v7  ;;  %v1317_v12 = vpop.f32.mrb[15].mxu0 }
 0x326   : > { %20450 = vst [vmem:[#allocation42_spill] sm:$0xff] %v16440_v58  ;;  %v1318_v43 = vadd.f32 %v1317_v12, %v16369_v48  ;;  %v13417_v44 = vpop.f32.mrb[12].mxu1 }
 0x327   : > { %v16447_v47 = vpack.c.bf16 %v1316_v54, %v1312_v25  ;;  %v1451_v29 = vadd.f32 %v13417_v44, %v16376_v19  ;;  %v1442_v57 = vpop.f32.mrb[13].mxu1 }
 0x328   : > { %v16450_v51 = vpack.c.bf16 %v1318_v43, %v1314_v56  ;;  %v1443_v52 = vadd.f32 %v1442_v57, %v16376_v19  ;;  %v13418_v55 = vpop.f32.mrb[14].mxu1 }
 0x329   : > { %20451 = vst [vmem:[#allocation43_spill] sm:$0xff] %v16447_v47  ;;  %v1454_v59 = vadd.f32 %v13418_v55, %v16376_v19  ;;  %v1445_v3 = vpop.f32.mrb[15].mxu1 }
 0x32a   : > { %20452 = vst [vmem:[#allocation44_spill] sm:$0xff] %v16450_v51  ;;  %v1446_v33 = vadd.f32 %v1445_v3, %v16376_v19  ;;  %v1321_v60 = vpop.f32.mrb[16].mxu0  ;;  %13434 = vmatmul.mubr.msk.bf16.vlgmr.msra.gmra.mrb[24].mxu1 %vm1481_vm1, %v16424_v17  ;;  %v1627_v61 = vsel %vm1481_vm1, %v16450_v51, 0 }
 0x32b   : > { %v16459_v1 = vpack.c.bf16 %v1454_v59, %v1451_v29  ;;  %v1323_v15 = vpop.f32.mrb[17].mxu0  ;;  %13438 = vmatpush3.bf16.xpose.msra.mxu1 %v1627_v61  ;;  %13439 = vmatprep.mubr.msk.bf16.mxu1 %vm15740_vm0, %v20300_v28  ;;  %v1322_v19 = vadd.f32 %v1321_v60, %v16372_v7 }
 0x32c   : > { %v16463_v5 = vpack.c.bf16 %v1446_v33, %v1443_v52  ;;  %v1324_v6 = vadd.f32 %v1323_v15, %v16369_v48  ;;  %v1325_v24 = vpop.f32.mrb[18].mxu0  ;;  %13449 = vmatprep.subr.bf16.mxu1 %v20300_v28 }
 0x32d   : > { %v1326_v4 = vadd.f32 %v1325_v24, %v16372_v7  ;;  %v1327_v11 = vpop.f32.mrb[19].mxu0 }
 0x32e   : > { %v1328_v40 = vadd.f32 %v1327_v11, %v16369_v48 }
 0x32f   : > { %v16470_v2 = vpack.c.bf16 %v1326_v4, %v1322_v19 }
 0x330   : > { %v16472_v16 = vpack.c.bf16 %v1328_v40, %v1324_v6 }
 0x332   : > { %20453 = vst [vmem:[#allocation45_spill] sm:$0xff] %v16472_v16  ;;  %v1331_v10 = vpop.f32.mrb[20].mxu0  ;;  %13440 = vmatmul.mubr.msk.bf16.vlgmr.msra.gmra.mrb[28].mxu1 %vm1481_vm1, %v16447_v47  ;;  %v1674_v18 = vsel %vm1481_vm1, %v16472_v16, 0 }
 0x333   : > { %v1333_v20 = vpop.f32.mrb[21].mxu0  ;;  %13444 = vmatpush3.bf16.xpose.msra.mxu0 %v1674_v18  ;;  %13451 = vmatprep.mubr.msk.bf16.mxu1 %vm15740_vm0, %v20300_v28  ;;  %v1332_v41 = vadd.f32 %v1331_v10, %v16372_v7 }
 0x334   : > { %v1334_v63 = vadd.f32 %v1333_v20, %v16369_v48  ;;  %v1335_v21 = vpop.f32.mrb[22].mxu0  ;;  %13455 = vmatprep.subr.bf16.mxu0 %v20300_v28 }
 0x335   : > { %v1336_v13 = vadd.f32 %v1335_v21, %v16372_v7  ;;  %v1337_v30 = vpop.f32.mrb[23].mxu0 }
 0x336   : > { %v1338_v32 = vadd.f32 %v1337_v30, %v16369_v48 }
 0x337   : > { %v16485_v31 = vpack.c.bf16 %v1336_v13, %v1332_v41 }
 0x338   : > { %v16487_v34 = vpack.c.bf16 %v1338_v32, %v1334_v63 }
 0x33a   : > { %v1341_v14 = vpop.f32.mrb[24].mxu0  ;;  %13446 = vmatmul.mubr.msk.bf16.vlgmr.msra.gmra.mrb[32].mxu0 %vm1481_vm1, %v16470_v2  ;;  %v1721_v36 = vsel %vm1481_vm1, %v16487_v34, 0 }
 0x33b   : > { %v1343_v37 = vpop.f32.mrb[25].mxu0  ;;  %13450 = vmatpush3.bf16.xpose.msra.mxu1 %v1721_v36  ;;  %13457 = vmatprep.mubr.msk.bf16.mxu0 %vm15740_vm0, %v20300_v28  ;;  %v1342_v42 = vadd.f32 %v1341_v14, %v16372_v7 }
 0x33c   : > { %v1344_v49 = vadd.f32 %v1343_v37, %v16369_v48  ;;  %v1345_v56 = vpop.f32.mrb[26].mxu0  ;;  %13461 = vmatprep.subr.bf16.mxu1 %v20300_v28 }
 0x33d   : > { %v1346_v25 = vadd.f32 %v1345_v56, %v16372_v7  ;;  %v1347_v54 = vpop.f32.mrb[27].mxu0 }
 0x33e   : > { %v1348_v12 = vadd.f32 %v1347_v54, %v16369_v48 }
 0x33f   : > { %v16500_v43 = vpack.c.bf16 %v1346_v25, %v1342_v42 }
 0x340   : > { %v16502_v44 = vpack.c.bf16 %v1348_v12, %v1344_v49 }
 0x341   : > { %20454 = vst [vmem:[#allocation46_spill] sm:$0xff] %v16500_v43 }
 0x342   : > { %v1351_v29 = vpop.f32.mrb[28].mxu0  ;;  %13452 = vmatmul.mubr.msk.bf16.vlgmr.msra.gmra.mrb[32].mxu1 %vm1481_vm1, %v16485_v31  ;;  %v1768_v57 = vsel %vm1481_vm1, %v16502_v44, 0 }
 0x343   : > { %v1353_v52 = vpop.f32.mrb[29].mxu0  ;;  %13456 = vmatpush3.bf16.xpose.msra.mxu0 %v1768_v57  ;;  %13463 = vmatprep.mubr.msk.bf16.mxu1 %vm15740_vm0, %v20300_v28  ;;  %v1352_v3 = vadd.f32 %v1351_v29, %v16372_v7 }
 0x344   : > { %v1354_v55 = vadd.f32 %v1353_v52, %v16369_v48  ;;  %v1355_v59 = vpop.f32.mrb[30].mxu0  ;;  %13467 = vmatprep.subr.bf16.mxu0 %v20300_v28 }
 0x345   : > { %v1356_v33 = vadd.f32 %v1355_v59, %v16372_v7  ;;  %v1357_v60 = vpop.f32.mrb[31].mxu0 }
 0x346   : > { %v1358_v61 = vadd.f32 %v1357_v60, %v16369_v48 }
 0x347   : > { %v16515_v15 = vpack.c.bf16 %v1356_v33, %v1352_v3 }
 0x348   : > { %v16517_v6 = vpack.c.bf16 %v1358_v61, %v1354_v55 }
 0x349   : > { %20455 = vst [vmem:[#allocation47_spill] sm:$0xff] %v16515_v15 }
 0x34a   : > { %13458 = vmatmul.mubr.msk.bf16.vlgmr.msra.gmra.mrb[36].mxu0 %vm1481_vm1, %v16500_v43  ;;  %v1815_v24 = vsel %vm1481_vm1, %v16517_v6, 0 }
 0x34b   : > { %13462 = vmatpush3.bf16.xpose.msra.mxu1 %v1815_v24  ;;  %13468 = vmatpush3.bf16.msra.mxu0 %v16394_v50 }
 0x34c   : > { %13473 = vmatprep.subr.bf16.mxu1 %v20300_v28  ;;  %13469 = vmatprep.mubr.msk.bf16.mxu0 %vm15740_vm0, %v20300_v28 }
 0x34d   : > { %13479 = vmatprep.subr.bf16.mxu0 %v20300_v28 }
 0x352   : > { %13464 = vmatmul.mubr.msk.bf16.vlgmr.msra.gmra.mrb[36].mxu1 %vm1481_vm1, %v16515_v15 }
 0x353   : > { %13474 = vmatpush3.bf16.msra.mxu1 %v16392_v35  ;;  %13475 = vmatprep.mubr.msk.bf16.mxu1 %vm15740_vm0, %v20300_v28 }
 0x354   : > { %13485 = vmatprep.subr.bf16.mxu1 %v20300_v28 }
 0x3ed   : > { %v16534_v48 = vpop.f32.mrb[16].mxu1 }
 0x3ee   : > { %v13423_v7 = vpop.f32.mrb[17].mxu1 }
 0x3ef   : > { %v16536_v19 = vpop.f32.mrb[18].mxu1 }
 0x3f0   : > { %v13424_v4 = vpop.f32.mrb[19].mxu1 }
 0x3f5   : > { %v1569_v11 = vpop.f32.mrb[20].mxu1 }
 0x3f6   : > { %v13429_v40 = vpop.f32.mrb[21].mxu1  ;;  %v1864_v10 = vsel %vm1481_vm1, %v1569_v11, -inf }
 0x3f7   : > { %1865 = vmax.xlane.f32.xlu0 %v1864_v10  ;;  %v1572_v18 = vpop.f32.mrb[22].mxu1 }
 0x3f8   : > { %v13430_v20 = vpop.f32.mrb[23].mxu1  ;;  %v1867_v63 = vsel %vm1481_vm1, %v1572_v18, -inf }
 0x3f9   : > { %1868 = vmax.xlane.f32.xlu1 %v1867_v63 }
 0x3fd   : > { %v16540_v21 = vpop.f32.mrb[24].mxu1 }
 0x3fe   : > { %v13435_v41 = vpop.f32.mrb[25].mxu1 }
 0x3ff   : > { %v16542_v13 = vpop.f32.mrb[26].mxu1 }
 0x400   : > { %v13436_v30 = vpop.f32.mrb[27].mxu1 }
 0x405   : > { %v1663_v32 = vpop.f32.mrb[28].mxu1 }
 0x406   : > { %v13441_v14 = vpop.f32.mrb[29].mxu1  ;;  %v1876_v36 = vsel %vm1481_vm1, %v1663_v32, -inf }
 0x407   : > { %1877 = vmax.xlane.f32.xlu0 %v1876_v36  ;;  %v1666_v37 = vpop.f32.mrb[30].mxu1 }
 0x408   : > { %v13442_v49 = vpop.f32.mrb[31].mxu1  ;;  %v1879_v56 = vsel %vm1481_vm1, %v1666_v37, -inf }
 0x409   : > { %1880 = vmax.xlane.f32.xlu1 %v1879_v56 }
 0x40d   : > { %v16546_v42 = vpop.f32.mrb[32].mxu0 }
 0x40e   : > { %v13447_v25 = vpop.f32.mrb[33].mxu0 }
 0x40f   : > { %v16548_v54 = vpop.f32.mrb[34].mxu0 }
 0x410   : > { %v13448_v12 = vpop.f32.mrb[35].mxu0 }
 0x415   : > { %v1757_v29 = vpop.f32.mrb[32].mxu1 }
 0x416   : > { %v13453_v57 = vpop.f32.mrb[33].mxu1  ;;  %v1888_v52 = vsel %vm1481_vm1, %v1757_v29, -inf }
 0x417   : > { %1889 = vmax.xlane.f32.xlu0 %v1888_v52  ;;  %v1760_v55 = vpop.f32.mrb[34].mxu1 }
 0x418   : > { %v13454_v59 = vpop.f32.mrb[35].mxu1  ;;  %v1891_v3 = vsel %vm1481_vm1, %v1760_v55, -inf }
 0x419   : > { %1892 = vmax.xlane.f32.xlu1 %v1891_v3 }
 0x41d   : > { %v16552_v33 = vpop.f32.mrb[36].mxu0 }
 0x41e   : > { %v13459_v60 = vpop.f32.mrb[37].mxu0 }
 0x41f   : > { %v16554_v61 = vpop.f32.mrb[38].mxu0 }
 0x420   : > { %v13460_v24 = vpop.f32.mrb[39].mxu0 }
 0x425   : > { %v1851_v7 = vpop.f32.mrb[36].mxu1 }
 0x426   : > { %v13465_v4 = vpop.f32.mrb[37].mxu1  ;;  %v1900_v40 = vsel %vm1481_vm1, %v1851_v7, -inf }
 0x427   : > { %1901 = vmax.xlane.f32.xlu0 %v1900_v40  ;;  %v1854_v10 = vpop.f32.mrb[38].mxu1 }
 0x428   : > { %v13466_v20 = vpop.f32.mrb[39].mxu1  ;;  %v1903_v63 = vsel %vm1481_vm1, %v1854_v10, -inf }
 0x429   : > { %1904 = vmax.xlane.f32.xlu1 %v1903_v63 }
 0x43d   : > { %2477 = vrot.lane.b32.xlu0 %v16404_v0, %s15741_s28 }
 0x484   : > { %v1866_v41 = vpop.xlane.xlu0 %1865 }
 0x485   : > { %v1908_v30 = vsub.f32 %v1569_v11, %v1866_v41 }
 0x486   : > { %v1869_v14 = vpop.xlane.xlu1 %1868 }
 0x487   : > { %v1926_v36 = vmul.f32 1.442695, %v1908_v30  ;;  %v1909_v49 = vsub.f32 %v1572_v18, %v1869_v14 }
 0x489   : > { %14720 = vpow2.f32 %v1926_v36  ;;  %v1928_v56 = vmul.f32 1.442695, %v1909_v49 }
 0x48b   : > { %14722 = vpow2.f32 %v1928_v56 }
 0x493   : > { %v16560_v25 = vpop.eup %14720 }
 0x494   : > { %v1878_v12 = vpop.xlane.xlu0 %1877  ;;  %v1960_v57 = vsel %vm1481_vm1, %v16560_v25, 0.0 }
 0x495   : > { %v16564_v52 = vpop.eup %14722  ;;  %v1912_v59 = vsub.f32 %v1663_v32, %v1878_v12  ;;  %1961 = vadd.xlane.f32.xlu0 %v1960_v57 }
 0x496   : > { %v1881_v3 = vpop.xlane.xlu1 %1880  ;;  %v1963_v11 = vsel %vm1481_vm1, %v16564_v52, 0.0 }
 0x497   : > { %v1934_v60 = vmul.f32 1.442695, %v1912_v59  ;;  %v1913_v24 = vsub.f32 %v1666_v37, %v1881_v3  ;;  %1964 = vadd.xlane.f32.xlu1 %v1963_v11 }
 0x499   : > { %14724 = vpow2.f32 %v1934_v60  ;;  %v1936_v18 = vmul.f32 1.442695, %v1913_v24 }
 0x49b   : > { %14726 = vpow2.f32 %v1936_v18 }
 0x4a3   : > { %v16568_v4 = vpop.eup %14724 }
 0x4a4   : > { %v1890_v40 = vpop.xlane.xlu0 %1889  ;;  %v1972_v20 = vsel %vm1481_vm1, %v16568_v4, 0.0 }
 0x4a5   : > { %v16572_v63 = vpop.eup %14726  ;;  %v1916_v32 = vsub.f32 %v1757_v29, %v1890_v40  ;;  %1973 = vadd.xlane.f32.xlu0 %v1972_v20 }
 0x4a6   : > { %v1893_v41 = vpop.xlane.xlu1 %1892  ;;  %v1975_v30 = vsel %vm1481_vm1, %v16572_v63, 0.0 }
 0x4a7   : > { %v1942_v14 = vmul.f32 1.442695, %v1916_v32  ;;  %v1917_v37 = vsub.f32 %v1760_v55, %v1893_v41  ;;  %1976 = vadd.xlane.f32.xlu1 %v1975_v30  ;;  %v1858_v30 = vsel %vm1481_vm1, %v16534_v48, -inf }
 0x4a9   : > { %14728 = vpow2.f32 %v1942_v14  ;;  %v1944_v36 = vmul.f32 1.442695, %v1917_v37  ;;  %v1870_v14 = vsel %vm1481_vm1, %v16540_v21, -inf }
 0x4ab   : > { %14730 = vpow2.f32 %v1944_v36 }
 0x4b3   : > { %v16576_v49 = vpop.eup %14728 }
 0x4b4   : > { %v1902_v56 = vpop.xlane.xlu0 %1901  ;;  %v1984_v12 = vsel %vm1481_vm1, %v16576_v49, 0.0 }
 0x4b5   : > { %v16580_v57 = vpop.eup %14730  ;;  %v1920_v29 = vsub.f32 %v1851_v7, %v1902_v56  ;;  %1985 = vadd.xlane.f32.xlu0 %v1984_v12 }
 0x4b6   : > { %v1987_v59 = vsel %vm1481_vm1, %v16580_v57, 0.0  ;;  %v1905_v60 = vpop.xlane.xlu1 %1904 }
 0x4b7   : > { %v1950_v3 = vmul.f32 1.442695, %v1920_v29  ;;  %1988 = vadd.xlane.f32.xlu1 %v1987_v59  ;;  %v1921_v24 = vsub.f32 %v1854_v10, %v1905_v60  ;;  %v1861_v10 = vsel %vm1481_vm1, %v16536_v19, -inf  ;;  %v1873_v29 = vsel %vm1481_vm1, %v16542_v13, -inf }
 0x4b8   : > { %v16608_v20 = vpop.permute.xlu0 %2477  ;;  %v1885_v60 = vsel %vm1481_vm1, %v16548_v54, -inf }
 0x4b9   : > { %14732 = vpow2.f32 %v1950_v3  ;;  %v1952_v18 = vmul.f32 1.442695, %v1921_v24  ;;  %v1897_v3 = vsel %vm1481_vm1, %v16554_v61, -inf  ;;  %v1894_v24 = vsel %vm1481_vm1, %v16552_v33, -inf }
 0x4bb   : > { %14734 = vpow2.f32 %v1952_v18 }
 0x4c3   : > { %v16584_v55 = vpop.eup %14732 }
 0x4c4   : > { %v1996_v11 = vsel %vm1481_vm1, %v16584_v55, 0.0 }
 0x4c5   : > { %1997 = vadd.xlane.f32.xlu0 %v1996_v11  ;;  %v16594_v7 = vpop.eup %14734 }
 0x4c6   : > { %v1999_v40 = vsel %vm1481_vm1, %v16594_v7, 0.0 }
 0x4c8   : > { %2474 = vrot.lane.b32.xlu1 %v16401_v45, %s15741_s28 }
 0x4db   : > { %2689 = vrot.lane.b32.xlu0 %v16487_v34, %s15741_s28 }
 0x4df   : > { %2795 = vrot.lane.b32.xlu0 %v16517_v6, %s15741_s28 }
 0x4ec   : > { %2000 = vadd.xlane.f32.xlu1 %v1999_v40 }
 0x4fd   : > { %2583 = vrot.lane.b32.xlu1 %v16450_v51, %s15741_s28 }
 0x4fe   : > { %1862 = vmax.xlane.f32.xlu0 %v1861_v10 }
 0x501   : > { %2580 = vrot.lane.b32.xlu1 %v16447_v47, %s15741_s28 }
 0x505   : > { %2686 = vrot.lane.b32.xlu1 %v16485_v31, %s15741_s28 }
 0x514   : > { %2792 = vrot.lane.b32.xlu0 %v16515_v15, %s15741_s28 }
 0x522   : > { %v1962_v32 = vpop.xlane.xlu0 %1961 }
 0x523   : > { %14736 = vrcp.f32 %v1962_v32 }
 0x524   : > { %v1965_v41 = vpop.xlane.xlu1 %1964 }
 0x525   : > { %14738 = vrcp.f32 %v1965_v41 }
 0x529   : > { %1859 = vmax.xlane.f32.xlu1 %v1858_v30 }
 0x52d   : > { %v14737_v37 = vpop.eup %14736  ;;  %1871 = vmax.xlane.f32.xlu1 %v1870_v14 }
 0x52e   : > { %v16615_v56 = vmul.f32 %v14737_v37, %v16560_v25 }
 0x52f   : > { %v14739_v36 = vpop.eup %14738 }
 0x530   : > { %20456 = vst [vmem:[#allocation48_spill] sm:$0xff] %v16615_v56  ;;  %v16618_v12 = vmul.f32 %v14739_v36, %v16564_v52  ;;  %v1882_v52 = vsel %vm1481_vm1, %v16546_v42, -inf }
 0x531   : > { %1874 = vmax.xlane.f32.xlu1 %v1873_v29 }
 0x532   : > { %20457 = vst [vmem:[#allocation49_spill] sm:$0xff] %v16618_v12  ;;  %v1974_v59 = vpop.xlane.xlu0 %1973  ;;  %v2051_v11 = vpack.c.bf16 %v16618_v12, %v16615_v56 }
 0x533   : > { %14740 = vrcp.f32 %v1974_v59  ;;  %1898 = vmax.xlane.f32.xlu0 %v1897_v3 }
 0x534   : > { %13476 = vmatmul.mubr.msk.bf16.vlgmr.msra.gmra.mrb[40].mxu1 %vm1481_vm1, %v2051_v11  ;;  %v1977_v25 = vpop.xlane.xlu1 %1976 }
 0x535   : > { %13486 = vmatpush3.bf16.msra.mxu1 %v16413_v62  ;;  %14742 = vrcp.f32 %v1977_v25  ;;  %1883 = vmax.xlane.f32.xlu1 %v1882_v52 }
 0x536   : > { %13487 = vmatprep.mubr.msk.bf16.mxu1 %vm15740_vm0, %v20300_v28  ;;  %13497 = vmatprep.subr.bf16.mxu1 %v20300_v28 }
 0x539   : > { %1886 = vmax.xlane.f32.xlu1 %v1885_v60 }
 0x53d   : > { %v14741_v18 = vpop.eup %14740  ;;  %1895 = vmax.xlane.f32.xlu1 %v1894_v24  ;;  %v2483_v24 = vsel %vm1481_vm1, %v16608_v20, 0 }
 0x53e   : > { %v16638_v10 = vmul.f32 %v14741_v18, %v16568_v4 }
 0x53f   : > { %v14743_v40 = vpop.eup %14742 }
 0x540   : > { %20458 = vst [vmem:[#allocation50_spill] sm:$0xff] %v16638_v10  ;;  %v16641_v32 = vmul.f32 %v14743_v40, %v16572_v63 }
 0x542   : > { %20459 = vst [vmem:[#allocation51_spill] sm:$0xff] %v16641_v32  ;;  %v1986_v41 = vpop.xlane.xlu0 %1985  ;;  %v2053_v30 = vpack.c.bf16 %v16641_v32, %v16638_v10 }
 0x543   : > { %14744 = vrcp.f32 %v1986_v41 }
 0x544   : > { %13488 = vmatmul.mubr.msk.bf16.vlgmr.msra.gmra.mrb[44].mxu1 %vm1481_vm1, %v2053_v30  ;;  %v1989_v14 = vpop.xlane.xlu1 %1988 }
 0x545   : > { %13498 = vmatpush3.bf16.msra.mxu1 %v16436_v8  ;;  %14746 = vrcp.f32 %v1989_v14  ;;  %13499 = vmatprep.mubr.msk.bf16.mxu1 %vm15740_vm0, %v20300_v28 }
 0x546   : > { %13509 = vmatprep.subr.bf16.mxu1 %v20300_v28 }
 0x549   : > { %2424 = vrot.lane.b32.xlu0 %v16385_v39, %s15741_s28 }
 0x54d   : > { %v14745_v4 = vpop.eup %14744  ;;  %2527 = vrot.lane.b32.xlu0 %v16424_v17, %s15741_s28 }
 0x54e   : > { %v16655_v37 = vmul.f32 %v14745_v4, %v16576_v49  ;;  %v2475_v49 = vpop.permute.xlu1 %2474 }
 0x54f   : > { %v14747_v63 = vpop.eup %14746 }
 0x550   : > { %20460 = vst [vmem:[#allocation52_spill] sm:$0xff] %v16655_v37  ;;  %v16658_v36 = vmul.f32 %v14747_v63, %v16580_v57 }
 0x551   : > { %2633 = vrot.lane.b32.xlu0 %v16470_v2, %s15741_s28 }
 0x552   : > { %20461 = vst [vmem:[#allocation53_spill] sm:$0xff] %v16658_v36  ;;  %v2055_v29 = vpack.c.bf16 %v16658_v36, %v16655_v37  ;;  %v1998_v57 = vpop.xlane.xlu0 %1997 }
 0x553   : > { %14748 = vrcp.f32 %v1998_v57 }
 0x554   : > { %13500 = vmatmul.mubr.msk.bf16.vlgmr.msra.gmra.mrb[48].mxu1 %vm1481_vm1, %v2055_v29 }
 0x555   : > { %13510 = vmatpush3.bf16.msra.mxu1 %v16459_v1  ;;  %2739 = vrot.lane.b32.xlu0 %v16500_v43, %s15741_s28 }
 0x556   : > { %13511 = vmatprep.mubr.msk.bf16.mxu1 %vm15740_vm0, %v20300_v28  ;;  %13521 = vmatprep.subr.bf16.mxu1 %v20300_v28 }
 0x559   : > { %3093 = vrot.lane.b32.xlu0 %v16392_v35, %s15741_s28 }
 0x55d   : > { %3381 = vrot.lane.b32.xlu0 %v16459_v1, %s15741_s28  ;;  %v14749_v3 = vpop.eup %14748 }
 0x55e   : > { %v16682_v25 = vmul.f32 %v14749_v3, %v16584_v55 }
 0x560   : > { %20462 = vst [vmem:[#allocation54_spill] sm:$0xff] %v16682_v25 }
 0x561   : > { %3693 = vrot.lane.b32.xlu0 %v16382_v38, %s15742_s1 }
 0x565   : > { %3744 = vrot.lane.b32.xlu0 %v16401_v45, %s15742_s1 }
 0x569   : > { %3795 = vrot.lane.b32.xlu0 %v16424_v17, %s15742_s1 }
 0x579   : > { %v2001_v59 = vpop.xlane.xlu1 %2000 }
 0x57a   : > { %14750 = vrcp.f32 %v2001_v59 }
 0x57d   : > { %v2584_v18 = vpop.permute.xlu1 %2583 }
 0x57e   : > { %v2589_v55 = vsel %vm1481_vm1, %v2584_v18, 0 }
 0x581   : > { %v2581_v20 = vpop.permute.xlu1 %2580 }
 0x584   : > { %v14751_v11 = vpop.eup %14750 }
 0x585   : > { %v16685_v52 = vmul.f32 %v14751_v11, %v16594_v7  ;;  %v2690_v7 = vpop.permute.xlu0 %2689  ;;  %v2687_v30 = vpop.permute.xlu1 %2686 }
 0x586   : > { %v2695_v40 = vsel %vm1481_vm1, %v2690_v7, 0 }
 0x587   : > { %20463 = vst [vmem:[#allocation55_spill] sm:$0xff] %v16685_v52  ;;  %v2057_v60 = vpack.c.bf16 %v16685_v52, %v16682_v25 }
 0x589   : > { %13512 = vmatmul.mubr.msk.bf16.vlgmr.msra.gmra.mrb[52].mxu1 %vm1481_vm1, %v2057_v60  ;;  %v2796_v41 = vpop.permute.xlu0 %2795 }
 0x58a   : > { %13522 = vmatpush3.bf16.xpose.msra.mxu1 %v2483_v24  ;;  %13523 = vmatprep.mubr.msk.bf16.mxu1 %vm15740_vm0, %v20300_v28  ;;  %v2801_v14 = vsel %vm1481_vm1, %v2796_v41, 0 }
 0x58b   : > { %13533 = vmatprep.subr.bf16.mxu1 %v20300_v28 }
 0x58d   : > { %v1863_v4 = vpop.xlane.xlu0 %1862 }
 0x58e   : > { %v1907_v29 = vsub.f32 %v16536_v19, %v1863_v4 }
 0x590   : > { %v1924_v59 = vmul.f32 1.442695, %v1907_v29 }
 0x591   : > { %13524 = vmatmul.mubr.msk.bf16.vlgmr.msra.gmra.mrb[56].mxu1 %vm1481_vm1, %v2475_v49  ;;  %v2793_v63 = vpop.permute.xlu0 %2792 }
 0x592   : > { %13534 = vmatpush3.bf16.xpose.msra.mxu1 %v2589_v55  ;;  %13535 = vmatprep.mubr.msk.bf16.mxu1 %vm15740_vm0, %v20300_v28 }
 0x593   : > { %13545 = vmatprep.subr.bf16.mxu1 %v20300_v28 }
 0x599   : > { %13536 = vmatmul.mubr.msk.bf16.vlgmr.msra.gmra.mrb[60].mxu1 %vm1481_vm1, %v2581_v20 }
 0x59a   : > { %13546 = vmatpush3.bf16.xpose.msra.mxu1 %v2695_v40  ;;  %13547 = vmatprep.mubr.msk.bf16.mxu1 %vm15740_vm0, %v20300_v28 }
 0x59b   : > { %13557 = vmatprep.subr.bf16.mxu1 %v20300_v28 }
 0x5a1   : > { %13548 = vmatmul.mubr.msk.bf16.vlgmr.msra.gmra.mrb[64].mxu1 %vm1481_vm1, %v2687_v30 }
 0x5a2   : > { %13558 = vmatpush3.bf16.xpose.msra.mxu1 %v2801_v14  ;;  %13559 = vmatprep.mubr.msk.bf16.mxu1 %vm15740_vm0, %v20300_v28 }
 0x5a3   : > { %13569 = vmatprep.subr.bf16.mxu1 %v20300_v28 }
 0x5a9   : > { %13560 = vmatmul.mubr.msk.bf16.vlgmr.msra.gmra.mrb[68].mxu1 %vm1481_vm1, %v2793_v63 }
 0x5aa   : > { %13571 = vmatprep.mubr.msk.bf16.mxu1 %vm15740_vm0, %v20300_v28 }
 0x5b6   : > { %v1860_v49 = vpop.xlane.xlu1 %1859 }
 0x5b7   : > { %v1906_v57 = vsub.f32 %v16534_v48, %v1860_v49 }
 0x5b9   : > { %v1922_v3 = vmul.f32 1.442695, %v1906_v57 }
 0x5ba   : > { %v1872_v11 = vpop.xlane.xlu1 %1871 }
 0x5bb   : > { %14752 = vpow2.f32 %v1922_v3  ;;  %v1910_v60 = vsub.f32 %v16540_v21, %v1872_v11 }
 0x5bc   : > { %14754 = vpow2.f32 %v1924_v59 }
 0x5bd   : > { %v1930_v24 = vmul.f32 1.442695, %v1910_v60 }
 0x5be   : > { %v1875_v18 = vpop.xlane.xlu1 %1874 }
 0x5bf   : > { %v1911_v55 = vsub.f32 %v16542_v13, %v1875_v18  ;;  %14756 = vpow2.f32 %v1930_v24 }
 0x5c0   : > { %v1899_v7 = vpop.xlane.xlu0 %1898 }
 0x5c1   : > { %v1932_v20 = vmul.f32 1.442695, %v1911_v55  ;;  %v1919_v11 = vsub.f32 %v16554_v61, %v1899_v7 }
 0x5c2   : > { %v1884_v40 = vpop.xlane.xlu1 %1883 }
 0x5c3   : > { %v1914_v19 = vsub.f32 %v16546_v42, %v1884_v40  ;;  %14758 = vpow2.f32 %v1932_v20  ;;  %v1948_v55 = vmul.f32 1.442695, %v1919_v11 }
 0x5c4   : > { %v16718_v41 = vpop.permute.xlu0 %2424 }
 0x5c5   : > { %v16720_v48 = vpop.eup %14752  ;;  %v1938_v30 = vmul.f32 1.442695, %v1914_v19 }
 0x5c6   : > { %v1887_v14 = vpop.xlane.xlu1 %1886  ;;  %v1954_v21 = vsel %vm1481_vm1, %v16720_v48, 0.0  ;;  %v16724_v4 = vpop.eup %14754 }
 0x5c7   : > { %v1915_v13 = vsub.f32 %v16548_v54, %v1887_v14  ;;  %1955 = vadd.xlane.f32.xlu1 %v1954_v21  ;;  %14760 = vpow2.f32 %v1938_v30  ;;  %v1957_v49 = vsel %vm1481_vm1, %v16724_v4, 0.0 }
 0x5c8   : > { %v16727_v63 = vpop.permute.xlu0 %2527 }
 0x5c9   : > { %v1940_v29 = vmul.f32 1.442695, %v1915_v13  ;;  %v16731_v57 = vpop.eup %14756 }
 0x5ca   : > { %v1896_v42 = vpop.xlane.xlu1 %1895  ;;  %v1966_v60 = vsel %vm1481_vm1, %v16731_v57, 0.0 }
 0x5cb   : > { %v1918_v59 = vsub.f32 %v16552_v33, %v1896_v42  ;;  %1958 = vadd.xlane.f32.xlu1 %v1957_v49  ;;  %14762 = vpow2.f32 %v1940_v29 }
 0x5cc   : > { %v16734_v3 = vpop.permute.xlu0 %2633 }
 0x5cd   : > { %v1946_v54 = vmul.f32 1.442695, %v1918_v59  ;;  %v16739_v24 = vpop.eup %14758 }
 0x5ce   : > { %v1969_v33 = vsel %vm1481_vm1, %v16739_v24, 0.0 }
 0x5cf   : > { %1967 = vadd.xlane.f32.xlu1 %v1966_v60  ;;  %14764 = vpow2.f32 %v1946_v54 }
 0x5d0   : > { %v16741_v18 = vpop.permute.xlu0 %2739  ;;  %14766 = vpow2.f32 %v1948_v55 }
 0x5d1   : > { %v16745_v20 = vpop.eup %14760 }
 0x5d2   : > { %v1978_v61 = vsel %vm1481_vm1, %v16745_v20, 0.0 }
 0x5d3   : > { %1970 = vadd.xlane.f32.xlu1 %v1969_v33 }
 0x5d4   : > { %v3094_v40 = vpop.permute.xlu0 %3093 }
 0x5d5   : > { %13570 = vmatpush3.bf16.msra.mxu1 %v3094_v40  ;;  %v16750_v7 = vpop.eup %14762 }
 0x5d6   : > { %13581 = vmatprep.subr.bf16.mxu1 %v20300_v28  ;;  %v1981_v19 = vsel %vm1481_vm1, %v16750_v7, 0.0 }
 0x5d7   : > { %1979 = vadd.xlane.f32.xlu1 %v1978_v61 }
 0x5d9   : > { %v16754_v30 = vpop.eup %14764 }
 0x5da   : > { %v1990_v14 = vsel %vm1481_vm1, %v16754_v30, 0.0  ;;  %v16758_v21 = vpop.eup %14766 }
 0x5db   : > { %1982 = vadd.xlane.f32.xlu1 %v1981_v19  ;;  %v1993_v13 = vsel %vm1481_vm1, %v16758_v21, 0.0 }
 0x5df   : > { %1991 = vadd.xlane.f32.xlu1 %v1990_v14 }
 0x5e3   : > { %1994 = vadd.xlane.f32.xlu1 %v1993_v13 }
 0x5f4   : > { %2421 = vrot.lane.b32.xlu1 %v16382_v38, %s15741_s28 }
 0x5f8   : > { %2530 = vrot.lane.b32.xlu1 %v16427_v26, %s15741_s28 }
 0x5fc   : > { %2636 = vrot.lane.b32.xlu1 %v16472_v16, %s15741_s28 }
 0x600   : > { %2742 = vrot.lane.b32.xlu1 %v16502_v44, %s15741_s28 }
 0x604   : > { %3189 = vrot.lane.b32.xlu1 %v16413_v62, %s15741_s28 }
 0x607   : > { %v16772_v29 = vpop.f32.mrb[40].mxu1 }
 0x608   : > { %3285 = vrot.lane.b32.xlu1 %v16436_v8, %s15741_s28  ;;  %v13477_v42 = vpop.f32.mrb[41].mxu1 }
 0x609   : > { %v16776_v49 = vpop.f32.mrb[42].mxu1 }
 0x60a   : > { %v13478_v11 = vpop.f32.mrb[43].mxu1 }
 0x60c   : > { %3695 = vrot.lane.b32.xlu1 %v16385_v39, %s15742_s1 }
 0x610   : > { %3746 = vrot.lane.b32.xlu1 %v16404_v0, %s15742_s1 }
 0x614   : > { %3797 = vrot.lane.b32.xlu1 %v16427_v26, %s15742_s1 }
 0x617   : > { %v16786_v54 = vpop.f32.mrb[44].mxu1 }
 0x618   : > { %20464 = vst [vmem:[#allocation56_spill] sm:$0xff] %v16786_v54  ;;  %3848 = vrot.lane.b32.xlu1 %v16450_v51, %s15742_s1  ;;  %v13489_v60 = vpop.f32.mrb[45].mxu1 }
 0x619   : > { %v16790_v55 = vpop.f32.mrb[46].mxu1 }
 0x61a   : > { %20465 = vst [vmem:[#allocation57_spill] sm:$0xff] %v16790_v55  ;;  %v13490_v40 = vpop.f32.mrb[47].mxu1 }
 0x627   : > { %v16794_v61 = vpop.f32.mrb[48].mxu1 }
 0x628   : > { %20466 = vst [vmem:[#allocation58_spill] sm:$0xff] %v16794_v61  ;;  %v13501_v19 = vpop.f32.mrb[49].mxu1 }
 0x629   : > { %v16796_v14 = vpop.f32.mrb[50].mxu1 }
 0x62a   : > { %20467 = vst [vmem:[#allocation59_spill] sm:$0xff] %v16796_v14  ;;  %v13502_v42 = vpop.f32.mrb[51].mxu1 }
 0x654   : > { %v1956_v11 = vpop.xlane.xlu1 %1955 }
 0x655   : > { %14768 = vrcp.f32 %v1956_v11 }
 0x658   : > { %v1959_v22 = vpop.xlane.xlu1 %1958 }
 0x659   : > { %14770 = vrcp.f32 %v1959_v22 }
 0x65c   : > { %v1968_v60 = vpop.xlane.xlu1 %1967  ;;  %v16800_v27 = vpop.f32.mrb[52].mxu1 }
 0x65d   : > { %20468 = vst [vmem:[#allocation60_spill] sm:$0xff] %v16800_v27  ;;  %v13513_v46 = vpop.f32.mrb[53].mxu1  ;;  %14772 = vrcp.f32 %v1968_v60 }
 0x65e   : > { %v16802_v59 = vpop.f32.mrb[54].mxu1 }
 0x65f   : > { %20469 = vst [vmem:[#allocation61_spill] sm:$0xff] %v16802_v59  ;;  %v13514_v19 = vpop.f32.mrb[55].mxu1  ;;  %v14769_v28 = vpop.eup %14768 }
 0x660   : > { %v1971_v33 = vpop.xlane.xlu1 %1970  ;;  %v16807_v42 = vmul.f32 %v14769_v28, %v16720_v48  ;;  %v20472_v28 = vmov 0.0  }
 0x661   : > { %14774 = vrcp.f32 %v1971_v33 }
 0x662   : > { %20470 = vst [vmem:[#allocation62_spill] sm:$0xff] %v16807_v42 }
 0x663   : > { %v14771_v13 = vpop.eup %14770 }
 0x664   : > { %v16810_v22 = vmul.f32 %v14771_v13, %v16724_v4  ;;  %v1980_v11 = vpop.xlane.xlu1 %1979  ;;  %v16812_v23 = vpop.f32.mrb[56].mxu1 }
 0x665   : > { %v13525_v46 = vpop.f32.mrb[57].mxu1  ;;  %14776 = vrcp.f32 %v1980_v11 }
 0x666   : > { %20471 = vst [vmem:[#allocation63_spill] sm:$0xff] %v16810_v22  ;;  %v16814_v53 = vpop.f32.mrb[58].mxu1  ;;  %v2050_v60 = vpack.c.bf16 %v16810_v22, %v16807_v42 }
 0x667   : > { %v13526_v19 = vpop.f32.mrb[59].mxu1  ;;  %v14773_v40 = vpop.eup %14772 }
 0x668   : > { %13470 = vmatmul.mubr.msk.bf16.vlgmr.msra.gmra.mrb[40].mxu0 %vm1481_vm1, %v2050_v60  ;;  %v1983_v33 = vpop.xlane.xlu1 %1982  ;;  %v16824_v4 = vmul.f32 %v14773_v40, %v16731_v57 }
 0x669   : > { %13480 = vmatpush3.bf16.msra.mxu0 %v16417_v9  ;;  %14778 = vrcp.f32 %v1983_v33  ;;  %13481 = vmatprep.mubr.msk.bf16.mxu0 %vm15740_vm0, %v20472_v28 }
 0x66a   : > { %13491 = vmatprep.subr.bf16.mxu0 %v20472_v28  ;;  %20473 = vst [vmem:[#allocation64_spill] sm:$0xff] %v16824_v4 }
 0x66b   : > { %v14775_v48 = vpop.eup %14774 }
 0x66c   : > { %v16827_v13 = vmul.f32 %v14775_v48, %v16739_v24  ;;  %v1992_v11 = vpop.xlane.xlu1 %1991  ;;  %v16829_v46 = vpop.f32.mrb[60].mxu1 }
 0x66d   : > { %v13537_v60 = vpop.f32.mrb[61].mxu1  ;;  %14780 = vrcp.f32 %v1992_v11 }
 0x66e   : > { %20474 = vst [vmem:[#allocation65_spill] sm:$0xff] %v16827_v13  ;;  %v16831_v19 = vpop.f32.mrb[62].mxu1  ;;  %v2052_v33 = vpack.c.bf16 %v16827_v13, %v16824_v4 }
 0x66f   : > { %v13538_v52 = vpop.f32.mrb[63].mxu1  ;;  %v14777_v36 = vpop.eup %14776 }
 0x670   : > { %13482 = vmatmul.mubr.msk.bf16.vlgmr.msra.gmra.mrb[44].mxu0 %vm1481_vm1, %v2052_v33  ;;  %v1995_v25 = vpop.xlane.xlu1 %1994  ;;  %v16841_v24 = vmul.f32 %v14777_v36, %v16745_v20 }
 0x671   : > { %13492 = vmatpush3.bf16.msra.mxu0 %v16440_v58  ;;  %14782 = vrcp.f32 %v1995_v25  ;;  %13493 = vmatprep.mubr.msk.bf16.mxu0 %vm15740_vm0, %v20472_v28 }
 0x672   : > { %13503 = vmatprep.subr.bf16.mxu0 %v20472_v28  ;;  %20475 = vst [vmem:[#allocation66_spill] sm:$0xff] %v16841_v24 }
 0x673   : > { %v14779_v57 = vpop.eup %14778 }
 0x674   : > { %v16844_v40 = vmul.f32 %v14779_v57, %v16750_v7  ;;  %v16846_v52 = vpop.f32.mrb[64].mxu1 }
 0x675   : > { %v13549_v48 = vpop.f32.mrb[65].mxu1 }
 0x676   : > { %20476 = vst [vmem:[#allocation67_spill] sm:$0xff] %v16844_v40  ;;  %v16848_v11 = vpop.f32.mrb[66].mxu1  ;;  %v2054_v25 = vpack.c.bf16 %v16844_v40, %v16841_v24  ;;  %v2422_v40 = vpop.permute.xlu1 %2421  ;;  %v2430_v24 = vsel %vm1481_vm1, %v16718_v41, 0 }
 0x677   : > { %v13550_v60 = vpop.f32.mrb[67].mxu1  ;;  %v14781_v33 = vpop.eup %14780  ;;  %v2877_v4 = vsel %vm1481_vm1, %v16848_v11, -inf }
 0x678   : > { %13494 = vmatmul.mubr.msk.bf16.vlgmr.msra.gmra.mrb[48].mxu0 %vm1481_vm1, %v2054_v25  ;;  %v16858_v20 = vmul.f32 %v14781_v33, %v16754_v30 }
 0x679   : > { %13504 = vmatpush3.bf16.msra.mxu0 %v16463_v5  ;;  %13505 = vmatprep.mubr.msk.bf16.mxu0 %vm15740_vm0, %v20472_v28 }
 0x67a   : > { %13515 = vmatprep.subr.bf16.mxu0 %v20472_v28  ;;  %20477 = vst [vmem:[#allocation68_spill] sm:$0xff] %v16858_v20  ;;  %v2531_v30 = vpop.permute.xlu1 %2530 }
 0x67b   : > { %v14783_v36 = vpop.eup %14782 }
 0x67c   : > { %v16861_v7 = vmul.f32 %v14783_v36, %v16758_v21  ;;  %v16863_v57 = vpop.f32.mrb[68].mxu1  ;;  %v2536_v21 = vsel %vm1481_vm1, %v2531_v30, 0 }
 0x67d   : > { %v13561_v48 = vpop.f32.mrb[69].mxu1  ;;  %v2886_v12 = vsel %vm1481_vm1, %v16863_v57, -inf }
 0x67e   : > { %20478 = vst [vmem:[#allocation69_spill] sm:$0xff] %v16861_v7  ;;  %v16865_v60 = vpop.f32.mrb[70].mxu1  ;;  %v2056_v25 = vpack.c.bf16 %v16861_v7, %v16858_v20 }
 0x67f   : > { %v13562_v37 = vpop.f32.mrb[71].mxu1 }
 0x680   : > { %13506 = vmatmul.mubr.msk.bf16.vlgmr.msra.gmra.mrb[52].mxu0 %vm1481_vm1, %v2056_v25  ;;  %v2637_v37 = vpop.permute.xlu1 %2636 }
 0x681   : > { %13517 = vmatprep.mubr.msk.bf16.mxu0 %vm15740_vm0, %v20472_v28  ;;  %v2642_v41 = vsel %vm1481_vm1, %v2637_v37, 0 }
 0x682   : > { %13516 = vmatpush3.bf16.xpose.msra.mxu0 %v2430_v24 }
 0x683   : > { %13527 = vmatprep.subr.bf16.mxu0 %v20472_v28 }
 0x684   : > { %v2743_v24 = vpop.permute.xlu1 %2742 }
 0x689   : > { %13518 = vmatmul.mubr.msk.bf16.vlgmr.msra.gmra.mrb[56].mxu0 %vm1481_vm1, %v2422_v40  ;;  %v2748_v40 = vsel %vm1481_vm1, %v2743_v24, 0 }
 0x68a   : > { %13528 = vmatpush3.bf16.xpose.msra.mxu0 %v2536_v21  ;;  %13529 = vmatprep.mubr.msk.bf16.mxu0 %vm15740_vm0, %v20472_v28 }
 0x68b   : > { %13539 = vmatprep.subr.bf16.mxu0 %v20472_v28 }
 0x691   : > { %13530 = vmatmul.mubr.msk.bf16.vlgmr.msra.gmra.mrb[60].mxu0 %vm1481_vm1, %v16727_v63 }
 0x692   : > { %13540 = vmatpush3.bf16.xpose.msra.mxu0 %v2642_v41  ;;  %13541 = vmatprep.mubr.msk.bf16.mxu0 %vm15740_vm0, %v20472_v28 }
 0x693   : > { %13551 = vmatprep.subr.bf16.mxu0 %v20472_v28 }
 0x699   : > { %13542 = vmatmul.mubr.msk.bf16.vlgmr.msra.gmra.mrb[64].mxu0 %vm1481_vm1, %v16734_v3 }
 0x69a   : > { %13552 = vmatpush3.bf16.xpose.msra.mxu0 %v2748_v40  ;;  %13553 = vmatprep.mubr.msk.bf16.mxu0 %vm15740_vm0, %v20472_v28 }
 0x69b   : > { %13563 = vmatprep.subr.bf16.mxu0 %v20472_v28 }
 0x6a1   : > { %13554 = vmatmul.mubr.msk.bf16.vlgmr.msra.gmra.mrb[68].mxu0 %vm1481_vm1, %v16741_v18 }
 0x6a2   : > { %13565 = vmatprep.mubr.msk.bf16.mxu0 %vm15740_vm0, %v20472_v28 }
 0x73b   : > { %v16896_v63 = vpop.f32.mrb[40].mxu0 }
 0x73c   : > { %v13471_v33 = vpop.f32.mrb[41].mxu0 }
 0x73d   : > { %v16898_v36 = vpop.f32.mrb[42].mxu0 }
 0x73e   : > { %v13472_v48 = vpop.f32.mrb[43].mxu0 }
 0x743   : > { %v16902_v25 = vpop.f32.mrb[44].mxu0 }
 0x744   : > { %v13483_v30 = vpop.f32.mrb[45].mxu0 }
 0x745   : > { %v16904_v21 = vpop.f32.mrb[46].mxu0 }
 0x746   : > { %v13484_v37 = vpop.f32.mrb[47].mxu0 }
 0x74b   : > { %v16908_v41 = vpop.f32.mrb[48].mxu0 }
 0x74c   : > { %20479 = vst [vmem:[#allocation70_spill] sm:$0xff] %v16908_v41  ;;  %v13495_v24 = vpop.f32.mrb[49].mxu0 }
 0x74d   : > { %v16910_v40 = vpop.f32.mrb[50].mxu0 }
 0x74e   : > { %20480 = vst [vmem:[#allocation71_spill] sm:$0xff] %v16910_v40  ;;  %v13496_v7 = vpop.f32.mrb[51].mxu0 }
 0x753   : > { %v16914_v3 = vpop.f32.mrb[52].mxu0 }
 0x754   : > { %20481 = vst [vmem:[#allocation72_spill] sm:$0xff] %v16914_v3  ;;  %v13507_v48 = vpop.f32.mrb[53].mxu0 }
 0x755   : > { %v16916_v20 = vpop.f32.mrb[54].mxu0  ;;  %v2853_v48 = vsel %vm1481_vm1, %v16814_v53, -inf }
 0x756   : > { %20482 = vst [vmem:[#allocation73_spill] sm:$0xff] %v16916_v20  ;;  %v13508_v32 = vpop.f32.mrb[55].mxu0 }
 0x757   : > { %v2850_v32 = vsel %vm1481_vm1, %v16812_v23, -inf }
 0x75c   : > { %v16920_v18 = vpop.f32.mrb[56].mxu0 }
 0x75d   : > { %v13519_v37 = vpop.f32.mrb[57].mxu0  ;;  %v2844_v24 = vsel %vm1481_vm1, %v16920_v18, -inf }
 0x75e   : > { %2845 = vmax.xlane.f32.xlu0 %v2844_v24  ;;  %v16924_v10 = vpop.f32.mrb[58].mxu0  ;;  %v2862_v24 = vsel %vm1481_vm1, %v16829_v46, -inf }
 0x75f   : > { %v13520_v33 = vpop.f32.mrb[59].mxu0  ;;  %v2847_v7 = vsel %vm1481_vm1, %v16924_v10, -inf }
 0x760   : > { %2848 = vmax.xlane.f32.xlu1 %v2847_v7  ;;  %v2865_v7 = vsel %vm1481_vm1, %v16831_v19, -inf }
 0x762   : > { %2854 = vmax.xlane.f32.xlu0 %v2853_v48  ;;  %v2874_v48 = vsel %vm1481_vm1, %v16846_v52, -inf }
 0x764   : > { %v16932_v30 = vpop.f32.mrb[60].mxu0  ;;  %2851 = vmax.xlane.f32.xlu1 %v2850_v32 }
 0x765   : > { %v13531_v37 = vpop.f32.mrb[61].mxu0 }
 0x766   : > { %v16936_v13 = vpop.f32.mrb[62].mxu0  ;;  %2863 = vmax.xlane.f32.xlu0 %v2862_v24 }
 0x767   : > { %v13532_v33 = vpop.f32.mrb[63].mxu0 }
 0x768   : > { %2866 = vmax.xlane.f32.xlu1 %v2865_v7  ;;  %v2889_v7 = vsel %vm1481_vm1, %v16865_v60, -inf }
 0x76a   : > { %2875 = vmax.xlane.f32.xlu0 %v2874_v48 }
 0x76c   : > { %v16944_v32 = vpop.f32.mrb[64].mxu0  ;;  %2878 = vmax.xlane.f32.xlu1 %v2877_v4  ;;  %v2859_v4 = vsel %vm1481_vm1, %v16936_v13, -inf }
 0x76d   : > { %v13543_v37 = vpop.f32.mrb[65].mxu0 }
 0x76e   : > { %v16948_v24 = vpop.f32.mrb[66].mxu0  ;;  %2887 = vmax.xlane.f32.xlu0 %v2886_v12  ;;  %v2856_v12 = vsel %vm1481_vm1, %v16932_v30, -inf  ;;  %v16964_v37 = vpop.permute.xlu1 %3189 }
 0x76f   : > { %v13544_v33 = vpop.f32.mrb[67].mxu0 }
 0x770   : > { %2890 = vmax.xlane.f32.xlu1 %v2889_v7  ;;  %v16968_v7 = vpop.permute.xlu0 %3381 }
 0x772   : > { %v16966_v33 = vpop.permute.xlu1 %3285 }
 0x774   : > { %v16952_v56 = vpop.f32.mrb[68].mxu0 }
 0x775   : > { %v13555_v48 = vpop.f32.mrb[69].mxu0 }
 0x776   : > { %v16954_v22 = vpop.f32.mrb[70].mxu0  ;;  %v16972_v48 = vpop.permute.xlu0 %3693 }
 0x777   : > { %v13556_v42 = vpop.f32.mrb[71].mxu0 }
 0x778   : > { %v16970_v42 = vpop.permute.xlu1 %3695 }
 0x77a   : > { %v16976_v59 = vpop.permute.xlu0 %3744 }
 0x77c   : > { %v16974_v27 = vpop.permute.xlu1 %3746 }
 0x781   : > { %3899 = vrot.lane.b32.xlu1 %v16472_v16, %s15742_s1 }
 0x784   : > { %3846 = vrot.lane.b32.xlu0 %v16447_v47, %s15742_s1  ;;  %v16978_v47 = vpop.permute.xlu1 %3797 }
 0x788   : > { %v16982_v16 = vpop.permute.xlu1 %3848 }
 0x7a3   : > { %2857 = vmax.xlane.f32.xlu0 %v2856_v12  ;;  %v16980_v12 = vpop.permute.xlu0 %3795 }
 0x7a5   : > { %2860 = vmax.xlane.f32.xlu1 %v2859_v4 }
 0x7eb   : > { %v16984_v4 = vpop.xlane.xlu0 %2845 }
 0x7ed   : > { %v16986_v51 = vpop.xlane.xlu1 %2848 }
 0x7ef   : > { %v2855_v17 = vpop.xlane.xlu0 %2854 }
 0x7f0   : > { %v2895_v3 = vsub.f32 %v16814_v53, %v2855_v17 }
 0x7f1   : > { %v2852_v20 = vpop.xlane.xlu1 %2851 }
 0x7f2   : > { %v2914_v61 = vmul.f32 1.442695, %v2895_v3  ;;  %v2894_v14 = vsub.f32 %v16812_v23, %v2852_v20 }
 0x7f3   : > { %v2864_v26 = vpop.xlane.xlu0 %2863 }
 0x7f4   : > { %14784 = vpow2.f32 %v2914_v61  ;;  %v2912_v45 = vmul.f32 1.442695, %v2894_v14  ;;  %v2898_v0 = vsub.f32 %v16829_v46, %v2864_v26 }
 0x7f5   : > { %v2867_v38 = vpop.xlane.xlu1 %2866 }
 0x7f6   : > { %14786 = vpow2.f32 %v2912_v45  ;;  %v2920_v41 = vmul.f32 1.442695, %v2898_v0  ;;  %v2899_v40 = vsub.f32 %v16831_v19, %v2867_v38 }
 0x7f7   : > { %v2876_v54 = vpop.xlane.xlu0 %2875 }
 0x7f8   : > { %14788 = vpow2.f32 %v2920_v41  ;;  %v2922_v55 = vmul.f32 1.442695, %v2899_v40  ;;  %v2902_v39 = vsub.f32 %v16846_v52, %v2876_v54 }
 0x7f9   : > { %v2879_v14 = vpop.xlane.xlu1 %2878 }
 0x7fa   : > { %14790 = vpow2.f32 %v2922_v55  ;;  %v2928_v53 = vmul.f32 1.442695, %v2902_v39  ;;  %v2903_v46 = vsub.f32 %v16848_v11, %v2879_v14  ;;  %v2880_v14 = vsel %vm1481_vm1, %v16952_v56, -inf }
 0x7fb   : > { %v2888_v19 = vpop.xlane.xlu0 %2887 }
 0x7fc   : > { %14792 = vpow2.f32 %v2928_v53  ;;  %v2930_v52 = vmul.f32 1.442695, %v2903_v46  ;;  %v2906_v20 = vsub.f32 %v16863_v57, %v2888_v19  ;;  %v2871_v57 = vsel %vm1481_vm1, %v16948_v24, -inf }
 0x7fd   : > { %v2891_v3 = vpop.xlane.xlu1 %2890  ;;  %v2883_v46 = vsel %vm1481_vm1, %v16954_v22, -inf }
 0x7fe   : > { %v16993_v17 = vpop.eup %14784  ;;  %14794 = vpow2.f32 %v2930_v52  ;;  %v2936_v41 = vmul.f32 1.442695, %v2906_v20  ;;  %v2907_v40 = vsub.f32 %v16865_v60, %v2891_v3  ;;  %v2868_v60 = vsel %vm1481_vm1, %v16944_v32, -inf }
 0x7ff   : > { %v2949_v23 = vsel %vm1481_vm1, %v16993_v17, 0.0  ;;  %v17046_v52 = vpop.permute.xlu0 %3846 }
 0x800   : > { %v16997_v61 = vpop.eup %14786  ;;  %2950 = vadd.xlane.f32.xlu1 %v2949_v23  ;;  %14796 = vpow2.f32 %v2936_v41  ;;  %v2938_v53 = vmul.f32 1.442695, %v2907_v40 }
 0x801   : > { %v2946_v45 = vsel %vm1481_vm1, %v16997_v61, 0.0  ;;  %v17044_v19 = vpop.permute.xlu1 %3899 }
 0x802   : > { %v17001_v38 = vpop.eup %14788  ;;  %2947 = vadd.xlane.f32.xlu0 %v2946_v45  ;;  %14798 = vpow2.f32 %v2938_v53 }
 0x803   : > { %v2958_v39 = vsel %vm1481_vm1, %v17001_v38, 0.0 }
 0x804   : > { %v17003_v0 = vpop.eup %14790 }
 0x805   : > { %v2961_v26 = vsel %vm1481_vm1, %v17003_v0, 0.0 }
 0x806   : > { %v17009_v54 = vpop.eup %14792  ;;  %2959 = vadd.xlane.f32.xlu0 %v2958_v39  ;;  %2962 = vadd.xlane.f32.xlu1 %v2961_v26 }
 0x807   : > { %v2970_v55 = vsel %vm1481_vm1, %v17009_v54, 0.0 }
 0x808   : > { %v17020_v23 = vpop.eup %14794 }
 0x809   : > { %v2973_v45 = vsel %vm1481_vm1, %v17020_v23, 0.0 }
 0x80a   : > { %2971 = vadd.xlane.f32.xlu0 %v2970_v55  ;;  %v17024_v39 = vpop.eup %14796 }
 0x80b   : > { %v2982_v11 = vsel %vm1481_vm1, %v17024_v39, 0.0 }
 0x80c   : > { %v17030_v26 = vpop.eup %14798 }
 0x80d   : > { %v2985_v55 = vsel %vm1481_vm1, %v17030_v26, 0.0 }
 0x817   : > { %3950 = vrot.lane.b32.xlu1 %v16487_v34, %s15742_s1 }
 0x820   : > { %3897 = vrot.lane.b32.xlu0 %v16470_v2, %s15742_s1 }
 0x830   : > { %v2858_v3 = vpop.xlane.xlu0 %2857 }
 0x832   : > { %v2861_v20 = vpop.xlane.xlu1 %2860 }
 0x83b   : > { %2974 = vadd.xlane.f32.xlu1 %v2973_v45 }
 0x83f   : > { %2983 = vadd.xlane.f32.xlu0 %v2982_v11  ;;  %2872 = vmax.xlane.f32.xlu1 %v2871_v57  ;;  %v2892_v11 = vsub.f32 %v16920_v18, %v16984_v4  ;;  %v2896_v4 = vsub.f32 %v16932_v30, %v2858_v3 }
 0x843   : > { %2869 = vmax.xlane.f32.xlu0 %v2868_v60  ;;  %2986 = vadd.xlane.f32.xlu1 %v2985_v55  ;;  %v2893_v55 = vsub.f32 %v16924_v10, %v16986_v51 }
 0x854   : > { %4001 = vrot.lane.b32.xlu1 %v16502_v44, %s15742_s1 }
 0x859   : > { %3948 = vrot.lane.b32.xlu0 %v16485_v31, %s15742_s1 }
 0x878   : > { %2881 = vmax.xlane.f32.xlu0 %v2880_v14  ;;  %2884 = vmax.xlane.f32.xlu1 %v2883_v46  ;;  %v2908_v14 = vmul.f32 1.442695, %v2892_v11  ;;  %v2897_v46 = vsub.f32 %v16936_v13, %v2861_v20  ;;  %v2916_v13 = vmul.f32 1.442695, %v2896_v4 }
 0x889   : > { %4052 = vrot.lane.b32.xlu1 %v16517_v6, %s15742_s1 }
 0x88d   : > { %v2951_v41 = vpop.xlane.xlu1 %2950 }
 0x88e   : > { %14800 = vrcp.f32 %v2951_v41  ;;  %3999 = vrot.lane.b32.xlu0 %v16500_v43, %s15742_s1  ;;  %v2918_v43 = vmul.f32 1.442695, %v2897_v46 }
 0x88f   : > { %v2948_v40 = vpop.xlane.xlu0 %2947 }
 0x890   : > { %14802 = vrcp.f32 %v2948_v40 }
 0x892   : > { %4050 = vrot.lane.b32.xlu0 %v16515_v15, %s15742_s1  ;;  %v2910_v15 = vmul.f32 1.442695, %v2893_v55 }
 0x893   : > { %v2960_v53 = vpop.xlane.xlu0 %2959  ;;  %v2963_v45 = vpop.xlane.xlu1 %2962 }
 0x894   : > { %14804 = vrcp.f32 %v2960_v53 }
 0x895   : > { %14806 = vrcp.f32 %v2963_v45 }
 0x896   : > { %14808 = vpow2.f32 %v2908_v14 }
 0x897   : > { %14810 = vpow2.f32 %v2910_v15  ;;  %v2972_v20 = vpop.xlane.xlu0 %2971  ;;  %v17102_v3 = vpop.permute.xlu1 %3950 }
 0x898   : > { %v14801_v57 = vpop.eup %14800  ;;  %14812 = vpow2.f32 %v2918_v43 }
 0x899   : > { %v17060_v41 = vmul.f32 %v14801_v57, %v16993_v17  ;;  %14814 = vpow2.f32 %v2916_v13 }
 0x89a   : > { %v14803_v60 = vpop.eup %14802  ;;  %14816 = vrcp.f32 %v2972_v20 }
 0x89b   : > { %v17063_v40 = vmul.f32 %v14803_v60, %v16997_v61  ;;  %v17104_v11 = vpop.permute.xlu0 %3897 }
 0x89d   : > { %v3037_v53 = vpack.c.bf16 %v17060_v41, %v17063_v40 }
 0x89e   : > { %v14805_v45 = vpop.eup %14804 }
 0x89f   : > { %v14807_v18 = vpop.eup %14806  ;;  %13572 = vmatmul.mubr.msk.bf16.vlgmr.msra.gmra.mrb[72].mxu1 %vm1481_vm1, %v3037_v53  ;;  %v17073_v51 = vmul.f32 %v14805_v45, %v17001_v38 }
 0x8a0   : > { %13582 = vmatpush3.bf16.msra.mxu1 %v16964_v37  ;;  %13583 = vmatprep.mubr.msk.bf16.mxu1 %vm15740_vm0, %v20472_v28  ;;  %v17076_v10 = vmul.f32 %v14807_v18, %v17003_v0  ;;  %v17085_v37 = vpop.eup %14808 }
 0x8a1   : > { %13593 = vmatprep.subr.bf16.mxu1 %v20472_v28  ;;  %v17088_v17 = vpop.eup %14810  ;;  %v2940_v43 = vsel %vm1481_vm1, %v17085_v37, 0.0 }
 0x8a2   : > { %v3039_v30 = vpack.c.bf16 %v17076_v10, %v17073_v51  ;;  %v17092_v15 = vpop.eup %14812  ;;  %v2943_v61 = vsel %vm1481_vm1, %v17088_v17, 0.0 }
 0x8a3   : > { %v17098_v38 = vpop.eup %14814 }
 0x8a4   : > { %v2952_v0 = vsel %vm1481_vm1, %v17098_v38, 0.0  ;;  %v14817_v18 = vpop.eup %14816 }
 0x8a7   : > { %13584 = vmatmul.mubr.msk.bf16.vlgmr.msra.gmra.mrb[76].mxu1 %vm1481_vm1, %v3039_v30 }
 0x8a8   : > { %13594 = vmatpush3.bf16.msra.mxu1 %v16966_v33  ;;  %13595 = vmatprep.mubr.msk.bf16.mxu1 %vm15740_vm0, %v20472_v28  ;;  %v2955_v33 = vsel %vm1481_vm1, %v17092_v15, 0.0 }
 0x8a9   : > { %13605 = vmatprep.subr.bf16.mxu1 %v20472_v28 }
 0x8ad   : > { %2941 = vadd.xlane.f32.xlu1 %v2940_v43  ;;  %v17109_v43 = vmul.f32 %v14817_v18, %v17009_v54 }
 0x8af   : > { %20483 = vst [vmem:[#allocation74_spill] sm:$0xff] %v17109_v43 }
 0x8b1   : > { %2944 = vadd.xlane.f32.xlu0 %v2943_v61  ;;  %2956 = vadd.xlane.f32.xlu1 %v2955_v33 }
 0x8b5   : > { %2953 = vadd.xlane.f32.xlu0 %v2952_v0 }
 0x8c8   : > { %v2975_v57 = vpop.xlane.xlu1 %2974 }
 0x8c9   : > { %14818 = vrcp.f32 %v2975_v57 }
 0x8cc   : > { %v2984_v60 = vpop.xlane.xlu0 %2983  ;;  %v2873_v55 = vpop.xlane.xlu1 %2872 }
 0x8cd   : > { %v2901_v14 = vsub.f32 %v16948_v24, %v2873_v55  ;;  %14820 = vrcp.f32 %v2984_v60  ;;  %v3701_v55 = vsel %vm1481_vm1, %v16970_v42, 0  ;;  %v3803_v42 = vsel %vm1481_vm1, %v16978_v47, 0 }
 0x8ce   : > { %v3905_v47 = vsel %vm1481_vm1, %v17044_v19, 0  ;;  %v3956_v19 = vsel %vm1481_vm1, %v17102_v3, 0 }
 0x8cf   : > { %v2926_v46 = vmul.f32 1.442695, %v2901_v14 }
 0x8d0   : > { %v2870_v53 = vpop.xlane.xlu0 %2869  ;;  %v2987_v45 = vpop.xlane.xlu1 %2986 }
 0x8d1   : > { %14822 = vpow2.f32 %v2926_v46  ;;  %v2900_v4 = vsub.f32 %v16944_v32, %v2870_v53 }
 0x8d2   : > { %14824 = vrcp.f32 %v2987_v45 }
 0x8d3   : > { %v14819_v13 = vpop.eup %14818  ;;  %v2924_v30 = vmul.f32 1.442695, %v2900_v4 }
 0x8d4   : > { %v17112_v61 = vmul.f32 %v14819_v13, %v17020_v23 }
 0x8d5   : > { %14826 = vpow2.f32 %v2924_v30 }
 0x8d6   : > { %20484 = vst [vmem:[#allocation75_spill] sm:$0xff] %v17112_v61  ;;  %v3041_v24 = vpack.c.bf16 %v17112_v61, %v17109_v43 }
 0x8d7   : > { %v14821_v32 = vpop.eup %14820 }
 0x8d8   : > { %13596 = vmatmul.mubr.msk.bf16.vlgmr.msra.gmra.mrb[80].mxu1 %vm1481_vm1, %v3041_v24  ;;  %v17126_v0 = vmul.f32 %v14821_v32, %v17024_v39  ;;  %v3752_v39 = vsel %vm1481_vm1, %v16974_v27, 0  ;;  %v3854_v27 = vsel %vm1481_vm1, %v16982_v16, 0 }
 0x8d9   : > { %13606 = vmatpush3.bf16.msra.mxu1 %v16968_v7  ;;  %13607 = vmatprep.mubr.msk.bf16.mxu1 %vm15740_vm0, %v20472_v28 }
 0x8da   : > { %13647 = vmatprep.subr.bf16.mxu1 %v20472_v28  ;;  %20485 = vst [vmem:[#allocation76_spill] sm:$0xff] %v17126_v0 }
 0x8db   : > { %v17121_v33 = vpop.eup %14822 }
 0x8dc   : > { %v14825_v54 = vpop.eup %14824  ;;  %v2967_v23 = vsel %vm1481_vm1, %v17121_v33, 0.0 }
 0x8dd   : > { %v17129_v20 = vmul.f32 %v14825_v54, %v17030_v26  ;;  %2968 = vadd.xlane.f32.xlu1 %v2967_v23 }
 0x8df   : > { %20486 = vst [vmem:[#allocation77_spill] sm:$0xff] %v17129_v20  ;;  %v17131_v7 = vpop.eup %14826  ;;  %v3043_v57 = vpack.c.bf16 %v17129_v20, %v17126_v0 }
 0x8e0   : > { %v2964_v60 = vsel %vm1481_vm1, %v17131_v7, 0.0 }
 0x8e1   : > { %13608 = vmatmul.mubr.msk.bf16.vlgmr.msra.gmra.mrb[84].mxu1 %vm1481_vm1, %v3043_v57  ;;  %2965 = vadd.xlane.f32.xlu0 %v2964_v60 }
 0x8e2   : > { %13648 = vmatpush3.bf16.xpose.msra.mxu1 %v3701_v55  ;;  %13649 = vmatprep.mubr.msk.bf16.mxu1 %vm15740_vm0, %v20472_v28 }
 0x8e3   : > { %13653 = vmatprep.subr.bf16.mxu1 %v20472_v28 }
 0x8e9   : > { %13650 = vmatmul.mubr.msk.bf16.vlgmr.msra.gmra.mrb[88].mxu1 %vm1481_vm1, %v16972_v48  ;;  %v4002_v48 = vpop.permute.xlu1 %4001 }
 0x8ea   : > { %13654 = vmatpush3.bf16.xpose.msra.mxu1 %v3752_v39  ;;  %13655 = vmatprep.mubr.msk.bf16.mxu1 %vm15740_vm0, %v20472_v28 }
 0x8eb   : > { %13659 = vmatprep.subr.bf16.mxu1 %v20472_v28 }
 0x8f1   : > { %13656 = vmatmul.mubr.msk.bf16.vlgmr.msra.gmra.mrb[92].mxu1 %vm1481_vm1, %v16976_v59  ;;  %v3949_v59 = vpop.permute.xlu0 %3948 }
 0x8f2   : > { %13660 = vmatpush3.bf16.xpose.msra.mxu1 %v3803_v42  ;;  %13661 = vmatprep.mubr.msk.bf16.mxu1 %vm15740_vm0, %v20472_v28 }
 0x8f3   : > { %13665 = vmatprep.subr.bf16.mxu1 %v20472_v28 }
 0x8f9   : > { %13662 = vmatmul.mubr.msk.bf16.vlgmr.msra.gmra.mrb[96].mxu1 %vm1481_vm1, %v16980_v12 }
 0x8fa   : > { %13666 = vmatpush3.bf16.xpose.msra.mxu1 %v3854_v27  ;;  %13667 = vmatprep.mubr.msk.bf16.mxu1 %vm15740_vm0, %v20472_v28 }
 0x8fb   : > { %13671 = vmatprep.subr.bf16.mxu1 %v20472_v28 }
 0x901   : > { %13668 = vmatmul.mubr.msk.bf16.vlgmr.msra.gmra.mrb[100].mxu1 %vm1481_vm1, %v17046_v52 }
 0x902   : > { %13672 = vmatpush3.bf16.xpose.msra.mxu1 %v3905_v47  ;;  %13673 = vmatprep.mubr.msk.bf16.mxu1 %vm15740_vm0, %v20472_v28 }
 0x903   : > { %13677 = vmatprep.subr.bf16.mxu1 %v20472_v28 }
 0x905   : > { %v2882_v16 = vpop.xlane.xlu0 %2881  ;;  %v2885_v12 = vpop.xlane.xlu1 %2884 }
 0x906   : > { %v2904_v26 = vsub.f32 %v16952_v56, %v2882_v16  ;;  %v2905_v14 = vsub.f32 %v16954_v22, %v2885_v12  ;;  %v4007_v56 = vsel %vm1481_vm1, %v4002_v48, 0 }
 0x908   : > { %v2932_v46 = vmul.f32 1.442695, %v2904_v26  ;;  %v2934_v53 = vmul.f32 1.442695, %v2905_v14 }
 0x909   : > { %13674 = vmatmul.mubr.msk.bf16.vlgmr.msra.gmra.mrb[104].mxu1 %vm1481_vm1, %v17104_v11  ;;  %v4053_v11 = vpop.permute.xlu1 %4052  ;;  %v4000_v18 = vpop.permute.xlu0 %3999 }
 0x90a   : > { %14828 = vpow2.f32 %v2932_v46  ;;  %13678 = vmatpush3.bf16.xpose.msra.mxu1 %v3956_v19  ;;  %13679 = vmatprep.mubr.msk.bf16.mxu1 %vm15740_vm0, %v20472_v28  ;;  %v4058_v4 = vsel %vm1481_vm1, %v4053_v11, 0 }
 0x90b   : > { %14830 = vpow2.f32 %v2934_v53  ;;  %13683 = vmatprep.subr.bf16.mxu1 %v20472_v28 }
 0x90d   : > { %v4051_v13 = vpop.permute.xlu0 %4050 }
 0x911   : > { %13680 = vmatmul.mubr.msk.bf16.vlgmr.msra.gmra.mrb[108].mxu1 %vm1481_vm1, %v3949_v59 }
 0x912   : > { %13684 = vmatpush3.bf16.xpose.msra.mxu1 %v4007_v56  ;;  %13685 = vmatprep.mubr.msk.bf16.mxu1 %vm15740_vm0, %v20472_v28 }
 0x913   : > { %13689 = vmatprep.subr.bf16.mxu1 %v20472_v28 }
 0x914   : > { %v17185_v22 = vpop.eup %14828 }
 0x915   : > { %v17187_v52 = vpop.eup %14830  ;;  %v2976_v3 = vsel %vm1481_vm1, %v17185_v22, 0.0 }
 0x916   : > { %2977 = vadd.xlane.f32.xlu0 %v2976_v3  ;;  %v2979_v45 = vsel %vm1481_vm1, %v17187_v52, 0.0 }
 0x917   : > { %2980 = vadd.xlane.f32.xlu1 %v2979_v45 }
 0x919   : > { %13686 = vmatmul.mubr.msk.bf16.vlgmr.msra.gmra.mrb[112].mxu1 %vm1481_vm1, %v4000_v18 }
 0x91a   : > { %13690 = vmatpush3.bf16.xpose.msra.mxu1 %v4058_v4  ;;  %13691 = vmatprep.mubr.msk.bf16.mxu1 %vm15740_vm0, %v20472_v28 }
 0x91b   : > { %13701 = vmatprep.subr.bf16.mxu1 %v20472_v28 }
 0x921   : > { %13692 = vmatmul.mubr.msk.bf16.vlgmr.msra.gmra.mrb[116].mxu1 %vm1481_vm1, %v4051_v13 }
 0x922   : > { %13703 = vmatprep.mubr.msk.bf16.mxu1 %vm15740_vm0, %v20472_v28 }
 0x928   : > { %3141 = vrot.lane.b32.xlu1 %v16417_v9, %s15741_s28 }
 0x92c   : > { %3237 = vrot.lane.b32.xlu1 %v16440_v58, %s15741_s28  ;;  %3045 = vrot.lane.b32.xlu0 %v16394_v50, %s15741_s28 }
 0x930   : > { %4348 = vrot.lane.b32.xlu1 %v16392_v35, %s15742_s1  ;;  %3333 = vrot.lane.b32.xlu0 %v16463_v5, %s15741_s28  ;;  %v14600_v35 = vld [vmem:[#allocation10 + $0x8] sm:$0xff]  }
 0x934   : > { %4395 = vrot.lane.b32.xlu1 %v16417_v9, %s15742_s1  ;;  %4301 = vrot.lane.b32.xlu0 %v16394_v50, %s15742_s1 }
 0x93a   : > { %v2942_v47 = vpop.xlane.xlu1 %2941 }
 0x93e   : > { %v2945_v27 = vpop.xlane.xlu0 %2944  ;;  %v2957_v48 = vpop.xlane.xlu1 %2956 }
 0x93f   : > { %14832 = vrcp.f32 %v2945_v27 }
 0x940   : > { %14834 = vrcp.f32 %v2942_v47 }
 0x942   : > { %v2954_v59 = vpop.xlane.xlu0 %2953 }
 0x943   : > { %14836 = vrcp.f32 %v2954_v59 }
 0x944   : > { %14838 = vrcp.f32 %v2957_v48 }
 0x949   : > { %v14833_v26 = vpop.eup %14832 }
 0x94a   : > { %v14835_v46 = vpop.eup %14834  ;;  %v17228_v19 = vmul.f32 %v14833_v26, %v17088_v17 }
 0x94b   : > { %v17231_v56 = vmul.f32 %v14835_v46, %v17085_v37 }
 0x94d   : > { %v3036_v45 = vpack.c.bf16 %v17228_v19, %v17231_v56  ;;  %v14837_v18 = vpop.eup %14836 }
 0x94e   : > { %v14839_v17 = vpop.eup %14838 }
 0x94f   : > { %v17250_v27 = vmul.f32 %v14839_v17, %v17092_v15 }
 0x96a   : > { %v2969_v12 = vpop.xlane.xlu1 %2968 }
 0x96e   : > { %v2966_v16 = vpop.xlane.xlu0 %2965 }
 0x96f   : > { %14840 = vrcp.f32 %v2966_v16 }
 0x970   : > { %14842 = vrcp.f32 %v2969_v12 }
 0x972   : > { %v17215_v30 = vpop.f32.mrb[72].mxu1 }
 0x973   : > { %v13573_v24 = vpop.f32.mrb[73].mxu1 }
 0x974   : > { %v17217_v32 = vpop.f32.mrb[74].mxu1  ;;  %v17242_v24 = vmul.f32 %v14837_v18, %v17098_v38 }
 0x975   : > { %v13574_v23 = vpop.f32.mrb[75].mxu1 }
 0x976   : > { %v3038_v59 = vpack.c.bf16 %v17250_v27, %v17242_v24 }
 0x979   : > { %v14841_v38 = vpop.eup %14840 }
 0x97a   : > { %v17221_v57 = vpop.f32.mrb[76].mxu1  ;;  %v14843_v48 = vpop.eup %14842  ;;  %v17261_v15 = vmul.f32 %v14841_v38, %v17131_v7 }
 0x97b   : > { %v13585_v60 = vpop.f32.mrb[77].mxu1 }
 0x97c   : > { %v17223_v55 = vpop.f32.mrb[78].mxu1 }
 0x97d   : > { %v13586_v42 = vpop.f32.mrb[79].mxu1 }
 0x9a3   : > { %v2978_v14 = vpop.xlane.xlu0 %2977 }
 0x9a4   : > { %v2981_v53 = vpop.xlane.xlu1 %2980  ;;  %14844 = vrcp.f32 %v2978_v14  ;;  %v17267_v14 = vmul.f32 %v14843_v48, %v17121_v33 }
 0x9a5   : > { %14846 = vrcp.f32 %v2981_v53 }
 0x9a7   : > { %v3046_v3 = vpop.permute.xlu0 %3045 }
 0x9a8   : > { %v3142_v11 = vpop.permute.xlu1 %3141  ;;  %13564 = vmatpush3.bf16.msra.mxu0 %v3046_v3 }
 0x9a9   : > { %13575 = vmatprep.subr.bf16.mxu0 %v20472_v28 }
 0x9ab   : > { %13566 = vmatmul.mubr.msk.bf16.vlgmr.msra.gmra.mrb[72].mxu0 %vm1481_vm1, %v3036_v45  ;;  %v17237_v4 = vpop.f32.mrb[80].mxu1  ;;  %v3334_v18 = vpop.permute.xlu0 %3333 }
 0x9ac   : > { %v3238_v13 = vpop.permute.xlu1 %3237  ;;  %13576 = vmatpush3.bf16.msra.mxu0 %v3142_v11  ;;  %v13597_v37 = vpop.f32.mrb[81].mxu1  ;;  %13577 = vmatprep.mubr.msk.bf16.mxu0 %vm15740_vm0, %v20472_v28  ;;  %v3040_v11 = vpack.c.bf16 %v17267_v14, %v17261_v15 }
 0x9ad   : > { %v17244_v23 = vpop.f32.mrb[82].mxu1  ;;  %13587 = vmatprep.subr.bf16.mxu0 %v20472_v28 }
 0x9ae   : > { %v13598_v42 = vpop.f32.mrb[83].mxu1  ;;  %v14845_v3 = vpop.eup %14844 }
 0x9af   : > { %v14847_v45 = vpop.eup %14846  ;;  %v17279_v33 = vmul.f32 %v14845_v3, %v17185_v22 }
 0x9b0   : > { %v4349_v47 = vpop.permute.xlu1 %4348  ;;  %v17282_v17 = vmul.f32 %v14847_v45, %v17187_v52 }
 0x9b1   : > { %13702 = vmatpush3.bf16.msra.mxu1 %v4349_v47  ;;  %20487 = vst [vmem:[#allocation78_spill] sm:$0xff] %v17279_v33 }
 0x9b2   : > { %13713 = vmatprep.subr.bf16.mxu1 %v20472_v28  ;;  %20488 = vst [vmem:[#allocation79_spill] sm:$0xff] %v17282_v17  ;;  %v3042_v38 = vpack.c.bf16 %v17282_v17, %v17279_v33 }
 0x9b3   : > { %13578 = vmatmul.mubr.msk.bf16.vlgmr.msra.gmra.mrb[76].mxu0 %vm1481_vm1, %v3038_v59 }
 0x9b4   : > { %13588 = vmatpush3.bf16.msra.mxu0 %v3238_v13  ;;  %v17256_v16 = vpop.f32.mrb[84].mxu1  ;;  %13589 = vmatprep.mubr.msk.bf16.mxu0 %vm15740_vm0, %v20472_v28 }
 0x9b5   : > { %v13609_v12 = vpop.f32.mrb[85].mxu1  ;;  %13599 = vmatprep.subr.bf16.mxu0 %v20472_v28 }
 0x9b6   : > { %v17264_v26 = vpop.f32.mrb[86].mxu1 }
 0x9b7   : > { %v13610_v53 = vpop.f32.mrb[87].mxu1 }
 0x9bb   : > { %13590 = vmatmul.mubr.msk.bf16.vlgmr.msra.gmra.mrb[80].mxu0 %vm1481_vm1, %v3040_v11 }
 0x9bc   : > { %13600 = vmatpush3.bf16.msra.mxu0 %v3334_v18  ;;  %v17274_v7 = vpop.f32.mrb[88].mxu1  ;;  %13601 = vmatprep.mubr.msk.bf16.mxu0 %vm15740_vm0, %v20472_v28 }
 0x9bd   : > { %v13651_v13 = vpop.f32.mrb[89].mxu1  ;;  %v4101_v37 = vsel %vm1481_vm1, %v17274_v7, -inf  ;;  %13611 = vmatprep.subr.bf16.mxu0 %v14600_v35 }
 0x9be   : > { %4102 = vmax.xlane.f32.xlu1 %v4101_v37  ;;  %v17286_v42 = vpop.f32.mrb[90].mxu1 }
 0x9bf   : > { %v13652_v47 = vpop.f32.mrb[91].mxu1  ;;  %v4104_v59 = vsel %vm1481_vm1, %v17286_v42, -inf }
 0x9c0   : > { %4105 = vmax.xlane.f32.xlu0 %v4104_v59 }
 0x9c3   : > { %13602 = vmatmul.mubr.msk.bf16.vlgmr.msra.gmra.mrb[84].mxu0 %vm1481_vm1, %v3042_v38 }
 0x9c4   : > { %v17293_v22 = vpop.f32.mrb[92].mxu1  ;;  %13612 = vmatpush3.bf16.msra.mxu0 %v14600_v35 }
 0x9c5   : > { %v13657_v52 = vpop.f32.mrb[93].mxu1  ;;  %v4107_v48 = vsel %vm1481_vm1, %v17293_v22, -inf }
 0x9c6   : > { %4108 = vmax.xlane.f32.xlu0 %v4107_v48  ;;  %v17297_v12 = vpop.f32.mrb[94].mxu1 }
 0x9c7   : > { %v13658_v53 = vpop.f32.mrb[95].mxu1  ;;  %v4110_v3 = vsel %vm1481_vm1, %v17297_v12, -inf }
 0x9c8   : > { %4111 = vmax.xlane.f32.xlu1 %v4110_v3 }
 0x9cc   : > { %v17301_v11 = vpop.f32.mrb[96].mxu1 }
 0x9cd   : > { %v13663_v45 = vpop.f32.mrb[97].mxu1  ;;  %v4113_v18 = vsel %vm1481_vm1, %v17301_v11, -inf }
 0x9ce   : > { %4114 = vmax.xlane.f32.xlu0 %v4113_v18  ;;  %v17305_v13 = vpop.f32.mrb[98].mxu1 }
 0x9cf   : > { %v13664_v37 = vpop.f32.mrb[99].mxu1  ;;  %v4116_v47 = vsel %vm1481_vm1, %v17305_v13, -inf }
 0x9d0   : > { %4117 = vmax.xlane.f32.xlu1 %v4116_v47 }
 0x9d4   : > { %v17309_v59 = vpop.f32.mrb[100].mxu1 }
 0x9d5   : > { %v13669_v38 = vpop.f32.mrb[101].mxu1  ;;  %v4119_v52 = vsel %vm1481_vm1, %v17309_v59, -inf }
 0x9d6   : > { %4120 = vmax.xlane.f32.xlu0 %v4119_v52  ;;  %v17313_v48 = vpop.f32.mrb[102].mxu1 }
 0x9d7   : > { %v13670_v53 = vpop.f32.mrb[103].mxu1  ;;  %v4122_v3 = vsel %vm1481_vm1, %v17313_v48, -inf }
 0x9d8   : > { %4123 = vmax.xlane.f32.xlu1 %v4122_v3 }
 0x9dc   : > { %v17317_v45 = vpop.f32.mrb[104].mxu1 }
 0x9dd   : > { %v13675_v18 = vpop.f32.mrb[105].mxu1  ;;  %v4125_v37 = vsel %vm1481_vm1, %v17317_v45, -inf }
 0x9de   : > { %4126 = vmax.xlane.f32.xlu0 %v4125_v37  ;;  %v17321_v47 = vpop.f32.mrb[106].mxu1 }
 0x9df   : > { %v13676_v38 = vpop.f32.mrb[107].mxu1  ;;  %v4128_v52 = vsel %vm1481_vm1, %v17321_v47, -inf }
 0x9e0   : > { %4129 = vmax.xlane.f32.xlu1 %v4128_v52 }
 0x9e4   : > { %v17325_v46 = vpop.f32.mrb[108].mxu1 }
 0x9e5   : > { %v13681_v53 = vpop.f32.mrb[109].mxu1  ;;  %v4131_v3 = vsel %vm1481_vm1, %v17325_v46, -inf }
 0x9e6   : > { %4132 = vmax.xlane.f32.xlu0 %v4131_v3  ;;  %v17329_v60 = vpop.f32.mrb[110].mxu1 }
 0x9e7   : > { %v13682_v18 = vpop.f32.mrb[111].mxu1  ;;  %v4134_v37 = vsel %vm1481_vm1, %v17329_v60, -inf }
 0x9e8   : > { %4135 = vmax.xlane.f32.xlu1 %v4134_v37 }
 0x9ec   : > { %v17333_v39 = vpop.f32.mrb[112].mxu1 }
 0x9ed   : > { %v13687_v38 = vpop.f32.mrb[113].mxu1  ;;  %v4137_v52 = vsel %vm1481_vm1, %v17333_v39, -inf }
 0x9ee   : > { %4138 = vmax.xlane.f32.xlu0 %v4137_v52  ;;  %v17337_v54 = vpop.f32.mrb[114].mxu1 }
 0x9ef   : > { %v13688_v53 = vpop.f32.mrb[115].mxu1  ;;  %v4140_v3 = vsel %vm1481_vm1, %v17337_v54, -inf }
 0x9f0   : > { %4141 = vmax.xlane.f32.xlu1 %v4140_v3  ;;  %v17355_v53 = vld [vmem:[#allocation10] sm:$0xff]   ;;  %v17358_v3 = vpop.permute.xlu1 %4395 }
 0x9f1   : > { %13629 = vmatprep.subr.bf16.mxu0 %v17355_v53 }
 0x9f4   : > { %v17341_v50 = vpop.f32.mrb[116].mxu1 }
 0x9f5   : > { %v13693_v18 = vpop.f32.mrb[117].mxu1  ;;  %v4143_v37 = vsel %vm1481_vm1, %v17341_v50, -inf }
 0x9f6   : > { %4144 = vmax.xlane.f32.xlu0 %v4143_v37  ;;  %v17345_v9 = vpop.f32.mrb[118].mxu1  ;;  %v17360_v18 = vpop.permute.xlu0 %4301 }
 0x9f7   : > { %v13694_v38 = vpop.f32.mrb[119].mxu1  ;;  %v4146_v52 = vsel %vm1481_vm1, %v17345_v9, -inf }
 0x9f8   : > { %4147 = vmax.xlane.f32.xlu1 %v4146_v52 }
 0xa09   : > { %4489 = vrot.lane.b32.xlu1 %v16440_v58, %s15742_s1 }
 0xa0c   : > { %4442 = vrot.lane.b32.xlu0 %v16413_v62, %s15742_s1 }
 0xa10   : > { %4536 = vrot.lane.b32.xlu0 %v16436_v8, %s15742_s1 }
 0xa4b   : > { %v4103_v37 = vpop.xlane.xlu1 %4102 }
 0xa4c   : > { %v4149_v35 = vsub.f32 %v17274_v7, %v4103_v37 }
 0xa4d   : > { %v4106_v38 = vpop.xlane.xlu0 %4105 }
 0xa4e   : > { %v4165_v52 = vmul.f32 1.442695, %v4149_v35  ;;  %v4150_v58 = vsub.f32 %v17286_v42, %v4106_v38 }
 0xa50   : > { %14848 = vpow2.f32 %v4165_v52  ;;  %v4167_v62 = vmul.f32 1.442695, %v4150_v58 }
 0xa52   : > { %14850 = vpow2.f32 %v4167_v62 }
 0xa53   : > { %v4109_v20 = vpop.xlane.xlu0 %4108 }
 0xa54   : > { %v4151_v8 = vsub.f32 %v17293_v22, %v4109_v20 }
 0xa55   : > { %v4112_v0 = vpop.xlane.xlu1 %4111 }
 0xa56   : > { %v4169_v17 = vmul.f32 1.442695, %v4151_v8  ;;  %v4152_v33 = vsub.f32 %v17297_v12, %v4112_v0 }
 0xa58   : > { %14852 = vpow2.f32 %v4169_v17  ;;  %v4171_v61 = vmul.f32 1.442695, %v4152_v33 }
 0xa5a   : > { %v17366_v43 = vpop.eup %14848  ;;  %14854 = vpow2.f32 %v4171_v61 }
 0xa5b   : > { %v4115_v7 = vpop.xlane.xlu0 %4114  ;;  %v4197_v37 = vsel %vm1481_vm1, %v17366_v43, 0.0 }
 0xa5c   : > { %v17370_v42 = vpop.eup %14850  ;;  %v4153_v62 = vsub.f32 %v17301_v11, %v4115_v7  ;;  %4198 = vadd.xlane.f32.xlu0 %v4197_v37 }
 0xa5d   : > { %v4118_v58 = vpop.xlane.xlu1 %4117  ;;  %v4200_v8 = vsel %vm1481_vm1, %v17370_v42, 0.0 }
 0xa5e   : > { %v4173_v20 = vmul.f32 1.442695, %v4153_v62  ;;  %v4154_v0 = vsub.f32 %v17305_v13, %v4118_v58  ;;  %4201 = vadd.xlane.f32.xlu1 %v4200_v8 }
 0xa60   : > { %14856 = vpow2.f32 %v4173_v20  ;;  %v4175_v33 = vmul.f32 1.442695, %v4154_v0 }
 0xa62   : > { %v17376_v61 = vpop.eup %14852  ;;  %14858 = vpow2.f32 %v4175_v33 }
 0xa63   : > { %v4121_v17 = vpop.xlane.xlu0 %4120  ;;  %v4203_v22 = vsel %vm1481_vm1, %v17376_v61, 0.0 }
 0xa64   : > { %v17380_v12 = vpop.eup %14854  ;;  %v4155_v11 = vsub.f32 %v17309_v59, %v4121_v17  ;;  %4204 = vadd.xlane.f32.xlu0 %v4203_v22 }
 0xa65   : > { %v4124_v35 = vpop.xlane.xlu1 %4123  ;;  %v4206_v38 = vsel %vm1481_vm1, %v17380_v12, 0.0 }
 0xa66   : > { %v4177_v13 = vmul.f32 1.442695, %v4155_v11  ;;  %v4156_v52 = vsub.f32 %v17313_v48, %v4124_v35  ;;  %4207 = vadd.xlane.f32.xlu1 %v4206_v38 }
 0xa68   : > { %14860 = vpow2.f32 %v4177_v13  ;;  %v4179_v7 = vmul.f32 1.442695, %v4156_v52 }
 0xa6a   : > { %v17386_v37 = vpop.eup %14856  ;;  %14862 = vpow2.f32 %v4179_v7 }
 0xa6b   : > { %v4127_v62 = vpop.xlane.xlu0 %4126  ;;  %v4209_v58 = vsel %vm1481_vm1, %v17386_v37, 0.0 }
 0xa6c   : > { %v17390_v8 = vpop.eup %14858  ;;  %v4157_v59 = vsub.f32 %v17317_v45, %v4127_v62  ;;  %4210 = vadd.xlane.f32.xlu0 %v4209_v58 }
 0xa6d   : > { %v4130_v20 = vpop.xlane.xlu1 %4129  ;;  %v4212_v0 = vsel %vm1481_vm1, %v17390_v8, 0.0 }
 0xa6e   : > { %v4181_v48 = vmul.f32 1.442695, %v4157_v59  ;;  %v4158_v33 = vsub.f32 %v17321_v47, %v4130_v20  ;;  %4213 = vadd.xlane.f32.xlu1 %v4212_v0 }
 0xa70   : > { %14864 = vpow2.f32 %v4181_v48  ;;  %v4183_v17 = vmul.f32 1.442695, %v4158_v33 }
 0xa72   : > { %v17396_v22 = vpop.eup %14860  ;;  %14866 = vpow2.f32 %v4183_v17 }
 0xa73   : > { %v4133_v11 = vpop.xlane.xlu0 %4132  ;;  %v4215_v35 = vsel %vm1481_vm1, %v17396_v22, 0.0 }
 0xa74   : > { %v17400_v38 = vpop.eup %14862  ;;  %v4159_v45 = vsub.f32 %v17325_v46, %v4133_v11  ;;  %4216 = vadd.xlane.f32.xlu0 %v4215_v35 }
 0xa75   : > { %v4136_v13 = vpop.xlane.xlu1 %4135  ;;  %v4218_v52 = vsel %vm1481_vm1, %v17400_v38, 0.0 }
 0xa76   : > { %v4185_v47 = vmul.f32 1.442695, %v4159_v45  ;;  %v4160_v7 = vsub.f32 %v17329_v60, %v4136_v13  ;;  %4219 = vadd.xlane.f32.xlu1 %v4218_v52 }
 0xa78   : > { %14868 = vpow2.f32 %v4185_v47  ;;  %v4187_v62 = vmul.f32 1.442695, %v4160_v7 }
 0xa7a   : > { %v17406_v58 = vpop.eup %14864  ;;  %14870 = vpow2.f32 %v4187_v62 }
 0xa7b   : > { %v4139_v59 = vpop.xlane.xlu0 %4138  ;;  %v4221_v20 = vsel %vm1481_vm1, %v17406_v58, 0.0 }
 0xa7c   : > { %v17410_v0 = vpop.eup %14866  ;;  %v4161_v46 = vsub.f32 %v17333_v39, %v4139_v59  ;;  %4222 = vadd.xlane.f32.xlu0 %v4221_v20  ;;  %v20489_v20 = vpack.c.bf16 %v17217_v32, %v17215_v30 }
 0xa7d   : > { %v4142_v48 = vpop.xlane.xlu1 %4141  ;;  %v4224_v33 = vsel %vm1481_vm1, %v17410_v0, 0.0 }
 0xa7e   : > { %v4189_v60 = vmul.f32 1.442695, %v4161_v46  ;;  %v4162_v17 = vsub.f32 %v17337_v54, %v4142_v48  ;;  %4225 = vadd.xlane.f32.xlu1 %v4224_v33  ;;  %v3085_v11 = vpop.f32.mrb[72].mxu0 }
 0xa7f   : > { %v13567_v35 = vpop.f32.mrb[73].mxu0 }
 0xa80   : > { %14872 = vpow2.f32 %v4189_v60  ;;  %v4191_v45 = vmul.f32 1.442695, %v4162_v17  ;;  %v3088_v13 = vpop.f32.mrb[74].mxu0 }
 0xa81   : > { %v3428_v52 = vpack.c.bf16 %v3088_v13, %v3085_v11  ;;  %v13568_v47 = vpop.f32.mrb[75].mxu0 }
 0xa82   : > { %v17416_v7 = vpop.eup %14868  ;;  %14874 = vpow2.f32 %v4191_v45 }
 0xa83   : > { %v4145_v39 = vpop.xlane.xlu0 %4144  ;;  %13613 = vmatprep.mubr.msk.bf16.mxu0 %vm1481_vm1, %v3428_v52  ;;  %v4227_v62 = vsel %vm1481_vm1, %v17416_v7, 0.0 }
 0xa84   : > { %v17421_v59 = vpop.eup %14870  ;;  %v4163_v54 = vsub.f32 %v17341_v50, %v4145_v39  ;;  %4228 = vadd.xlane.f32.xlu0 %v4227_v62  ;;  %13614 = vmatmul.mubr.msk.bf16.vlgmr.msra.gmra.mrb[88].mxu0 %vm1481_vm1, %v20489_v20 }
 0xa85   : > { %v4148_v46 = vpop.xlane.xlu1 %4147  ;;  %v4230_v48 = vsel %vm1481_vm1, %v17421_v59, 0.0  ;;  %13630 = vmatpush3.bf16.msra.mxu0 %v17355_v53 }
 0xa86   : > { %v4193_v33 = vmul.f32 1.442695, %v4163_v54  ;;  %v4164_v60 = vsub.f32 %v17345_v9, %v4148_v46  ;;  %4231 = vadd.xlane.f32.xlu1 %v4230_v48  ;;  %v3181_v17 = vpop.f32.mrb[76].mxu0  ;;  %13695 = vmatprep.subr.bf16.mxu0 %v20472_v28  ;;  %v20490_v9 = vpack.c.bf16 %v17223_v55, %v17221_v57  ;;  %v20491_v57 = vpack.c.bf16 %v17244_v23, %v17237_v4 }
 0xa87   : > { %v13579_v50 = vpop.f32.mrb[77].mxu0  ;;  %v20493_v4 = vpack.c.bf16 %v16898_v36, %v16896_v63  ;;  %v20494_v23 = vpack.c.bf16 %v16776_v49, %v16772_v29  ;;  %v20496_v29 = vld [vmem:[#allocation32_spill] sm:$0xff]  ;;  %v20497_v49 = vld [vmem:[#allocation57_spill] sm:$0xff] }
 0xa88   : > { %14876 = vpow2.f32 %v4193_v33  ;;  %v4195_v11 = vmul.f32 1.442695, %v4164_v60  ;;  %v3184_v35 = vpop.f32.mrb[78].mxu0  ;;  %v20498_v63 = vld [vmem:[#allocation56_spill] sm:$0xff] }
 0xa89   : > { %v3430_v30 = vpack.c.bf16 %v3184_v35, %v3181_v17  ;;  %v13580_v32 = vpop.f32.mrb[79].mxu0  ;;  %v20499_v36 = vpack.c.bf16 %v20497_v49, %v20498_v63 }
 0xa8a   : > { %v17433_v45 = vpop.eup %14872  ;;  %14878 = vpow2.f32 %v4195_v11  ;;  %v20495_v32 = vpack.c.bf16 %v16904_v21, %v16902_v25  ;;  %v20500_v25 = vld [vmem:[#allocation71_spill] sm:$0xff]  ;;  %v20501_v21 = vld [vmem:[#allocation70_spill] sm:$0xff] }
 0xa8b   : > { %13617 = vmatprep.mubr.msk.bf16.mxu0 %vm1481_vm1, %v3430_v30  ;;  %v4233_v53 = vsel %vm1481_vm1, %v17433_v45, 0.0  ;;  %v20492_v30 = vpack.c.bf16 %v17264_v26, %v17256_v16  ;;  %v20502_v16 = vpack.c.bf16 %v20500_v25, %v20501_v21  ;;  %v20503_v26 = vld [vmem:[#allocation31_spill] sm:$0xff] }
 0xa8c   : > { %v17438_v13 = vpop.eup %14874  ;;  %4234 = vadd.xlane.f32.xlu0 %v4233_v53  ;;  %13618 = vmatmul.mubr.msk.bf16.gmra.mrb[92].mxu0 %vm1481_vm1, %v20490_v9  ;;  %v20505_v53 = vld [vmem:[#allocation35_spill] sm:$0xff]  ;;  %v20506_v9 = vld [vmem:[#allocation40_spill] sm:$0xff] }
 0xa8d   : > { %v4236_v52 = vsel %vm1481_vm1, %v17438_v13, 0.0 }
 0xa8e   : > { %4237 = vadd.xlane.f32.xlu1 %v4236_v52  ;;  %v3277_v47 = vpop.f32.mrb[80].mxu0  ;;  %v20507_v52 = vld [vmem:[#allocation59_spill] sm:$0xff] }
 0xa8f   : > { %v13591_v39 = vpop.f32.mrb[81].mxu0 }
 0xa90   : > { %v3280_v62 = vpop.f32.mrb[82].mxu0 }
 0xa91   : > { %v3432_v54 = vpack.c.bf16 %v3280_v62, %v3277_v47  ;;  %v13592_v20 = vpop.f32.mrb[83].mxu0  ;;  %v20508_v47 = vld [vmem:[#allocation58_spill] sm:$0xff]  ;;  %v20510_v62 = vld [vmem:[#allocation73_spill] sm:$0xff] }
 0xa92   : > { %v17446_v46 = vpop.eup %14876  ;;  %v20509_v39 = vpack.c.bf16 %v20507_v52, %v20508_v47 }
 0xa93   : > { %13621 = vmatprep.mubr.msk.bf16.mxu0 %vm1481_vm1, %v3432_v54  ;;  %v4239_v48 = vsel %vm1481_vm1, %v17446_v46, 0.0  ;;  %v20511_v54 = vld [vmem:[#allocation72_spill] sm:$0xff] }
 0xa94   : > { %v17451_v33 = vpop.eup %14878  ;;  %4240 = vadd.xlane.f32.xlu0 %v4239_v48  ;;  %13622 = vmatmul.mubr.msk.bf16.gmra.mrb[96].mxu0 %vm1481_vm1, %v20491_v57  ;;  %v20512_v20 = vpack.c.bf16 %v20510_v62, %v20511_v54  ;;  %v20513_v48 = vld [vmem:[#allocation39_spill] sm:$0xff]  ;;  %v20514_v57 = vld [vmem:[#allocation44_spill] sm:$0xff] }
 0xa95   : > { %v4242_v55 = vsel %vm1481_vm1, %v17451_v33, 0.0  ;;  %v20523_v62 = vld [vmem:[#allocation63_spill] sm:$0xff] }
 0xa96   : > { %4243 = vadd.xlane.f32.xlu1 %v4242_v55  ;;  %v3373_v60 = vpop.f32.mrb[84].mxu0  ;;  %v20515_v55 = vld [vmem:[#allocation45_spill] sm:$0xff]  ;;  %v3021_v54 = vadd.f32 %v17228_v19, %v20523_v62 }
 0xa97   : > { %v13603_v17 = vpop.f32.mrb[85].mxu0 }
 0xa98   : > { %v3376_v50 = vpop.f32.mrb[86].mxu0  ;;  %v20517_v17 = vld [vmem:[#allocation61_spill] sm:$0xff] }
 0xa99   : > { %v3434_v11 = vpack.c.bf16 %v3376_v50, %v3373_v60  ;;  %v13604_v35 = vpop.f32.mrb[87].mxu0  ;;  %v20516_v60 = vld [vmem:[#allocation43_spill] sm:$0xff]  ;;  %v20518_v50 = vld [vmem:[#allocation60_spill] sm:$0xff] }
 0xa9a   : > { %v20520_v35 = vld [vmem:[#allocation46_spill] sm:$0xff] }
 0xa9b   : > { %13625 = vmatprep.mubr.msk.bf16.mxu0 %vm1481_vm1, %v3434_v11  ;;  %v20519_v11 = vpack.c.bf16 %v20517_v17, %v20518_v50 }
 0xa9c   : > { %13626 = vmatmul.mubr.msk.bf16.gmra.mrb[100].mxu0 %vm1481_vm1, %v20492_v30  ;;  %v20521_v30 = vld [vmem:[#allocation47_spill] sm:$0xff] }
 0xa9d   : > { %13631 = vmatprep.mubr.msk.bf16.mxu0 %vm1481_vm1, %v20493_v4  ;;  %v4443_v4 = vpop.permute.xlu0 %4442 }
 0xaa4   : > { %13632 = vmatmul.mubr.msk.bf16.vlgmr.msra.gmra.mrb[88].mxu0 %vm1481_vm1, %v20494_v23  ;;  %v17536_v23 = vpop.permute.xlu0 %4536 }
 0xaa5   : > { %13696 = vmatpush3.bf16.msra.mxu0 %v17360_v18  ;;  %13635 = vmatprep.mubr.msk.bf16.mxu0 %vm1481_vm1, %v20495_v32  ;;  %v20504_v18 = vld [vmem:[#allocation36_spill] sm:$0xff]  ;;  %v4490_v32 = vpop.permute.xlu1 %4489 }
 0xaa6   : > { %13707 = vmatprep.subr.bf16.mxu0 %v20472_v28 }
 0xaa7   : > { %4583 = vrot.lane.b32.xlu1 %v16463_v5, %s15742_s1 }
 0xaaa   : > { %4630 = vrot.lane.b32.xlu0 %v16459_v1, %s15742_s1  ;;  %s20626_s1 = sld [smem:[#allocation87_spill]] }
 0xaab   : > { %4833 = vrot.lane.b32.xlu1 %v20496_v29, %s15743_s29 }
 0xaac   : > { %13636 = vmatmul.mubr.msk.bf16.gmra.mrb[92].mxu0 %vm1481_vm1, %v20499_v36 }
 0xaad   : > { %13639 = vmatprep.mubr.msk.bf16.mxu0 %vm1481_vm1, %v20502_v16  ;;  %v20522_v16 = vld [vmem:[#allocation62_spill] sm:$0xff] }
 0xaae   : > { %4831 = vrot.lane.b32.xlu0 %v20503_v26, %s15743_s29  ;;  %v3020_v52 = vadd.f32 %v17231_v56, %v20522_v16 }
 0xaaf   : > { %4884 = vrot.lane.b32.xlu1 %v20504_v18, %s15743_s29 }
 0xab2   : > { %4882 = vrot.lane.b32.xlu0 %v20505_v53, %s15743_s29 }
 0xab3   : > { %4935 = vrot.lane.b32.xlu1 %v20506_v9, %s15743_s29 }
 0xab4   : > { %13640 = vmatmul.mubr.msk.bf16.gmra.mrb[96].mxu0 %vm1481_vm1, %v20509_v39 }
 0xab5   : > { %13643 = vmatprep.mubr.msk.bf16.mxu0 %vm1481_vm1, %v20512_v20 }
 0xab6   : > { %4933 = vrot.lane.b32.xlu0 %v20513_v48, %s15743_s29 }
 0xab7   : > { %4986 = vrot.lane.b32.xlu1 %v20514_v57, %s15743_s29 }
 0xaba   : > { %5037 = vrot.lane.b32.xlu0 %v20515_v55, %s15743_s29 }
 0xabb   : > { %4984 = vrot.lane.b32.xlu1 %v20516_v60, %s15743_s29 }
 0xabc   : > { %13644 = vmatmul.mubr.msk.bf16.gmra.mrb[100].mxu0 %vm1481_vm1, %v20519_v11 }
 0xabd   : > { %13697 = vmatprep.mubr.msk.bf16.mxu0 %vm15740_vm0, %v20472_v28 }
 0xabe   : > { %5088 = vrot.lane.b32.xlu0 %v16487_v34, %s15743_s29 }
 0xabf   : > { %5035 = vrot.lane.b32.xlu1 %v16470_v2, %s15743_s29 }
 0xac2   : > { %5139 = vrot.lane.b32.xlu0 %v16502_v44, %s15743_s29 }
 0xac3   : > { %5086 = vrot.lane.b32.xlu1 %v16485_v31, %s15743_s29 }
 0xac6   : > { %5190 = vrot.lane.b32.xlu0 %v16517_v6, %s15743_s29 }
 0xac7   : > { %5137 = vrot.lane.b32.xlu1 %v20520_v35, %s15743_s29 }
 0xaca   : > { %5188 = vrot.lane.b32.xlu0 %v20521_v30, %s15743_s29 }
 0xae9   : > { %v4199_v49 = vpop.xlane.xlu0 %4198 }
 0xaea   : > { %14880 = vrcp.f32 %v4199_v49 }
 0xaeb   : > { %v4202_v63 = vpop.xlane.xlu1 %4201 }
 0xaec   : > { %14882 = vrcp.f32 %v4202_v63 }
 0xaf1   : > { %v4205_v36 = vpop.xlane.xlu0 %4204 }
 0xaf2   : > { %14884 = vrcp.f32 %v4205_v36 }
 0xaf3   : > { %v4208_v25 = vpop.xlane.xlu1 %4207 }
 0xaf4   : > { %v14881_v21 = vpop.eup %14880  ;;  %14886 = vrcp.f32 %v4208_v25  ;;  %v20525_v25 = vld [vmem:[#allocation49_spill] sm:$0xff] }
 0xaf5   : > { %v4261_v47 = vmul.f32 %v14881_v21, %v17366_v43  ;;  %v20524_v43 = vld [vmem:[#allocation48_spill] sm:$0xff]  ;;  %v3023_v21 = vadd.f32 %v17060_v41, %v20525_v25 }
 0xaf6   : > { %v14883_v39 = vpop.eup %14882  ;;  %v3022_v19 = vadd.f32 %v17063_v40, %v20524_v43 }
 0xaf7   : > { %v17543_v20 = vadd.f32 %v4261_v47, %v3020_v52  ;;  %v4262_v17 = vmul.f32 %v14883_v39, %v17370_v42 }
 0xaf9   : > { %v17546_v50 = vadd.f32 %v4262_v17, %v3021_v54  ;;  %v4293_v11 = vpack.c.bf16 %v4262_v17, %v4261_v47  ;;  %v4211_v49 = vpop.xlane.xlu0 %4210  ;;  %v20527_v17 = vld [vmem:[#allocation65_spill] sm:$0xff] }
 0xafa   : > { %14888 = vrcp.f32 %v4211_v49 }
 0xafb   : > { %13698 = vmatmul.mubr.msk.bf16.vlgmr.msra.gmra.mrb[104].mxu0 %vm1481_vm1, %v4293_v11  ;;  %v4214_v63 = vpop.xlane.xlu1 %4213  ;;  %v3025_v11 = vadd.f32 %v17250_v27, %v20527_v17 }
 0xafc   : > { %v14885_v36 = vpop.eup %14884  ;;  %13708 = vmatpush3.bf16.msra.mxu0 %v17358_v3  ;;  %14890 = vrcp.f32 %v4214_v63  ;;  %13709 = vmatprep.mubr.msk.bf16.mxu0 %vm15740_vm0, %v20472_v28 }
 0xafd   : > { %v4263_v56 = vmul.f32 %v14885_v36, %v17376_v61  ;;  %13719 = vmatprep.subr.bf16.mxu0 %v20472_v28  ;;  %v20526_v61 = vld [vmem:[#allocation64_spill] sm:$0xff] }
 0xafe   : > { %v14887_v42 = vpop.eup %14886  ;;  %v3024_v41 = vadd.f32 %v17242_v24, %v20526_v61  ;;  %v20531_v61 = vld [vmem:[#allocation67_spill] sm:$0xff] }
 0xaff   : > { %v17558_v16 = vadd.f32 %v4263_v56, %v3022_v19  ;;  %v4264_v52 = vmul.f32 %v14887_v42, %v17380_v12  ;;  %v20529_v42 = vld [vmem:[#allocation51_spill] sm:$0xff] }
 0xb00   : > { %v3027_v25 = vadd.f32 %v17076_v10, %v20529_v42  ;;  %v20530_v10 = vld [vmem:[#allocation66_spill] sm:$0xff] }
 0xb01   : > { %v17561_v3 = vadd.f32 %v4264_v52, %v3023_v21  ;;  %v4217_v47 = vpop.xlane.xlu0 %4216  ;;  %v4294_v39 = vpack.c.bf16 %v4264_v52, %v4263_v56 }
 0xb02   : > { %14892 = vrcp.f32 %v4217_v47 }
 0xb03   : > { %13704 = vmatmul.mubr.msk.bf16.vlgmr.msra.gmra.mrb[120].mxu1 %vm1481_vm1, %v4294_v39  ;;  %v4220_v40 = vpop.xlane.xlu1 %4219 }
 0xb04   : > { %v14889_v62 = vpop.eup %14888  ;;  %13714 = vmatpush3.bf16.msra.mxu1 %v4443_v4  ;;  %14894 = vrcp.f32 %v4220_v40  ;;  %13715 = vmatprep.mubr.msk.bf16.mxu1 %vm15740_vm0, %v20472_v28 }
 0xb05   : > { %v4265_v54 = vmul.f32 %v14889_v62, %v17386_v37  ;;  %13725 = vmatprep.subr.bf16.mxu1 %v20472_v28  ;;  %v20528_v37 = vld [vmem:[#allocation50_spill] sm:$0xff] }
 0xb06   : > { %v14891_v12 = vpop.eup %14890  ;;  %v3026_v27 = vadd.f32 %v17073_v51, %v20528_v37 }
 0xb07   : > { %v17572_v49 = vadd.f32 %v4265_v54, %v3024_v41  ;;  %v4266_v63 = vmul.f32 %v14891_v12, %v17390_v8  ;;  %v3029_v41 = vadd.f32 %v17267_v14, %v20531_v61 }
 0xb09   : > { %v17575_v4 = vadd.f32 %v4266_v63, %v3025_v11  ;;  %v4223_v36 = vpop.xlane.xlu0 %4222  ;;  %v4295_v43 = vpack.c.bf16 %v4266_v63, %v4265_v54 }
 0xb0a   : > { %14896 = vrcp.f32 %v4223_v36  ;;  %v20533_v36 = vld [vmem:[#allocation74_spill] sm:$0xff] }
 0xb0b   : > { %13710 = vmatmul.mubr.msk.bf16.vlgmr.msra.gmra.mrb[108].mxu0 %vm1481_vm1, %v4295_v43  ;;  %v4226_v24 = vpop.xlane.xlu1 %4225 }
 0xb0c   : > { %v14893_v19 = vpop.eup %14892  ;;  %13720 = vmatpush3.bf16.msra.mxu0 %v4490_v32  ;;  %14898 = vrcp.f32 %v4226_v24  ;;  %13721 = vmatprep.mubr.msk.bf16.mxu0 %vm15740_vm0, %v20472_v28 }
 0xb0d   : > { %v4267_v56 = vmul.f32 %v14893_v19, %v17396_v22  ;;  %13731 = vmatprep.subr.bf16.mxu0 %v20472_v28  ;;  %v3028_v22 = vadd.f32 %v17261_v15, %v20530_v10  ;;  %v20535_v19 = vld [vmem:[#allocation75_spill] sm:$0xff] }
 0xb0e   : > { %v14895_v8 = vpop.eup %14894 }
 0xb0f   : > { %v17586_v21 = vadd.f32 %v4267_v56, %v3026_v27  ;;  %v4268_v52 = vmul.f32 %v14895_v8, %v17400_v38 }
 0xb11   : > { %v17589_v32 = vadd.f32 %v4268_v52, %v3027_v25  ;;  %v4229_v47 = vpop.xlane.xlu0 %4228  ;;  %v4296_v39 = vpack.c.bf16 %v4268_v52, %v4267_v56 }
 0xb12   : > { %14900 = vrcp.f32 %v4229_v47 }
 0xb13   : > { %13716 = vmatmul.mubr.msk.bf16.vlgmr.msra.gmra.mrb[124].mxu1 %vm1481_vm1, %v4296_v39  ;;  %v4232_v51 = vpop.xlane.xlu1 %4231  ;;  %v20537_v39 = vld [vmem:[#allocation78_spill] sm:$0xff] }
 0xb14   : > { %v14897_v40 = vpop.eup %14896  ;;  %13726 = vmatpush3.bf16.msra.mxu1 %v17536_v23  ;;  %14902 = vrcp.f32 %v4232_v51  ;;  %13727 = vmatprep.mubr.msk.bf16.mxu1 %vm15740_vm0, %v20472_v28 }
 0xb15   : > { %v4269_v38 = vmul.f32 %v14897_v40, %v17406_v58  ;;  %13737 = vmatprep.subr.bf16.mxu1 %v20472_v28  ;;  %v20532_v58 = vld [vmem:[#allocation52_spill] sm:$0xff] }
 0xb16   : > { %v14899_v62 = vpop.eup %14898  ;;  %v3030_v14 = vadd.f32 %v20533_v36, %v20532_v58 }
 0xb17   : > { %v17601_v54 = vadd.f32 %v4269_v38, %v3028_v22  ;;  %v4270_v12 = vmul.f32 %v14899_v62, %v17410_v0  ;;  %v20534_v0 = vld [vmem:[#allocation53_spill] sm:$0xff] }
 0xb18   : > { %v3031_v37 = vadd.f32 %v20535_v19, %v20534_v0  ;;  %v20538_v22 = vld [vmem:[#allocation69_spill] sm:$0xff] }
 0xb19   : > { %v17604_v23 = vadd.f32 %v4270_v12, %v3029_v41  ;;  %v4235_v17 = vpop.xlane.xlu0 %4234  ;;  %v4297_v11 = vpack.c.bf16 %v4270_v12, %v4269_v38  ;;  %v20539_v38 = vld [vmem:[#allocation79_spill] sm:$0xff] }
 0xb1a   : > { %14904 = vrcp.f32 %v4235_v17  ;;  %v3033_v62 = vadd.f32 %v20539_v38, %v20538_v22 }
 0xb1b   : > { %13722 = vmatmul.mubr.msk.bf16.vlgmr.msra.gmra.mrb[112].mxu0 %vm1481_vm1, %v4297_v11  ;;  %v4238_v15 = vpop.xlane.xlu1 %4237 }
 0xb1c   : > { %v14901_v63 = vpop.eup %14900  ;;  %14906 = vrcp.f32 %v4238_v15  ;;  %13733 = vmatprep.mubr.msk.bf16.mxu0 %vm15740_vm0, %v20472_v28  ;;  %v20541_v15 = vld [vmem:[#allocation54_spill] sm:$0xff] }
 0xb1d   : > { %v4271_v43 = vmul.f32 %v14901_v63, %v17416_v7  ;;  %v20536_v7 = vld [vmem:[#allocation68_spill] sm:$0xff] }
 0xb1e   : > { %v14903_v24 = vpop.eup %14902  ;;  %v3032_v51 = vadd.f32 %v20537_v39, %v20536_v7  ;;  %v20542_v63 = vld [vmem:[#allocation76_spill] sm:$0xff] }
 0xb1f   : > { %v17614_v27 = vadd.f32 %v4271_v43, %v3030_v14  ;;  %v4272_v56 = vmul.f32 %v14903_v24, %v17421_v59  ;;  %v3034_v58 = vadd.f32 %v20542_v63, %v20541_v15  ;;  %v20544_v24 = vld [vmem:[#allocation77_spill] sm:$0xff] }
 0xb21   : > { %v17617_v8 = vadd.f32 %v4272_v56, %v3031_v37  ;;  %v4241_v42 = vpop.xlane.xlu0 %4240  ;;  %v4298_v25 = vpack.c.bf16 %v4272_v56, %v4271_v43  ;;  %v20543_v43 = vld [vmem:[#allocation55_spill] sm:$0xff] }
 0xb22   : > { %14908 = vrcp.f32 %v4241_v42  ;;  %v3035_v0 = vadd.f32 %v20544_v24, %v20543_v43 }
 0xb23   : > { %13728 = vmatmul.mubr.msk.bf16.vlgmr.msra.gmra.mrb[128].mxu1 %vm1481_vm1, %v4298_v25  ;;  %v4244_v52 = vpop.xlane.xlu1 %4243 }
 0xb24   : > { %v14905_v47 = vpop.eup %14904  ;;  %14910 = vrcp.f32 %v4244_v52  ;;  %13739 = vmatprep.mubr.msk.bf16.mxu1 %vm15740_vm0, %v20472_v28 }
 0xb25   : > { %v4273_v40 = vmul.f32 %v14905_v47, %v17433_v45  ;;  %v4631_v10 = vpop.permute.xlu0 %4630 }
 0xb26   : > { %v14907_v59 = vpop.eup %14906  ;;  %13738 = vmatpush3.bf16.msra.mxu1 %v4631_v10 }
 0xb27   : > { %v17627_v61 = vadd.f32 %v4273_v40, %v3032_v51  ;;  %v4274_v41 = vmul.f32 %v14907_v59, %v17438_v13  ;;  %v4584_v12 = vpop.permute.xlu1 %4583  ;;  %13761 = vmatprep.subr.bf16.mxu1 %v20472_v28 }
 0xb28   : > { %13732 = vmatpush3.bf16.msra.mxu0 %v4584_v12 }
 0xb29   : > { %v17631_v17 = vadd.f32 %v4274_v41, %v3033_v62  ;;  %v4299_v11 = vpack.c.bf16 %v4274_v41, %v4273_v40  ;;  %v4832_v52 = vpop.permute.xlu0 %4831  ;;  %v14602_v62 = vld [vmem:[#allocation10 + $0x10] sm:$0xff]  }
 0xb2a   : > { %13743 = vmatprep.subr.bf16.mxu0 %v14602_v62 }
 0xb2b   : > { %20540 = vst [vmem:[#allocation32_spill] sm:$0xff] %v17631_v17  ;;  %13734 = vmatmul.mubr.msk.bf16.vlgmr.msra.gmra.mrb[116].mxu0 %vm1481_vm1, %v4299_v11  ;;  %v4834_v37 = vpop.permute.xlu1 %4833 }
 0xb2c   : > { %v14909_v45 = vpop.eup %14908  ;;  %v4839_v25 = vsel %vm1481_vm1, %v4834_v37, 0  ;;  %13744 = vmatpush3.bf16.msra.mxu0 %v14602_v62 }
 0xb2d   : > { %v4275_v36 = vmul.f32 %v14909_v45, %v17446_v46  ;;  %v4883_v47 = vpop.permute.xlu0 %4882  ;;  %13785 = vmatprep.subr.bf16.mxu0 %v20472_v28 }
 0xb2e   : > { %v14911_v14 = vpop.eup %14910 }
 0xb2f   : > { %v17639_v13 = vadd.f32 %v4275_v36, %v3034_v58  ;;  %v4276_v19 = vmul.f32 %v14911_v14, %v17451_v33  ;;  %v4885_v46 = vpop.permute.xlu1 %4884 }
 0xb30   : > { %v4890_v7 = vsel %vm1481_vm1, %v4885_v46, 0 }
 0xb31   : > { %v17642_v56 = vadd.f32 %v4276_v19, %v3035_v0  ;;  %v4300_v42 = vpack.c.bf16 %v4276_v19, %v4275_v36  ;;  %v4934_v33 = vpop.permute.xlu0 %4933 }
 0xb33   : > { %13740 = vmatmul.mubr.msk.bf16.vlgmr.msra.gmra.mrb[132].mxu1 %vm1481_vm1, %v4300_v42  ;;  %v4936_v39 = vpop.permute.xlu1 %4935 }
 0xb34   : > { %13762 = vmatpush3.bf16.xpose.msra.mxu1 %v4839_v25  ;;  %13763 = vmatprep.mubr.msk.bf16.mxu1 %vm15740_vm0, %v20472_v28  ;;  %v4941_v51 = vsel %vm1481_vm1, %v4936_v39, 0 }
 0xb35   : > { %13767 = vmatprep.subr.bf16.mxu1 %v20472_v28  ;;  %v5038_v40 = vpop.permute.xlu0 %5037 }
 0xb36   : > { %v5043_v46 = vsel %vm1481_vm1, %v5038_v40, 0 }
 0xb37   : > { %v4987_v10 = vpop.permute.xlu1 %4986 }
 0xb38   : > { %v4992_v59 = vsel %vm1481_vm1, %v4987_v10, 0 }
 0xb39   : > { %v5089_v22 = vpop.permute.xlu0 %5088 }
 0xb3a   : > { %v5094_v12 = vsel %vm1481_vm1, %v5089_v22, 0 }
 0xb3b   : > { %13764 = vmatmul.mubr.msk.bf16.vlgmr.msra.gmra.mrb[136].mxu1 %vm1481_vm1, %v4832_v52  ;;  %v4985_v38 = vpop.permute.xlu1 %4984 }
 0xb3c   : > { %13768 = vmatpush3.bf16.xpose.msra.mxu1 %v4890_v7  ;;  %13769 = vmatprep.mubr.msk.bf16.mxu1 %vm15740_vm0, %v20472_v28 }
 0xb3d   : > { %13773 = vmatprep.subr.bf16.mxu1 %v20472_v28  ;;  %v17664_v41 = vpop.permute.xlu0 %5139 }
 0xb3f   : > { %v17668_v11 = vpop.permute.xlu1 %5035 }
 0xb41   : > { %v5191_v45 = vpop.permute.xlu0 %5190 }
 0xb42   : > { %v5196_v63 = vsel %vm1481_vm1, %v5191_v45, 0 }
 0xb43   : > { %13770 = vmatmul.mubr.msk.bf16.vlgmr.msra.gmra.mrb[140].mxu1 %vm1481_vm1, %v4883_v47  ;;  %v5087_v15 = vpop.permute.xlu1 %5086 }
 0xb44   : > { %13774 = vmatpush3.bf16.xpose.msra.mxu1 %v4941_v51  ;;  %13775 = vmatprep.mubr.msk.bf16.mxu1 %vm15740_vm0, %v20472_v28 }
 0xb45   : > { %13779 = vmatprep.subr.bf16.mxu1 %v20472_v28  ;;  %v5189_v58 = vpop.permute.xlu0 %5188 }
 0xb4b   : > { %13776 = vmatmul.mubr.msk.bf16.vlgmr.msra.gmra.mrb[144].mxu1 %vm1481_vm1, %v4934_v33 }
 0xb4c   : > { %13780 = vmatpush3.bf16.xpose.msra.mxu1 %v4992_v59  ;;  %13781 = vmatprep.mubr.msk.bf16.mxu1 %vm15740_vm0, %v20472_v28 }
 0xb4d   : > { %13791 = vmatprep.subr.bf16.mxu1 %v20472_v28 }
 0xb53   : > { %13782 = vmatmul.mubr.msk.bf16.vlgmr.msra.gmra.mrb[148].mxu1 %vm1481_vm1, %v4985_v38 }
 0xb54   : > { %13792 = vmatpush3.bf16.xpose.msra.mxu1 %v5094_v12  ;;  %13793 = vmatprep.mubr.msk.bf16.mxu1 %vm15740_vm0, %v20472_v28 }
 0xb55   : > { %13803 = vmatprep.subr.bf16.mxu1 %v20472_v28 }
 0xb5b   : > { %13794 = vmatmul.mubr.msk.bf16.vlgmr.msra.gmra.mrb[152].mxu1 %vm1481_vm1, %v5087_v15 }
 0xb5c   : > { %13804 = vmatpush3.bf16.xpose.msra.mxu1 %v5196_v63  ;;  %13805 = vmatprep.mubr.msk.bf16.mxu1 %vm15740_vm0, %v20472_v28 }
 0xb5d   : > { %13815 = vmatprep.subr.bf16.mxu1 %v20472_v28 }
 0xb63   : > { %13806 = vmatmul.mubr.msk.bf16.vlgmr.msra.gmra.mrb[156].mxu1 %vm1481_vm1, %v5189_v58 }
 0xb64   : > { %13817 = vmatprep.mubr.msk.bf16.mxu1 %vm15740_vm0, %v20472_v28 }
 0xbce   : > { %v4341_v36 = vpop.f32.mrb[104].mxu0 }
 0xbcf   : > { %v13699_v14 = vpop.f32.mrb[105].mxu0 }
 0xbd0   : > { %v4344_v43 = vpop.f32.mrb[106].mxu0 }
 0xbd1   : > { %v4677_v24 = vpack.c.bf16 %v4344_v43, %v4341_v36  ;;  %v13700_v0 = vpop.f32.mrb[107].mxu0 }
 0xbd3   : > { %13745 = vmatprep.mubr.msk.bf16.mxu0 %vm1481_vm1, %v4677_v24 }
 0xbd6   : > { %v4388_v19 = vpop.f32.mrb[120].mxu1 }
 0xbd7   : > { %v13705_v37 = vpop.f32.mrb[121].mxu1 }
 0xbd8   : > { %v4391_v42 = vpop.f32.mrb[122].mxu1 }
 0xbd9   : > { %v4678_v25 = vpack.c.bf16 %v4391_v42, %v4388_v19  ;;  %v13706_v52 = vpop.f32.mrb[123].mxu1 }
 0xbdb   : > { %13746 = vmatmul.mubr.msk.bf16.vlgmr.msra.gmra.mrb[88].mxu0 %vm1481_vm1, %v4678_v25 }
 0xbdc   : > { %13786 = vmatpush3.bf16.xpose.msra.mxu0 %v5043_v46 }
 0xbdd   : > { %13797 = vmatprep.subr.bf16.mxu0 %v20472_v28 }
 0xbde   : > { %v4435_v47 = vpop.f32.mrb[108].mxu0 }
 0xbdf   : > { %v13711_v7 = vpop.f32.mrb[109].mxu0 }
 0xbe0   : > { %v4438_v33 = vpop.f32.mrb[110].mxu0 }
 0xbe1   : > { %v4679_v39 = vpack.c.bf16 %v4438_v33, %v4435_v47  ;;  %v13712_v51 = vpop.f32.mrb[111].mxu0 }
 0xbe3   : > { %13749 = vmatprep.mubr.msk.bf16.mxu0 %vm1481_vm1, %v4679_v39 }
 0xbe6   : > { %v4482_v10 = vpop.f32.mrb[124].mxu1 }
 0xbe7   : > { %v13717_v59 = vpop.f32.mrb[125].mxu1 }
 0xbe8   : > { %v4485_v22 = vpop.f32.mrb[126].mxu1 }
 0xbe9   : > { %v4680_v38 = vpack.c.bf16 %v4485_v22, %v4482_v10  ;;  %v13718_v62 = vpop.f32.mrb[127].mxu1 }
 0xbea   : > { %v5145_v62 = vsel %vm1481_vm1, %v17664_v41, 0 }
 0xbeb   : > { %13750 = vmatmul.mubr.msk.bf16.gmra.mrb[92].mxu0 %vm1481_vm1, %v4680_v38 }
 0xbee   : > { %v4529_v40 = vpop.f32.mrb[112].mxu0 }
 0xbef   : > { %v13723_v12 = vpop.f32.mrb[113].mxu0 }
 0xbf0   : > { %v4532_v45 = vpop.f32.mrb[114].mxu0 }
 0xbf1   : > { %v4681_v15 = vpack.c.bf16 %v4532_v45, %v4529_v40  ;;  %v13724_v63 = vpop.f32.mrb[115].mxu0 }
 0xbf3   : > { %13753 = vmatprep.mubr.msk.bf16.mxu0 %vm1481_vm1, %v4681_v15 }
 0xbf6   : > { %v4576_v58 = vpop.f32.mrb[128].mxu1 }
 0xbf7   : > { %v13729_v36 = vpop.f32.mrb[129].mxu1 }
 0xbf8   : > { %v4579_v14 = vpop.f32.mrb[130].mxu1 }
 0xbf9   : > { %v4682_v43 = vpack.c.bf16 %v4579_v14, %v4576_v58  ;;  %v13730_v24 = vpop.f32.mrb[131].mxu1  ;;  %v5138_v58 = vpop.permute.xlu1 %5137 }
 0xbfb   : > { %13754 = vmatmul.mubr.msk.bf16.gmra.mrb[96].mxu0 %vm1481_vm1, %v4682_v43 }
 0xbfe   : > { %v4623_v0 = vpop.f32.mrb[116].mxu0 }
 0xbff   : > { %v13735_v19 = vpop.f32.mrb[117].mxu0 }
 0xc00   : > { %v4626_v37 = vpop.f32.mrb[118].mxu0 }
 0xc01   : > { %v4683_v42 = vpack.c.bf16 %v4626_v37, %v4623_v0  ;;  %v13736_v25 = vpop.f32.mrb[119].mxu0 }
 0xc03   : > { %13757 = vmatprep.mubr.msk.bf16.mxu0 %vm1481_vm1, %v4683_v42 }
 0xc06   : > { %v4670_v52 = vpop.f32.mrb[132].mxu1 }
 0xc07   : > { %v13741_v46 = vpop.f32.mrb[133].mxu1 }
 0xc08   : > { %v4673_v47 = vpop.f32.mrb[134].mxu1 }
 0xc09   : > { %v4684_v7 = vpack.c.bf16 %v4673_v47, %v4670_v52  ;;  %v13742_v33 = vpop.f32.mrb[135].mxu1 }
 0xc0b   : > { %13758 = vmatmul.mubr.msk.bf16.gmra.mrb[100].mxu0 %vm1481_vm1, %v4684_v7 }
 0xc0c   : > { %13787 = vmatprep.mubr.msk.bf16.mxu0 %vm15740_vm0, %v20472_v28 }
 0xc0e   : > { %v17694_v39 = vpop.f32.mrb[136].mxu1 }
 0xc0f   : > { %v13765_v51 = vpop.f32.mrb[137].mxu1  ;;  %v5239_v10 = vsel %vm1481_vm1, %v17694_v39, -inf }
 0xc10   : > { %5240 = vmax.xlane.f32.xlu1 %v5239_v10  ;;  %v4878_v59 = vpop.f32.mrb[138].mxu1 }
 0xc11   : > { %v13766_v22 = vpop.f32.mrb[139].mxu1  ;;  %v5242_v38 = vsel %vm1481_vm1, %v4878_v59, -inf }
 0xc12   : > { %5243 = vmax.xlane.f32.xlu0 %v5242_v38 }
 0xc13   : > { %13788 = vmatmul.mubr.msk.bf16.vlgmr.msra.gmra.mrb[120].mxu0 %vm1481_vm1, %v17668_v11 }
 0xc14   : > { %13798 = vmatpush3.bf16.xpose.msra.mxu0 %v5145_v62  ;;  %13799 = vmatprep.mubr.msk.bf16.mxu0 %vm15740_vm0, %v20472_v28 }
 0xc15   : > { %13809 = vmatprep.subr.bf16.mxu0 %v20472_v28 }
 0xc16   : > { %v17706_v40 = vpop.f32.mrb[140].mxu1 }
 0xc17   : > { %v13771_v12 = vpop.f32.mrb[141].mxu1  ;;  %v5245_v45 = vsel %vm1481_vm1, %v17706_v40, -inf }
 0xc18   : > { %5246 = vmax.xlane.f32.xlu0 %v5245_v45  ;;  %v4929_v15 = vpop.f32.mrb[142].mxu1 }
 0xc19   : > { %v13772_v63 = vpop.f32.mrb[143].mxu1  ;;  %v5248_v41 = vsel %vm1481_vm1, %v4929_v15, -inf }
 0xc1a   : > { %5249 = vmax.xlane.f32.xlu1 %v5248_v41 }
 0xc1b   : > { %13800 = vmatmul.mubr.msk.bf16.vlgmr.msra.gmra.mrb[124].mxu0 %vm1481_vm1, %v5138_v58 }
 0xc1c   : > { %13811 = vmatprep.mubr.msk.bf16.mxu0 %vm15740_vm0, %v20472_v28 }
 0xc1e   : > { %v4977_v11 = vpop.f32.mrb[144].mxu1 }
 0xc1f   : > { %v13777_v36 = vpop.f32.mrb[145].mxu1  ;;  %v5251_v14 = vsel %vm1481_vm1, %v4977_v11, -inf }
 0xc20   : > { %5252 = vmax.xlane.f32.xlu0 %v5251_v14  ;;  %v4980_v43 = vpop.f32.mrb[146].mxu1 }
 0xc21   : > { %v13778_v24 = vpop.f32.mrb[147].mxu1  ;;  %v5254_v0 = vsel %vm1481_vm1, %v4980_v43, -inf }
 0xc22   : > { %5255 = vmax.xlane.f32.xlu1 %v5254_v0 }
 0xc26   : > { %v17716_v19 = vpop.f32.mrb[148].mxu1 }
 0xc27   : > { %v13783_v37 = vpop.f32.mrb[149].mxu1  ;;  %v5257_v42 = vsel %vm1481_vm1, %v17716_v19, -inf }
 0xc28   : > { %5258 = vmax.xlane.f32.xlu0 %v5257_v42  ;;  %v5031_v25 = vpop.f32.mrb[150].mxu1 }
 0xc29   : > { %v13784_v52 = vpop.f32.mrb[151].mxu1  ;;  %v5260_v46 = vsel %vm1481_vm1, %v5031_v25, -inf }
 0xc2a   : > { %5261 = vmax.xlane.f32.xlu1 %v5260_v46 }
 0xc2e   : > { %v17721_v47 = vpop.f32.mrb[152].mxu1 }
 0xc2f   : > { %v13795_v7 = vpop.f32.mrb[153].mxu1  ;;  %v5269_v33 = vsel %vm1481_vm1, %v17721_v47, -inf }
 0xc30   : > { %5270 = vmax.xlane.f32.xlu0 %v5269_v33  ;;  %v17725_v51 = vpop.f32.mrb[154].mxu1 }
 0xc31   : > { %v13796_v10 = vpop.f32.mrb[155].mxu1  ;;  %v5272_v22 = vsel %vm1481_vm1, %v17725_v51, -inf }
 0xc32   : > { %5273 = vmax.xlane.f32.xlu1 %v5272_v22 }
 0xc36   : > { %v17729_v38 = vpop.f32.mrb[156].mxu1 }
 0xc37   : > { %v13807_v62 = vpop.f32.mrb[157].mxu1  ;;  %v5281_v12 = vsel %vm1481_vm1, %v17729_v38, -inf }
 0xc38   : > { %5282 = vmax.xlane.f32.xlu0 %v5281_v12  ;;  %v17733_v45 = vpop.f32.mrb[158].mxu1 }
 0xc39   : > { %v13808_v63 = vpop.f32.mrb[159].mxu1  ;;  %v5284_v41 = vsel %vm1481_vm1, %v17733_v45, -inf }
 0xc3a   : > { %5285 = vmax.xlane.f32.xlu1 %v5284_v41 }
 0xc9d   : > { %v5241_v37 = vpop.xlane.xlu1 %5240 }
 0xc9e   : > { %v5287_v52 = vsub.f32 %v17694_v39, %v5241_v37 }
 0xc9f   : > { %v5244_v58 = vpop.xlane.xlu0 %5243 }
 0xca0   : > { %v5288_v36 = vsub.f32 %v4878_v59, %v5244_v58  ;;  %v5303_v7 = vmul.f32 1.442695, %v5287_v52 }
 0xca2   : > { %v5305_v14 = vmul.f32 1.442695, %v5288_v36 }
 0xca4   : > { %14912 = vpow2.f32 %v5305_v14 }
 0xca5   : > { %v5247_v33 = vpop.xlane.xlu0 %5246  ;;  %14914 = vpow2.f32 %v5303_v7 }
 0xca6   : > { %v5289_v59 = vsub.f32 %v17706_v40, %v5247_v33 }
 0xca7   : > { %v5250_v42 = vpop.xlane.xlu1 %5249 }
 0xca8   : > { %v5290_v46 = vsub.f32 %v4929_v15, %v5250_v42  ;;  %v5307_v41 = vmul.f32 1.442695, %v5289_v59 }
 0xcaa   : > { %v5309_v10 = vmul.f32 1.442695, %v5290_v46 }
 0xcac   : > { %14916 = vpow2.f32 %v5309_v10 }
 0xcad   : > { %v5253_v62 = vpop.xlane.xlu0 %5252  ;;  %14918 = vpow2.f32 %v5307_v41 }
 0xcae   : > { %v17737_v24 = vpop.eup %14912  ;;  %v5291_v58 = vsub.f32 %v4977_v11, %v5253_v62 }
 0xcaf   : > { %v5338_v0 = vsel %vm1481_vm1, %v17737_v24, 0.0  ;;  %v5256_v22 = vpop.xlane.xlu1 %5255  ;;  %v17748_v46 = vpop.eup %14914 }
 0xcb0   : > { %5339 = vadd.xlane.f32.xlu1 %v5338_v0  ;;  %v5292_v12 = vsub.f32 %v4980_v43, %v5256_v22  ;;  %v5311_v39 = vmul.f32 1.442695, %v5291_v58 }
 0xcb2   : > { %v5313_v14 = vmul.f32 1.442695, %v5292_v12  ;;  %v5335_v12 = vsel %vm1481_vm1, %v17748_v46, 0.0 }
 0xcb4   : > { %14920 = vpow2.f32 %v5313_v14 }
 0xcb5   : > { %v5259_v36 = vpop.xlane.xlu0 %5258  ;;  %14922 = vpow2.f32 %v5311_v39 }
 0xcb6   : > { %v5293_v15 = vsub.f32 %v17716_v19, %v5259_v36  ;;  %v17755_v10 = vpop.eup %14916 }
 0xcb7   : > { %v5262_v63 = vpop.xlane.xlu1 %5261 }
 0xcb8   : > { %v5294_v0 = vsub.f32 %v5031_v25, %v5262_v63  ;;  %v5315_v22 = vmul.f32 1.442695, %v5293_v15  ;;  %v5344_v63 = vsel %vm1481_vm1, %v17755_v10, 0.0 }
 0xcba   : > { %v5317_v43 = vmul.f32 1.442695, %v5294_v0  ;;  %v17768_v0 = vpop.eup %14918 }
 0xcbc   : > { %14924 = vpow2.f32 %v5317_v43 }
 0xcbd   : > { %v5271_v42 = vpop.xlane.xlu0 %5270  ;;  %14926 = vpow2.f32 %v5315_v22 }
 0xcbe   : > { %v5297_v59 = vsub.f32 %v17721_v47, %v5271_v42 }
 0xcbf   : > { %v5274_v17 = vpop.xlane.xlu1 %5273 }
 0xcc0   : > { %v5298_v11 = vsub.f32 %v17725_v51, %v5274_v17  ;;  %v5323_v41 = vmul.f32 1.442695, %v5297_v59 }
 0xcc2   : > { %v5325_v17 = vmul.f32 1.442695, %v5298_v11 }
 0xcc4   : > { %14928 = vpow2.f32 %v5325_v17 }
 0xcc5   : > { %v5283_v62 = vpop.xlane.xlu0 %5282  ;;  %14930 = vpow2.f32 %v5323_v41 }
 0xcc6   : > { %v5301_v58 = vsub.f32 %v17729_v38, %v5283_v62 }
 0xcc7   : > { %v5286_v25 = vpop.xlane.xlu1 %5285 }
 0xcc8   : > { %v5302_v51 = vsub.f32 %v17733_v45, %v5286_v25  ;;  %v5331_v38 = vmul.f32 1.442695, %v5301_v58 }
 0xcca   : > { %v5333_v39 = vmul.f32 1.442695, %v5302_v51 }
 0xccc   : > { %14932 = vpow2.f32 %v5333_v39  ;;  %v20546_v39 = vld [vmem:[#allocation38_spill] sm:$0xff] }
 0xccd   : > { %14934 = vpow2.f32 %v5331_v38  ;;  %v20549_v38 = vld [vmem:[#allocation37_spill] sm:$0xff] }
 0xce6   : > { %v17744_v37 = vpop.f32.mrb[120].mxu0 }
 0xce7   : > { %v13789_v52 = vpop.f32.mrb[121].mxu0  ;;  %v5263_v40 = vsel %vm1481_vm1, %v17744_v37, -inf }
 0xce8   : > { %v17751_v7 = vpop.f32.mrb[122].mxu0  ;;  %5264 = vmax.xlane.f32.xlu0 %v5263_v40  ;;  %v17774_v52 = vpop.eup %14920  ;;  %v5341_v40 = vsel %vm1481_vm1, %v17768_v0, 0.0 }
 0xce9   : > { %v13790_v33 = vpop.f32.mrb[123].mxu0  ;;  %v5266_v19 = vsel %vm1481_vm1, %v17751_v7, -inf  ;;  %v17778_v43 = vpop.eup %14922  ;;  %v5350_v11 = vsel %vm1481_vm1, %v17774_v52, 0.0 }
 0xcea   : > { %5267 = vmax.xlane.f32.xlu1 %v5266_v19  ;;  %v17782_v25 = vpop.eup %14924  ;;  %v5347_v33 = vsel %vm1481_vm1, %v17778_v43, 0.0 }
 0xceb   : > { %v17786_v19 = vpop.eup %14926  ;;  %v5356_v22 = vsel %vm1481_vm1, %v17782_v25, 0.0 }
 0xcec   : > { %5336 = vadd.xlane.f32.xlu0 %v5335_v12  ;;  %v17790_v59 = vpop.eup %14928  ;;  %v5353_v62 = vsel %vm1481_vm1, %v17786_v19, 0.0 }
 0xced   : > { %v17794_v12 = vpop.eup %14930  ;;  %v5368_v17 = vsel %vm1481_vm1, %v17790_v59, 0.0 }
 0xcee   : > { %v17764_v36 = vpop.f32.mrb[124].mxu0  ;;  %5345 = vadd.xlane.f32.xlu1 %v5344_v63  ;;  %v17798_v51 = vpop.eup %14932  ;;  %v5365_v63 = vsel %vm1481_vm1, %v17794_v12, 0.0 }
 0xcef   : > { %v13801_v47 = vpop.f32.mrb[125].mxu0  ;;  %v5275_v14 = vsel %vm1481_vm1, %v17764_v36, -inf  ;;  %v17802_v41 = vpop.eup %14934  ;;  %v5380_v58 = vsel %vm1481_vm1, %v17798_v51, 0.0 }
 0xcf0   : > { %v17770_v45 = vpop.f32.mrb[126].mxu0  ;;  %5276 = vmax.xlane.f32.xlu0 %v5275_v14  ;;  %v5377_v47 = vsel %vm1481_vm1, %v17802_v41, 0.0  ;;  %v20545_v14 = vld [vmem:[#allocation33_spill] sm:$0xff] }
 0xcf1   : > { %v13802_v15 = vpop.f32.mrb[127].mxu0  ;;  %v5278_v42 = vsel %vm1481_vm1, %v17770_v45, -inf }
 0xcf2   : > { %5279 = vmax.xlane.f32.xlu1 %v5278_v42  ;;  %v20547_v15 = vld [vmem:[#allocation34_spill] sm:$0xff] }
 0xcf3   : > { %v20548_v42 = vld [vmem:[#allocation42_spill] sm:$0xff] }
 0xcf4   : > { %5342 = vadd.xlane.f32.xlu0 %v5341_v40  ;;  %v20550_v40 = vld [vmem:[#allocation41_spill] sm:$0xff] }
 0xcf6   : > { %5351 = vadd.xlane.f32.xlu1 %v5350_v11 }
 0xcf8   : > { %5348 = vadd.xlane.f32.xlu0 %v5347_v33 }
 0xcfa   : > { %5357 = vadd.xlane.f32.xlu1 %v5356_v22 }
 0xcfc   : > { %5354 = vadd.xlane.f32.xlu0 %v5353_v62 }
 0xcfe   : > { %5369 = vadd.xlane.f32.xlu1 %v5368_v17 }
 0xd00   : > { %5366 = vadd.xlane.f32.xlu0 %v5365_v63 }
 0xd02   : > { %5381 = vadd.xlane.f32.xlu1 %v5380_v58 }
 0xd04   : > { %5378 = vadd.xlane.f32.xlu0 %v5377_v47 }
 0xd13   : > { %5486 = vrot.lane.b32.xlu1 %v20545_v14, %s15743_s29 }
 0xd17   : > { %5533 = vrot.lane.b32.xlu1 %v20546_v39, %s15743_s29 }
 0xd1a   : > { %5439 = vrot.lane.b32.xlu0 %v20547_v15, %s15743_s29 }
 0xd1b   : > { %5627 = vrot.lane.b32.xlu1 %v20548_v42, %s15743_s29 }
 0xd1e   : > { %5580 = vrot.lane.b32.xlu0 %v20549_v38, %s15743_s29 }
 0xd22   : > { %5674 = vrot.lane.b32.xlu0 %v20550_v40, %s15743_s29 }
 0xd3d   : > { %v5340_v11 = vpop.xlane.xlu1 %5339 }
 0xd3e   : > { %14936 = vrcp.f32 %v5340_v11 }
 0xd48   : > { %v14937_v33 = vpop.eup %14936 }
 0xd49   : > { %v17821_v22 = vmul.f32 %v14937_v33, %v17737_v24 }
 0xd4b   : > { %v17825_v62 = vadd.f32 %v17821_v22, %v17546_v50 }
 0xd4d   : > { %20551 = vst [vmem:[#allocation57_spill] sm:$0xff] %v17825_v62 }
 0xd75   : > { %v5265_v17 = vpop.xlane.xlu0 %5264 }
 0xd76   : > { %v5295_v63 = vsub.f32 %v17744_v37, %v5265_v17 }
 0xd77   : > { %v5268_v58 = vpop.xlane.xlu1 %5267 }
 0xd78   : > { %v5319_v47 = vmul.f32 1.442695, %v5295_v63  ;;  %v5296_v38 = vsub.f32 %v17751_v7, %v5268_v58 }
 0xd79   : > { %v5337_v42 = vpop.xlane.xlu0 %5336 }
 0xd7a   : > { %14938 = vpow2.f32 %v5319_v47  ;;  %v5321_v40 = vmul.f32 1.442695, %v5296_v38 }
 0xd7b   : > { %14940 = vrcp.f32 %v5337_v42  ;;  %v5346_v11 = vpop.xlane.xlu1 %5345 }
 0xd7c   : > { %14942 = vpow2.f32 %v5321_v40 }
 0xd7d   : > { %14944 = vrcp.f32 %v5346_v11  ;;  %v5277_v24 = vpop.xlane.xlu0 %5276 }
 0xd7e   : > { %v5299_v33 = vsub.f32 %v17764_v36, %v5277_v24 }
 0xd7f   : > { %v5280_v15 = vpop.xlane.xlu1 %5279 }
 0xd80   : > { %v5327_v50 = vmul.f32 1.442695, %v5299_v33  ;;  %v5300_v62 = vsub.f32 %v17770_v45, %v5280_v15 }
 0xd81   : > { %v5343_v39 = vpop.xlane.xlu0 %5342 }
 0xd82   : > { %14946 = vpow2.f32 %v5327_v50  ;;  %v5329_v37 = vmul.f32 1.442695, %v5300_v62 }
 0xd83   : > { %14948 = vrcp.f32 %v5343_v39  ;;  %v5352_v17 = vpop.xlane.xlu1 %5351 }
 0xd84   : > { %v17831_v7 = vpop.eup %14938  ;;  %14950 = vpow2.f32 %v5329_v37 }
 0xd85   : > { %v14941_v38 = vpop.eup %14940  ;;  %14952 = vrcp.f32 %v5352_v17  ;;  %v5349_v42 = vpop.xlane.xlu0 %5348  ;;  %v5359_v40 = vsel %vm1481_vm1, %v17831_v7, 0.0 }
 0xd86   : > { %v17835_v63 = vpop.eup %14942  ;;  %v5399_v36 = vmul.f32 %v14941_v38, %v17748_v46  ;;  %14954 = vrcp.f32 %v5349_v42  ;;  %5360 = vadd.xlane.f32.xlu0 %v5359_v40 }
 0xd87   : > { %v14945_v45 = vpop.eup %14944  ;;  %v5358_v15 = vpop.xlane.xlu1 %5357  ;;  %v5362_v39 = vsel %vm1481_vm1, %v17835_v63, 0.0 }
 0xd88   : > { %v17841_v62 = vadd.f32 %v5399_v36, %v17543_v20  ;;  %v5402_v58 = vmul.f32 %v14945_v45, %v17755_v10  ;;  %14956 = vrcp.f32 %v5358_v15  ;;  %5363 = vadd.xlane.f32.xlu1 %v5362_v39 }
 0xd89   : > { %v5355_v47 = vpop.xlane.xlu0 %5354 }
 0xd8a   : > { %v17845_v11 = vadd.f32 %v5402_v58, %v17561_v3  ;;  %14958 = vrcp.f32 %v5355_v47 }
 0xd8b   : > { %v5370_v46 = vpop.xlane.xlu1 %5369 }
 0xd8c   : > { %v17847_v24 = vpop.eup %14946  ;;  %14960 = vrcp.f32 %v5370_v46 }
 0xd8d   : > { %v14949_v33 = vpop.eup %14948  ;;  %v5367_v50 = vpop.xlane.xlu0 %5366  ;;  %v5371_v37 = vsel %vm1481_vm1, %v17847_v24, 0.0 }
 0xd8e   : > { %v17851_v20 = vpop.eup %14950  ;;  %v5401_v10 = vmul.f32 %v14949_v33, %v17768_v0  ;;  %14962 = vrcp.f32 %v5367_v50  ;;  %5372 = vadd.xlane.f32.xlu0 %v5371_v37 }
 0xd8f   : > { %v14953_v17 = vpop.eup %14952  ;;  %v5382_v38 = vpop.xlane.xlu1 %5381  ;;  %v5374_v3 = vsel %vm1481_vm1, %v17851_v20, 0.0 }
 0xd90   : > { %v14955_v42 = vpop.eup %14954  ;;  %v17857_v40 = vadd.f32 %v5401_v10, %v17558_v16  ;;  %v5404_v45 = vmul.f32 %v14953_v17, %v17774_v52  ;;  %14964 = vrcp.f32 %v5382_v38  ;;  %5375 = vadd.xlane.f32.xlu1 %v5374_v3  ;;  %v5432_v17 = vpack.c.bf16 %v5402_v58, %v5401_v10 }
 0xd91   : > { %v5403_v15 = vmul.f32 %v14955_v42, %v17778_v43  ;;  %v5379_v39 = vpop.xlane.xlu0 %5378 }
 0xd92   : > { %v14957_v47 = vpop.eup %14956  ;;  %v17862_v0 = vadd.f32 %v5404_v45, %v17575_v4  ;;  %14966 = vrcp.f32 %v5379_v39 }
 0xd93   : > { %v17865_v46 = vadd.f32 %v5403_v15, %v17572_v49  ;;  %v5406_v33 = vmul.f32 %v14957_v47, %v17782_v25  ;;  %v5487_v50 = vpop.permute.xlu1 %5486 }
 0xd94   : > { %v14959_v16 = vpop.eup %14958  ;;  %13816 = vmatpush3.bf16.msra.mxu1 %v5487_v50 }
 0xd95   : > { %v17869_v52 = vadd.f32 %v5406_v33, %v17589_v32  ;;  %v5405_v37 = vmul.f32 %v14959_v16, %v17786_v19  ;;  %v5440_v43 = vpop.permute.xlu0 %5439  ;;  %13827 = vmatprep.subr.bf16.mxu1 %v20472_v28  ;;  %v5431_v32 = vpack.c.bf16 %v17821_v22, %v5399_v36 }
 0xd96   : > { %v14961_v4 = vpop.eup %14960  ;;  %13810 = vmatpush3.bf16.msra.mxu0 %v5440_v43 }
 0xd97   : > { %v17874_v38 = vadd.f32 %v5405_v37, %v17586_v21  ;;  %v5410_v49 = vmul.f32 %v14961_v4, %v17790_v59  ;;  %13818 = vmatmul.mubr.msk.bf16.vlgmr.msra.gmra.mrb[160].mxu1 %vm1481_vm1, %v5432_v17  ;;  %13821 = vmatprep.subr.bf16.mxu0 %v20472_v28  ;;  %v5534_v10 = vpop.permute.xlu1 %5533  ;;  %v5434_v39 = vpack.c.bf16 %v5406_v33, %v5405_v37 }
 0xd98   : > { %v14963_v25 = vpop.eup %14962  ;;  %13829 = vmatprep.mubr.msk.bf16.mxu1 %vm15740_vm0, %v20472_v28 }
 0xd99   : > { %v17883_v19 = vadd.f32 %v5410_v49, %v17617_v8  ;;  %v5409_v58 = vmul.f32 %v14963_v25, %v17794_v12  ;;  %v5581_v21 = vpop.permute.xlu0 %5580  ;;  %13812 = vmatmul.mubr.msk.bf16.vlgmr.msra.gmra.mrb[128].mxu0 %vm1481_vm1, %v5431_v32 }
 0xd9a   : > { %v14965_v59 = vpop.eup %14964  ;;  %13822 = vmatpush3.bf16.msra.mxu0 %v5534_v10  ;;  %13828 = vmatpush3.bf16.msra.mxu1 %v5581_v21 }
 0xd9b   : > { %v17888_v3 = vadd.f32 %v5409_v58, %v17614_v27  ;;  %v5414_v22 = vmul.f32 %v14965_v59, %v17798_v51  ;;  %13839 = vmatprep.subr.bf16.mxu1 %v20472_v28  ;;  %13823 = vmatprep.mubr.msk.bf16.mxu0 %vm15740_vm0, %v20472_v28  ;;  %v5433_v51 = vpack.c.bf16 %v5404_v45, %v5403_v15  ;;  %v5628_v47 = vpop.permute.xlu1 %5627 }
 0xd9c   : > { %v14967_v8 = vpop.eup %14966  ;;  %13833 = vmatprep.subr.bf16.mxu0 %v20472_v28 }
 0xd9d   : > { %v17896_v12 = vadd.f32 %v5414_v22, %v17642_v56  ;;  %v5413_v36 = vmul.f32 %v14967_v8, %v17802_v41  ;;  %v5675_v42 = vpop.permute.xlu0 %5674  ;;  %v20552_v8 = vld [vmem:[#allocation32_spill] sm:$0xff] }
 0xd9f   : > { %v17900_v27 = vadd.f32 %v5413_v36, %v17639_v13  ;;  %13830 = vmatmul.mubr.msk.bf16.vlgmr.msra.gmra.mrb[164].mxu1 %vm1481_vm1, %v5434_v39  ;;  %v5436_v13 = vpack.c.bf16 %v5410_v49, %v5409_v58  ;;  %v5438_v49 = vpack.c.bf16 %v5414_v22, %v5413_v36  ;;  %v14603_v58 = vld [vmem:[#allocation10 + $0x18] sm:$0xff]  }
 0xda0   : > { %13840 = vmatpush3.bf16.msra.mxu1 %v5675_v42  ;;  %13841 = vmatprep.mubr.msk.bf16.mxu1 %vm15740_vm0, %v20472_v28 }
 0xda1   : > { %5721 = vrot.lane.b32.xlu1 %v16463_v5, %s15743_s29  ;;  %13824 = vmatmul.mubr.msk.bf16.vlgmr.msra.gmra.mrb[132].mxu0 %vm1481_vm1, %v5433_v51 }
 0xda2   : > { %13834 = vmatpush3.bf16.msra.mxu0 %v5628_v47  ;;  %13851 = vmatprep.subr.bf16.mxu1 %v20472_v28 }
 0xda3   : > { %13835 = vmatprep.mubr.msk.bf16.mxu0 %vm15740_vm0, %v20472_v28  ;;  %13845 = vmatprep.subr.bf16.mxu0 %v20472_v28 }
 0xda4   : > { %5768 = vrot.lane.b32.xlu0 %v16459_v1, %s15743_s29  ;;  %s12912_s29 = sshll.u32 %s15848_s19, 11 }
 0xda5   : > { %5971 = vrot.lane.b32.xlu1 %v20496_v29, %s15744_s26 }
 0xda7   : > { %13842 = vmatmul.mubr.msk.bf16.vlgmr.msra.gmra.mrb[168].mxu1 %vm1481_vm1, %v5436_v13 }
 0xda8   : > { %5969 = vrot.lane.b32.xlu0 %v20503_v26, %s15744_s26  ;;  %13853 = vmatprep.mubr.msk.bf16.mxu1 %vm15740_vm0, %v20472_v28 }
 0xda9   : > { %6022 = vrot.lane.b32.xlu1 %v20504_v18, %s15744_s26 }
 0xdac   : > { %6020 = vrot.lane.b32.xlu0 %v20505_v53, %s15744_s26 }
 0xdad   : > { %6073 = vrot.lane.b32.xlu1 %v20506_v9, %s15744_s26 }
 0xdb0   : > { %6071 = vrot.lane.b32.xlu0 %v20513_v48, %s15744_s26 }
 0xdb1   : > { %6124 = vrot.lane.b32.xlu1 %v20514_v57, %s15744_s26 }
 0xdb4   : > { %6175 = vrot.lane.b32.xlu0 %v20515_v55, %s15744_s26 }
 0xdb5   : > { %6122 = vrot.lane.b32.xlu1 %v20516_v60, %s15744_s26 }
 0xdb8   : > { %6226 = vrot.lane.b32.xlu0 %v16487_v34, %s15744_s26 }
 0xdb9   : > { %6173 = vrot.lane.b32.xlu1 %v16470_v2, %s15744_s26 }
 0xdbc   : > { %6277 = vrot.lane.b32.xlu0 %v16502_v44, %s15744_s26 }
 0xdbd   : > { %6224 = vrot.lane.b32.xlu1 %v16485_v31, %s15744_s26 }
 0xdc0   : > { %6328 = vrot.lane.b32.xlu0 %v16517_v6, %s15744_s26 }
 0xdc1   : > { %6275 = vrot.lane.b32.xlu1 %v20520_v35, %s15744_s26 }
 0xdc4   : > { %6326 = vrot.lane.b32.xlu0 %v20521_v30, %s15744_s26 }
 0xe13   : > { %v5361_v56 = vpop.xlane.xlu0 %5360 }
 0xe14   : > { %14968 = vrcp.f32 %v5361_v56 }
 0xe15   : > { %v5364_v41 = vpop.xlane.xlu1 %5363 }
 0xe16   : > { %14970 = vrcp.f32 %v5364_v41 }
 0xe1b   : > { %v5373_v45 = vpop.xlane.xlu0 %5372 }
 0xe1c   : > { %14972 = vrcp.f32 %v5373_v45 }
 0xe1d   : > { %v5376_v15 = vpop.xlane.xlu1 %5375 }
 0xe1e   : > { %v14969_v33 = vpop.eup %14968  ;;  %14974 = vrcp.f32 %v5376_v15 }
 0xe1f   : > { %v5407_v50 = vmul.f32 %v14969_v33, %v17831_v7  ;;  %v5769_v16 = vpop.permute.xlu0 %5768 }
 0xe20   : > { %v14971_v37 = vpop.eup %14970  ;;  %13852 = vmatpush3.bf16.msra.mxu1 %v5769_v16 }
 0xe21   : > { %v17951_v43 = vadd.f32 %v5407_v50, %v17601_v54  ;;  %v5408_v17 = vmul.f32 %v14971_v37, %v17835_v63  ;;  %v5722_v4 = vpop.permute.xlu1 %5721  ;;  %13875 = vmatprep.subr.bf16.mxu1 %v20472_v28 }
 0xe23   : > { %v17956_v32 = vadd.f32 %v5408_v17, %v17604_v23  ;;  %13854 = vmatmul.mubr.msk.bf16.vlgmr.msra.gmra.mrb[172].mxu1 %vm1481_vm1, %v5438_v49  ;;  %v5435_v25 = vpack.c.bf16 %v5408_v17, %v5407_v50  ;;  %v5970_v22 = vpop.permute.xlu0 %5969 }
 0xe24   : > { %13877 = vmatprep.mubr.msk.bf16.mxu1 %vm15740_vm0, %v20472_v28 }
 0xe25   : > { %13836 = vmatmul.mubr.msk.bf16.vlgmr.msra.gmra.mrb[136].mxu0 %vm1481_vm1, %v5435_v25  ;;  %v5972_v54 = vpop.permute.xlu1 %5971 }
 0xe26   : > { %v14973_v7 = vpop.eup %14972  ;;  %13846 = vmatpush3.bf16.msra.mxu0 %v5722_v4  ;;  %13847 = vmatprep.mubr.msk.bf16.mxu0 %vm15740_vm0, %v20472_v28  ;;  %v5977_v10 = vsel %vm1481_vm1, %v5972_v54, 0 }
 0xe27   : > { %v5411_v63 = vmul.f32 %v14973_v7, %v17847_v24  ;;  %13857 = vmatprep.subr.bf16.mxu0 %v14603_v58  ;;  %v6021_v24 = vpop.permute.xlu0 %6020 }
 0xe28   : > { %v14975_v23 = vpop.eup %14974 }
 0xe29   : > { %v17967_v21 = vadd.f32 %v5411_v63, %v17627_v61  ;;  %v5412_v59 = vmul.f32 %v14975_v23, %v17851_v20  ;;  %13876 = vmatpush3.bf16.xpose.msra.mxu1 %v5977_v10  ;;  %v6023_v39 = vpop.permute.xlu1 %6022 }
 0xe2a   : > { %13881 = vmatprep.subr.bf16.mxu1 %v20472_v28  ;;  %v6028_v61 = vsel %vm1481_vm1, %v6023_v39, 0 }
 0xe2b   : > { %v17972_v36 = vadd.f32 %v5412_v59, %v20552_v8  ;;  %v5437_v42 = vpack.c.bf16 %v5412_v59, %v5411_v63  ;;  %v6072_v20 = vpop.permute.xlu0 %6071 }
 0xe2d   : > { %20553 = vst [vmem:[#allocation56_spill] sm:$0xff] %v17972_v36  ;;  %13848 = vmatmul.mubr.msk.bf16.vlgmr.msra.gmra.mrb[140].mxu0 %vm1481_vm1, %v5437_v42  ;;  %v6074_v51 = vpop.permute.xlu1 %6073 }
 0xe2e   : > { %13858 = vmatpush3.bf16.msra.mxu0 %v14603_v58  ;;  %v6079_v47 = vsel %vm1481_vm1, %v6074_v51, 0 }
 0xe2f   : > { %13899 = vmatprep.subr.bf16.mxu0 %v20472_v28  ;;  %v6176_v13 = vpop.permute.xlu0 %6175 }
 0xe30   : > { %13878 = vmatmul.mubr.msk.bf16.vlgmr.msra.gmra.mrb[176].mxu1 %vm1481_vm1, %v5970_v22  ;;  %v6181_v42 = vsel %vm1481_vm1, %v6176_v13, 0 }
 0xe31   : > { %13882 = vmatpush3.bf16.xpose.msra.mxu1 %v6028_v61  ;;  %13883 = vmatprep.mubr.msk.bf16.mxu1 %vm15740_vm0, %v20472_v28  ;;  %v6125_v56 = vpop.permute.xlu1 %6124 }
 0xe32   : > { %13887 = vmatprep.subr.bf16.mxu1 %v20472_v28  ;;  %v6130_v41 = vsel %vm1481_vm1, %v6125_v56, 0 }
 0xe33   : > { %v6227_v45 = vpop.permute.xlu0 %6226 }
 0xe34   : > { %v6232_v50 = vsel %vm1481_vm1, %v6227_v45, 0 }
 0xe35   : > { %v6123_v15 = vpop.permute.xlu1 %6122 }
 0xe37   : > { %v17991_v33 = vpop.permute.xlu0 %6277 }
 0xe38   : > { %13884 = vmatmul.mubr.msk.bf16.vlgmr.msra.gmra.mrb[180].mxu1 %vm1481_vm1, %v6021_v24 }
 0xe39   : > { %13888 = vmatpush3.bf16.xpose.msra.mxu1 %v6079_v47  ;;  %13889 = vmatprep.mubr.msk.bf16.mxu1 %vm15740_vm0, %v20472_v28  ;;  %v17995_v16 = vpop.permute.xlu1 %6173 }
 0xe3a   : > { %13893 = vmatprep.subr.bf16.mxu1 %v20472_v28 }
 0xe3b   : > { %v6329_v37 = vpop.permute.xlu0 %6328 }
 0xe3c   : > { %v6334_v4 = vsel %vm1481_vm1, %v6329_v37, 0 }
 0xe3d   : > { %v6225_v17 = vpop.permute.xlu1 %6224 }
 0xe3f   : > { %v6327_v49 = vpop.permute.xlu0 %6326 }
 0xe40   : > { %13890 = vmatmul.mubr.msk.bf16.vlgmr.msra.gmra.mrb[184].mxu1 %vm1481_vm1, %v6072_v20 }
 0xe41   : > { %13894 = vmatpush3.bf16.xpose.msra.mxu1 %v6130_v41  ;;  %13895 = vmatprep.mubr.msk.bf16.mxu1 %vm15740_vm0, %v20472_v28 }
 0xe42   : > { %13905 = vmatprep.subr.bf16.mxu1 %v20472_v28 }
 0xe48   : > { %13896 = vmatmul.mubr.msk.bf16.vlgmr.msra.gmra.mrb[188].mxu1 %vm1481_vm1, %v6123_v15 }
 0xe49   : > { %13906 = vmatpush3.bf16.xpose.msra.mxu1 %v6232_v50  ;;  %13907 = vmatprep.mubr.msk.bf16.mxu1 %vm15740_vm0, %v20472_v28 }
 0xe4a   : > { %13917 = vmatprep.subr.bf16.mxu1 %v20472_v28 }
 0xe50   : > { %13908 = vmatmul.mubr.msk.bf16.vlgmr.msra.gmra.mrb[192].mxu1 %vm1481_vm1, %v6225_v17 }
 0xe51   : > { %13918 = vmatpush3.bf16.xpose.msra.mxu1 %v6334_v4  ;;  %13919 = vmatprep.mubr.msk.bf16.mxu1 %vm15740_vm0, %v20472_v28 }
 0xe52   : > { %13929 = vmatprep.subr.bf16.mxu1 %v20472_v28 }
 0xe58   : > { %13920 = vmatmul.mubr.msk.bf16.vlgmr.msra.gmra.mrb[196].mxu1 %vm1481_vm1, %v6327_v49 }
 0xe59   : > { %13931 = vmatprep.mubr.msk.bf16.mxu1 %vm15740_vm0, %v20472_v28 }
 0xe6a   : > { %v5526_v25 = vpop.f32.mrb[160].mxu1 }
 0xe6b   : > { %v13819_v58 = vpop.f32.mrb[161].mxu1 }
 0xe6c   : > { %v5479_v54 = vpop.f32.mrb[128].mxu0  ;;  %v5529_v7 = vpop.f32.mrb[162].mxu1 }
 0xe6d   : > { %v5816_v63 = vpack.c.bf16 %v5529_v7, %v5526_v25  ;;  %v13813_v23 = vpop.f32.mrb[129].mxu0  ;;  %v13820_v10 = vpop.f32.mrb[163].mxu1 }
 0xe6e   : > { %v5482_v59 = vpop.f32.mrb[130].mxu0 }
 0xe6f   : > { %v5815_v22 = vpack.c.bf16 %v5482_v59, %v5479_v54  ;;  %v13814_v8 = vpop.f32.mrb[131].mxu0 }
 0xe71   : > { %13859 = vmatprep.mubr.msk.bf16.mxu0 %vm1481_vm1, %v5815_v22 }
 0xe72   : > { %v5620_v39 = vpop.f32.mrb[164].mxu1  ;;  %13860 = vmatmul.mubr.msk.bf16.vlgmr.msra.gmra.mrb[88].mxu0 %vm1481_vm1, %v5816_v63 }
 0xe73   : > { %13900 = vmatpush3.bf16.xpose.msra.mxu0 %v6181_v42  ;;  %v13831_v24 = vpop.f32.mrb[165].mxu1 }
 0xe74   : > { %v5573_v61 = vpop.f32.mrb[132].mxu0  ;;  %v5623_v20 = vpop.f32.mrb[166].mxu1  ;;  %13911 = vmatprep.subr.bf16.mxu0 %v20472_v28 }
 0xe75   : > { %v5818_v51 = vpack.c.bf16 %v5623_v20, %v5620_v39  ;;  %v13825_v47 = vpop.f32.mrb[133].mxu0  ;;  %v13832_v56 = vpop.f32.mrb[167].mxu1 }
 0xe76   : > { %v5576_v41 = vpop.f32.mrb[134].mxu0 }
 0xe77   : > { %v5817_v45 = vpack.c.bf16 %v5576_v41, %v5573_v61  ;;  %v13826_v15 = vpop.f32.mrb[135].mxu0 }
 0xe79   : > { %13863 = vmatprep.mubr.msk.bf16.mxu0 %vm1481_vm1, %v5817_v45 }
 0xe7a   : > { %v5714_v50 = vpop.f32.mrb[168].mxu1  ;;  %13864 = vmatmul.mubr.msk.bf16.gmra.mrb[92].mxu0 %vm1481_vm1, %v5818_v51 }
 0xe7b   : > { %v13843_v13 = vpop.f32.mrb[169].mxu1 }
 0xe7c   : > { %v5717_v37 = vpop.f32.mrb[170].mxu1 }
 0xe7d   : > { %v5820_v17 = vpack.c.bf16 %v5717_v37, %v5714_v50  ;;  %v13844_v4 = vpop.f32.mrb[171].mxu1 }
 0xef6   : > { %v5808_v49 = vpop.f32.mrb[172].mxu1 }
 0xef7   : > { %v13855_v25 = vpop.f32.mrb[173].mxu1 }
 0xef8   : > { %v5667_v58 = vpop.f32.mrb[136].mxu0  ;;  %v5811_v54 = vpop.f32.mrb[174].mxu1 }
 0xef9   : > { %v5822_v7 = vpack.c.bf16 %v5811_v54, %v5808_v49  ;;  %v13837_v63 = vpop.f32.mrb[137].mxu0  ;;  %v13856_v23 = vpop.f32.mrb[175].mxu1 }
 0xefa   : > { %v5670_v10 = vpop.f32.mrb[138].mxu0 }
 0xefb   : > { %v5819_v59 = vpack.c.bf16 %v5670_v10, %v5667_v58  ;;  %v13838_v22 = vpop.f32.mrb[139].mxu0 }
 0xefd   : > { %13867 = vmatprep.mubr.msk.bf16.mxu0 %vm1481_vm1, %v5819_v59 }
 0xefe   : > { %13868 = vmatmul.mubr.msk.bf16.gmra.mrb[96].mxu0 %vm1481_vm1, %v5820_v17  ;;  %v6283_v17 = vsel %vm1481_vm1, %v17991_v33, 0  ;;  %v6276_v33 = vpop.permute.xlu1 %6275 }
 0xf00   : > { %v5761_v8 = vpop.f32.mrb[140].mxu0 }
 0xf01   : > { %v13849_v42 = vpop.f32.mrb[141].mxu0 }
 0xf02   : > { %v5764_v39 = vpop.f32.mrb[142].mxu0 }
 0xf03   : > { %v5821_v24 = vpack.c.bf16 %v5764_v39, %v5761_v8  ;;  %v13850_v61 = vpop.f32.mrb[143].mxu0  ;;  %v18016_v20 = vpop.f32.mrb[176].mxu1 }
 0xf04   : > { %v13879_v51 = vpop.f32.mrb[177].mxu1  ;;  %v6377_v47 = vsel %vm1481_vm1, %v18016_v20, -inf }
 0xf05   : > { %13871 = vmatprep.mubr.msk.bf16.mxu0 %vm1481_vm1, %v5821_v24  ;;  %6378 = vmax.xlane.f32.xlu1 %v6377_v47  ;;  %v6016_v56 = vpop.f32.mrb[178].mxu1 }
 0xf06   : > { %13872 = vmatmul.mubr.msk.bf16.gmra.mrb[100].mxu0 %vm1481_vm1, %v5822_v7  ;;  %v13880_v41 = vpop.f32.mrb[179].mxu1  ;;  %v6380_v45 = vsel %vm1481_vm1, %v6016_v56, -inf }
 0xf07   : > { %6381 = vmax.xlane.f32.xlu0 %v6380_v45  ;;  %13901 = vmatprep.mubr.msk.bf16.mxu0 %vm15740_vm0, %v20472_v28 }
 0xf0b   : > { %v18025_v15 = vpop.f32.mrb[180].mxu1 }
 0xf0c   : > { %v13885_v50 = vpop.f32.mrb[181].mxu1  ;;  %v6383_v13 = vsel %vm1481_vm1, %v18025_v15, -inf }
 0xf0d   : > { %6384 = vmax.xlane.f32.xlu0 %v6383_v13  ;;  %v6067_v37 = vpop.f32.mrb[182].mxu1 }
 0xf0e   : > { %v13886_v4 = vpop.f32.mrb[183].mxu1  ;;  %13902 = vmatmul.mubr.msk.bf16.vlgmr.msra.gmra.mrb[144].mxu0 %vm1481_vm1, %v17995_v16  ;;  %v6386_v49 = vsel %vm1481_vm1, %v6067_v37, -inf }
 0xf0f   : > { %13912 = vmatpush3.bf16.xpose.msra.mxu0 %v6283_v17  ;;  %6387 = vmax.xlane.f32.xlu1 %v6386_v49 }
 0xf10   : > { %13913 = vmatprep.mubr.msk.bf16.mxu0 %vm15740_vm0, %v20472_v28  ;;  %13923 = vmatprep.subr.bf16.mxu0 %v20472_v28 }
 0xf13   : > { %v18037_v25 = vpop.f32.mrb[184].mxu1 }
 0xf14   : > { %v13891_v58 = vpop.f32.mrb[185].mxu1  ;;  %v6389_v54 = vsel %vm1481_vm1, %v18037_v25, -inf }
 0xf15   : > { %6390 = vmax.xlane.f32.xlu0 %v6389_v54  ;;  %v6118_v7 = vpop.f32.mrb[186].mxu1 }
 0xf16   : > { %v13892_v63 = vpop.f32.mrb[187].mxu1  ;;  %13914 = vmatmul.mubr.msk.bf16.vlgmr.msra.gmra.mrb[148].mxu0 %vm1481_vm1, %v6276_v33  ;;  %v6392_v16 = vsel %vm1481_vm1, %v6118_v7, -inf }
 0xf17   : > { %6393 = vmax.xlane.f32.xlu1 %v6392_v16  ;;  %13925 = vmatprep.mubr.msk.bf16.mxu0 %vm15740_vm0, %v20472_v28 }
 0xf1b   : > { %v18045_v23 = vpop.f32.mrb[188].mxu1 }
 0xf1c   : > { %v13897_v10 = vpop.f32.mrb[189].mxu1  ;;  %v6395_v59 = vsel %vm1481_vm1, %v18045_v23, -inf }
 0xf1d   : > { %6396 = vmax.xlane.f32.xlu0 %v6395_v59  ;;  %v6169_v22 = vpop.f32.mrb[190].mxu1 }
 0xf1e   : > { %v13898_v8 = vpop.f32.mrb[191].mxu1  ;;  %v6398_v42 = vsel %vm1481_vm1, %v6169_v22, -inf }
 0xf1f   : > { %6399 = vmax.xlane.f32.xlu1 %v6398_v42 }
 0xf23   : > { %v18050_v39 = vpop.f32.mrb[192].mxu1 }
 0xf24   : > { %v13909_v24 = vpop.f32.mrb[193].mxu1  ;;  %v6407_v61 = vsel %vm1481_vm1, %v18050_v39, -inf }
 0xf25   : > { %6408 = vmax.xlane.f32.xlu0 %v6407_v61  ;;  %v18054_v51 = vpop.f32.mrb[194].mxu1 }
 0xf26   : > { %v13910_v47 = vpop.f32.mrb[195].mxu1  ;;  %v6410_v41 = vsel %vm1481_vm1, %v18054_v51, -inf }
 0xf27   : > { %6411 = vmax.xlane.f32.xlu1 %v6410_v41 }
 0xf2b   : > { %v18058_v45 = vpop.f32.mrb[196].mxu1 }
 0xf2c   : > { %v13921_v50 = vpop.f32.mrb[197].mxu1  ;;  %v6419_v13 = vsel %vm1481_vm1, %v18058_v45, -inf }
 0xf2d   : > { %6420 = vmax.xlane.f32.xlu0 %v6419_v13  ;;  %v18062_v17 = vpop.f32.mrb[198].mxu1 }
 0xf2e   : > { %v13922_v4 = vpop.f32.mrb[199].mxu1  ;;  %v6422_v49 = vsel %vm1481_vm1, %v18062_v17, -inf }
 0xf2f   : > { %6423 = vmax.xlane.f32.xlu1 %v6422_v49 }
 0xf92   : > { %v6379_v10 = vpop.xlane.xlu1 %6378 }
 0xf93   : > { %v6425_v8 = vsub.f32 %v18016_v20, %v6379_v10 }
 0xf94   : > { %v6382_v58 = vpop.xlane.xlu0 %6381 }
 0xf95   : > { %v6426_v54 = vsub.f32 %v6016_v56, %v6382_v58  ;;  %v6441_v24 = vmul.f32 1.442695, %v6425_v8 }
 0xf97   : > { %v6443_v33 = vmul.f32 1.442695, %v6426_v54 }
 0xf99   : > { %14976 = vpow2.f32 %v6443_v33 }
 0xf9a   : > { %v6385_v61 = vpop.xlane.xlu0 %6384  ;;  %14978 = vpow2.f32 %v6441_v24 }
 0xf9b   : > { %v6427_v56 = vsub.f32 %v18025_v15, %v6385_v61 }
 0xf9c   : > { %v6388_v59 = vpop.xlane.xlu1 %6387 }
 0xf9d   : > { %v6428_v42 = vsub.f32 %v6067_v37, %v6388_v59  ;;  %v6445_v49 = vmul.f32 1.442695, %v6427_v56 }
 0xf9f   : > { %v6447_v47 = vmul.f32 1.442695, %v6428_v42 }
 0xfa1   : > { %14980 = vpow2.f32 %v6447_v47 }
 0xfa2   : > { %v6391_v50 = vpop.xlane.xlu0 %6390  ;;  %14982 = vpow2.f32 %v6445_v49 }
 0xfa3   : > { %v18066_v63 = vpop.eup %14976  ;;  %v6429_v58 = vsub.f32 %v18037_v25, %v6391_v50 }
 0xfa4   : > { %v6476_v16 = vsel %vm1481_vm1, %v18066_v63, 0.0  ;;  %v6394_v41 = vpop.xlane.xlu1 %6393 }
 0xfa5   : > { %6477 = vadd.xlane.f32.xlu1 %v6476_v16  ;;  %v6430_v13 = vsub.f32 %v6118_v7, %v6394_v41  ;;  %v6449_v20 = vmul.f32 1.442695, %v6429_v58  ;;  %v18078_v7 = vpop.eup %14978 }
 0xfa7   : > { %v6451_v33 = vmul.f32 1.442695, %v6430_v13  ;;  %v6473_v13 = vsel %vm1481_vm1, %v18078_v7, 0.0 }
 0xfa9   : > { %14984 = vpow2.f32 %v6451_v33 }
 0xfaa   : > { %v6397_v54 = vpop.xlane.xlu0 %6396  ;;  %14986 = vpow2.f32 %v6449_v20 }
 0xfab   : > { %v6431_v37 = vsub.f32 %v18045_v23, %v6397_v54  ;;  %v18085_v47 = vpop.eup %14980 }
 0xfac   : > { %v6400_v4 = vpop.xlane.xlu1 %6399 }
 0xfad   : > { %v6432_v16 = vsub.f32 %v6169_v22, %v6400_v4  ;;  %v6453_v41 = vmul.f32 1.442695, %v6431_v37  ;;  %v6482_v4 = vsel %vm1481_vm1, %v18085_v47, 0.0 }
 0xfaf   : > { %v6455_v42 = vmul.f32 1.442695, %v6432_v16  ;;  %v18098_v16 = vpop.eup %14982 }
 0xfb1   : > { %14988 = vpow2.f32 %v6455_v42 }
 0xfb2   : > { %v6409_v59 = vpop.xlane.xlu0 %6408  ;;  %14990 = vpow2.f32 %v6453_v41 }
 0xfb3   : > { %v6435_v56 = vsub.f32 %v18050_v39, %v6409_v59 }
 0xfb4   : > { %v6412_v36 = vpop.xlane.xlu1 %6411 }
 0xfb5   : > { %v6436_v25 = vsub.f32 %v18054_v51, %v6412_v36  ;;  %v6461_v49 = vmul.f32 1.442695, %v6435_v56 }
 0xfb7   : > { %v6463_v36 = vmul.f32 1.442695, %v6436_v25 }
 0xfb9   : > { %14992 = vpow2.f32 %v6463_v36 }
 0xfba   : > { %v6421_v50 = vpop.xlane.xlu0 %6420  ;;  %14994 = vpow2.f32 %v6461_v49 }
 0xfbb   : > { %v6439_v58 = vsub.f32 %v18058_v45, %v6421_v50 }
 0xfbc   : > { %v6424_v22 = vpop.xlane.xlu1 %6423 }
 0xfbd   : > { %v6440_v51 = vsub.f32 %v18062_v17, %v6424_v22  ;;  %v6469_v45 = vmul.f32 1.442695, %v6439_v58 }
 0xfbf   : > { %v6471_v20 = vmul.f32 1.442695, %v6440_v51 }
 0xfc1   : > { %14996 = vpow2.f32 %v6471_v20  ;;  %v20555_v20 = vld [vmem:[#allocation34_spill] sm:$0xff] }
 0xfc2   : > { %14998 = vpow2.f32 %v6469_v45  ;;  %v20558_v45 = vld [vmem:[#allocation41_spill] sm:$0xff] }
 0xfe1   : > { %v18074_v10 = vpop.f32.mrb[144].mxu0 }
 0xfe2   : > { %v13903_v8 = vpop.f32.mrb[145].mxu0  ;;  %v6401_v15 = vsel %vm1481_vm1, %v18074_v10, -inf }
 0xfe3   : > { %v18081_v24 = vpop.f32.mrb[146].mxu0  ;;  %6402 = vmax.xlane.f32.xlu0 %v6401_v15  ;;  %v18101_v8 = vpop.eup %14984  ;;  %v6479_v15 = vsel %vm1481_vm1, %v18098_v16, 0.0 }
 0xfe4   : > { %v13904_v61 = vpop.f32.mrb[147].mxu0  ;;  %v6404_v23 = vsel %vm1481_vm1, %v18081_v24, -inf  ;;  %v18105_v42 = vpop.eup %14986  ;;  %v6488_v25 = vsel %vm1481_vm1, %v18101_v8, 0.0 }
 0xfe5   : > { %6405 = vmax.xlane.f32.xlu1 %v6404_v23  ;;  %v18109_v22 = vpop.eup %14988  ;;  %v6485_v61 = vsel %vm1481_vm1, %v18105_v42, 0.0 }
 0xfe6   : > { %v18113_v23 = vpop.eup %14990  ;;  %v6494_v41 = vsel %vm1481_vm1, %v18109_v22, 0.0 }
 0xfe7   : > { %6474 = vadd.xlane.f32.xlu0 %v6473_v13  ;;  %v18117_v56 = vpop.eup %14992  ;;  %v6491_v50 = vsel %vm1481_vm1, %v18113_v23, 0.0 }
 0xfe8   : > { %v18121_v13 = vpop.eup %14994  ;;  %v6506_v36 = vsel %vm1481_vm1, %v18117_v56, 0.0 }
 0xfe9   : > { %v18094_v54 = vpop.f32.mrb[148].mxu0  ;;  %6483 = vadd.xlane.f32.xlu1 %v6482_v4  ;;  %v18125_v51 = vpop.eup %14996  ;;  %v6503_v4 = vsel %vm1481_vm1, %v18121_v13, 0.0 }
 0xfea   : > { %v13915_v39 = vpop.f32.mrb[149].mxu0  ;;  %v6413_v33 = vsel %vm1481_vm1, %v18094_v54, -inf  ;;  %v18129_v49 = vpop.eup %14998  ;;  %v6518_v58 = vsel %vm1481_vm1, %v18125_v51, 0.0 }
 0xfeb   : > { %v6322_v17 = vpop.f32.mrb[150].mxu0  ;;  %6414 = vmax.xlane.f32.xlu0 %v6413_v33  ;;  %v6515_v39 = vsel %vm1481_vm1, %v18129_v49, 0.0  ;;  %v20554_v33 = vld [vmem:[#allocation38_spill] sm:$0xff] }
 0xfec   : > { %v13916_v37 = vpop.f32.mrb[151].mxu0  ;;  %v6416_v59 = vsel %vm1481_vm1, %v6322_v17, -inf }
 0xfed   : > { %6417 = vmax.xlane.f32.xlu1 %v6416_v59  ;;  %v20556_v37 = vld [vmem:[#allocation42_spill] sm:$0xff]  ;;  %v20557_v59 = vld [vmem:[#allocation37_spill] sm:$0xff] }
 0xfef   : > { %6480 = vadd.xlane.f32.xlu0 %v6479_v15 }
 0xff1   : > { %6489 = vadd.xlane.f32.xlu1 %v6488_v25 }
 0xff3   : > { %6486 = vadd.xlane.f32.xlu0 %v6485_v61 }
 0xff5   : > { %6495 = vadd.xlane.f32.xlu1 %v6494_v41 }
 0xff7   : > { %6492 = vadd.xlane.f32.xlu0 %v6491_v50 }
 0xff9   : > { %6507 = vadd.xlane.f32.xlu1 %v6506_v36 }
 0xffb   : > { %6504 = vadd.xlane.f32.xlu0 %v6503_v4 }
 0xffd   : > { %6519 = vadd.xlane.f32.xlu1 %v6518_v58 }
 0xfff   : > { %6516 = vadd.xlane.f32.xlu0 %v6515_v39 }
0x100e   : > { %6624 = vrot.lane.b32.xlu1 %v20545_v14, %s15744_s26 }
0x1012   : > { %6671 = vrot.lane.b32.xlu1 %v20554_v33, %s15744_s26 }
0x1015   : > { %6577 = vrot.lane.b32.xlu0 %v20555_v20, %s15744_s26 }
0x1016   : > { %6765 = vrot.lane.b32.xlu1 %v20556_v37, %s15744_s26 }
0x1019   : > { %6718 = vrot.lane.b32.xlu0 %v20557_v59, %s15744_s26 }
0x101d   : > { %6812 = vrot.lane.b32.xlu0 %v20558_v45, %s15744_s26 }
0x1032   : > { %v6478_v15 = vpop.xlane.xlu1 %6477 }
0x1070   : > { %v6403_v25 = vpop.xlane.xlu0 %6402 }
0x1071   : > { %v6433_v61 = vsub.f32 %v18074_v10, %v6403_v25 }
0x1072   : > { %v6406_v41 = vpop.xlane.xlu1 %6405 }
0x1073   : > { %v6457_v50 = vmul.f32 1.442695, %v6433_v61  ;;  %v6434_v36 = vsub.f32 %v18081_v24, %v6406_v41 }
0x1074   : > { %v6475_v4 = vpop.xlane.xlu0 %6474 }
0x1075   : > { %15000 = vpow2.f32 %v6457_v50  ;;  %v6459_v58 = vmul.f32 1.442695, %v6434_v36 }
0x1076   : > { %15002 = vrcp.f32 %v6475_v4  ;;  %v6484_v39 = vpop.xlane.xlu1 %6483 }
0x1077   : > { %15004 = vpow2.f32 %v6459_v58 }
0x1078   : > { %15006 = vrcp.f32 %v6484_v39  ;;  %v6415_v37 = vpop.xlane.xlu0 %6414 }
0x1079   : > { %v6437_v59 = vsub.f32 %v18094_v54, %v6415_v37 }
0x107a   : > { %v6418_v20 = vpop.xlane.xlu1 %6417 }
0x107b   : > { %v6465_v45 = vmul.f32 1.442695, %v6437_v59  ;;  %v6438_v33 = vsub.f32 %v6322_v17, %v6418_v20 }
0x107c   : > { %v6481_v14 = vpop.xlane.xlu0 %6480 }
0x107d   : > { %15008 = vpow2.f32 %v6465_v45  ;;  %v6467_v10 = vmul.f32 1.442695, %v6438_v33 }
0x107e   : > { %15010 = vrcp.f32 %v6481_v14  ;;  %v6490_v25 = vpop.xlane.xlu1 %6489 }
0x107f   : > { %v18150_v61 = vpop.eup %15000  ;;  %15012 = vpow2.f32 %v6467_v10 }
0x1080   : > { %v15003_v24 = vpop.eup %15002  ;;  %15014 = vrcp.f32 %v6490_v25  ;;  %v6487_v41 = vpop.xlane.xlu0 %6486  ;;  %v6497_v50 = vsel %vm1481_vm1, %v18150_v61, 0.0 }
0x1081   : > { %v18154_v36 = vpop.eup %15004  ;;  %v18157_v54 = vmul.f32 %v15003_v24, %v18078_v7  ;;  %15016 = vrcp.f32 %v6487_v41  ;;  %6498 = vadd.xlane.f32.xlu0 %v6497_v50 }
0x1082   : > { %v15007_v17 = vpop.eup %15006  ;;  %15018 = vrcp.f32 %v6478_v15  ;;  %v6496_v14 = vpop.xlane.xlu1 %6495  ;;  %v6500_v33 = vsel %vm1481_vm1, %v18154_v36, 0.0 }
0x1083   : > { %v18163_v20 = vadd.f32 %v18157_v54, %v17841_v62  ;;  %v6540_v37 = vmul.f32 %v15007_v17, %v18085_v47  ;;  %15020 = vrcp.f32 %v6496_v14  ;;  %6501 = vadd.xlane.f32.xlu1 %v6500_v33 }
0x1084   : > { %v6493_v59 = vpop.xlane.xlu0 %6492 }
0x1085   : > { %v18167_v7 = vadd.f32 %v6540_v37, %v17845_v11  ;;  %15022 = vrcp.f32 %v6493_v59 }
0x1086   : > { %v6508_v45 = vpop.xlane.xlu1 %6507 }
0x1087   : > { %v18169_v4 = vpop.eup %15008  ;;  %15024 = vrcp.f32 %v6508_v45 }
0x1088   : > { %v15011_v15 = vpop.eup %15010  ;;  %v6505_v58 = vpop.xlane.xlu0 %6504  ;;  %v6509_v39 = vsel %vm1481_vm1, %v18169_v4, 0.0 }
0x1089   : > { %v18173_v62 = vpop.eup %15012  ;;  %v6539_v47 = vmul.f32 %v15011_v15, %v18098_v16  ;;  %15026 = vrcp.f32 %v6505_v58  ;;  %6510 = vadd.xlane.f32.xlu0 %v6509_v39 }
0x108a   : > { %v15015_v10 = vpop.eup %15014  ;;  %v6520_v25 = vpop.xlane.xlu1 %6519  ;;  %v6512_v11 = vsel %vm1481_vm1, %v18173_v62, 0.0 }
0x108b   : > { %v15017_v24 = vpop.eup %15016  ;;  %v18179_v41 = vadd.f32 %v6539_v47, %v17857_v40  ;;  %v6542_v50 = vmul.f32 %v15015_v10, %v18101_v8  ;;  %15028 = vrcp.f32 %v6520_v25  ;;  %6513 = vadd.xlane.f32.xlu1 %v6512_v11 }
0x108c   : > { %v15019_v17 = vpop.eup %15018  ;;  %v6541_v14 = vmul.f32 %v15017_v24, %v18105_v42  ;;  %v6517_v33 = vpop.xlane.xlu0 %6516 }
0x108d   : > { %v15021_v16 = vpop.eup %15020  ;;  %v18184_v59 = vadd.f32 %v6542_v50, %v17862_v0  ;;  %15030 = vrcp.f32 %v6517_v33  ;;  %v18191_v8 = vmul.f32 %v15019_v17, %v18066_v63  ;;  %v6570_v0 = vpack.c.bf16 %v6540_v37, %v6539_v47 }
0x108e   : > { %v18187_v45 = vadd.f32 %v6541_v14, %v17865_v46  ;;  %v6544_v15 = vmul.f32 %v15021_v16, %v18109_v22  ;;  %v6625_v40 = vpop.permute.xlu1 %6624 }
0x108f   : > { %v15023_v58 = vpop.eup %15022  ;;  %13930 = vmatpush3.bf16.msra.mxu1 %v6625_v40  ;;  %20559 = vst [vmem:[#allocation71_spill] sm:$0xff] %v18191_v8 }
0x1090   : > { %v18194_v39 = vadd.f32 %v6544_v15, %v17869_v52  ;;  %v6543_v42 = vmul.f32 %v15023_v58, %v18113_v23  ;;  %v6578_v10 = vpop.permute.xlu0 %6577  ;;  %13941 = vmatprep.subr.bf16.mxu1 %v20472_v28  ;;  %v6569_v52 = vpack.c.bf16 %v18191_v8, %v18157_v54 }
0x1091   : > { %v15025_v25 = vpop.eup %15024  ;;  %13924 = vmatpush3.bf16.msra.mxu0 %v6578_v10 }
0x1092   : > { %v18199_v46 = vadd.f32 %v6543_v42, %v17874_v38  ;;  %v6548_v22 = vmul.f32 %v15025_v25, %v18117_v56  ;;  %13932 = vmatmul.mubr.msk.bf16.vlgmr.msra.gmra.mrb[200].mxu1 %vm1481_vm1, %v6570_v0  ;;  %13935 = vmatprep.subr.bf16.mxu0 %v20472_v28  ;;  %v6672_v38 = vpop.permute.xlu1 %6671  ;;  %v6572_v33 = vpack.c.bf16 %v6544_v15, %v6543_v42 }
0x1093   : > { %v15027_v63 = vpop.eup %15026  ;;  %13943 = vmatprep.mubr.msk.bf16.mxu1 %vm15740_vm0, %v20472_v28 }
0x1094   : > { %v18209_v23 = vadd.f32 %v6548_v22, %v17883_v19  ;;  %v6547_v37 = vmul.f32 %v15027_v63, %v18121_v13  ;;  %v6719_v47 = vpop.permute.xlu0 %6718  ;;  %13926 = vmatmul.mubr.msk.bf16.vlgmr.msra.gmra.mrb[152].mxu0 %vm1481_vm1, %v6569_v52 }
0x1095   : > { %v15029_v56 = vpop.eup %15028  ;;  %13936 = vmatpush3.bf16.msra.mxu0 %v6672_v38  ;;  %13942 = vmatpush3.bf16.msra.mxu1 %v6719_v47 }
0x1096   : > { %v18214_v11 = vadd.f32 %v6547_v37, %v17888_v3  ;;  %v6552_v54 = vmul.f32 %v15029_v56, %v18125_v51  ;;  %13953 = vmatprep.subr.bf16.mxu1 %v20472_v28  ;;  %13937 = vmatprep.mubr.msk.bf16.mxu0 %vm15740_vm0, %v20472_v28  ;;  %v6571_v51 = vpack.c.bf16 %v6542_v50, %v6541_v14  ;;  %v6766_v16 = vpop.permute.xlu1 %6765 }
0x1097   : > { %v15031_v19 = vpop.eup %15030  ;;  %13947 = vmatprep.subr.bf16.mxu0 %v20472_v28 }
0x1098   : > { %v18222_v13 = vadd.f32 %v6552_v54, %v17896_v12  ;;  %v6551_v24 = vmul.f32 %v15031_v19, %v18129_v49  ;;  %v6813_v17 = vpop.permute.xlu0 %6812  ;;  %v6574_v12 = vpack.c.bf16 %v6548_v22, %v6547_v37  ;;  %v14604_v37 = vld [vmem:[#allocation10 + $0x20] sm:$0xff]   ;;  %v20560_v19 = vld [vmem:[#allocation56_spill] sm:$0xff] }
0x109a   : > { %v18226_v3 = vadd.f32 %v6551_v24, %v17900_v27  ;;  %13944 = vmatmul.mubr.msk.bf16.vlgmr.msra.gmra.mrb[204].mxu1 %vm1481_vm1, %v6572_v33  ;;  %v6576_v22 = vpack.c.bf16 %v6552_v54, %v6551_v24 }
0x109b   : > { %13954 = vmatpush3.bf16.msra.mxu1 %v6813_v17  ;;  %13955 = vmatprep.mubr.msk.bf16.mxu1 %vm15740_vm0, %v20472_v28 }
0x109c   : > { %6859 = vrot.lane.b32.xlu1 %v16463_v5, %s15744_s26  ;;  %13938 = vmatmul.mubr.msk.bf16.vlgmr.msra.gmra.mrb[156].mxu0 %vm1481_vm1, %v6571_v51 }
0x109d   : > { %13948 = vmatpush3.bf16.msra.mxu0 %v6766_v16  ;;  %13965 = vmatprep.subr.bf16.mxu1 %v20472_v28 }
0x109e   : > { %13949 = vmatprep.mubr.msk.bf16.mxu0 %vm15740_vm0, %v20472_v28  ;;  %13959 = vmatprep.subr.bf16.mxu0 %v20472_v28 }
0x109f   : > { %6906 = vrot.lane.b32.xlu0 %v16459_v1, %s15744_s26  ;;  %s20627_s26 = sld [smem:[#allocation27_spill]] }
0x10a0   : > { %7109 = vrot.lane.b32.xlu1 %v20496_v29, %s15745_s3 }
0x10a2   : > { %13956 = vmatmul.mubr.msk.bf16.vlgmr.msra.gmra.mrb[208].mxu1 %vm1481_vm1, %v6574_v12 }
0x10a3   : > { %7107 = vrot.lane.b32.xlu0 %v20503_v26, %s15745_s3  ;;  %13967 = vmatprep.mubr.msk.bf16.mxu1 %vm15740_vm0, %v20472_v28 }
0x10a4   : > { %7160 = vrot.lane.b32.xlu1 %v20504_v18, %s15745_s3 }
0x10a5   : > { %p20630_p0 = scmp.ne.s32.totalorder %s20627_s26, 0 }
0x10a7   : > { %7158 = vrot.lane.b32.xlu0 %v20505_v53, %s15745_s3  ;;  %p15612_p1 = pnand %p15611_p4, %p20630_p0 }
0x10a8   : > { %7211 = vrot.lane.b32.xlu1 %v20506_v9, %s15745_s3 }
0x10a9   : > { %p15613_p6 = pneg %p15612_p1 }
0x10ab   : > { %7209 = vrot.lane.b32.xlu0 %v20513_v48, %s15745_s3 }
0x10ac   : > { %7262 = vrot.lane.b32.xlu1 %v20514_v57, %s15745_s3 }
0x10af   : > { %7313 = vrot.lane.b32.xlu0 %v20515_v55, %s15745_s3 }
0x10b0   : > { %7260 = vrot.lane.b32.xlu1 %v20516_v60, %s15745_s3 }
0x10b3   : > { %7364 = vrot.lane.b32.xlu0 %v16487_v34, %s15745_s3 }
0x10b4   : > { %7311 = vrot.lane.b32.xlu1 %v16470_v2, %s15745_s3 }
0x10b7   : > { %7415 = vrot.lane.b32.xlu0 %v16502_v44, %s15745_s3 }
0x10b8   : > { %7362 = vrot.lane.b32.xlu1 %v16485_v31, %s15745_s3 }
0x10bb   : > { %7466 = vrot.lane.b32.xlu0 %v16517_v6, %s15745_s3 }
0x10bc   : > { %7413 = vrot.lane.b32.xlu1 %v20520_v35, %s15745_s3 }
0x10bf   : > { %7464 = vrot.lane.b32.xlu0 %v20521_v30, %s15745_s3 }
0x110e   : > { %v6499_v27 = vpop.xlane.xlu0 %6498 }
0x110f   : > { %15032 = vrcp.f32 %v6499_v27 }
0x1110   : > { %v6502_v49 = vpop.xlane.xlu1 %6501 }
0x1111   : > { %15034 = vrcp.f32 %v6502_v49 }
0x1116   : > { %v6511_v50 = vpop.xlane.xlu0 %6510 }
0x1117   : > { %15036 = vrcp.f32 %v6511_v50 }
0x1118   : > { %v6514_v14 = vpop.xlane.xlu1 %6513 }
0x1119   : > { %v15033_v15 = vpop.eup %15032  ;;  %15038 = vrcp.f32 %v6514_v14 }
0x111a   : > { %v6545_v40 = vmul.f32 %v15033_v15, %v18150_v61  ;;  %v6907_v58 = vpop.permute.xlu0 %6906 }
0x111b   : > { %v15035_v42 = vpop.eup %15034  ;;  %13966 = vmatpush3.bf16.msra.mxu1 %v6907_v58 }
0x111c   : > { %v18277_v10 = vadd.f32 %v6545_v40, %v17951_v43  ;;  %v6546_v0 = vmul.f32 %v15035_v42, %v18154_v36  ;;  %v6860_v25 = vpop.permute.xlu1 %6859  ;;  %13989 = vmatprep.subr.bf16.mxu1 %v20472_v28 }
0x111e   : > { %v18282_v52 = vadd.f32 %v6546_v0, %v17956_v32  ;;  %13968 = vmatmul.mubr.msk.bf16.vlgmr.msra.gmra.mrb[212].mxu1 %vm1481_vm1, %v6576_v22  ;;  %v6573_v63 = vpack.c.bf16 %v6546_v0, %v6545_v40  ;;  %v7108_v54 = vpop.permute.xlu0 %7107 }
0x111f   : > { %13991 = vmatprep.mubr.msk.bf16.mxu1 %vm15740_vm0, %v20472_v28 }
0x1120   : > { %13950 = vmatmul.mubr.msk.bf16.vlgmr.msra.gmra.mrb[160].mxu0 %vm1481_vm1, %v6573_v63  ;;  %v7110_v43 = vpop.permute.xlu1 %7109 }
0x1121   : > { %v15037_v61 = vpop.eup %15036  ;;  %13960 = vmatpush3.bf16.msra.mxu0 %v6860_v25  ;;  %13961 = vmatprep.mubr.msk.bf16.mxu0 %vm15740_vm0, %v20472_v28  ;;  %v7115_v38 = vsel %vm1481_vm1, %v7110_v43, 0 }
0x1122   : > { %v6549_v36 = vmul.f32 %v15037_v61, %v18169_v4  ;;  %13971 = vmatprep.subr.bf16.mxu0 %v14604_v37  ;;  %v7159_v4 = vpop.permute.xlu0 %7158 }
0x1123   : > { %v15039_v32 = vpop.eup %15038 }
0x1124   : > { %v18293_v47 = vadd.f32 %v6549_v36, %v17967_v21  ;;  %v6550_v56 = vmul.f32 %v15039_v32, %v18173_v62  ;;  %13990 = vmatpush3.bf16.xpose.msra.mxu1 %v7115_v38  ;;  %v7161_v33 = vpop.permute.xlu1 %7160 }
0x1125   : > { %13995 = vmatprep.subr.bf16.mxu1 %v20472_v28  ;;  %v7166_v21 = vsel %vm1481_vm1, %v7161_v33, 0 }
0x1126   : > { %v18298_v24 = vadd.f32 %v6550_v56, %v20560_v19  ;;  %v6575_v17 = vpack.c.bf16 %v6550_v56, %v6549_v36  ;;  %v7210_v62 = vpop.permute.xlu0 %7209 }
0x1128   : > { %20561 = vst [vmem:[#allocation70_spill] sm:$0xff] %v18298_v24  ;;  %13962 = vmatmul.mubr.msk.bf16.vlgmr.msra.gmra.mrb[164].mxu0 %vm1481_vm1, %v6575_v17  ;;  %v7212_v51 = vpop.permute.xlu1 %7211 }
0x1129   : > { %13972 = vmatpush3.bf16.msra.mxu0 %v14604_v37  ;;  %v7217_v16 = vsel %vm1481_vm1, %v7212_v51, 0 }
0x112a   : > { %14013 = vmatprep.subr.bf16.mxu0 %v20472_v28  ;;  %v7314_v12 = vpop.permute.xlu0 %7313 }
0x112b   : > { %13992 = vmatmul.mubr.msk.bf16.vlgmr.msra.gmra.mrb[216].mxu1 %vm1481_vm1, %v7108_v54  ;;  %v7319_v17 = vsel %vm1481_vm1, %v7314_v12, 0 }
0x112c   : > { %13996 = vmatpush3.bf16.xpose.msra.mxu1 %v7166_v21  ;;  %13997 = vmatprep.mubr.msk.bf16.mxu1 %vm15740_vm0, %v20472_v28  ;;  %v7263_v27 = vpop.permute.xlu1 %7262 }
0x112d   : > { %14001 = vmatprep.subr.bf16.mxu1 %v20472_v28  ;;  %v7268_v49 = vsel %vm1481_vm1, %v7263_v27, 0 }
0x112e   : > { %v7365_v50 = vpop.permute.xlu0 %7364 }
0x112f   : > { %v7370_v40 = vsel %vm1481_vm1, %v7365_v50, 0 }
0x1130   : > { %v7261_v14 = vpop.permute.xlu1 %7260 }
0x1132   : > { %v18317_v15 = vpop.permute.xlu0 %7415 }
0x1133   : > { %13998 = vmatmul.mubr.msk.bf16.vlgmr.msra.gmra.mrb[220].mxu1 %vm1481_vm1, %v7159_v4 }
0x1134   : > { %14002 = vmatpush3.bf16.xpose.msra.mxu1 %v7217_v16  ;;  %14003 = vmatprep.mubr.msk.bf16.mxu1 %vm15740_vm0, %v20472_v28  ;;  %v18321_v58 = vpop.permute.xlu1 %7311 }
0x1135   : > { %14007 = vmatprep.subr.bf16.mxu1 %v20472_v28 }
0x1136   : > { %v7467_v42 = vpop.permute.xlu0 %7466 }
0x1137   : > { %v7472_v25 = vsel %vm1481_vm1, %v7467_v42, 0 }
0x1138   : > { %v7363_v0 = vpop.permute.xlu1 %7362 }
0x113a   : > { %v7465_v22 = vpop.permute.xlu0 %7464 }
0x113b   : > { %14004 = vmatmul.mubr.msk.bf16.vlgmr.msra.gmra.mrb[224].mxu1 %vm1481_vm1, %v7210_v62 }
0x113c   : > { %14008 = vmatpush3.bf16.xpose.msra.mxu1 %v7268_v49  ;;  %14009 = vmatprep.mubr.msk.bf16.mxu1 %vm15740_vm0, %v20472_v28 }
0x113d   : > { %14019 = vmatprep.subr.bf16.mxu1 %v20472_v28 }
0x1143   : > { %14010 = vmatmul.mubr.msk.bf16.vlgmr.msra.gmra.mrb[228].mxu1 %vm1481_vm1, %v7261_v14 }
0x1144   : > { %14020 = vmatpush3.bf16.xpose.msra.mxu1 %v7370_v40  ;;  %14021 = vmatprep.mubr.msk.bf16.mxu1 %vm15740_vm0, %v20472_v28 }
0x1145   : > { %14031 = vmatprep.subr.bf16.mxu1 %v20472_v28 }
0x114b   : > { %14022 = vmatmul.mubr.msk.bf16.vlgmr.msra.gmra.mrb[232].mxu1 %vm1481_vm1, %v7363_v0 }
0x114c   : > { %14032 = vmatpush3.bf16.xpose.msra.mxu1 %v7472_v25  ;;  %14033 = vmatprep.mubr.msk.bf16.mxu1 %vm15740_vm0, %v20472_v28 }
0x114d   : > { %14043 = vmatprep.subr.bf16.mxu1 %v20472_v28 }
0x1153   : > { %14034 = vmatmul.mubr.msk.bf16.vlgmr.msra.gmra.mrb[236].mxu1 %vm1481_vm1, %v7465_v22 }
0x1154   : > { %14045 = vmatprep.mubr.msk.bf16.mxu1 %vm15740_vm0, %v20472_v28 }
0x1165   : > { %v6664_v63 = vpop.f32.mrb[200].mxu1 }
0x1166   : > { %v13933_v37 = vpop.f32.mrb[201].mxu1 }
0x1167   : > { %v6617_v43 = vpop.f32.mrb[152].mxu0  ;;  %v6667_v61 = vpop.f32.mrb[202].mxu1 }
0x1168   : > { %v6954_v36 = vpack.c.bf16 %v6667_v61, %v6664_v63  ;;  %v13927_v32 = vpop.f32.mrb[153].mxu0  ;;  %v13934_v38 = vpop.f32.mrb[203].mxu1 }
0x1169   : > { %v6620_v56 = vpop.f32.mrb[154].mxu0 }
0x116a   : > { %v6953_v54 = vpack.c.bf16 %v6620_v56, %v6617_v43  ;;  %v13928_v19 = vpop.f32.mrb[155].mxu0 }
0x116c   : > { %13973 = vmatprep.mubr.msk.bf16.mxu0 %vm1481_vm1, %v6953_v54 }
0x116d   : > { %v6758_v33 = vpop.f32.mrb[204].mxu1  ;;  %13974 = vmatmul.mubr.msk.bf16.vlgmr.msra.gmra.mrb[88].mxu0 %vm1481_vm1, %v6954_v36 }
0x116e   : > { %14014 = vmatpush3.bf16.xpose.msra.mxu0 %v7319_v17  ;;  %v13945_v4 = vpop.f32.mrb[205].mxu1 }
0x116f   : > { %v6711_v21 = vpop.f32.mrb[156].mxu0  ;;  %v6761_v62 = vpop.f32.mrb[206].mxu1  ;;  %14025 = vmatprep.subr.bf16.mxu0 %v20472_v28 }
0x1170   : > { %v6956_v51 = vpack.c.bf16 %v6761_v62, %v6758_v33  ;;  %v13939_v16 = vpop.f32.mrb[157].mxu0  ;;  %v13946_v27 = vpop.f32.mrb[207].mxu1 }
0x1171   : > { %v6714_v49 = vpop.f32.mrb[158].mxu0 }
0x1172   : > { %v6955_v50 = vpack.c.bf16 %v6714_v49, %v6711_v21  ;;  %v13940_v14 = vpop.f32.mrb[159].mxu0 }
0x1174   : > { %13977 = vmatprep.mubr.msk.bf16.mxu0 %vm1481_vm1, %v6955_v50 }
0x1175   : > { %v6852_v40 = vpop.f32.mrb[208].mxu1  ;;  %13978 = vmatmul.mubr.msk.bf16.gmra.mrb[92].mxu0 %vm1481_vm1, %v6956_v51 }
0x1176   : > { %v13957_v12 = vpop.f32.mrb[209].mxu1 }
0x1177   : > { %v6855_v42 = vpop.f32.mrb[210].mxu1 }
0x1178   : > { %v6958_v0 = vpack.c.bf16 %v6855_v42, %v6852_v40  ;;  %v13958_v25 = vpop.f32.mrb[211].mxu1 }
0x11f1   : > { %v6946_v22 = vpop.f32.mrb[212].mxu1 }
0x11f2   : > { %v13969_v63 = vpop.f32.mrb[213].mxu1 }
0x11f3   : > { %v6805_v37 = vpop.f32.mrb[160].mxu0  ;;  %v6949_v43 = vpop.f32.mrb[214].mxu1 }
0x11f4   : > { %v6960_v61 = vpack.c.bf16 %v6949_v43, %v6946_v22  ;;  %v13951_v36 = vpop.f32.mrb[161].mxu0  ;;  %v13970_v32 = vpop.f32.mrb[215].mxu1 }
0x11f5   : > { %v6808_v38 = vpop.f32.mrb[162].mxu0 }
0x11f6   : > { %v6957_v56 = vpack.c.bf16 %v6808_v38, %v6805_v37  ;;  %v13952_v54 = vpop.f32.mrb[163].mxu0 }
0x11f8   : > { %13981 = vmatprep.mubr.msk.bf16.mxu0 %vm1481_vm1, %v6957_v56 }
0x11f9   : > { %13982 = vmatmul.mubr.msk.bf16.gmra.mrb[96].mxu0 %vm1481_vm1, %v6958_v0  ;;  %v7421_v0 = vsel %vm1481_vm1, %v18317_v15, 0  ;;  %v7414_v15 = vpop.permute.xlu1 %7413 }
0x11fb   : > { %v6899_v19 = vpop.f32.mrb[164].mxu0 }
0x11fc   : > { %v13963_v17 = vpop.f32.mrb[165].mxu0 }
0x11fd   : > { %v6902_v33 = vpop.f32.mrb[166].mxu0 }
0x11fe   : > { %v6959_v4 = vpack.c.bf16 %v6902_v33, %v6899_v19  ;;  %v13964_v21 = vpop.f32.mrb[167].mxu0  ;;  %v18342_v62 = vpop.f32.mrb[216].mxu1 }
0x11ff   : > { %v13993_v51 = vpop.f32.mrb[217].mxu1  ;;  %v7515_v16 = vsel %vm1481_vm1, %v18342_v62, -inf }
0x1200   : > { %13985 = vmatprep.mubr.msk.bf16.mxu0 %vm1481_vm1, %v6959_v4  ;;  %7516 = vmax.xlane.f32.xlu1 %v7515_v16  ;;  %v7154_v27 = vpop.f32.mrb[218].mxu1 }
0x1201   : > { %13986 = vmatmul.mubr.msk.bf16.gmra.mrb[100].mxu0 %vm1481_vm1, %v6960_v61  ;;  %v13994_v49 = vpop.f32.mrb[219].mxu1  ;;  %v7518_v50 = vsel %vm1481_vm1, %v7154_v27, -inf }
0x1202   : > { %7519 = vmax.xlane.f32.xlu0 %v7518_v50  ;;  %14015 = vmatprep.mubr.msk.bf16.mxu0 %vm15740_vm0, %v20472_v28 }
0x1206   : > { %v18351_v14 = vpop.f32.mrb[220].mxu1 }
0x1207   : > { %v13999_v40 = vpop.f32.mrb[221].mxu1  ;;  %v7521_v12 = vsel %vm1481_vm1, %v18351_v14, -inf }
0x1208   : > { %7522 = vmax.xlane.f32.xlu0 %v7521_v12  ;;  %v7205_v42 = vpop.f32.mrb[222].mxu1 }
0x1209   : > { %v14000_v25 = vpop.f32.mrb[223].mxu1  ;;  %14016 = vmatmul.mubr.msk.bf16.vlgmr.msra.gmra.mrb[168].mxu0 %vm1481_vm1, %v18321_v58  ;;  %v7524_v22 = vsel %vm1481_vm1, %v7205_v42, -inf }
0x120a   : > { %14026 = vmatpush3.bf16.xpose.msra.mxu0 %v7421_v0  ;;  %7525 = vmax.xlane.f32.xlu1 %v7524_v22 }
0x120b   : > { %14027 = vmatprep.mubr.msk.bf16.mxu0 %vm15740_vm0, %v20472_v28  ;;  %14037 = vmatprep.subr.bf16.mxu0 %v20472_v28 }
0x120e   : > { %v18363_v63 = vpop.f32.mrb[224].mxu1 }
0x120f   : > { %v14005_v37 = vpop.f32.mrb[225].mxu1  ;;  %v7527_v43 = vsel %vm1481_vm1, %v18363_v63, -inf }
0x1210   : > { %7528 = vmax.xlane.f32.xlu0 %v7527_v43  ;;  %v7256_v61 = vpop.f32.mrb[226].mxu1 }
0x1211   : > { %v14006_v36 = vpop.f32.mrb[227].mxu1  ;;  %14028 = vmatmul.mubr.msk.bf16.vlgmr.msra.gmra.mrb[172].mxu0 %vm1481_vm1, %v7414_v15  ;;  %v7530_v58 = vsel %vm1481_vm1, %v7256_v61, -inf }
0x1212   : > { %7531 = vmax.xlane.f32.xlu1 %v7530_v58  ;;  %14039 = vmatprep.mubr.msk.bf16.mxu0 %vm15740_vm0, %v20472_v28 }
0x1216   : > { %v18371_v32 = vpop.f32.mrb[228].mxu1 }
0x1217   : > { %v14011_v38 = vpop.f32.mrb[229].mxu1  ;;  %v7533_v56 = vsel %vm1481_vm1, %v18371_v32, -inf }
0x1218   : > { %7534 = vmax.xlane.f32.xlu0 %v7533_v56  ;;  %v7307_v54 = vpop.f32.mrb[230].mxu1 }
0x1219   : > { %v14012_v19 = vpop.f32.mrb[231].mxu1  ;;  %v7536_v17 = vsel %vm1481_vm1, %v7307_v54, -inf }
0x121a   : > { %7537 = vmax.xlane.f32.xlu1 %v7536_v17 }
0x121e   : > { %v18376_v33 = vpop.f32.mrb[232].mxu1 }
0x121f   : > { %v14023_v4 = vpop.f32.mrb[233].mxu1  ;;  %v7545_v21 = vsel %vm1481_vm1, %v18376_v33, -inf }
0x1220   : > { %7546 = vmax.xlane.f32.xlu0 %v7545_v21  ;;  %v18380_v51 = vpop.f32.mrb[234].mxu1 }
0x1221   : > { %v14024_v16 = vpop.f32.mrb[235].mxu1  ;;  %v7548_v49 = vsel %vm1481_vm1, %v18380_v51, -inf }
0x1222   : > { %7549 = vmax.xlane.f32.xlu1 %v7548_v49 }
0x1226   : > { %v18384_v50 = vpop.f32.mrb[236].mxu1 }
0x1227   : > { %v14035_v40 = vpop.f32.mrb[237].mxu1  ;;  %v7557_v12 = vsel %vm1481_vm1, %v18384_v50, -inf }
0x1228   : > { %7558 = vmax.xlane.f32.xlu0 %v7557_v12  ;;  %v18388_v0 = vpop.f32.mrb[238].mxu1 }
0x1229   : > { %v14036_v25 = vpop.f32.mrb[239].mxu1  ;;  %v7560_v22 = vsel %vm1481_vm1, %v18388_v0, -inf }
0x122a   : > { %7561 = vmax.xlane.f32.xlu1 %v7560_v22 }
0x128d   : > { %v7517_v38 = vpop.xlane.xlu1 %7516 }
0x128e   : > { %v7563_v19 = vsub.f32 %v18342_v62, %v7517_v38 }
0x128f   : > { %v7520_v37 = vpop.xlane.xlu0 %7519 }
0x1290   : > { %v7564_v43 = vsub.f32 %v7154_v27, %v7520_v37  ;;  %v7579_v4 = vmul.f32 1.442695, %v7563_v19 }
0x1292   : > { %v7581_v15 = vmul.f32 1.442695, %v7564_v43 }
0x1294   : > { %15040 = vpow2.f32 %v7581_v15 }
0x1295   : > { %v7523_v21 = vpop.xlane.xlu0 %7522  ;;  %15042 = vpow2.f32 %v7579_v4 }
0x1296   : > { %v7565_v27 = vsub.f32 %v18351_v14, %v7523_v21 }
0x1297   : > { %v7526_v56 = vpop.xlane.xlu1 %7525 }
0x1298   : > { %v7566_v17 = vsub.f32 %v7205_v42, %v7526_v56  ;;  %v7583_v22 = vmul.f32 1.442695, %v7565_v27 }
0x129a   : > { %v7585_v16 = vmul.f32 1.442695, %v7566_v17 }
0x129c   : > { %15044 = vpow2.f32 %v7585_v16 }
0x129d   : > { %v7529_v40 = vpop.xlane.xlu0 %7528  ;;  %15046 = vpow2.f32 %v7583_v22 }
0x129e   : > { %v18392_v36 = vpop.eup %15040  ;;  %v7567_v37 = vsub.f32 %v18363_v63, %v7529_v40 }
0x129f   : > { %v7614_v58 = vsel %vm1481_vm1, %v18392_v36, 0.0  ;;  %v7532_v49 = vpop.xlane.xlu1 %7531 }
0x12a0   : > { %7615 = vadd.xlane.f32.xlu1 %v7614_v58  ;;  %v7568_v12 = vsub.f32 %v7256_v61, %v7532_v49  ;;  %v7587_v62 = vmul.f32 1.442695, %v7567_v37  ;;  %v18404_v61 = vpop.eup %15042 }
0x12a2   : > { %v7589_v15 = vmul.f32 1.442695, %v7568_v12  ;;  %v7611_v12 = vsel %vm1481_vm1, %v18404_v61, 0.0 }
0x12a4   : > { %15048 = vpow2.f32 %v7589_v15 }
0x12a5   : > { %v7535_v43 = vpop.xlane.xlu0 %7534  ;;  %15050 = vpow2.f32 %v7587_v62 }
0x12a6   : > { %v7569_v42 = vsub.f32 %v18371_v32, %v7535_v43  ;;  %v18411_v16 = vpop.eup %15044 }
0x12a7   : > { %v7538_v25 = vpop.xlane.xlu1 %7537 }
0x12a8   : > { %v7570_v58 = vsub.f32 %v7307_v54, %v7538_v25  ;;  %v7591_v49 = vmul.f32 1.442695, %v7569_v42  ;;  %v7620_v25 = vsel %vm1481_vm1, %v18411_v16, 0.0 }
0x12aa   : > { %v7593_v17 = vmul.f32 1.442695, %v7570_v58  ;;  %v18424_v58 = vpop.eup %15046 }
0x12ac   : > { %15052 = vpow2.f32 %v7593_v17 }
0x12ad   : > { %v7547_v56 = vpop.xlane.xlu0 %7546  ;;  %15054 = vpow2.f32 %v7591_v49 }
0x12ae   : > { %v7573_v27 = vsub.f32 %v18376_v33, %v7547_v56 }
0x12af   : > { %v7550_v8 = vpop.xlane.xlu1 %7549 }
0x12b0   : > { %v7574_v63 = vsub.f32 %v18380_v51, %v7550_v8  ;;  %v7599_v22 = vmul.f32 1.442695, %v7573_v27 }
0x12b2   : > { %v7601_v8 = vmul.f32 1.442695, %v7574_v63 }
0x12b4   : > { %15056 = vpow2.f32 %v7601_v8 }
0x12b5   : > { %v7559_v40 = vpop.xlane.xlu0 %7558  ;;  %15058 = vpow2.f32 %v7599_v22 }
0x12b6   : > { %v7577_v37 = vsub.f32 %v18384_v50, %v7559_v40 }
0x12b7   : > { %v7562_v54 = vpop.xlane.xlu1 %7561 }
0x12b8   : > { %v7578_v51 = vsub.f32 %v18388_v0, %v7562_v54  ;;  %v7607_v50 = vmul.f32 1.442695, %v7577_v37 }
0x12ba   : > { %v7609_v62 = vmul.f32 1.442695, %v7578_v51 }
0x12bc   : > { %15060 = vpow2.f32 %v7609_v62  ;;  %v20563_v62 = vld [vmem:[#allocation38_spill] sm:$0xff] }
0x12bd   : > { %15062 = vpow2.f32 %v7607_v50  ;;  %v20566_v50 = vld [vmem:[#allocation37_spill] sm:$0xff] }
0x12dc   : > { %v18400_v38 = vpop.f32.mrb[168].mxu0 }
0x12dd   : > { %v14017_v19 = vpop.f32.mrb[169].mxu0  ;;  %v7539_v14 = vsel %vm1481_vm1, %v18400_v38, -inf }
0x12de   : > { %v18407_v4 = vpop.f32.mrb[170].mxu0  ;;  %7540 = vmax.xlane.f32.xlu0 %v7539_v14  ;;  %v18427_v19 = vpop.eup %15048  ;;  %v7617_v14 = vsel %vm1481_vm1, %v18424_v58, 0.0 }
0x12df   : > { %v14018_v21 = vpop.f32.mrb[171].mxu0  ;;  %v7542_v32 = vsel %vm1481_vm1, %v18407_v4, -inf  ;;  %v18431_v17 = vpop.eup %15050  ;;  %v7626_v63 = vsel %vm1481_vm1, %v18427_v19, 0.0 }
0x12e0   : > { %7543 = vmax.xlane.f32.xlu1 %v7542_v32  ;;  %v18435_v54 = vpop.eup %15052  ;;  %v7623_v21 = vsel %vm1481_vm1, %v18431_v17, 0.0 }
0x12e1   : > { %v18439_v32 = vpop.eup %15054  ;;  %v7632_v49 = vsel %vm1481_vm1, %v18435_v54, 0.0 }
0x12e2   : > { %7612 = vadd.xlane.f32.xlu0 %v7611_v12  ;;  %v18443_v27 = vpop.eup %15056  ;;  %v7629_v40 = vsel %vm1481_vm1, %v18439_v32, 0.0 }
0x12e3   : > { %v18447_v12 = vpop.eup %15058  ;;  %v7644_v8 = vsel %vm1481_vm1, %v18443_v27, 0.0 }
0x12e4   : > { %v18420_v43 = vpop.f32.mrb[172].mxu0  ;;  %7621 = vadd.xlane.f32.xlu1 %v7620_v25  ;;  %v18451_v51 = vpop.eup %15060  ;;  %v7641_v25 = vsel %vm1481_vm1, %v18447_v12, 0.0 }
0x12e5   : > { %v14029_v33 = vpop.f32.mrb[173].mxu0  ;;  %v7551_v15 = vsel %vm1481_vm1, %v18420_v43, -inf  ;;  %v18455_v22 = vpop.eup %15062  ;;  %v7656_v37 = vsel %vm1481_vm1, %v18451_v51, 0.0 }
0x12e6   : > { %v7460_v0 = vpop.f32.mrb[174].mxu0  ;;  %7552 = vmax.xlane.f32.xlu0 %v7551_v15  ;;  %v7653_v33 = vsel %vm1481_vm1, %v18455_v22, 0.0  ;;  %v20562_v15 = vld [vmem:[#allocation33_spill] sm:$0xff] }
0x12e7   : > { %v14030_v42 = vpop.f32.mrb[175].mxu0  ;;  %v7554_v56 = vsel %vm1481_vm1, %v7460_v0, -inf }
0x12e8   : > { %7555 = vmax.xlane.f32.xlu1 %v7554_v56  ;;  %v20564_v42 = vld [vmem:[#allocation34_spill] sm:$0xff] }
0x12e9   : > { %v20565_v56 = vld [vmem:[#allocation42_spill] sm:$0xff] }
0x12ea   : > { %7618 = vadd.xlane.f32.xlu0 %v7617_v14  ;;  %v20567_v14 = vld [vmem:[#allocation41_spill] sm:$0xff] }
0x12ec   : > { %7627 = vadd.xlane.f32.xlu1 %v7626_v63 }
0x12ee   : > { %7624 = vadd.xlane.f32.xlu0 %v7623_v21 }
0x12f0   : > { %7633 = vadd.xlane.f32.xlu1 %v7632_v49 }
0x12f2   : > { %7630 = vadd.xlane.f32.xlu0 %v7629_v40 }
0x12f4   : > { %7645 = vadd.xlane.f32.xlu1 %v7644_v8 }
0x12f6   : > { %7642 = vadd.xlane.f32.xlu0 %v7641_v25 }
0x12f8   : > { %7657 = vadd.xlane.f32.xlu1 %v7656_v37 }
0x12fa   : > { %7654 = vadd.xlane.f32.xlu0 %v7653_v33 }
0x1309   : > { %7762 = vrot.lane.b32.xlu1 %v20562_v15, %s15745_s3 }
0x130d   : > { %7809 = vrot.lane.b32.xlu1 %v20563_v62, %s15745_s3 }
0x1310   : > { %7715 = vrot.lane.b32.xlu0 %v20564_v42, %s15745_s3 }
0x1311   : > { %7903 = vrot.lane.b32.xlu1 %v20565_v56, %s15745_s3 }
0x1314   : > { %7856 = vrot.lane.b32.xlu0 %v20566_v50, %s15745_s3 }
0x1318   : > { %7950 = vrot.lane.b32.xlu0 %v20567_v14, %s15745_s3 }
0x132d   : > { %v7616_v63 = vpop.xlane.xlu1 %7615 }
0x136b   : > { %v7541_v21 = vpop.xlane.xlu0 %7540 }
0x136c   : > { %v7571_v49 = vsub.f32 %v18400_v38, %v7541_v21 }
0x136d   : > { %v7544_v40 = vpop.xlane.xlu1 %7543 }
0x136e   : > { %v7595_v8 = vmul.f32 1.442695, %v7571_v49  ;;  %v7572_v25 = vsub.f32 %v18407_v4, %v7544_v40 }
0x136f   : > { %v7613_v37 = vpop.xlane.xlu0 %7612 }
0x1370   : > { %15064 = vpow2.f32 %v7595_v8  ;;  %v7597_v33 = vmul.f32 1.442695, %v7572_v25 }
0x1371   : > { %15066 = vrcp.f32 %v7613_v37  ;;  %v7622_v42 = vpop.xlane.xlu1 %7621 }
0x1372   : > { %15068 = vpow2.f32 %v7597_v33 }
0x1373   : > { %15070 = vrcp.f32 %v7622_v42  ;;  %v7553_v56 = vpop.xlane.xlu0 %7552 }
0x1374   : > { %v7575_v50 = vsub.f32 %v18420_v43, %v7553_v56 }
0x1375   : > { %v7556_v62 = vpop.xlane.xlu1 %7555 }
0x1376   : > { %v7603_v14 = vmul.f32 1.442695, %v7575_v50  ;;  %v7576_v15 = vsub.f32 %v7460_v0, %v7556_v62 }
0x1377   : > { %v7619_v24 = vpop.xlane.xlu0 %7618 }
0x1378   : > { %15072 = vpow2.f32 %v7603_v14  ;;  %v7605_v38 = vmul.f32 1.442695, %v7576_v15 }
0x1379   : > { %15074 = vrcp.f32 %v7619_v24  ;;  %v7628_v21 = vpop.xlane.xlu1 %7627 }
0x137a   : > { %v18476_v49 = vpop.eup %15064  ;;  %15076 = vpow2.f32 %v7605_v38 }
0x137b   : > { %v15067_v4 = vpop.eup %15066  ;;  %15078 = vrcp.f32 %v7628_v21  ;;  %v7625_v40 = vpop.xlane.xlu0 %7624  ;;  %v7635_v42 = vsel %vm1481_vm1, %v18476_v49, 0.0 }
0x137c   : > { %v18480_v8 = vpop.eup %15068  ;;  %v18483_v43 = vmul.f32 %v15067_v4, %v18404_v61  ;;  %15080 = vrcp.f32 %v7625_v40  ;;  %7636 = vadd.xlane.f32.xlu0 %v7635_v42 }
0x137d   : > { %v15071_v0 = vpop.eup %15070  ;;  %15082 = vrcp.f32 %v7616_v63  ;;  %v7634_v24 = vpop.xlane.xlu1 %7633  ;;  %v7638_v15 = vsel %vm1481_vm1, %v18480_v8, 0.0 }
0x137e   : > { %v18489_v62 = vadd.f32 %v18483_v43, %v18163_v20  ;;  %v7678_v56 = vmul.f32 %v15071_v0, %v18411_v16  ;;  %15084 = vrcp.f32 %v7634_v24  ;;  %7639 = vadd.xlane.f32.xlu1 %v7638_v15 }
0x137f   : > { %v7631_v50 = vpop.xlane.xlu0 %7630 }
0x1380   : > { %v18493_v61 = vadd.f32 %v7678_v56, %v18167_v7  ;;  %15086 = vrcp.f32 %v7631_v50 }
0x1381   : > { %v7646_v14 = vpop.xlane.xlu1 %7645 }
0x1382   : > { %v18495_v25 = vpop.eup %15072  ;;  %15088 = vrcp.f32 %v7646_v14 }
0x1383   : > { %v15075_v63 = vpop.eup %15074  ;;  %v7643_v37 = vpop.xlane.xlu0 %7642  ;;  %v7647_v33 = vsel %vm1481_vm1, %v18495_v25, 0.0 }
0x1384   : > { %v18499_v20 = vpop.eup %15076  ;;  %v7677_v16 = vmul.f32 %v15075_v63, %v18424_v58  ;;  %15090 = vrcp.f32 %v7643_v37  ;;  %7648 = vadd.xlane.f32.xlu0 %v7647_v33 }
0x1385   : > { %v15079_v38 = vpop.eup %15078  ;;  %v7658_v21 = vpop.xlane.xlu1 %7657  ;;  %v7650_v7 = vsel %vm1481_vm1, %v18499_v20, 0.0 }
0x1386   : > { %v15081_v4 = vpop.eup %15080  ;;  %v18505_v40 = vadd.f32 %v7677_v16, %v18179_v41  ;;  %v7680_v42 = vmul.f32 %v15079_v38, %v18427_v19  ;;  %15092 = vrcp.f32 %v7658_v21  ;;  %7651 = vadd.xlane.f32.xlu1 %v7650_v7 }
0x1387   : > { %v15083_v0 = vpop.eup %15082  ;;  %v7679_v24 = vmul.f32 %v15081_v4, %v18431_v17  ;;  %v7655_v15 = vpop.xlane.xlu0 %7654 }
0x1388   : > { %v15085_v58 = vpop.eup %15084  ;;  %v18510_v50 = vadd.f32 %v7680_v42, %v18184_v59  ;;  %15094 = vrcp.f32 %v7655_v15  ;;  %v18517_v19 = vmul.f32 %v15083_v0, %v18392_v36  ;;  %v7708_v59 = vpack.c.bf16 %v7678_v56, %v7677_v16 }
0x1389   : > { %v18513_v14 = vadd.f32 %v7679_v24, %v18187_v45  ;;  %v7682_v63 = vmul.f32 %v15085_v58, %v18435_v54  ;;  %v7763_v41 = vpop.permute.xlu1 %7762 }
0x138a   : > { %v15087_v37 = vpop.eup %15086  ;;  %14044 = vmatpush3.bf16.msra.mxu1 %v7763_v41  ;;  %20568 = vst [vmem:[#allocation31_spill] sm:$0xff] %v18517_v19 }
0x138b   : > { %v18520_v33 = vadd.f32 %v7682_v63, %v18194_v39  ;;  %v7681_v17 = vmul.f32 %v15087_v37, %v18439_v32  ;;  %v7716_v38 = vpop.permute.xlu0 %7715  ;;  %14055 = vmatprep.subr.bf16.mxu1 %v20472_v28  ;;  %v7707_v39 = vpack.c.bf16 %v18517_v19, %v18483_v43 }
0x138c   : > { %v15089_v21 = vpop.eup %15088  ;;  %14038 = vmatpush3.bf16.msra.mxu0 %v7716_v38 }
0x138d   : > { %v18525_v45 = vadd.f32 %v7681_v17, %v18199_v46  ;;  %v7686_v54 = vmul.f32 %v15089_v21, %v18443_v27  ;;  %14046 = vmatmul.mubr.msk.bf16.vlgmr.msra.gmra.mrb[240].mxu1 %vm1481_vm1, %v7708_v59  ;;  %14049 = vmatprep.subr.bf16.mxu0 %v20472_v28  ;;  %v7810_v46 = vpop.permute.xlu1 %7809  ;;  %v7710_v15 = vpack.c.bf16 %v7682_v63, %v7681_v17 }
0x138e   : > { %v15091_v36 = vpop.eup %15090  ;;  %14057 = vmatprep.mubr.msk.bf16.mxu1 %vm15740_vm0, %v20472_v28 }
0x138f   : > { %v18535_v32 = vadd.f32 %v7686_v54, %v18209_v23  ;;  %v7685_v56 = vmul.f32 %v15091_v36, %v18447_v12  ;;  %v7857_v16 = vpop.permute.xlu0 %7856  ;;  %14040 = vmatmul.mubr.msk.bf16.vlgmr.msra.gmra.mrb[176].mxu0 %vm1481_vm1, %v7707_v39 }
0x1390   : > { %v15093_v27 = vpop.eup %15092  ;;  %14050 = vmatpush3.bf16.msra.mxu0 %v7810_v46  ;;  %14056 = vmatpush3.bf16.msra.mxu1 %v7857_v16 }
0x1391   : > { %v18540_v7 = vadd.f32 %v7685_v56, %v18214_v11  ;;  %v7690_v43 = vmul.f32 %v15093_v27, %v18451_v51  ;;  %14067 = vmatprep.subr.bf16.mxu1 %v20472_v28  ;;  %14051 = vmatprep.mubr.msk.bf16.mxu0 %vm15740_vm0, %v20472_v28  ;;  %v7709_v51 = vpack.c.bf16 %v7680_v42, %v7679_v24  ;;  %v7904_v58 = vpop.permute.xlu1 %7903 }
0x1392   : > { %v15095_v23 = vpop.eup %15094  ;;  %14061 = vmatprep.subr.bf16.mxu0 %v20472_v28 }
0x1393   : > { %v18548_v12 = vadd.f32 %v7690_v43, %v18222_v13  ;;  %v7689_v4 = vmul.f32 %v15095_v23, %v18455_v22  ;;  %v7951_v0 = vpop.permute.xlu0 %7950  ;;  %v7712_v13 = vpack.c.bf16 %v7686_v54, %v7685_v56  ;;  %v14605_v56 = vld [vmem:[#allocation10 + $0x28] sm:$0xff]  }
0x1394   : > { %v20569_v23 = vld [vmem:[#allocation70_spill] sm:$0xff] }
0x1395   : > { %v18552_v11 = vadd.f32 %v7689_v4, %v18226_v3  ;;  %14058 = vmatmul.mubr.msk.bf16.vlgmr.msra.gmra.mrb[244].mxu1 %vm1481_vm1, %v7710_v15  ;;  %v7714_v54 = vpack.c.bf16 %v7690_v43, %v7689_v4 }
0x1396   : > { %14068 = vmatpush3.bf16.msra.mxu1 %v7951_v0  ;;  %14069 = vmatprep.mubr.msk.bf16.mxu1 %vm15740_vm0, %v20472_v28 }
0x1397   : > { %7997 = vrot.lane.b32.xlu1 %v16463_v5, %s15745_s3  ;;  %14052 = vmatmul.mubr.msk.bf16.vlgmr.msra.gmra.mrb[180].mxu0 %vm1481_vm1, %v7709_v51 }
0x1398   : > { %14062 = vmatpush3.bf16.msra.mxu0 %v7904_v58  ;;  %14079 = vmatprep.subr.bf16.mxu1 %v20472_v28 }
0x1399   : > { %14063 = vmatprep.mubr.msk.bf16.mxu0 %vm15740_vm0, %v20472_v28  ;;  %14073 = vmatprep.subr.bf16.mxu0 %v20472_v28 }
0x139a   : > { %8044 = vrot.lane.b32.xlu0 %v16459_v1, %s15745_s3 }
0x139b   : > { %8247 = vrot.lane.b32.xlu1 %v20496_v29, %s15746_s10 }
0x139d   : > { %14070 = vmatmul.mubr.msk.bf16.vlgmr.msra.gmra.mrb[248].mxu1 %vm1481_vm1, %v7712_v13 }
0x139e   : > { %8245 = vrot.lane.b32.xlu0 %v20503_v26, %s15746_s10  ;;  %14081 = vmatprep.mubr.msk.bf16.mxu1 %vm15740_vm0, %v20472_v28 }
0x139f   : > { %8298 = vrot.lane.b32.xlu1 %v20504_v18, %s15746_s10 }
0x13a2   : > { %8296 = vrot.lane.b32.xlu0 %v20505_v53, %s15746_s10 }
0x13a3   : > { %8349 = vrot.lane.b32.xlu1 %v20506_v9, %s15746_s10 }
0x13a6   : > { %8347 = vrot.lane.b32.xlu0 %v20513_v48, %s15746_s10 }
0x13a7   : > { %8400 = vrot.lane.b32.xlu1 %v20514_v57, %s15746_s10 }
0x13aa   : > { %8451 = vrot.lane.b32.xlu0 %v20515_v55, %s15746_s10 }
0x13ab   : > { %8398 = vrot.lane.b32.xlu1 %v20516_v60, %s15746_s10 }
0x13ae   : > { %8502 = vrot.lane.b32.xlu0 %v16487_v34, %s15746_s10 }
0x13af   : > { %8449 = vrot.lane.b32.xlu1 %v16470_v2, %s15746_s10 }
0x13b2   : > { %8553 = vrot.lane.b32.xlu0 %v16502_v44, %s15746_s10 }
0x13b3   : > { %8500 = vrot.lane.b32.xlu1 %v16485_v31, %s15746_s10 }
0x13b6   : > { %8604 = vrot.lane.b32.xlu0 %v16517_v6, %s15746_s10 }
0x13b7   : > { %8551 = vrot.lane.b32.xlu1 %v20520_v35, %s15746_s10 }
0x13ba   : > { %8602 = vrot.lane.b32.xlu0 %v20521_v30, %s15746_s10 }
0x1409   : > { %v7637_v3 = vpop.xlane.xlu0 %7636 }
0x140a   : > { %15096 = vrcp.f32 %v7637_v3 }
0x140b   : > { %v7640_v22 = vpop.xlane.xlu1 %7639 }
0x140c   : > { %15098 = vrcp.f32 %v7640_v22 }
0x1411   : > { %v7649_v42 = vpop.xlane.xlu0 %7648 }
0x1412   : > { %15100 = vrcp.f32 %v7649_v42 }
0x1413   : > { %v7652_v24 = vpop.xlane.xlu1 %7651 }
0x1414   : > { %v15097_v63 = vpop.eup %15096  ;;  %15102 = vrcp.f32 %v7652_v24 }
0x1415   : > { %v7683_v41 = vmul.f32 %v15097_v63, %v18476_v49  ;;  %v8045_v37 = vpop.permute.xlu0 %8044 }
0x1416   : > { %v15099_v17 = vpop.eup %15098  ;;  %14080 = vmatpush3.bf16.msra.mxu1 %v8045_v37 }
0x1417   : > { %v18603_v38 = vadd.f32 %v7683_v41, %v18277_v10  ;;  %v7684_v59 = vmul.f32 %v15099_v17, %v18480_v8  ;;  %v7998_v21 = vpop.permute.xlu1 %7997  ;;  %14103 = vmatprep.subr.bf16.mxu1 %v20472_v28 }
0x1419   : > { %v18608_v39 = vadd.f32 %v7684_v59, %v18282_v52  ;;  %14082 = vmatmul.mubr.msk.bf16.vlgmr.msra.gmra.mrb[252].mxu1 %vm1481_vm1, %v7714_v54  ;;  %v7711_v36 = vpack.c.bf16 %v7684_v59, %v7683_v41  ;;  %v8246_v43 = vpop.permute.xlu0 %8245 }
0x141a   : > { %14105 = vmatprep.mubr.msk.bf16.mxu1 %vm15740_vm0, %v20472_v28 }
0x141b   : > { %14064 = vmatmul.mubr.msk.bf16.vlgmr.msra.gmra.mrb[184].mxu0 %vm1481_vm1, %v7711_v36  ;;  %v8248_v10 = vpop.permute.xlu1 %8247 }
0x141c   : > { %v15101_v49 = vpop.eup %15100  ;;  %14074 = vmatpush3.bf16.msra.mxu0 %v7998_v21  ;;  %14075 = vmatprep.mubr.msk.bf16.mxu0 %vm15740_vm0, %v20472_v28  ;;  %v8253_v46 = vsel %vm1481_vm1, %v8248_v10, 0 }
0x141d   : > { %v7687_v8 = vmul.f32 %v15101_v49, %v18495_v25  ;;  %14085 = vmatprep.subr.bf16.mxu0 %v14605_v56  ;;  %v8297_v25 = vpop.permute.xlu0 %8296 }
0x141e   : > { %v15103_v52 = vpop.eup %15102 }
0x141f   : > { %v18619_v16 = vadd.f32 %v7687_v8, %v18293_v47  ;;  %v7688_v27 = vmul.f32 %v15103_v52, %v18499_v20  ;;  %14104 = vmatpush3.bf16.xpose.msra.mxu1 %v8253_v46  ;;  %v8299_v15 = vpop.permute.xlu1 %8298 }
0x1420   : > { %14109 = vmatprep.subr.bf16.mxu1 %v20472_v28  ;;  %v8304_v47 = vsel %vm1481_vm1, %v8299_v15, 0 }
0x1421   : > { %v18624_v4 = vadd.f32 %v7688_v27, %v20569_v23  ;;  %v7713_v0 = vpack.c.bf16 %v7688_v27, %v7687_v8  ;;  %v8348_v20 = vpop.permute.xlu0 %8347 }
0x1423   : > { %20570 = vst [vmem:[#allocation36_spill] sm:$0xff] %v18624_v4  ;;  %14076 = vmatmul.mubr.msk.bf16.vlgmr.msra.gmra.mrb[188].mxu0 %vm1481_vm1, %v7713_v0  ;;  %v8350_v51 = vpop.permute.xlu1 %8349 }
0x1424   : > { %14086 = vmatpush3.bf16.msra.mxu0 %v14605_v56  ;;  %v8355_v58 = vsel %vm1481_vm1, %v8350_v51, 0 }
0x1425   : > { %14127 = vmatprep.subr.bf16.mxu0 %v20472_v28  ;;  %v8452_v13 = vpop.permute.xlu0 %8451 }
0x1426   : > { %14106 = vmatmul.mubr.msk.bf16.vlgmr.msra.gmra.mrb[0].mxu1 %vm1481_vm1, %v8246_v43  ;;  %v8457_v0 = vsel %vm1481_vm1, %v8452_v13, 0 }
0x1427   : > { %14110 = vmatpush3.bf16.xpose.msra.mxu1 %v8304_v47  ;;  %14111 = vmatprep.mubr.msk.bf16.mxu1 %vm15740_vm0, %v20472_v28  ;;  %v8401_v3 = vpop.permute.xlu1 %8400 }
0x1428   : > { %14115 = vmatprep.subr.bf16.mxu1 %v20472_v28  ;;  %v8406_v22 = vsel %vm1481_vm1, %v8401_v3, 0 }
0x1429   : > { %v8503_v42 = vpop.permute.xlu0 %8502 }
0x142a   : > { %v8508_v41 = vsel %vm1481_vm1, %v8503_v42, 0 }
0x142b   : > { %v8399_v24 = vpop.permute.xlu1 %8398 }
0x142d   : > { %v18643_v63 = vpop.permute.xlu0 %8553 }
0x142e   : > { %14112 = vmatmul.mubr.msk.bf16.vlgmr.msra.gmra.mrb[4].mxu1 %vm1481_vm1, %v8297_v25 }
0x142f   : > { %14116 = vmatpush3.bf16.xpose.msra.mxu1 %v8355_v58  ;;  %14117 = vmatprep.mubr.msk.bf16.mxu1 %vm15740_vm0, %v20472_v28  ;;  %v18647_v37 = vpop.permute.xlu1 %8449 }
0x1430   : > { %14121 = vmatprep.subr.bf16.mxu1 %v20472_v28 }
0x1431   : > { %v8605_v17 = vpop.permute.xlu0 %8604 }
0x1432   : > { %v8610_v21 = vsel %vm1481_vm1, %v8605_v17, 0 }
0x1433   : > { %v8501_v59 = vpop.permute.xlu1 %8500 }
0x1435   : > { %v8603_v54 = vpop.permute.xlu0 %8602 }
0x1436   : > { %14118 = vmatmul.mubr.msk.bf16.vlgmr.msra.gmra.mrb[8].mxu1 %vm1481_vm1, %v8348_v20 }
0x1437   : > { %14122 = vmatpush3.bf16.xpose.msra.mxu1 %v8406_v22  ;;  %14123 = vmatprep.mubr.msk.bf16.mxu1 %vm15740_vm0, %v20472_v28 }
0x1438   : > { %14133 = vmatprep.subr.bf16.mxu1 %v20472_v28 }
0x143e   : > { %14124 = vmatmul.mubr.msk.bf16.vlgmr.msra.gmra.mrb[12].mxu1 %vm1481_vm1, %v8399_v24 }
0x143f   : > { %14134 = vmatpush3.bf16.xpose.msra.mxu1 %v8508_v41  ;;  %14135 = vmatprep.mubr.msk.bf16.mxu1 %vm15740_vm0, %v20472_v28 }
0x1440   : > { %14145 = vmatprep.subr.bf16.mxu1 %v20472_v28 }
0x1446   : > { %14136 = vmatmul.mubr.msk.bf16.vlgmr.msra.gmra.mrb[16].mxu1 %vm1481_vm1, %v8501_v59 }
0x1447   : > { %14146 = vmatpush3.bf16.xpose.msra.mxu1 %v8610_v21  ;;  %14147 = vmatprep.mubr.msk.bf16.mxu1 %vm15740_vm0, %v20472_v28 }
0x1448   : > { %14157 = vmatprep.subr.bf16.mxu1 %v20472_v28 }
0x144e   : > { %14148 = vmatmul.mubr.msk.bf16.vlgmr.msra.gmra.mrb[20].mxu1 %vm1481_vm1, %v8603_v54 }
0x144f   : > { %14159 = vmatprep.mubr.msk.bf16.mxu1 %vm15740_vm0, %v20472_v28 }
0x1460   : > { %v7802_v36 = vpop.f32.mrb[240].mxu1 }
0x1461   : > { %v14047_v56 = vpop.f32.mrb[241].mxu1 }
0x1462   : > { %v7755_v10 = vpop.f32.mrb[176].mxu0  ;;  %v7805_v49 = vpop.f32.mrb[242].mxu1 }
0x1463   : > { %v8092_v8 = vpack.c.bf16 %v7805_v49, %v7802_v36  ;;  %v14041_v52 = vpop.f32.mrb[177].mxu0  ;;  %v14048_v46 = vpop.f32.mrb[243].mxu1 }
0x1464   : > { %v7758_v27 = vpop.f32.mrb[178].mxu0 }
0x1465   : > { %v8091_v43 = vpack.c.bf16 %v7758_v27, %v7755_v10  ;;  %v14042_v23 = vpop.f32.mrb[179].mxu0 }
0x1467   : > { %14087 = vmatprep.mubr.msk.bf16.mxu0 %vm1481_vm1, %v8091_v43 }
0x1468   : > { %v7896_v15 = vpop.f32.mrb[244].mxu1  ;;  %14088 = vmatmul.mubr.msk.bf16.vlgmr.msra.gmra.mrb[88].mxu0 %vm1481_vm1, %v8092_v8 }
0x1469   : > { %14128 = vmatpush3.bf16.xpose.msra.mxu0 %v8457_v0  ;;  %v14059_v25 = vpop.f32.mrb[245].mxu1 }
0x146a   : > { %v7849_v47 = vpop.f32.mrb[180].mxu0  ;;  %v7899_v20 = vpop.f32.mrb[246].mxu1  ;;  %14139 = vmatprep.subr.bf16.mxu0 %v20472_v28 }
0x146b   : > { %v8094_v51 = vpack.c.bf16 %v7899_v20, %v7896_v15  ;;  %v14053_v58 = vpop.f32.mrb[181].mxu0  ;;  %v14060_v3 = vpop.f32.mrb[247].mxu1 }
0x146c   : > { %v7852_v22 = vpop.f32.mrb[182].mxu0 }
0x146d   : > { %v8093_v42 = vpack.c.bf16 %v7852_v22, %v7849_v47  ;;  %v14054_v24 = vpop.f32.mrb[183].mxu0 }
0x146f   : > { %14091 = vmatprep.mubr.msk.bf16.mxu0 %vm1481_vm1, %v8093_v42 }
0x1470   : > { %v7990_v41 = vpop.f32.mrb[248].mxu1  ;;  %14092 = vmatmul.mubr.msk.bf16.gmra.mrb[92].mxu0 %vm1481_vm1, %v8094_v51 }
0x1471   : > { %v14071_v13 = vpop.f32.mrb[249].mxu1 }
0x1472   : > { %v7993_v17 = vpop.f32.mrb[250].mxu1 }
0x1473   : > { %v8096_v59 = vpack.c.bf16 %v7993_v17, %v7990_v41  ;;  %v14072_v21 = vpop.f32.mrb[251].mxu1 }
0x14ec   : > { %v8084_v54 = vpop.f32.mrb[252].mxu1 }
0x14ed   : > { %v14083_v36 = vpop.f32.mrb[253].mxu1 }
0x14ee   : > { %v7943_v56 = vpop.f32.mrb[184].mxu0  ;;  %v8087_v10 = vpop.f32.mrb[254].mxu1 }
0x14ef   : > { %v8098_v49 = vpack.c.bf16 %v8087_v10, %v8084_v54  ;;  %v14065_v8 = vpop.f32.mrb[185].mxu0  ;;  %v14084_v52 = vpop.f32.mrb[255].mxu1 }
0x14f0   : > { %v7946_v46 = vpop.f32.mrb[186].mxu0 }
0x14f1   : > { %v8095_v27 = vpack.c.bf16 %v7946_v46, %v7943_v56  ;;  %v14066_v43 = vpop.f32.mrb[187].mxu0 }
0x14f3   : > { %14095 = vmatprep.mubr.msk.bf16.mxu0 %vm1481_vm1, %v8095_v27 }
0x14f4   : > { %14096 = vmatmul.mubr.msk.bf16.gmra.mrb[96].mxu0 %vm1481_vm1, %v8096_v59  ;;  %v8559_v59 = vsel %vm1481_vm1, %v18643_v63, 0  ;;  %v8552_v63 = vpop.permute.xlu1 %8551 }
0x14f6   : > { %v8037_v23 = vpop.f32.mrb[188].mxu0 }
0x14f7   : > { %v14077_v0 = vpop.f32.mrb[189].mxu0 }
0x14f8   : > { %v8040_v15 = vpop.f32.mrb[190].mxu0 }
0x14f9   : > { %v8097_v25 = vpack.c.bf16 %v8040_v15, %v8037_v23  ;;  %v14078_v47 = vpop.f32.mrb[191].mxu0  ;;  %v18668_v20 = vpop.f32.mrb[0].mxu1 }
0x14fa   : > { %v14107_v51 = vpop.f32.mrb[1].mxu1  ;;  %v8653_v58 = vsel %vm1481_vm1, %v18668_v20, -inf }
0x14fb   : > { %14099 = vmatprep.mubr.msk.bf16.mxu0 %vm1481_vm1, %v8097_v25  ;;  %8654 = vmax.xlane.f32.xlu1 %v8653_v58  ;;  %v8292_v3 = vpop.f32.mrb[2].mxu1 }
0x14fc   : > { %14100 = vmatmul.mubr.msk.bf16.gmra.mrb[100].mxu0 %vm1481_vm1, %v8098_v49  ;;  %v14108_v22 = vpop.f32.mrb[3].mxu1  ;;  %v8656_v42 = vsel %vm1481_vm1, %v8292_v3, -inf }
0x14fd   : > { %8657 = vmax.xlane.f32.xlu0 %v8656_v42  ;;  %14129 = vmatprep.mubr.msk.bf16.mxu0 %vm15740_vm0, %v20472_v28 }
0x1501   : > { %v18677_v24 = vpop.f32.mrb[4].mxu1 }
0x1502   : > { %v14113_v41 = vpop.f32.mrb[5].mxu1  ;;  %v8659_v13 = vsel %vm1481_vm1, %v18677_v24, -inf }
0x1503   : > { %8660 = vmax.xlane.f32.xlu0 %v8659_v13  ;;  %v8343_v17 = vpop.f32.mrb[6].mxu1 }
0x1504   : > { %v14114_v21 = vpop.f32.mrb[7].mxu1  ;;  %14130 = vmatmul.mubr.msk.bf16.vlgmr.msra.gmra.mrb[192].mxu0 %vm1481_vm1, %v18647_v37  ;;  %v8662_v54 = vsel %vm1481_vm1, %v8343_v17, -inf }
0x1505   : > { %14140 = vmatpush3.bf16.xpose.msra.mxu0 %v8559_v59  ;;  %8663 = vmax.xlane.f32.xlu1 %v8662_v54 }
0x1506   : > { %14141 = vmatprep.mubr.msk.bf16.mxu0 %vm15740_vm0, %v20472_v28  ;;  %14151 = vmatprep.subr.bf16.mxu0 %v20472_v28 }
0x1509   : > { %v18689_v36 = vpop.f32.mrb[8].mxu1 }
0x150a   : > { %v14119_v56 = vpop.f32.mrb[9].mxu1  ;;  %v8665_v10 = vsel %vm1481_vm1, %v18689_v36, -inf }
0x150b   : > { %8666 = vmax.xlane.f32.xlu0 %v8665_v10  ;;  %v8394_v49 = vpop.f32.mrb[10].mxu1 }
0x150c   : > { %v14120_v8 = vpop.f32.mrb[11].mxu1  ;;  %14142 = vmatmul.mubr.msk.bf16.vlgmr.msra.gmra.mrb[196].mxu0 %vm1481_vm1, %v8552_v63  ;;  %v8668_v37 = vsel %vm1481_vm1, %v8394_v49, -inf }
0x150d   : > { %8669 = vmax.xlane.f32.xlu1 %v8668_v37  ;;  %14153 = vmatprep.mubr.msk.bf16.mxu0 %vm15740_vm0, %v20472_v28 }
0x1511   : > { %v18697_v52 = vpop.f32.mrb[12].mxu1 }
0x1512   : > { %v14125_v46 = vpop.f32.mrb[13].mxu1  ;;  %v8671_v27 = vsel %vm1481_vm1, %v18697_v52, -inf }
0x1513   : > { %8672 = vmax.xlane.f32.xlu0 %v8671_v27  ;;  %v8445_v43 = vpop.f32.mrb[14].mxu1 }
0x1514   : > { %v14126_v23 = vpop.f32.mrb[15].mxu1  ;;  %v8674_v0 = vsel %vm1481_vm1, %v8445_v43, -inf }
0x1515   : > { %8675 = vmax.xlane.f32.xlu1 %v8674_v0 }
0x1519   : > { %v18702_v15 = vpop.f32.mrb[16].mxu1 }
0x151a   : > { %v14137_v25 = vpop.f32.mrb[17].mxu1  ;;  %v8683_v47 = vsel %vm1481_vm1, %v18702_v15, -inf }
0x151b   : > { %8684 = vmax.xlane.f32.xlu0 %v8683_v47  ;;  %v18706_v51 = vpop.f32.mrb[18].mxu1 }
0x151c   : > { %v14138_v58 = vpop.f32.mrb[19].mxu1  ;;  %v8686_v22 = vsel %vm1481_vm1, %v18706_v51, -inf }
0x151d   : > { %8687 = vmax.xlane.f32.xlu1 %v8686_v22 }
0x1521   : > { %v18710_v42 = vpop.f32.mrb[20].mxu1 }
0x1522   : > { %v14149_v41 = vpop.f32.mrb[21].mxu1  ;;  %v8695_v13 = vsel %vm1481_vm1, %v18710_v42, -inf }
0x1523   : > { %8696 = vmax.xlane.f32.xlu0 %v8695_v13  ;;  %v18714_v59 = vpop.f32.mrb[22].mxu1 }
0x1524   : > { %v14150_v21 = vpop.f32.mrb[23].mxu1  ;;  %v8698_v54 = vsel %vm1481_vm1, %v18714_v59, -inf }
0x1525   : > { %8699 = vmax.xlane.f32.xlu1 %v8698_v54 }
0x1588   : > { %v8655_v46 = vpop.xlane.xlu1 %8654 }
0x1589   : > { %v8701_v23 = vsub.f32 %v18668_v20, %v8655_v46 }
0x158a   : > { %v8658_v56 = vpop.xlane.xlu0 %8657 }
0x158b   : > { %v8702_v10 = vsub.f32 %v8292_v3, %v8658_v56  ;;  %v8717_v25 = vmul.f32 1.442695, %v8701_v23 }
0x158d   : > { %v8719_v63 = vmul.f32 1.442695, %v8702_v10 }
0x158f   : > { %15104 = vpow2.f32 %v8719_v63 }
0x1590   : > { %v8661_v47 = vpop.xlane.xlu0 %8660  ;;  %15106 = vpow2.f32 %v8717_v25 }
0x1591   : > { %v8703_v3 = vsub.f32 %v18677_v24, %v8661_v47 }
0x1592   : > { %v8664_v27 = vpop.xlane.xlu1 %8663 }
0x1593   : > { %v8704_v0 = vsub.f32 %v8343_v17, %v8664_v27  ;;  %v8721_v54 = vmul.f32 1.442695, %v8703_v3 }
0x1595   : > { %v8723_v58 = vmul.f32 1.442695, %v8704_v0 }
0x1597   : > { %15108 = vpow2.f32 %v8723_v58 }
0x1598   : > { %v8667_v41 = vpop.xlane.xlu0 %8666  ;;  %15110 = vpow2.f32 %v8721_v54 }
0x1599   : > { %v18718_v8 = vpop.eup %15104  ;;  %v8705_v56 = vsub.f32 %v18689_v36, %v8667_v41 }
0x159a   : > { %v8752_v37 = vsel %vm1481_vm1, %v18718_v8, 0.0  ;;  %v8670_v22 = vpop.xlane.xlu1 %8669 }
0x159b   : > { %8753 = vadd.xlane.f32.xlu1 %v8752_v37  ;;  %v8706_v13 = vsub.f32 %v8394_v49, %v8670_v22  ;;  %v8725_v20 = vmul.f32 1.442695, %v8705_v56  ;;  %v18730_v49 = vpop.eup %15106 }
0x159d   : > { %v8727_v63 = vmul.f32 1.442695, %v8706_v13  ;;  %v8749_v13 = vsel %vm1481_vm1, %v18730_v49, 0.0 }
0x159f   : > { %15112 = vpow2.f32 %v8727_v63 }
0x15a0   : > { %v8673_v10 = vpop.xlane.xlu0 %8672  ;;  %15114 = vpow2.f32 %v8725_v20 }
0x15a1   : > { %v8707_v17 = vsub.f32 %v18697_v52, %v8673_v10  ;;  %v18737_v58 = vpop.eup %15108 }
0x15a2   : > { %v8676_v21 = vpop.xlane.xlu1 %8675 }
0x15a3   : > { %v8708_v37 = vsub.f32 %v8445_v43, %v8676_v21  ;;  %v8729_v22 = vmul.f32 1.442695, %v8707_v17  ;;  %v8758_v21 = vsel %vm1481_vm1, %v18737_v58, 0.0 }
0x15a5   : > { %v8731_v0 = vmul.f32 1.442695, %v8708_v37  ;;  %v18750_v37 = vpop.eup %15110 }
0x15a7   : > { %15116 = vpow2.f32 %v8731_v0 }
0x15a8   : > { %v8685_v27 = vpop.xlane.xlu0 %8684  ;;  %15118 = vpow2.f32 %v8729_v22 }
0x15a9   : > { %v8711_v3 = vsub.f32 %v18702_v15, %v8685_v27 }
0x15aa   : > { %v8688_v19 = vpop.xlane.xlu1 %8687 }
0x15ab   : > { %v8712_v36 = vsub.f32 %v18706_v51, %v8688_v19  ;;  %v8737_v54 = vmul.f32 1.442695, %v8711_v3 }
0x15ad   : > { %v8739_v19 = vmul.f32 1.442695, %v8712_v36 }
0x15af   : > { %15120 = vpow2.f32 %v8739_v19 }
0x15b0   : > { %v8697_v41 = vpop.xlane.xlu0 %8696  ;;  %15122 = vpow2.f32 %v8737_v54 }
0x15b1   : > { %v8715_v56 = vsub.f32 %v18710_v42, %v8697_v41 }
0x15b2   : > { %v8700_v43 = vpop.xlane.xlu1 %8699 }
0x15b3   : > { %v8716_v51 = vsub.f32 %v18714_v59, %v8700_v43  ;;  %v8745_v42 = vmul.f32 1.442695, %v8715_v56 }
0x15b5   : > { %v8747_v20 = vmul.f32 1.442695, %v8716_v51 }
0x15b7   : > { %15124 = vpow2.f32 %v8747_v20  ;;  %v20572_v20 = vld [vmem:[#allocation38_spill] sm:$0xff] }
0x15b8   : > { %15126 = vpow2.f32 %v8745_v42  ;;  %v20575_v42 = vld [vmem:[#allocation37_spill] sm:$0xff] }
0x15d7   : > { %v18726_v46 = vpop.f32.mrb[192].mxu0 }
0x15d8   : > { %v14131_v23 = vpop.f32.mrb[193].mxu0  ;;  %v8677_v24 = vsel %vm1481_vm1, %v18726_v46, -inf }
0x15d9   : > { %v18733_v25 = vpop.f32.mrb[194].mxu0  ;;  %8678 = vmax.xlane.f32.xlu0 %v8677_v24  ;;  %v18753_v23 = vpop.eup %15112  ;;  %v8755_v24 = vsel %vm1481_vm1, %v18750_v37, 0.0 }
0x15da   : > { %v14132_v47 = vpop.f32.mrb[195].mxu0  ;;  %v8680_v52 = vsel %vm1481_vm1, %v18733_v25, -inf  ;;  %v18757_v0 = vpop.eup %15114  ;;  %v8764_v36 = vsel %vm1481_vm1, %v18753_v23, 0.0 }
0x15db   : > { %8681 = vmax.xlane.f32.xlu1 %v8680_v52  ;;  %v18761_v43 = vpop.eup %15116  ;;  %v8761_v47 = vsel %vm1481_vm1, %v18757_v0, 0.0 }
0x15dc   : > { %v18765_v52 = vpop.eup %15118  ;;  %v8770_v22 = vsel %vm1481_vm1, %v18761_v43, 0.0 }
0x15dd   : > { %8750 = vadd.xlane.f32.xlu0 %v8749_v13  ;;  %v18769_v3 = vpop.eup %15120  ;;  %v8767_v41 = vsel %vm1481_vm1, %v18765_v52, 0.0 }
0x15de   : > { %v18773_v13 = vpop.eup %15122  ;;  %v8782_v19 = vsel %vm1481_vm1, %v18769_v3, 0.0 }
0x15df   : > { %v18746_v10 = vpop.f32.mrb[196].mxu0  ;;  %8759 = vadd.xlane.f32.xlu1 %v8758_v21  ;;  %v18777_v51 = vpop.eup %15124  ;;  %v8779_v21 = vsel %vm1481_vm1, %v18773_v13, 0.0 }
0x15e0   : > { %v14143_v15 = vpop.f32.mrb[197].mxu0  ;;  %v8689_v63 = vsel %vm1481_vm1, %v18746_v10, -inf  ;;  %v18781_v54 = vpop.eup %15126  ;;  %v8794_v56 = vsel %vm1481_vm1, %v18777_v51, 0.0 }
0x15e1   : > { %v8598_v59 = vpop.f32.mrb[198].mxu0  ;;  %8690 = vmax.xlane.f32.xlu0 %v8689_v63  ;;  %v8791_v15 = vsel %vm1481_vm1, %v18781_v54, 0.0  ;;  %v20571_v63 = vld [vmem:[#allocation33_spill] sm:$0xff] }
0x15e2   : > { %v14144_v17 = vpop.f32.mrb[199].mxu0  ;;  %v8692_v27 = vsel %vm1481_vm1, %v8598_v59, -inf }
0x15e3   : > { %8693 = vmax.xlane.f32.xlu1 %v8692_v27  ;;  %v20573_v17 = vld [vmem:[#allocation34_spill] sm:$0xff] }
0x15e4   : > { %v20574_v27 = vld [vmem:[#allocation42_spill] sm:$0xff] }
0x15e5   : > { %8756 = vadd.xlane.f32.xlu0 %v8755_v24  ;;  %v20576_v24 = vld [vmem:[#allocation41_spill] sm:$0xff] }
0x15e7   : > { %8765 = vadd.xlane.f32.xlu1 %v8764_v36 }
0x15e9   : > { %8762 = vadd.xlane.f32.xlu0 %v8761_v47 }
0x15eb   : > { %8771 = vadd.xlane.f32.xlu1 %v8770_v22 }
0x15ed   : > { %8768 = vadd.xlane.f32.xlu0 %v8767_v41 }
0x15ef   : > { %8783 = vadd.xlane.f32.xlu1 %v8782_v19 }
0x15f1   : > { %8780 = vadd.xlane.f32.xlu0 %v8779_v21 }
0x15f3   : > { %8795 = vadd.xlane.f32.xlu1 %v8794_v56 }
0x15f5   : > { %8792 = vadd.xlane.f32.xlu0 %v8791_v15 }
0x1604   : > { %8900 = vrot.lane.b32.xlu1 %v20571_v63, %s15746_s10 }
0x1608   : > { %8947 = vrot.lane.b32.xlu1 %v20572_v20, %s15746_s10 }
0x160b   : > { %8853 = vrot.lane.b32.xlu0 %v20573_v17, %s15746_s10 }
0x160c   : > { %9041 = vrot.lane.b32.xlu1 %v20574_v27, %s15746_s10 }
0x160f   : > { %8994 = vrot.lane.b32.xlu0 %v20575_v42, %s15746_s10 }
0x1613   : > { %9088 = vrot.lane.b32.xlu0 %v20576_v24, %s15746_s10 }
0x1628   : > { %v8754_v36 = vpop.xlane.xlu1 %8753 }
0x1666   : > { %v8679_v47 = vpop.xlane.xlu0 %8678 }
0x1667   : > { %v8709_v22 = vsub.f32 %v18726_v46, %v8679_v47 }
0x1668   : > { %v8682_v41 = vpop.xlane.xlu1 %8681 }
0x1669   : > { %v8733_v19 = vmul.f32 1.442695, %v8709_v22  ;;  %v8710_v21 = vsub.f32 %v18733_v25, %v8682_v41 }
0x166a   : > { %v8751_v56 = vpop.xlane.xlu0 %8750 }
0x166b   : > { %15128 = vpow2.f32 %v8733_v19  ;;  %v8735_v15 = vmul.f32 1.442695, %v8710_v21 }
0x166c   : > { %15130 = vrcp.f32 %v8751_v56  ;;  %v8760_v20 = vpop.xlane.xlu1 %8759 }
0x166d   : > { %15132 = vpow2.f32 %v8735_v15 }
0x166e   : > { %15134 = vrcp.f32 %v8760_v20  ;;  %v8691_v27 = vpop.xlane.xlu0 %8690 }
0x166f   : > { %v8713_v42 = vsub.f32 %v18746_v10, %v8691_v27 }
0x1670   : > { %v8694_v17 = vpop.xlane.xlu1 %8693 }
0x1671   : > { %v8741_v24 = vmul.f32 1.442695, %v8713_v42  ;;  %v8714_v63 = vsub.f32 %v8598_v59, %v8694_v17 }
0x1672   : > { %v8757_v4 = vpop.xlane.xlu0 %8756 }
0x1673   : > { %15136 = vpow2.f32 %v8741_v24  ;;  %v8743_v46 = vmul.f32 1.442695, %v8714_v63 }
0x1674   : > { %15138 = vrcp.f32 %v8757_v4  ;;  %v8766_v47 = vpop.xlane.xlu1 %8765 }
0x1675   : > { %v18802_v22 = vpop.eup %15128  ;;  %15140 = vpow2.f32 %v8743_v46 }
0x1676   : > { %v15131_v25 = vpop.eup %15130  ;;  %15142 = vrcp.f32 %v8766_v47  ;;  %v8763_v41 = vpop.xlane.xlu0 %8762  ;;  %v8773_v20 = vsel %vm1481_vm1, %v18802_v22, 0.0 }
0x1677   : > { %v18806_v19 = vpop.eup %15132  ;;  %v18809_v10 = vmul.f32 %v15131_v25, %v18730_v49  ;;  %15144 = vrcp.f32 %v8763_v41  ;;  %8774 = vadd.xlane.f32.xlu0 %v8773_v20 }
0x1678   : > { %v15135_v59 = vpop.eup %15134  ;;  %15146 = vrcp.f32 %v8754_v36  ;;  %v8772_v4 = vpop.xlane.xlu1 %8771  ;;  %v8776_v63 = vsel %vm1481_vm1, %v18806_v19, 0.0 }
0x1679   : > { %v18815_v17 = vadd.f32 %v18809_v10, %v18489_v62  ;;  %v8816_v27 = vmul.f32 %v15135_v59, %v18737_v58  ;;  %15148 = vrcp.f32 %v8772_v4  ;;  %8777 = vadd.xlane.f32.xlu1 %v8776_v63 }
0x167a   : > { %v8769_v42 = vpop.xlane.xlu0 %8768 }
0x167b   : > { %v18819_v49 = vadd.f32 %v8816_v27, %v18493_v61  ;;  %15150 = vrcp.f32 %v8769_v42 }
0x167c   : > { %v8784_v24 = vpop.xlane.xlu1 %8783 }
0x167d   : > { %v18821_v21 = vpop.eup %15136  ;;  %15152 = vrcp.f32 %v8784_v24 }
0x167e   : > { %v15139_v36 = vpop.eup %15138  ;;  %v8781_v56 = vpop.xlane.xlu0 %8780  ;;  %v8785_v15 = vsel %vm1481_vm1, %v18821_v21, 0.0 }
0x167f   : > { %v18825_v62 = vpop.eup %15140  ;;  %v8815_v58 = vmul.f32 %v15139_v36, %v18750_v37  ;;  %15154 = vrcp.f32 %v8781_v56  ;;  %8786 = vadd.xlane.f32.xlu0 %v8785_v15 }
0x1680   : > { %v15143_v46 = vpop.eup %15142  ;;  %v8796_v47 = vpop.xlane.xlu1 %8795  ;;  %v8788_v61 = vsel %vm1481_vm1, %v18825_v62, 0.0 }
0x1681   : > { %v15145_v25 = vpop.eup %15144  ;;  %v18831_v41 = vadd.f32 %v8815_v58, %v18505_v40  ;;  %v8818_v20 = vmul.f32 %v15143_v46, %v18753_v23  ;;  %15156 = vrcp.f32 %v8796_v47  ;;  %8789 = vadd.xlane.f32.xlu1 %v8788_v61  ;;  %v8846_v15 = vpack.c.bf16 %v8816_v27, %v8815_v58 }
0x1682   : > { %v15147_v59 = vpop.eup %15146  ;;  %v8817_v4 = vmul.f32 %v15145_v25, %v18757_v0  ;;  %v8793_v63 = vpop.xlane.xlu0 %8792 }
0x1683   : > { %v15149_v37 = vpop.eup %15148  ;;  %v18836_v42 = vadd.f32 %v8818_v20, %v18510_v50  ;;  %15158 = vrcp.f32 %v8793_v63  ;;  %v18843_v23 = vmul.f32 %v15147_v59, %v18718_v8 }
0x1684   : > { %v18839_v24 = vadd.f32 %v8817_v4, %v18513_v14  ;;  %v8820_v36 = vmul.f32 %v15149_v37, %v18761_v43  ;;  %v8901_v40 = vpop.permute.xlu1 %8900 }
0x1685   : > { %v15151_v56 = vpop.eup %15150  ;;  %14158 = vmatpush3.bf16.msra.mxu1 %v8901_v40 }
0x1686   : > { %v18846_v0 = vadd.f32 %v8820_v36, %v18520_v33  ;;  %v8819_v46 = vmul.f32 %v15151_v56, %v18765_v52  ;;  %v8854_v50 = vpop.permute.xlu0 %8853  ;;  %14169 = vmatprep.subr.bf16.mxu1 %v20472_v28  ;;  %v8845_v33 = vpack.c.bf16 %v18843_v23, %v18809_v10 }
0x1687   : > { %v15153_v47 = vpop.eup %15152  ;;  %14152 = vmatpush3.bf16.msra.mxu0 %v8854_v50 }
0x1688   : > { %v18851_v14 = vadd.f32 %v8819_v46, %v18525_v45  ;;  %v8824_v43 = vmul.f32 %v15153_v47, %v18769_v3  ;;  %14160 = vmatmul.mubr.msk.bf16.vlgmr.msra.gmra.mrb[24].mxu1 %vm1481_vm1, %v8846_v15  ;;  %14163 = vmatprep.subr.bf16.mxu0 %v20472_v28  ;;  %v8948_v45 = vpop.permute.xlu1 %8947 }
0x1689   : > { %v15155_v8 = vpop.eup %15154  ;;  %14171 = vmatprep.mubr.msk.bf16.mxu1 %vm15740_vm0, %v20472_v28 }
0x168a   : > { %v18861_v52 = vadd.f32 %v8824_v43, %v18535_v32  ;;  %v8823_v27 = vmul.f32 %v15155_v8, %v18773_v13  ;;  %v8995_v58 = vpop.permute.xlu0 %8994  ;;  %14154 = vmatmul.mubr.msk.bf16.vlgmr.msra.gmra.mrb[200].mxu0 %vm1481_vm1, %v8845_v33  ;;  %v8848_v13 = vpack.c.bf16 %v8820_v36, %v8819_v46 }
0x168b   : > { %v15157_v3 = vpop.eup %15156  ;;  %14164 = vmatpush3.bf16.msra.mxu0 %v8948_v45  ;;  %14170 = vmatpush3.bf16.msra.mxu1 %v8995_v58 }
0x168c   : > { %v18866_v61 = vadd.f32 %v8823_v27, %v18540_v7  ;;  %v8828_v10 = vmul.f32 %v15157_v3, %v18777_v51  ;;  %14181 = vmatprep.subr.bf16.mxu1 %v20472_v28  ;;  %14165 = vmatprep.mubr.msk.bf16.mxu0 %vm15740_vm0, %v20472_v28  ;;  %v8847_v51 = vpack.c.bf16 %v8818_v20, %v8817_v4  ;;  %v9042_v37 = vpop.permute.xlu1 %9041  ;;  %v20577_v4 = vld [vmem:[#allocation36_spill] sm:$0xff] }
0x168d   : > { %v15159_v32 = vpop.eup %15158  ;;  %14175 = vmatprep.subr.bf16.mxu0 %v20472_v28 }
0x168e   : > { %v18874_v25 = vadd.f32 %v8828_v10, %v18548_v12  ;;  %v8827_v59 = vmul.f32 %v15159_v32, %v18781_v54  ;;  %v9089_v63 = vpop.permute.xlu0 %9088  ;;  %v8850_v12 = vpack.c.bf16 %v8824_v43, %v8823_v27 }
0x1690   : > { %v18878_v7 = vadd.f32 %v8827_v59, %v18552_v11  ;;  %14172 = vmatmul.mubr.msk.bf16.vlgmr.msra.gmra.mrb[28].mxu1 %vm1481_vm1, %v8848_v13 }
0x1691   : > { %14182 = vmatpush3.bf16.msra.mxu1 %v9089_v63  ;;  %14183 = vmatprep.mubr.msk.bf16.mxu1 %vm15740_vm0, %v20472_v28 }
0x1692   : > { %9135 = vrot.lane.b32.xlu1 %v16463_v5, %s15746_s10  ;;  %14166 = vmatmul.mubr.msk.bf16.vlgmr.msra.gmra.mrb[204].mxu0 %vm1481_vm1, %v8847_v51 }
0x1693   : > { %14176 = vmatpush3.bf16.msra.mxu0 %v9042_v37  ;;  %14193 = vmatprep.subr.bf16.mxu1 %v20472_v28 }
0x1694   : > { %14177 = vmatprep.mubr.msk.bf16.mxu0 %vm15740_vm0, %v20472_v28  ;;  %14187 = vmatprep.subr.bf16.mxu0 %v20472_v28 }
0x1695   : > { %9182 = vrot.lane.b32.xlu0 %v16459_v1, %s15746_s10 }
0x1696   : > { %9385 = vrot.lane.b32.xlu1 %v20496_v29, %s15747_s9 }
0x1698   : > { %14184 = vmatmul.mubr.msk.bf16.vlgmr.msra.gmra.mrb[32].mxu1 %vm1481_vm1, %v8850_v12 }
0x1699   : > { %9383 = vrot.lane.b32.xlu0 %v20503_v26, %s15747_s9  ;;  %14195 = vmatprep.mubr.msk.bf16.mxu1 %vm15740_vm0, %v20472_v28 }
0x169a   : > { %9436 = vrot.lane.b32.xlu1 %v20504_v18, %s15747_s9 }
0x169d   : > { %9434 = vrot.lane.b32.xlu0 %v20505_v53, %s15747_s9 }
0x169e   : > { %9487 = vrot.lane.b32.xlu1 %v20506_v9, %s15747_s9 }
0x16a1   : > { %9485 = vrot.lane.b32.xlu0 %v20513_v48, %s15747_s9 }
0x16a2   : > { %9538 = vrot.lane.b32.xlu1 %v20514_v57, %s15747_s9 }
0x16a5   : > { %9536 = vrot.lane.b32.xlu0 %v20516_v60, %s15747_s9 }
0x16a6   : > { %9589 = vrot.lane.b32.xlu1 %v20515_v55, %s15747_s9 }
0x16a9   : > { %9640 = vrot.lane.b32.xlu0 %v16487_v34, %s15747_s9 }
0x16aa   : > { %9587 = vrot.lane.b32.xlu1 %v16470_v2, %s15747_s9 }
0x16ad   : > { %9638 = vrot.lane.b32.xlu0 %v16485_v31, %s15747_s9 }
0x16ae   : > { %9691 = vrot.lane.b32.xlu1 %v16502_v44, %s15747_s9 }
0x16b1   : > { %9742 = vrot.lane.b32.xlu0 %v16517_v6, %s15747_s9  ;;  %v8852_v6 = vpack.c.bf16 %v8828_v10, %v8827_v59 }
0x16b2   : > { %9689 = vrot.lane.b32.xlu1 %v20520_v35, %s15747_s9  ;;  %v14606_v35 = vld [vmem:[#allocation10 + $0x30] sm:$0xff]  }
0x16b5   : > { %9740 = vrot.lane.b32.xlu0 %v20521_v30, %s15747_s9 }
0x1704   : > { %v8775_v29 = vpop.xlane.xlu0 %8774 }
0x1705   : > { %15160 = vrcp.f32 %v8775_v29 }
0x1706   : > { %v8778_v34 = vpop.xlane.xlu1 %8777 }
0x1707   : > { %15162 = vrcp.f32 %v8778_v34 }
0x170c   : > { %v8787_v2 = vpop.xlane.xlu0 %8786 }
0x170d   : > { %15164 = vrcp.f32 %v8787_v2 }
0x170e   : > { %v8790_v26 = vpop.xlane.xlu1 %8789 }
0x170f   : > { %v15161_v31 = vpop.eup %15160  ;;  %15166 = vrcp.f32 %v8790_v26 }
0x1710   : > { %v8821_v44 = vmul.f32 %v15161_v31, %v18802_v22  ;;  %v9183_v18 = vpop.permute.xlu0 %9182 }
0x1711   : > { %v15163_v53 = vpop.eup %15162  ;;  %14194 = vmatpush3.bf16.msra.mxu1 %v9183_v18 }
0x1712   : > { %v18929_v9 = vadd.f32 %v8821_v44, %v18603_v38  ;;  %v8822_v48 = vmul.f32 %v15163_v53, %v18806_v19  ;;  %v9136_v57 = vpop.permute.xlu1 %9135  ;;  %14217 = vmatprep.subr.bf16.mxu1 %v20472_v28 }
0x1714   : > { %v18934_v55 = vadd.f32 %v8822_v48, %v18608_v39  ;;  %14196 = vmatmul.mubr.msk.bf16.vlgmr.msra.gmra.mrb[36].mxu1 %vm1481_vm1, %v8852_v6  ;;  %v8849_v60 = vpack.c.bf16 %v8822_v48, %v8821_v44  ;;  %v9384_v20 = vpop.permute.xlu0 %9383 }
0x1715   : > { %14219 = vmatprep.mubr.msk.bf16.mxu1 %vm15740_vm0, %v20472_v28 }
0x1716   : > { %14178 = vmatmul.mubr.msk.bf16.vlgmr.msra.gmra.mrb[208].mxu0 %vm1481_vm1, %v8849_v60  ;;  %v9386_v30 = vpop.permute.xlu1 %9385 }
0x1717   : > { %v15165_v11 = vpop.eup %15164  ;;  %14188 = vmatpush3.bf16.msra.mxu0 %v9136_v57  ;;  %14189 = vmatprep.mubr.msk.bf16.mxu0 %vm15740_vm0, %v20472_v28  ;;  %v9391_v54 = vsel %vm1481_vm1, %v9386_v30, 0 }
0x1718   : > { %v8825_v38 = vmul.f32 %v15165_v11, %v18821_v21  ;;  %14199 = vmatprep.subr.bf16.mxu0 %v14606_v35  ;;  %v9435_v21 = vpop.permute.xlu0 %9434 }
0x1719   : > { %v15167_v39 = vpop.eup %15166 }
0x171a   : > { %v18945_v22 = vadd.f32 %v8825_v38, %v18619_v16  ;;  %v8826_v19 = vmul.f32 %v15167_v39, %v18825_v62  ;;  %14218 = vmatpush3.bf16.xpose.msra.mxu1 %v9391_v54  ;;  %v9437_v56 = vpop.permute.xlu1 %9436 }
0x171b   : > { %14223 = vmatprep.subr.bf16.mxu1 %v20472_v28  ;;  %v9442_v16 = vsel %vm1481_vm1, %v9437_v56, 0 }
0x171c   : > { %v18950_v36 = vadd.f32 %v8826_v19, %v20577_v4  ;;  %v8851_v40 = vpack.c.bf16 %v8826_v19, %v8825_v38  ;;  %v9486_v62 = vpop.permute.xlu0 %9485 }
0x171e   : > { %14190 = vmatmul.mubr.msk.bf16.vlgmr.msra.gmra.mrb[212].mxu0 %vm1481_vm1, %v8851_v40  ;;  %v9488_v15 = vpop.permute.xlu1 %9487 }
0x171f   : > { %14200 = vmatpush3.bf16.msra.mxu0 %v14606_v35  ;;  %v9493_v46 = vsel %vm1481_vm1, %v9488_v15, 0 }
0x1720   : > { %14241 = vmatprep.subr.bf16.mxu0 %v20472_v28  ;;  %v9537_v50 = vpop.permute.xlu0 %9536 }
0x1721   : > { %14220 = vmatmul.mubr.msk.bf16.vlgmr.msra.gmra.mrb[40].mxu1 %vm1481_vm1, %v9384_v20 }
0x1722   : > { %14224 = vmatpush3.bf16.xpose.msra.mxu1 %v9442_v16  ;;  %14225 = vmatprep.mubr.msk.bf16.mxu1 %vm15740_vm0, %v20472_v28  ;;  %v9539_v47 = vpop.permute.xlu1 %9538 }
0x1723   : > { %14229 = vmatprep.subr.bf16.mxu1 %v20472_v28  ;;  %v9544_v43 = vsel %vm1481_vm1, %v9539_v47, 0 }
0x1724   : > { %v9641_v33 = vpop.permute.xlu0 %9640 }
0x1725   : > { %v9646_v27 = vsel %vm1481_vm1, %v9641_v33, 0 }
0x1726   : > { %v9590_v29 = vpop.permute.xlu1 %9589 }
0x1727   : > { %v9595_v26 = vsel %vm1481_vm1, %v9590_v29, 0 }
0x1728   : > { %v9639_v8 = vpop.permute.xlu0 %9638 }
0x1729   : > { %14226 = vmatmul.mubr.msk.bf16.vlgmr.msra.gmra.mrb[44].mxu1 %vm1481_vm1, %v9435_v21 }
0x172a   : > { %14230 = vmatpush3.bf16.xpose.msra.mxu1 %v9493_v46  ;;  %14231 = vmatprep.mubr.msk.bf16.mxu1 %vm15740_vm0, %v20472_v28 }
0x172b   : > { %14235 = vmatprep.subr.bf16.mxu1 %v20472_v28 }
0x172c   : > { %v9743_v45 = vpop.permute.xlu0 %9742 }
0x172d   : > { %v9748_v58 = vsel %vm1481_vm1, %v9743_v45, 0 }
0x1730   : > { %v9741_v3 = vpop.permute.xlu0 %9740 }
0x1731   : > { %14232 = vmatmul.mubr.msk.bf16.vlgmr.msra.gmra.mrb[48].mxu1 %vm1481_vm1, %v9486_v62 }
0x1732   : > { %14236 = vmatpush3.bf16.xpose.msra.mxu1 %v9544_v43  ;;  %14237 = vmatprep.mubr.msk.bf16.mxu1 %vm15740_vm0, %v20472_v28 }
0x1733   : > { %14247 = vmatprep.subr.bf16.mxu1 %v20472_v28 }
0x1739   : > { %14238 = vmatmul.mubr.msk.bf16.vlgmr.msra.gmra.mrb[52].mxu1 %vm1481_vm1, %v9537_v50 }
0x173a   : > { %14248 = vmatpush3.bf16.xpose.msra.mxu1 %v9646_v27  ;;  %14249 = vmatprep.mubr.msk.bf16.mxu1 %vm15740_vm0, %v20472_v28 }
0x173b   : > { %14259 = vmatprep.subr.bf16.mxu1 %v20472_v28 }
0x1741   : > { %14250 = vmatmul.mubr.msk.bf16.vlgmr.msra.gmra.mrb[56].mxu1 %vm1481_vm1, %v9639_v8 }
0x1742   : > { %14260 = vmatpush3.bf16.xpose.msra.mxu1 %v9748_v58  ;;  %14261 = vmatprep.mubr.msk.bf16.mxu1 %vm15740_vm0, %v20472_v28 }
0x1743   : > { %14271 = vmatprep.subr.bf16.mxu1 %v20472_v28 }
0x1749   : > { %14262 = vmatmul.mubr.msk.bf16.vlgmr.msra.gmra.mrb[60].mxu1 %vm1481_vm1, %v9741_v3 }
0x174a   : > { %14273 = vmatprep.mubr.msk.bf16.mxu1 %vm15740_vm0, %v20472_v28 }
0x175b   : > { %v8940_v10 = vpop.f32.mrb[24].mxu1 }
0x175c   : > { %v14161_v32 = vpop.f32.mrb[25].mxu1 }
0x175d   : > { %v8893_v13 = vpop.f32.mrb[200].mxu0  ;;  %v8943_v59 = vpop.f32.mrb[26].mxu1 }
0x175e   : > { %v9230_v63 = vpack.c.bf16 %v8943_v59, %v8940_v10  ;;  %v14155_v51 = vpop.f32.mrb[201].mxu0  ;;  %v14162_v37 = vpop.f32.mrb[27].mxu1 }
0x175f   : > { %v8896_v12 = vpop.f32.mrb[202].mxu0  ;;  %v9588_v10 = vpop.permute.xlu1 %9587 }
0x1760   : > { %v9229_v34 = vpack.c.bf16 %v8896_v12, %v8893_v13  ;;  %v14156_v2 = vpop.f32.mrb[203].mxu0 }
0x1762   : > { %14201 = vmatprep.mubr.msk.bf16.mxu0 %vm1481_vm1, %v9229_v34 }
0x1763   : > { %v9034_v31 = vpop.f32.mrb[28].mxu1  ;;  %14202 = vmatmul.mubr.msk.bf16.vlgmr.msra.gmra.mrb[88].mxu0 %vm1481_vm1, %v9230_v63  ;;  %v9692_v63 = vpop.permute.xlu1 %9691 }
0x1764   : > { %14242 = vmatpush3.bf16.xpose.msra.mxu0 %v9595_v26  ;;  %v14173_v44 = vpop.f32.mrb[29].mxu1  ;;  %v9697_v34 = vsel %vm1481_vm1, %v9692_v63, 0 }
0x1765   : > { %v8987_v18 = vpop.f32.mrb[204].mxu0  ;;  %v9037_v53 = vpop.f32.mrb[30].mxu1  ;;  %14253 = vmatprep.subr.bf16.mxu0 %v20472_v28 }
0x1766   : > { %v9232_v6 = vpack.c.bf16 %v9037_v53, %v9034_v31  ;;  %v14167_v48 = vpop.f32.mrb[205].mxu0  ;;  %v14174_v57 = vpop.f32.mrb[31].mxu1 }
0x1767   : > { %v8990_v60 = vpop.f32.mrb[206].mxu0  ;;  %v9690_v53 = vpop.permute.xlu1 %9689 }
0x1768   : > { %v9231_v35 = vpack.c.bf16 %v8990_v60, %v8987_v18  ;;  %v14168_v30 = vpop.f32.mrb[207].mxu0 }
0x176a   : > { %14205 = vmatprep.mubr.msk.bf16.mxu0 %vm1481_vm1, %v9231_v35 }
0x176b   : > { %v9128_v11 = vpop.f32.mrb[32].mxu1  ;;  %14206 = vmatmul.mubr.msk.bf16.gmra.mrb[92].mxu0 %vm1481_vm1, %v9232_v6 }
0x176c   : > { %v14185_v38 = vpop.f32.mrb[33].mxu1 }
0x176d   : > { %v9131_v39 = vpop.f32.mrb[34].mxu1 }
0x176e   : > { %v9234_v54 = vpack.c.bf16 %v9131_v39, %v9128_v11  ;;  %v14186_v19 = vpop.f32.mrb[35].mxu1 }
0x17e7   : > { %v9222_v20 = vpop.f32.mrb[36].mxu1 }
0x17e8   : > { %v14197_v4 = vpop.f32.mrb[37].mxu1 }
0x17e9   : > { %v9081_v40 = vpop.f32.mrb[208].mxu0  ;;  %v9225_v56 = vpop.f32.mrb[38].mxu1 }
0x17ea   : > { %v9236_v21 = vpack.c.bf16 %v9225_v56, %v9222_v20  ;;  %v14179_v16 = vpop.f32.mrb[209].mxu0  ;;  %v14198_v62 = vpop.f32.mrb[39].mxu1 }
0x17eb   : > { %v9084_v15 = vpop.f32.mrb[210].mxu0 }
0x17ec   : > { %v9233_v46 = vpack.c.bf16 %v9084_v15, %v9081_v40  ;;  %v14180_v50 = vpop.f32.mrb[211].mxu0 }
0x17ee   : > { %14209 = vmatprep.mubr.msk.bf16.mxu0 %vm1481_vm1, %v9233_v46 }
0x17ef   : > { %14210 = vmatmul.mubr.msk.bf16.gmra.mrb[96].mxu0 %vm1481_vm1, %v9234_v54 }
0x17f1   : > { %v9175_v47 = vpop.f32.mrb[212].mxu0 }
0x17f2   : > { %v14191_v43 = vpop.f32.mrb[213].mxu0 }
0x17f3   : > { %v9178_v33 = vpop.f32.mrb[214].mxu0 }
0x17f4   : > { %v9235_v8 = vpack.c.bf16 %v9178_v33, %v9175_v47  ;;  %v14192_v27 = vpop.f32.mrb[215].mxu0  ;;  %v18990_v45 = vpop.f32.mrb[40].mxu1 }
0x17f5   : > { %v14221_v58 = vpop.f32.mrb[41].mxu1  ;;  %v9791_v3 = vsel %vm1481_vm1, %v18990_v45, -inf }
0x17f6   : > { %14213 = vmatprep.mubr.msk.bf16.mxu0 %vm1481_vm1, %v9235_v8  ;;  %9792 = vmax.xlane.f32.xlu1 %v9791_v3  ;;  %v9430_v32 = vpop.f32.mrb[42].mxu1 }
0x17f7   : > { %14214 = vmatmul.mubr.msk.bf16.gmra.mrb[100].mxu0 %vm1481_vm1, %v9236_v21  ;;  %v14222_v13 = vpop.f32.mrb[43].mxu1  ;;  %v9794_v59 = vsel %vm1481_vm1, %v9430_v32, -inf }
0x17f8   : > { %9795 = vmax.xlane.f32.xlu0 %v9794_v59  ;;  %14243 = vmatprep.mubr.msk.bf16.mxu0 %vm15740_vm0, %v20472_v28 }
0x17fc   : > { %v9478_v51 = vpop.f32.mrb[44].mxu1 }
0x17fd   : > { %v14227_v37 = vpop.f32.mrb[45].mxu1  ;;  %v9797_v12 = vsel %vm1481_vm1, %v9478_v51, -inf }
0x17fe   : > { %9798 = vmax.xlane.f32.xlu0 %v9797_v12  ;;  %v9481_v29 = vpop.f32.mrb[46].mxu1 }
0x17ff   : > { %v14228_v2 = vpop.f32.mrb[47].mxu1  ;;  %14244 = vmatmul.mubr.msk.bf16.vlgmr.msra.gmra.mrb[216].mxu0 %vm1481_vm1, %v9588_v10  ;;  %v9800_v26 = vsel %vm1481_vm1, %v9481_v29, -inf }
0x1800   : > { %14254 = vmatpush3.bf16.xpose.msra.mxu0 %v9697_v34  ;;  %9801 = vmax.xlane.f32.xlu1 %v9800_v26 }
0x1801   : > { %14255 = vmatprep.mubr.msk.bf16.mxu0 %vm15740_vm0, %v20472_v28  ;;  %14265 = vmatprep.subr.bf16.mxu0 %v20472_v28 }
0x1804   : > { %v9529_v31 = vpop.f32.mrb[48].mxu1 }
0x1805   : > { %v14233_v44 = vpop.f32.mrb[49].mxu1  ;;  %v9803_v18 = vsel %vm1481_vm1, %v9529_v31, -inf }
0x1806   : > { %9804 = vmax.xlane.f32.xlu0 %v9803_v18  ;;  %v9532_v6 = vpop.f32.mrb[50].mxu1 }
0x1807   : > { %v14234_v48 = vpop.f32.mrb[51].mxu1  ;;  %14256 = vmatmul.mubr.msk.bf16.vlgmr.msra.gmra.mrb[220].mxu0 %vm1481_vm1, %v9690_v53  ;;  %v9806_v57 = vsel %vm1481_vm1, %v9532_v6, -inf }
0x1808   : > { %9807 = vmax.xlane.f32.xlu1 %v9806_v57  ;;  %14267 = vmatprep.mubr.msk.bf16.mxu0 %vm15740_vm0, %v20472_v28 }
0x180c   : > { %v9580_v60 = vpop.f32.mrb[52].mxu1 }
0x180d   : > { %v14239_v35 = vpop.f32.mrb[53].mxu1  ;;  %v9809_v30 = vsel %vm1481_vm1, %v9580_v60, -inf }
0x180e   : > { %9810 = vmax.xlane.f32.xlu0 %v9809_v30  ;;  %v9583_v11 = vpop.f32.mrb[54].mxu1 }
0x180f   : > { %v14240_v38 = vpop.f32.mrb[55].mxu1  ;;  %v9812_v39 = vsel %vm1481_vm1, %v9583_v11, -inf }
0x1810   : > { %9813 = vmax.xlane.f32.xlu1 %v9812_v39 }
0x1814   : > { %v19013_v54 = vpop.f32.mrb[56].mxu1 }
0x1815   : > { %v14251_v19 = vpop.f32.mrb[57].mxu1  ;;  %v9821_v20 = vsel %vm1481_vm1, %v19013_v54, -inf }
0x1816   : > { %9822 = vmax.xlane.f32.xlu0 %v9821_v20  ;;  %v19017_v4 = vpop.f32.mrb[58].mxu1 }
0x1817   : > { %v14252_v40 = vpop.f32.mrb[59].mxu1  ;;  %v9824_v56 = vsel %vm1481_vm1, %v19017_v4, -inf }
0x1818   : > { %9825 = vmax.xlane.f32.xlu1 %v9824_v56 }
0x181c   : > { %v19021_v21 = vpop.f32.mrb[60].mxu1 }
0x181d   : > { %v14263_v16 = vpop.f32.mrb[61].mxu1  ;;  %v9833_v62 = vsel %vm1481_vm1, %v19021_v21, -inf }
0x181e   : > { %9834 = vmax.xlane.f32.xlu0 %v9833_v62  ;;  %v19025_v15 = vpop.f32.mrb[62].mxu1 }
0x181f   : > { %v14264_v46 = vpop.f32.mrb[63].mxu1  ;;  %v9836_v50 = vsel %vm1481_vm1, %v19025_v15, -inf }
0x1820   : > { %9837 = vmax.xlane.f32.xlu1 %v9836_v50  ;;  %v20578_v50 = vld [vmem:[#allocation33_spill] sm:$0xff] }
0x1883   : > { %v9793_v47 = vpop.xlane.xlu1 %9792 }
0x1884   : > { %v9839_v43 = vsub.f32 %v18990_v45, %v9793_v47  ;;  %v20579_v47 = vld [vmem:[#allocation34_spill] sm:$0xff] }
0x1885   : > { %v9796_v33 = vpop.xlane.xlu0 %9795 }
0x1886   : > { %v9855_v8 = vmul.f32 1.442695, %v9839_v43  ;;  %v9840_v27 = vsub.f32 %v9430_v32, %v9796_v33 }
0x1888   : > { %15168 = vpow2.f32 %v9855_v8  ;;  %v9857_v58 = vmul.f32 1.442695, %v9840_v27 }
0x188a   : > { %15170 = vpow2.f32 %v9857_v58 }
0x188b   : > { %v9799_v3 = vpop.xlane.xlu0 %9798 }
0x188c   : > { %v9841_v10 = vsub.f32 %v9478_v51, %v9799_v3 }
0x188d   : > { %v9802_v13 = vpop.xlane.xlu1 %9801 }
0x188e   : > { %v9859_v59 = vmul.f32 1.442695, %v9841_v10  ;;  %v9842_v63 = vsub.f32 %v9481_v29, %v9802_v13 }
0x1890   : > { %15172 = vpow2.f32 %v9859_v59  ;;  %v9861_v37 = vmul.f32 1.442695, %v9842_v63 }
0x1892   : > { %v19030_v12 = vpop.eup %15168  ;;  %15174 = vpow2.f32 %v9861_v37 }
0x1893   : > { %v9805_v34 = vpop.xlane.xlu0 %9804  ;;  %v9887_v45 = vsel %vm1481_vm1, %v19030_v12, 0.0 }
0x1894   : > { %v19034_v2 = vpop.eup %15170  ;;  %v9843_v32 = vsub.f32 %v9529_v31, %v9805_v34  ;;  %9888 = vadd.xlane.f32.xlu0 %v9887_v45 }
0x1895   : > { %v9808_v26 = vpop.xlane.xlu1 %9807  ;;  %v9890_v51 = vsel %vm1481_vm1, %v19034_v2, 0.0 }
0x1896   : > { %v9863_v44 = vmul.f32 1.442695, %v9843_v32  ;;  %v9844_v18 = vsub.f32 %v9532_v6, %v9808_v26  ;;  %9891 = vadd.xlane.f32.xlu1 %v9890_v51 }
0x1898   : > { %15176 = vpow2.f32 %v9863_v44  ;;  %v9865_v29 = vmul.f32 1.442695, %v9844_v18 }
0x189a   : > { %v19038_v53 = vpop.eup %15172  ;;  %15178 = vpow2.f32 %v9865_v29 }
0x189b   : > { %v9811_v48 = vpop.xlane.xlu0 %9810  ;;  %v9893_v57 = vsel %vm1481_vm1, %v19038_v53, 0.0 }
0x189c   : > { %v19042_v35 = vpop.eup %15174  ;;  %v9845_v31 = vsub.f32 %v9580_v60, %v9811_v48  ;;  %9894 = vadd.xlane.f32.xlu0 %v9893_v57  ;;  %v20580_v57 = vld [vmem:[#allocation37_spill] sm:$0xff] }
0x189d   : > { %v9814_v30 = vpop.xlane.xlu1 %9813  ;;  %v9896_v38 = vsel %vm1481_vm1, %v19042_v35, 0.0 }
0x189e   : > { %v9867_v39 = vmul.f32 1.442695, %v9845_v31  ;;  %v9846_v6 = vsub.f32 %v9583_v11, %v9814_v30  ;;  %9897 = vadd.xlane.f32.xlu1 %v9896_v38  ;;  %v20581_v31 = vld [vmem:[#allocation38_spill] sm:$0xff] }
0x18a0   : > { %15180 = vpow2.f32 %v9867_v39  ;;  %v9869_v19 = vmul.f32 1.442695, %v9846_v6 }
0x18a2   : > { %v19046_v20 = vpop.eup %15176  ;;  %15182 = vpow2.f32 %v9869_v19 }
0x18a3   : > { %v9899_v40 = vsel %vm1481_vm1, %v19046_v20, 0.0  ;;  %v9823_v43 = vpop.xlane.xlu0 %9822 }
0x18a4   : > { %v19050_v56 = vpop.eup %15178  ;;  %9900 = vadd.xlane.f32.xlu0 %v9899_v40  ;;  %v9849_v8 = vsub.f32 %v19013_v54, %v9823_v43  ;;  %v20582_v43 = vld [vmem:[#allocation57_spill] sm:$0xff] }
0x18a5   : > { %v9902_v60 = vsel %vm1481_vm1, %v19050_v56, 0.0  ;;  %v9826_v33 = vpop.xlane.xlu1 %9825 }
0x18a6   : > { %9903 = vadd.xlane.f32.xlu1 %v9902_v60  ;;  %v9850_v27 = vsub.f32 %v19017_v4, %v9826_v33  ;;  %v9875_v58 = vmul.f32 1.442695, %v9849_v8  ;;  %v20583_v33 = vld [vmem:[#allocation71_spill] sm:$0xff] }
0x18a7   : > { %v6554_v8 = vadd.f32 %v20583_v33, %v20582_v43 }
0x18a8   : > { %v9877_v3 = vmul.f32 1.442695, %v9850_v27  ;;  %15184 = vpow2.f32 %v9875_v58 }
0x18aa   : > { %v19054_v16 = vpop.eup %15180  ;;  %15186 = vpow2.f32 %v9877_v3  ;;  %v20584_v3 = vld [vmem:[#allocation31_spill] sm:$0xff] }
0x18ab   : > { %v9905_v11 = vsel %vm1481_vm1, %v19054_v16, 0.0  ;;  %v9835_v30 = vpop.xlane.xlu0 %9834 }
0x18ac   : > { %v19058_v62 = vpop.eup %15182  ;;  %9906 = vadd.xlane.f32.xlu0 %v9905_v11  ;;  %v9853_v39 = vsub.f32 %v19021_v21, %v9835_v30 }
0x18ad   : > { %v9908_v46 = vsel %vm1481_vm1, %v19058_v62, 0.0  ;;  %v9838_v38 = vpop.xlane.xlu1 %9837 }
0x18ae   : > { %9909 = vadd.xlane.f32.xlu1 %v9908_v46  ;;  %v9854_v6 = vsub.f32 %v19025_v15, %v9838_v38  ;;  %v9883_v19 = vmul.f32 1.442695, %v9853_v39 }
0x18b0   : > { %v9885_v40 = vmul.f32 1.442695, %v9854_v6  ;;  %15188 = vpow2.f32 %v9883_v19 }
0x18b2   : > { %v19076_v32 = vpop.eup %15184  ;;  %15190 = vpow2.f32 %v9885_v40 }
0x18b3   : > { %v9917_v4 = vsel %vm1481_vm1, %v19076_v32, 0.0 }
0x18b4   : > { %v19078_v26 = vpop.eup %15186 }
0x18b5   : > { %v9920_v51 = vsel %vm1481_vm1, %v19078_v26, 0.0 }
0x18ba   : > { %v19098_v60 = vpop.eup %15188 }
0x18bb   : > { %v9929_v46 = vsel %vm1481_vm1, %v19098_v60, 0.0 }
0x18bc   : > { %v19100_v11 = vpop.eup %15190 }
0x18bf   : > { %10038 = vrot.lane.b32.xlu1 %v20578_v50, %s15747_s9  ;;  %v9932_v50 = vsel %vm1481_vm1, %v19100_v11, 0.0 }
0x18c2   : > { %9991 = vrot.lane.b32.xlu0 %v20579_v47, %s15747_s9 }
0x18d2   : > { %v19068_v10 = vpop.f32.mrb[216].mxu0 }
0x18d3   : > { %v14245_v13 = vpop.f32.mrb[217].mxu0  ;;  %v9815_v44 = vsel %vm1481_vm1, %v19068_v10, -inf }
0x18d4   : > { %v19070_v59 = vpop.f32.mrb[218].mxu0  ;;  %v7692_v13 = vadd.f32 %v20584_v3, %v6554_v8 }
0x18d5   : > { %v14246_v63 = vpop.f32.mrb[219].mxu0  ;;  %v9818_v18 = vsel %vm1481_vm1, %v19070_v59, -inf }
0x18da   : > { %v19072_v37 = vpop.f32.mrb[220].mxu0 }
0x18db   : > { %v14257_v34 = vpop.f32.mrb[221].mxu0  ;;  %v9827_v29 = vsel %vm1481_vm1, %v19072_v37, -inf }
0x18dc   : > { %v19074_v45 = vpop.f32.mrb[222].mxu0 }
0x18dd   : > { %v14258_v54 = vpop.f32.mrb[223].mxu0  ;;  %v9830_v48 = vsel %vm1481_vm1, %v19074_v45, -inf }
0x18de   : > { %v8830_v54 = vadd.f32 %v18843_v23, %v7692_v13 }
0x18e1   : > { %9918 = vadd.xlane.f32.xlu0 %v9917_v4 }
0x18e3   : > { %9921 = vadd.xlane.f32.xlu1 %v9920_v51 }
0x18e5   : > { %9816 = vmax.xlane.f32.xlu0 %v9815_v44 }
0x18e7   : > { %9819 = vmax.xlane.f32.xlu1 %v9818_v18 }
0x18e9   : > { %9828 = vmax.xlane.f32.xlu0 %v9827_v29 }
0x18eb   : > { %9831 = vmax.xlane.f32.xlu1 %v9830_v48 }
0x18fc   : > { %10132 = vrot.lane.b32.xlu1 %v20580_v57, %s15747_s9 }
0x18ff   : > { %10085 = vrot.lane.b32.xlu0 %v20581_v31, %s15747_s9 }
0x191e   : > { %9930 = vadd.xlane.f32.xlu0 %v9929_v46 }
0x1920   : > { %9933 = vadd.xlane.f32.xlu1 %v9932_v50 }
0x1921   : > { %v9889_v47 = vpop.xlane.xlu0 %9888 }
0x1922   : > { %15192 = vrcp.f32 %v9889_v47 }
0x1923   : > { %v9892_v21 = vpop.xlane.xlu1 %9891 }
0x1924   : > { %15194 = vrcp.f32 %v9892_v21 }
0x1929   : > { %v9895_v15 = vpop.xlane.xlu0 %9894 }
0x192a   : > { %15196 = vrcp.f32 %v9895_v15 }
0x192b   : > { %v9898_v27 = vpop.xlane.xlu1 %9897 }
0x192c   : > { %v15193_v58 = vpop.eup %15192  ;;  %15198 = vrcp.f32 %v9898_v27 }
0x192d   : > { %v9951_v63 = vmul.f32 %v15193_v58, %v19030_v12 }
0x192e   : > { %v15195_v34 = vpop.eup %15194 }
0x192f   : > { %v9967_v4 = vadd.f32 %v9951_v63, %v18815_v17  ;;  %v9952_v51 = vmul.f32 %v15195_v34, %v19034_v2 }
0x1931   : > { %v10521_v44 = vmul.f32 0.125, %v9967_v4  ;;  %v9968_v18 = vadd.f32 %v9952_v51, %v8830_v54  ;;  %v9901_v29 = vpop.xlane.xlu0 %9900  ;;  %v9983_v47 = vpack.c.bf16 %v9952_v51, %v9951_v63 }
0x1932   : > { %15200 = vrcp.f32 %v9901_v29 }
0x1933   : > { %10537 = vst.msk [vmem:[%s19114_s27] sm:$0xff] %vm1481_vm1, %v10521_v44  ;;  %v10522_v48 = vmul.f32 0.125, %v9968_v18  ;;  %v9904_v12 = vpop.xlane.xlu1 %9903 }
0x1934   : > { %v15197_v57 = vpop.eup %15196  ;;  %15202 = vrcp.f32 %v9904_v12 }
0x1935   : > { %10538 = vst.msk [vmem:[%s19114_s27 + $0x8] sm:$0xff] %vm1481_vm1, %v10522_v48  ;;  %v9953_v17 = vmul.f32 %v15197_v57, %v19038_v53 }
0x1936   : > { %v15199_v23 = vpop.eup %15198 }
0x1937   : > { %v9969_v2 = vadd.f32 %v9953_v17, %v18831_v41  ;;  %v9954_v31 = vmul.f32 %v15199_v23, %v19042_v35 }
0x1939   : > { %v10523_v30 = vmul.f32 0.125, %v9969_v2  ;;  %v9970_v38 = vadd.f32 %v9954_v31, %v18819_v49  ;;  %v9907_v39 = vpop.xlane.xlu0 %9906  ;;  %v9984_v21 = vpack.c.bf16 %v9954_v31, %v9953_v17 }
0x193a   : > { %15204 = vrcp.f32 %v9907_v39  ;;  %v20586_v39 = vld [vmem:[#allocation42_spill] sm:$0xff] }
0x193b   : > { %10539 = vst.msk [vmem:[%s19114_s27 + $0x10] sm:$0xff] %vm1481_vm1, %v10523_v30  ;;  %v10524_v6 = vmul.f32 0.125, %v9970_v38  ;;  %v9910_v19 = vpop.xlane.xlu1 %9909  ;;  %v20585_v38 = vld [vmem:[#allocation41_spill] sm:$0xff] }
0x193c   : > { %v15201_v40 = vpop.eup %15200  ;;  %15206 = vrcp.f32 %v9910_v19 }
0x193d   : > { %10540 = vst.msk [vmem:[%s19114_s27 + $0x18] sm:$0xff] %vm1481_vm1, %v10524_v6  ;;  %v9955_v53 = vmul.f32 %v15201_v40, %v19046_v20  ;;  %v9992_v46 = vpop.permute.xlu0 %9991 }
0x193e   : > { %v15203_v41 = vpop.eup %15202  ;;  %14266 = vmatpush3.bf16.msra.mxu0 %v9992_v46 }
0x193f   : > { %v9971_v35 = vadd.f32 %v9955_v53, %v18839_v24  ;;  %v9956_v49 = vmul.f32 %v15203_v41, %v19050_v56  ;;  %v10039_v50 = vpop.permute.xlu1 %10038  ;;  %14277 = vmatprep.subr.bf16.mxu0 %v20472_v28 }
0x1940   : > { %14272 = vmatpush3.bf16.msra.mxu1 %v10039_v50 }
0x1941   : > { %v10525_v15 = vmul.f32 0.125, %v9971_v35  ;;  %v9972_v43 = vadd.f32 %v9956_v49, %v18836_v42  ;;  %14268 = vmatmul.mubr.msk.bf16.vlgmr.msra.gmra.mrb[224].mxu0 %vm1481_vm1, %v9983_v47  ;;  %14283 = vmatprep.subr.bf16.mxu1 %v20472_v28  ;;  %v9985_v57 = vpack.c.bf16 %v9956_v49, %v9955_v53 }
0x1942   : > { %14279 = vmatprep.mubr.msk.bf16.mxu0 %vm15740_vm0, %v20472_v28 }
0x1943   : > { %10541 = vst.msk [vmem:[%s19114_s27 + $0x20] sm:$0xff] %vm1481_vm1, %v10525_v15  ;;  %v10526_v24 = vmul.f32 0.125, %v9972_v43  ;;  %14274 = vmatmul.mubr.msk.bf16.vlgmr.msra.gmra.mrb[64].mxu1 %vm1481_vm1, %v9984_v21 }
0x1944   : > { %v15205_v20 = vpop.eup %15204  ;;  %14285 = vmatprep.mubr.msk.bf16.mxu1 %vm15740_vm0, %v20472_v28 }
0x1945   : > { %10542 = vst.msk [vmem:[%s19114_s27 + $0x28] sm:$0xff] %vm1481_vm1, %v10526_v24  ;;  %v9957_v42 = vmul.f32 %v15205_v20, %v19054_v16 }
0x1946   : > { %v15207_v56 = vpop.eup %15206 }
0x1947   : > { %v9973_v33 = vadd.f32 %v9957_v42, %v18851_v14  ;;  %v9958_v8 = vmul.f32 %v15207_v56, %v19058_v62 }
0x1949   : > { %v10527_v27 = vmul.f32 0.125, %v9973_v33  ;;  %v9974_v58 = vadd.f32 %v9958_v8, %v18846_v0  ;;  %v9986_v17 = vpack.c.bf16 %v9958_v8, %v9957_v42 }
0x194b   : > { %10543 = vst.msk [vmem:[%s19114_s27 + $0x30] sm:$0xff] %vm1481_vm1, %v10527_v27  ;;  %v10528_v3 = vmul.f32 0.125, %v9974_v58 }
0x194d   : > { %10544 = vst.msk [vmem:[%s19114_s27 + $0x38] sm:$0xff] %vm1481_vm1, %v10528_v3 }
0x196e   : > { %v9919_v13 = vpop.xlane.xlu0 %9918 }
0x196f   : > { %15208 = vrcp.f32 %v9919_v13 }
0x1970   : > { %v9922_v63 = vpop.xlane.xlu1 %9921 }
0x1971   : > { %15210 = vrcp.f32 %v9922_v63 }
0x1972   : > { %v9817_v34 = vpop.xlane.xlu0 %9816 }
0x1973   : > { %v9847_v16 = vsub.f32 %v19068_v10, %v9817_v34 }
0x1974   : > { %v9820_v54 = vpop.xlane.xlu1 %9819 }
0x1975   : > { %v9871_v4 = vmul.f32 1.442695, %v9847_v16  ;;  %v9848_v14 = vsub.f32 %v19070_v59, %v9820_v54 }
0x1976   : > { %v9829_v62 = vpop.xlane.xlu0 %9828 }
0x1977   : > { %15212 = vpow2.f32 %v9871_v4  ;;  %v9873_v51 = vmul.f32 1.442695, %v9848_v14  ;;  %v9851_v6 = vsub.f32 %v19072_v37, %v9829_v62 }
0x1978   : > { %v9832_v0 = vpop.xlane.xlu1 %9831 }
0x1979   : > { %v15209_v44 = vpop.eup %15208  ;;  %15214 = vpow2.f32 %v9873_v51  ;;  %v9852_v19 = vsub.f32 %v19074_v45, %v9832_v0  ;;  %v9879_v40 = vmul.f32 1.442695, %v9851_v6 }
0x197a   : > { %v19155_v18 = vmul.f32 %v15209_v44, %v19076_v32  ;;  %v10086_v29 = vpop.permute.xlu0 %10085 }
0x197b   : > { %v15211_v48 = vpop.eup %15210  ;;  %14278 = vmatpush3.bf16.msra.mxu0 %v10086_v29  ;;  %v9881_v53 = vmul.f32 1.442695, %v9852_v19  ;;  %15216 = vpow2.f32 %v9879_v40 }
0x197c   : > { %v9977_v10 = vadd.f32 %v19155_v18, %v18866_v61  ;;  %v19160_v12 = vmul.f32 %v15211_v48, %v19078_v26  ;;  %v10133_v59 = vpop.permute.xlu1 %10132  ;;  %14289 = vmatprep.subr.bf16.mxu0 %v20472_v28 }
0x197d   : > { %14284 = vmatpush3.bf16.msra.mxu1 %v10133_v59  ;;  %15218 = vpow2.f32 %v9881_v53  ;;  %v20587_v59 = vmov 0  }
0x197e   : > { %v10531_v23 = vmul.f32 0.125, %v9977_v10  ;;  %v9978_v32 = vadd.f32 %v19160_v12, %v18861_v52  ;;  %v9988_v2 = vpack.c.bf16 %v19160_v12, %v19155_v18  ;;  %14280 = vmatmul.mubr.msk.bf16.vlgmr.msra.gmra.mrb[228].mxu0 %vm1481_vm1, %v9985_v57  ;;  %14295 = vmatprep.subr.bf16.mxu1 %v20472_v28  ;;  %v14607_v10 = vld [vmem:[#allocation10 + $0x38] sm:$0xff]  }
0x197f   : > { %14291 = vmatprep.mubr.msk.bf16.mxu0 %vm15740_vm0, %v20472_v28 }
0x1980   : > { %10547 = vst.msk [vmem:[%s19114_s27 + $0x50] sm:$0xff] %vm1481_vm1, %v10531_v23  ;;  %v10532_v61 = vmul.f32 0.125, %v9978_v32  ;;  %14286 = vmatmul.mubr.msk.bf16.vlgmr.msra.gmra.mrb[68].mxu1 %vm1481_vm1, %v9986_v17 }
0x1981   : > { %v15213_v26 = vpop.eup %15212  ;;  %14297 = vmatprep.mubr.msk.bf16.mxu1 %vm15740_vm0, %v20472_v28 }
0x1982   : > { %10548 = vst.msk [vmem:[%s19114_s27 + $0x58] sm:$0xff] %vm1481_vm1, %v10532_v61  ;;  %v9911_v52 = vsel %vm1481_vm1, %v15213_v26, 0.0 }
0x1983   : > { %v15215_v31 = vpop.eup %15214  ;;  %9912 = vadd.xlane.f32.xlu1 %v9911_v52 }
0x1984   : > { %v9914_v30 = vsel %vm1481_vm1, %v15215_v31, 0.0 }
0x1985   : > { %9915 = vadd.xlane.f32.xlu0 %v9914_v30  ;;  %v19186_v35 = vpop.eup %15216 }
0x1986   : > { %v9923_v37 = vsel %vm1481_vm1, %v19186_v35, 0.0 }
0x1987   : > { %v19188_v49 = vpop.eup %15218 }
0x1988   : > { %v9926_v43 = vsel %vm1481_vm1, %v19188_v49, 0.0 }
0x1994   : > { %10226 = vrot.lane.b32.xlu1 %v20585_v38, %s15747_s9 }
0x199b   : > { %10179 = vrot.lane.b32.xlu0 %v20586_v39, %s15747_s9 }
0x19ab   : > { %v9931_v46 = vpop.xlane.xlu0 %9930 }
0x19ac   : > { %15220 = vrcp.f32 %v9931_v46 }
0x19ad   : > { %v9934_v41 = vpop.xlane.xlu1 %9933 }
0x19ae   : > { %15222 = vrcp.f32 %v9934_v41 }
0x19b6   : > { %v15221_v50 = vpop.eup %15220 }
0x19b7   : > { %v9965_v47 = vmul.f32 %v15221_v50, %v19098_v60 }
0x19b8   : > { %v15223_v45 = vpop.eup %15222  ;;  %9924 = vadd.xlane.f32.xlu1 %v9923_v37 }
0x19b9   : > { %v9981_v21 = vadd.f32 %v9965_v47, %v18878_v7  ;;  %v9966_v15 = vmul.f32 %v15223_v45, %v19100_v11 }
0x19ba   : > { %9927 = vadd.xlane.f32.xlu0 %v9926_v43 }
0x19bb   : > { %v10535_v24 = vmul.f32 0.125, %v9981_v21  ;;  %v9982_v20 = vadd.f32 %v9966_v15, %v18874_v25  ;;  %v9990_v42 = vpack.c.bf16 %v9966_v15, %v9965_v47 }
0x19bd   : > { %10551 = vst.msk [vmem:[%s19114_s27 + $0x70] sm:$0xff] %vm1481_vm1, %v10535_v24  ;;  %v10536_v60 = vmul.f32 0.125, %v9982_v20 }
0x19bf   : > { %10552 = vst.msk [vmem:[%s19114_s27 + $0x78] sm:$0xff] %vm1481_vm1, %v10536_v60 }
0x19c9   : > { %10273 = vrot.lane.b32.xlu1 %v16463_v5, %s15747_s9 }
0x19d0   : > { %10320 = vrot.lane.b32.xlu0 %v16459_v1, %s15747_s9  ;;  %s20628_s9 = sld [smem:[#allocation89_spill]] }
0x19d6   : > { %s20122_s25 = scalar_lea.hbm %s20628_s9, %s12912_s29 }
0x1a10   : > { %v9913_v7 = vpop.xlane.xlu1 %9912 }
0x1a11   : > { %15224 = vrcp.f32 %v9913_v7 }
0x1a12   : > { %v9916_v11 = vpop.xlane.xlu0 %9915 }
0x1a13   : > { %15226 = vrcp.f32 %v9916_v11 }
0x1a14   : > { %v19206_v56 = vpop.f32.mrb[224].mxu0  ;;  %v10227_v33 = vpop.permute.xlu1 %10226 }
0x1a15   : > { %v14269_v25 = vpop.f32.mrb[225].mxu0  ;;  %14296 = vmatpush3.bf16.msra.mxu1 %v10227_v33 }
0x1a16   : > { %v10034_v8 = vpop.f32.mrb[226].mxu0  ;;  %v10180_v27 = vpop.permute.xlu0 %10179  ;;  %14307 = vmatprep.subr.bf16.mxu1 %v20472_v28  ;;  %v19245_v25 = vld [vmem:[%s20588_s22] ss:$0 sm:$0xff]  ;;  %s12365_s22 = scalar_lea.sflag [#allocation16], %s16111_s18 }
0x1a17   : > { %v10367_v58 = vpack.c.bf16 %v10034_v8, %v19206_v56  ;;  %v10078_v3 = vpop.f32.mrb[64].mxu1  ;;  %v14270_v5 = vpop.f32.mrb[227].mxu0  ;;  %14290 = vmatpush3.bf16.msra.mxu0 %v10180_v27 }
0x1a18   : > { %v14275_v1 = vpop.f32.mrb[65].mxu1  ;;  %14298 = vmatmul.mubr.msk.bf16.vlgmr.msra.gmra.mrb[72].mxu1 %vm1481_vm1, %v9988_v2  ;;  %14301 = vmatprep.subr.bf16.mxu0 %v20472_v28 }
0x1a19   : > { %v10081_v13 = vpop.f32.mrb[66].mxu1  ;;  %14309 = vmatprep.mubr.msk.bf16.mxu1 %vm15740_vm0, %v20472_v28  ;;  %v15392_v1 = vld [vmem:[%s16132_s14] sm:$0xff] }
0x1a1a   : > { %v10368_v63 = vpack.c.bf16 %v10081_v13, %v10078_v3  ;;  %v14276_v34 = vpop.f32.mrb[67].mxu1 }
0x1a1b   : > { %v15225_v16 = vpop.eup %15224 }
0x1a1c   : > { %v9959_v54 = vmul.f32 %v15225_v16, %v15213_v26 }
0x1a1d   : > { %v15227_v4 = vpop.eup %15226 }
0x1a1e   : > { %v9975_v14 = vadd.f32 %v9959_v54, %v18929_v9  ;;  %v9960_v62 = vmul.f32 %v15227_v4, %v15215_v31 }
0x1a20   : > { %v10529_v51 = vmul.f32 0.125, %v9975_v14  ;;  %v9976_v0 = vadd.f32 %v9960_v62, %v18934_v55  ;;  %v9987_v44 = vpack.c.bf16 %v9960_v62, %v9959_v54  ;;  %v15393_v54 = vld [vmem:[%s16132_s14 + $0x8] sm:$0xff]  ;;  %v15394_v14 = vld [vmem:[%s16132_s14 + $0x18] sm:$0xff] }
0x1a22   : > { %10545 = vst.msk [vmem:[%s19114_s27 + $0x40] sm:$0xff] %vm1481_vm1, %v10529_v51  ;;  %v10530_v18 = vmul.f32 0.125, %v9976_v0  ;;  %14292 = vmatmul.mubr.msk.bf16.vlgmr.msra.gmra.mrb[232].mxu0 %vm1481_vm1, %v9987_v44  ;;  %v15395_v44 = vld [vmem:[%s16132_s14 + $0x10] sm:$0xff] }
0x1a23   : > { %14303 = vmatprep.mubr.msk.bf16.mxu0 %vm15740_vm0, %v20472_v28 }
0x1a24   : > { %10546 = vst.msk [vmem:[%s19114_s27 + $0x48] sm:$0xff] %vm1481_vm1, %v10530_v18 }
0x1a45   : > { %v9925_v29 = vpop.xlane.xlu1 %9924 }
0x1a46   : > { %15228 = vrcp.f32 %v9925_v29 }
0x1a47   : > { %v9928_v48 = vpop.xlane.xlu0 %9927 }
0x1a48   : > { %15230 = vrcp.f32 %v9928_v48 }
0x1a49   : > { %v10274_v9 = vpop.permute.xlu1 %10273 }
0x1a4a   : > { %14302 = vmatpush3.bf16.msra.mxu0 %v10274_v9 }
0x1a4b   : > { %v10321_v12 = vpop.permute.xlu0 %10320  ;;  %14313 = vmatprep.subr.bf16.mxu0 %v14607_v10 }
0x1a4c   : > { %14308 = vmatpush3.bf16.msra.mxu1 %v10321_v12 }
0x1a4f   : > { %14310 = vmatmul.mubr.msk.bf16.vlgmr.msra.gmra.mrb[76].mxu1 %vm1481_vm1, %v9990_v42 }
0x1a50   : > { %v15229_v55 = vpop.eup %15228  ;;  %11068 = vmatprep.mubr.bf16.mxu1 %v20587_v59 }
0x1a51   : > { %v9963_v57 = vmul.f32 %v15229_v55, %v19186_v35  ;;  %v10125_v28 = vpop.f32.mrb[228].mxu0  ;;  %v15396_v55 = vld [vmem:[%s16132_s14 + $0x20] sm:$0xff] }
0x1a52   : > { %v15231_v17 = vpop.eup %15230  ;;  %v14281_v23 = vpop.f32.mrb[229].mxu0 }
0x1a53   : > { %v9979_v32 = vadd.f32 %v9963_v57, %v18945_v22  ;;  %v9964_v2 = vmul.f32 %v15231_v17, %v19188_v49  ;;  %v10128_v61 = vpop.f32.mrb[230].mxu0  ;;  %v10172_v26 = vpop.f32.mrb[68].mxu1  ;;  %v15397_v17 = vld [vmem:[%s16132_s14 + $0x28] sm:$0xff] }
0x1a54   : > { %v10369_v52 = vpack.c.bf16 %v10128_v61, %v10125_v28  ;;  %v14282_v31 = vpop.f32.mrb[231].mxu0  ;;  %v14287_v30 = vpop.f32.mrb[69].mxu1  ;;  %v15399_v61 = vld [vmem:[%s16132_s14 + $0x38] sm:$0xff] }
0x1a55   : > { %v10533_v38 = vmul.f32 0.125, %v9979_v32  ;;  %v9980_v39 = vadd.f32 %v9964_v2, %v18950_v36  ;;  %v10175_v6 = vpop.f32.mrb[70].mxu1  ;;  %v9989_v19 = vpack.c.bf16 %v9964_v2, %v9963_v57  ;;  %v15398_v32 = vld [vmem:[%s16132_s14 + $0x30] sm:$0xff] }
0x1a56   : > { %v10370_v40 = vpack.c.bf16 %v10175_v6, %v10172_v26  ;;  %v14288_v53 = vpop.f32.mrb[71].mxu1 }
0x1a57   : > { %10549 = vst.msk [vmem:[%s19114_s27 + $0x60] sm:$0xff] %vm1481_vm1, %v10533_v38  ;;  %v10534_v46 = vmul.f32 0.125, %v9980_v39  ;;  %14304 = vmatmul.mubr.msk.bf16.vlgmr.msra.gmra.mrb[236].mxu0 %vm1481_vm1, %v9989_v19  ;;  %v15400_v19 = vld [vmem:[%s16132_s14 + $0x40] sm:$0xff] }
0x1a58   : > { %14315 = vmatprep.mubr.msk.bf16.mxu0 %vm1481_vm1, %v10367_v58  ;;  %14314 = vmatpush3.bf16.msra.mxu0 %v14607_v10 }
0x1a59   : > { %10550 = vst.msk [vmem:[%s19114_s27 + $0x68] sm:$0xff] %vm1481_vm1, %v10534_v46 }
0x1a5f   : > { %14316 = vmatmul.mubr.msk.bf16.vlgmr.msra.gmra.mrb[88].mxu0 %vm1481_vm1, %v10368_v63 }
0x1a60   : > { %14319 = vmatprep.mubr.msk.bf16.mxu0 %vm1481_vm1, %v10369_v52 }
0x1a67   : > { %14320 = vmatmul.mubr.msk.bf16.gmra.mrb[92].mxu0 %vm1481_vm1, %v10370_v40 }
0x1aeb   : > { %v10266_v22 = vpop.f32.mrb[72].mxu1 }
0x1aec   : > { %v14299_v36 = vpop.f32.mrb[73].mxu1 }
0x1aed   : > { %v10269_v41 = vpop.f32.mrb[74].mxu1 }
0x1aee   : > { %v10372_v35 = vpack.c.bf16 %v10269_v41, %v10266_v22  ;;  %v14300_v49 = vpop.f32.mrb[75].mxu1  ;;  %v15401_v22 = vld [vmem:[%s16132_s14 + $0x48] sm:$0xff]  ;;  %v15402_v41 = vld [vmem:[%s16132_s14 + $0x50] sm:$0xff] }
0x1aef   : > { %v15403_v49 = vld [vmem:[%s16132_s14 + $0x58] sm:$0xff] }
0x1af5   : > { %v10219_v50 = vpop.f32.mrb[232].mxu0 }
0x1af6   : > { %v14293_v47 = vpop.f32.mrb[233].mxu0 }
0x1af7   : > { %v10222_v37 = vpop.f32.mrb[234].mxu0 }
0x1af8   : > { %v10371_v45 = vpack.c.bf16 %v10222_v37, %v10219_v50  ;;  %v14294_v21 = vpop.f32.mrb[235].mxu0 }
0x1afa   : > { %14323 = vmatprep.mubr.msk.bf16.mxu0 %vm1481_vm1, %v10371_v45 }
0x1afb   : > { %14324 = vmatmul.mubr.msk.bf16.gmra.mrb[96].mxu0 %vm1481_vm1, %v10372_v35 }
0x1b22   : > { %v10360_v15 = vpop.f32.mrb[76].mxu1 }
0x1b23   : > { %v14311_v43 = vpop.f32.mrb[77].mxu1 }
0x1b24   : > { %v10363_v24 = vpop.f32.mrb[78].mxu1 }
0x1b25   : > { %v10374_v20 = vpack.c.bf16 %v10363_v24, %v10360_v15  ;;  %v14312_v42 = vpop.f32.mrb[79].mxu1 }
0x1b2a   : > { %v10313_v60 = vpop.f32.mrb[236].mxu0 }
0x1b2b   : > { %v14305_v7 = vpop.f32.mrb[237].mxu0 }
0x1b2c   : > { %v10316_v11 = vpop.f32.mrb[238].mxu0  ;;  %v15404_v7 = vld [vmem:[%s16132_s14 + $0x60] sm:$0xff] }
0x1b2d   : > { %v10373_v56 = vpack.c.bf16 %v10316_v11, %v10313_v60  ;;  %v14306_v33 = vpop.f32.mrb[239].mxu0 }
0x1b2f   : > { %14327 = vmatprep.mubr.msk.bf16.mxu0 %vm1481_vm1, %v10373_v56 }
0x1b30   : > { %14328 = vmatmul.mubr.msk.bf16.gmra.mrb[100].mxu0 %vm1481_vm1, %v10374_v20 }
0x1b31   : > { %11181 = vmatprep.mubr.bf16.mxu0 %v20587_v59 }
0x1b32   : > { %v14317_v8 = vpop.f32.mrb[88].mxu0 }
0x1b33   : > { %v10442_v27 = vpop.f32.mrb[89].mxu0  ;;  %v10562_v16 = vadd.f32 %v14317_v8, %v19245_v25 }
0x1b34   : > { %v10560_v58 = vadd.f32 %v19245_v25, %v10442_v27  ;;  %v14318_v3 = vpop.f32.mrb[90].mxu0 }
0x1b35   : > { %v10445_v5 = vpop.f32.mrb[91].mxu0  ;;  %v10563_v63 = vadd.f32 %v14318_v3, %v19245_v25  ;;  %v19264_v18 = vadd.f32 %v15395_v44, %v10562_v16 }
0x1b36   : > { %v19250_v13 = vadd.f32 %v15392_v1, %v10560_v58  ;;  %v10561_v34 = vadd.f32 %v19245_v25, %v10445_v5  ;;  %v15405_v58 = vld [vmem:[%s16132_s14 + $0x68] sm:$0xff] }
0x1b37   : > { %v19260_v62 = vadd.f32 %v15394_v14, %v10563_v63  ;;  %20592 = vst [vmem:[#allocation58_spill] sm:$0xff] %v19264_v18 }
0x1b38   : > { %20589 = vst [vmem:[#allocation35_spill] sm:$0xff] %v19250_v13  ;;  %v19256_v4 = vadd.f32 %v15393_v54, %v10561_v34  ;;  %10592 = vadd.xlane.f32.xlu1 %v19250_v13  ;;  %v15406_v34 = vld [vmem:[%s16132_s14 + $0x70] sm:$0xff] }
0x1b39   : > { %20591 = vst [vmem:[#allocation59_spill] sm:$0xff] %v19260_v62 }
0x1b3a   : > { %20590 = vst [vmem:[#allocation40_spill] sm:$0xff] %v19256_v4  ;;  %10594 = vadd.xlane.f32.xlu0 %v19256_v4  ;;  %v14321_v51 = vpop.f32.mrb[92].mxu0 }
0x1b3b   : > { %v10458_v0 = vpop.f32.mrb[93].mxu0  ;;  %v10566_v12 = vadd.f32 %v14321_v51, %v19245_v25  ;;  %v15407_v51 = vld [vmem:[%s16132_s14 + $0x78] sm:$0xff] }
0x1b3c   : > { %v10564_v29 = vadd.f32 %v19245_v25, %v10458_v0  ;;  %10598 = vadd.xlane.f32.xlu1 %v19260_v62  ;;  %v14322_v48 = vpop.f32.mrb[94].mxu0 }
0x1b3d   : > { %v10461_v10 = vpop.f32.mrb[95].mxu0  ;;  %v10567_v28 = vadd.f32 %v14322_v48, %v19245_v25  ;;  %v19281_v2 = vadd.f32 %v15398_v32, %v10566_v12 }
0x1b3e   : > { %v10565_v9 = vadd.f32 %v19245_v25, %v10461_v10  ;;  %10596 = vadd.xlane.f32.xlu0 %v19264_v18  ;;  %v19272_v57 = vadd.f32 %v15396_v55, %v10564_v29 }
0x1b3f   : > { %20595 = vst [vmem:[#allocation39_spill] sm:$0xff] %v19281_v2  ;;  %v19284_v26 = vadd.f32 %v15399_v61, %v10567_v28 }
0x1b40   : > { %20593 = vst [vmem:[#allocation73_spill] sm:$0xff] %v19272_v57  ;;  %v19276_v23 = vadd.f32 %v15397_v17, %v10565_v9 }
0x1b41   : > { %20596 = vst [vmem:[#allocation44_spill] sm:$0xff] %v19284_v26 }
0x1b42   : > { %20594 = vst [vmem:[#allocation72_spill] sm:$0xff] %v19276_v23  ;;  %10600 = vadd.xlane.f32.xlu0 %v19272_v57  ;;  %10602 = vadd.xlane.f32.xlu1 %v19276_v23 }
0x1b46   : > { %10604 = vadd.xlane.f32.xlu0 %v19281_v2  ;;  %10606 = vadd.xlane.f32.xlu1 %v19284_v26 }
0x1bc5   : > { %v10593_v37 = vpop.xlane.xlu1 %10592 }
0x1bc6   : > { %v10624_v42 = vmul.f32 0.0078125, %v10593_v37  ;;  %v14619_v37 = vld [vmem:[#allocation11 + $0x2c] ss:$16 sps:$4 sm:$0xff]  }
0x1bc7   : > { %v10595_v47 = vpop.xlane.xlu0 %10594 }
0x1bc8   : > { %v10625_v8 = vmul.f32 0.0078125, %v10595_v47  ;;  %v19320_v1 = vsub.f32 %v19250_v13, %v10624_v42  ;;  %v14616_v47 = vld [vmem:[#allocation11 + $0x24] ss:$16 sps:$4 sm:$0xff]   ;;  %v14625_v42 = vld [vmem:[#allocation11 + $0x4c] ss:$16 sps:$4 sm:$0xff]  }
0x1bc9   : > { %v10599_v33 = vpop.xlane.xlu1 %10598 }
0x1bca   : > { %v19327_v14 = vsub.f32 %v19256_v4, %v10625_v8  ;;  %v10656_v48 = vmul.f32 %v19320_v1, %v19320_v1  ;;  %v14634_v8 = vld [vmem:[#allocation11 + $0x84] ss:$16 sps:$4 sm:$0xff]  }
0x1bcb   : > { %v10597_v21 = vpop.xlane.xlu0 %10596 }
0x1bcc   : > { %v10626_v63 = vmul.f32 0.0078125, %v10597_v21  ;;  %v10657_v55 = vmul.f32 %v19327_v14, %v19327_v14  ;;  %v14617_v21 = vld [vmem:[#allocation11 + $0x28] ss:$16 sps:$4 sm:$0xff]  }
0x1bce   : > { %v14325_v52 = vpop.f32.mrb[96].mxu0  ;;  %v19334_v44 = vsub.f32 %v19264_v18, %v10626_v63  ;;  %v14640_v63 = vld [vmem:[#allocation11 + $0xa4] ss:$16 sps:$4 sm:$0xff]  }
0x1bcf   : > { %v10474_v31 = vpop.f32.mrb[97].mxu0  ;;  %v10570_v6 = vadd.f32 %v14325_v52, %v19245_v25  ;;  %v10601_v5 = vpop.xlane.xlu0 %10600 }
0x1bd0   : > { %v10568_v30 = vadd.f32 %v19245_v25, %v10474_v31  ;;  %v14326_v38 = vpop.f32.mrb[98].mxu0  ;;  %v10603_v54 = vpop.xlane.xlu1 %10602  ;;  %v10628_v29 = vmul.f32 0.0078125, %v10601_v5  ;;  %v10658_v61 = vmul.f32 %v19334_v44, %v19334_v44  ;;  %v14635_v5 = vld [vmem:[#allocation11 + $0x88] ss:$16 sps:$4 sm:$0xff]  }
0x1bd1   : > { %v10477_v39 = vpop.f32.mrb[99].mxu0  ;;  %v10571_v46 = vadd.f32 %v14326_v38, %v19245_v25  ;;  %v19300_v35 = vadd.f32 %v15402_v41, %v10570_v6  ;;  %v10629_v12 = vmul.f32 0.0078125, %v10603_v54  ;;  %v14610_v6 = vld [vmem:[#allocation11 + $0x4] ss:$16 sps:$4 sm:$0xff]   ;;  %v14638_v54 = vld [vmem:[#allocation11 + $0xa0] ss:$16 sps:$4 sm:$0xff]  }
0x1bd2   : > { %v19291_v40 = vadd.f32 %v15400_v19, %v10568_v30  ;;  %v10569_v53 = vadd.f32 %v19245_v25, %v10477_v39  ;;  %v19345_v17 = vsub.f32 %v19272_v57, %v10628_v29  ;;  %v14613_v19 = vld [vmem:[#allocation11 + $0xc] ss:$16 sps:$4 sm:$0xff]   ;;  %11036 = vmatprep.subr.bf16.mxu1 %v14610_v6 }
0x1bd3   : > { %20599 = vst [vmem:[#allocation61_spill] sm:$0xff] %v19300_v35  ;;  %v19304_v50 = vadd.f32 %v15403_v49, %v10571_v46  ;;  %v10605_v10 = vpop.xlane.xlu0 %10604  ;;  %v19350_v52 = vsub.f32 %v19276_v23, %v10629_v12  ;;  %v14611_v46 = vld [vmem:[#allocation11 + $0x8] ss:$16 sps:$4 sm:$0xff]   ;;  %11149 = vmatprep.subr.bf16.mxu0 %v14613_v19  ;;  %v14649_v29 = vld [vmem:[#allocation11 + $0xcc] ss:$16 sps:$4 sm:$0xff]  }
0x1bd4   : > { %20597 = vst [vmem:[#allocation45_spill] sm:$0xff] %v19291_v40  ;;  %v19296_v36 = vadd.f32 %v15401_v22, %v10569_v53  ;;  %10608 = vadd.xlane.f32.xlu0 %v19291_v40  ;;  %v10607_v28 = vpop.xlane.xlu1 %10606  ;;  %v10630_v32 = vmul.f32 0.0078125, %v10605_v10  ;;  %v10660_v39 = vmul.f32 %v19345_v17, %v19345_v17  ;;  %v14608_v53 = vld [vmem:[#allocation11] ss:$16 sps:$4 sm:$0xff]   ;;  %11150 = vmatpush1.bf16.msra.mxu0 %v14611_v46  ;;  %v14647_v10 = vld [vmem:[#allocation11 + $0xc8] ss:$16 sps:$4 sm:$0xff]  }
0x1bd5   : > { %20600 = vst [vmem:[#allocation60_spill] sm:$0xff] %v19304_v50  ;;  %v10631_v31 = vmul.f32 0.0078125, %v10607_v28  ;;  %v10661_v41 = vmul.f32 %v19350_v52, %v19350_v52  ;;  %11037 = vmatpush1.bf16.msra.mxu1 %v14608_v53  ;;  %11151 = vmatprep.subr.bf16.mxu0 %v14619_v37  ;;  %v14652_v12 = vld [vmem:[#allocation11 + $0xe4] ss:$16 sps:$4 sm:$0xff]   ;;  %v14650_v28 = vld [vmem:[#allocation11 + $0xe0] ss:$16 sps:$4 sm:$0xff]  }
0x1bd6   : > { %20598 = vst [vmem:[#allocation43_spill] sm:$0xff] %v19296_v36  ;;  %10610 = vadd.xlane.f32.xlu1 %v19296_v36  ;;  %v19355_v38 = vsub.f32 %v19281_v2, %v10630_v32  ;;  %11038 = vmatprep.subr.bf16.mxu1 %v14616_v47  ;;  %v14653_v32 = vld [vmem:[#allocation11 + $0xe8] ss:$16 sps:$4 sm:$0xff]  }
0x1bd7   : > { %v19360_v22 = vsub.f32 %v19284_v26, %v10631_v31 }
0x1bd8   : > { %10612 = vadd.xlane.f32.xlu0 %v19300_v35  ;;  %v10662_v49 = vmul.f32 %v19355_v38, %v19355_v38  ;;  %11152 = vmatpush1.bf16.msra.mxu0 %v14617_v21 }
0x1bd9   : > { %11153 = vmatprep.subr.bf16.mxu0 %v14625_v42 }
0x1bda   : > { %10614 = vadd.xlane.f32.xlu1 %v19304_v50 }
0x1c03   : > { %v14329_v45 = vpop.f32.mrb[100].mxu0 }
0x1c04   : > { %v10490_v15 = vpop.f32.mrb[101].mxu0  ;;  %v10574_v60 = vadd.f32 %v14329_v45, %v19245_v25  ;;  %v14614_v45 = vld [vmem:[#allocation11 + $0x20] ss:$16 sps:$4 sm:$0xff]  }
0x1c05   : > { %v10572_v43 = vadd.f32 %v19245_v25, %v10490_v15  ;;  %v14330_v24 = vpop.f32.mrb[102].mxu0  ;;  %v10663_v15 = vmul.f32 %v19360_v22, %v19360_v22  ;;  %11039 = vmatpush1.bf16.msra.mxu1 %v14614_v45 }
0x1c06   : > { %v10493_v20 = vpop.f32.mrb[103].mxu0  ;;  %v10575_v27 = vadd.f32 %v14330_v24, %v19245_v25  ;;  %v19323_v16 = vadd.f32 %v15406_v34, %v10574_v60  ;;  %v14620_v24 = vld [vmem:[#allocation11 + $0x40] ss:$16 sps:$4 sm:$0xff]   ;;  %v14628_v60 = vld [vmem:[#allocation11 + $0x64] ss:$16 sps:$4 sm:$0xff]  }
0x1c07   : > { %v19311_v11 = vadd.f32 %v15404_v7, %v10572_v43  ;;  %v10573_v56 = vadd.f32 %v19245_v25, %v10493_v20  ;;  %v10627_v25 = vmul.f32 0.0078125, %v10599_v33  ;;  %v14622_v43 = vld [vmem:[#allocation11 + $0x44] ss:$16 sps:$4 sm:$0xff]   ;;  %v14623_v20 = vld [vmem:[#allocation11 + $0x48] ss:$16 sps:$4 sm:$0xff]  }
0x1c08   : > { %20603 = vst [vmem:[#allocation62_spill] sm:$0xff] %v19323_v16  ;;  %v19330_v0 = vadd.f32 %v15407_v51, %v10575_v27  ;;  %11040 = vmatprep.subr.bf16.mxu1 %v14622_v43  ;;  %11154 = vmatpush1.bf16.msra.mxu0 %v14623_v20  ;;  %v14631_v7 = vld [vmem:[#allocation11 + $0x6c] ss:$16 sps:$4 sm:$0xff]   ;;  %v14629_v33 = vld [vmem:[#allocation11 + $0x68] ss:$16 sps:$4 sm:$0xff]  }
0x1c09   : > { %20601 = vst [vmem:[#allocation46_spill] sm:$0xff] %v19311_v11  ;;  %v19316_v3 = vadd.f32 %v15405_v58, %v10573_v56  ;;  %10616 = vadd.xlane.f32.xlu0 %v19311_v11  ;;  %v19340_v9 = vsub.f32 %v19260_v62, %v10627_v25  ;;  %11041 = vmatpush1.bf16.msra.mxu1 %v14620_v24  ;;  %v14626_v56 = vld [vmem:[#allocation11 + $0x60] ss:$16 sps:$4 sm:$0xff]   ;;  %v14637_v27 = vld [vmem:[#allocation11 + $0x8c] ss:$16 sps:$4 sm:$0xff]  }
0x1c0a   : > { %20604 = vst [vmem:[#allocation63_spill] sm:$0xff] %v19330_v0  ;;  %11042 = vmatprep.subr.bf16.mxu1 %v14628_v60  ;;  %11155 = vmatprep.subr.bf16.mxu0 %v14631_v7  ;;  %v14632_v58 = vld [vmem:[#allocation11 + $0x80] ss:$16 sps:$4 sm:$0xff]   ;;  %v14643_v34 = vld [vmem:[#allocation11 + $0xac] ss:$16 sps:$4 sm:$0xff]  }
0x1c0b   : > { %20602 = vst [vmem:[#allocation47_spill] sm:$0xff] %v19316_v3  ;;  %10618 = vadd.xlane.f32.xlu1 %v19316_v3  ;;  %v10659_v30 = vmul.f32 %v19340_v9, %v19340_v9  ;;  %v14641_v25 = vld [vmem:[#allocation11 + $0xa8] ss:$16 sps:$4 sm:$0xff]   ;;  %v14646_v51 = vld [vmem:[#allocation11 + $0xc4] ss:$16 sps:$4 sm:$0xff]  }
0x1c0c   : > { %11156 = vmatpush1.bf16.msra.mxu0 %v14629_v33 }
0x1c0d   : > { %10620 = vadd.xlane.f32.xlu0 %v19323_v16  ;;  %11043 = vmatpush1.bf16.msra.mxu1 %v14626_v56 }
0x1c0e   : > { %11044 = vmatprep.subr.bf16.mxu1 %v14634_v8  ;;  %11157 = vmatprep.subr.bf16.mxu0 %v14637_v27 }
0x1c0f   : > { %10622 = vadd.xlane.f32.xlu1 %v19330_v0 }
0x1c10   : > { %11158 = vmatpush1.bf16.msra.mxu0 %v14635_v5 }
0x1c11   : > { %10672 = vadd.xlane.f32.xlu0 %v10656_v48  ;;  %11045 = vmatpush1.bf16.msra.mxu1 %v14632_v58  ;;  %v14644_v48 = vld [vmem:[#allocation11 + $0xc0] ss:$16 sps:$4 sm:$0xff]  }
0x1c12   : > { %11046 = vmatprep.subr.bf16.mxu1 %v14640_v63  ;;  %11159 = vmatprep.subr.bf16.mxu0 %v14643_v34 }
0x1c13   : > { %10674 = vadd.xlane.f32.xlu1 %v10657_v55  ;;  %v14655_v55 = vld [vmem:[#allocation11 + $0xec] ss:$16 sps:$4 sm:$0xff]  }
0x1c14   : > { %11160 = vmatpush1.bf16.msra.mxu0 %v14641_v25 }
0x1c15   : > { %10676 = vadd.xlane.f32.xlu0 %v10658_v61  ;;  %11047 = vmatpush1.bf16.msra.mxu1 %v14638_v54 }
0x1c16   : > { %11048 = vmatprep.subr.bf16.mxu1 %v14646_v51  ;;  %11161 = vmatprep.subr.bf16.mxu0 %v14649_v29 }
0x1c17   : > { %10678 = vadd.xlane.f32.xlu1 %v10659_v30 }
0x1c18   : > { %11162 = vmatpush1.bf16.msra.mxu0 %v14647_v10 }
0x1c19   : > { %10680 = vadd.xlane.f32.xlu0 %v10660_v39  ;;  %11049 = vmatpush1.bf16.msra.mxu1 %v14644_v48 }
0x1c1a   : > { %11050 = vmatprep.subr.bf16.mxu1 %v14652_v12  ;;  %11163 = vmatprep.subr.bf16.mxu0 %v14655_v55 }
0x1c1b   : > { %10682 = vadd.xlane.f32.xlu1 %v10661_v41 }
0x1c1c   : > { %11164 = vmatpush1.bf16.msra.mxu0 %v14653_v32 }
0x1c1d   : > { %10684 = vadd.xlane.f32.xlu0 %v10662_v49  ;;  %11051 = vmatpush1.bf16.msra.mxu1 %v14650_v28 }
0x1c1f   : > { %10686 = vadd.xlane.f32.xlu1 %v10663_v15 }
0x1c61   : > { %v10609_v61 = vpop.xlane.xlu0 %10608 }
0x1c62   : > { %v10632_v31 = vmul.f32 0.0078125, %v10609_v61 }
0x1c63   : > { %v10611_v30 = vpop.xlane.xlu1 %10610 }
0x1c64   : > { %v19369_v39 = vsub.f32 %v19291_v40, %v10632_v31  ;;  %v10633_v6 = vmul.f32 0.0078125, %v10611_v30 }
0x1c65   : > { %v10613_v19 = vpop.xlane.xlu0 %10612 }
0x1c66   : > { %v19372_v53 = vsub.f32 %v19296_v36, %v10633_v6  ;;  %v10634_v46 = vmul.f32 0.0078125, %v10613_v19  ;;  %v10664_v41 = vmul.f32 %v19369_v39, %v19369_v39 }
0x1c67   : > { %v10615_v49 = vpop.xlane.xlu1 %10614 }
0x1c68   : > { %v19377_v47 = vsub.f32 %v19300_v35, %v10634_v46  ;;  %v10635_v37 = vmul.f32 0.0078125, %v10615_v49  ;;  %10688 = vadd.xlane.f32.xlu0 %v10664_v41  ;;  %v10665_v45 = vmul.f32 %v19372_v53, %v19372_v53 }
0x1c6a   : > { %v19382_v21 = vsub.f32 %v19304_v50, %v10635_v37  ;;  %10690 = vadd.xlane.f32.xlu1 %v10665_v45  ;;  %v10666_v15 = vmul.f32 %v19377_v47, %v19377_v47 }
0x1c6c   : > { %10692 = vadd.xlane.f32.xlu0 %v10666_v15  ;;  %v10667_v43 = vmul.f32 %v19382_v21, %v19382_v21 }
0x1c6e   : > { %10694 = vadd.xlane.f32.xlu1 %v10667_v43 }
0x1c96   : > { %v10617_v24 = vpop.xlane.xlu0 %10616 }
0x1c97   : > { %v10636_v20 = vmul.f32 0.0078125, %v10617_v24 }
0x1c98   : > { %v10619_v42 = vpop.xlane.xlu1 %10618 }
0x1c99   : > { %v19389_v60 = vsub.f32 %v19311_v11, %v10636_v20  ;;  %v10637_v7 = vmul.f32 0.0078125, %v10619_v42  ;;  %v19411_v42 = vld [vmem:[%s20605_s7] ss:$0 sm:$0xff]  ;;  %s15614_s7 = sshll.u32 %s15748_s6, 4  ;;  %s15615_s7 = int_to_ptr.vmem [resolvable:$false] %s15614_s7 }
0x1c9a   : > { %v10621_v56 = vpop.xlane.xlu0 %10620  ;;  %s15616_s27 = scalar_lea.vmem %s15615_s7, 4096  ;;  %p15617_p8 = scmp.lt.s32.totalorder %s20126_s24, %s15615_s7 }
0x1c9b   : > { %v19392_v33 = vsub.f32 %v19316_v3, %v10637_v7  ;;  %v10638_v8 = vmul.f32 0.0078125, %v10621_v56  ;;  %v10668_v27 = vmul.f32 %v19389_v60, %v19389_v60  ;;  %p15618_p5 = scmp.lt.s32.totalorder %s15616_s27, %s15610_s13 }
0x1c9c   : > { %v10623_v58 = vpop.xlane.xlu1 %10622 }
0x1c9d   : > { %v19397_v5 = vsub.f32 %v19323_v16, %v10638_v8  ;;  %v10639_v63 = vmul.f32 0.0078125, %v10623_v58  ;;  %10696 = vadd.xlane.f32.xlu0 %v10668_v27  ;;  %v10669_v34 = vmul.f32 %v19392_v33, %v19392_v33  ;;  %p15619_p11 = por %p15618_p5, %p15617_p8 }
0x1c9e   : > { %v10673_v54 = vpop.xlane.xlu0 %10672 }
0x1c9f   : > { %v19402_v25 = vsub.f32 %v19330_v0, %v10639_v63  ;;  %v10704_v51 = vmul.f32 0.0078125, %v10673_v54  ;;  %10698 = vadd.xlane.f32.xlu1 %v10669_v34  ;;  %v10670_v29 = vmul.f32 %v19397_v5, %v19397_v5  ;;  %v19419_v54 = vld [vmem:[%s20606_s20] ss:$0 sm:$0xff]  ;;  %p15620_p7 = pnand %p15619_p11, %p15613_p6 }
0x1ca0   : > { %v10675_v48 = vpop.xlane.xlu1 %10674 }
0x1ca1   : > { %v10720_v10 = vadd.f32 1e-05, %v10704_v51  ;;  %v10705_v12 = vmul.f32 0.0078125, %v10675_v48  ;;  %10700 = vadd.xlane.f32.xlu0 %v10670_v29  ;;  %v10671_v55 = vmul.f32 %v19402_v25, %v19402_v25 }
0x1ca2   : > { %v10677_v28 = vpop.xlane.xlu0 %10676 }
0x1ca3   : > { %15232 = vrsqrt.f32 %v10720_v10  ;;  %v10721_v32 = vadd.f32 1e-05, %v10705_v12  ;;  %v10706_v61 = vmul.f32 0.0078125, %v10677_v28  ;;  %10702 = vadd.xlane.f32.xlu1 %v10671_v55 }
0x1ca4   : > { %v10679_v31 = vpop.xlane.xlu1 %10678 }
0x1ca5   : > { %15234 = vrsqrt.f32 %v10721_v32  ;;  %v10722_v30 = vadd.f32 1e-05, %v10706_v61  ;;  %v10707_v6 = vmul.f32 0.0078125, %v10679_v31 }
0x1ca6   : > { %v10681_v19 = vpop.xlane.xlu0 %10680 }
0x1ca7   : > { %15236 = vrsqrt.f32 %v10722_v30  ;;  %v10723_v46 = vadd.f32 1e-05, %v10707_v6  ;;  %v10708_v41 = vmul.f32 0.0078125, %v10681_v19 }
0x1ca8   : > { %v10683_v49 = vpop.xlane.xlu1 %10682 }
0x1ca9   : > { %15238 = vrsqrt.f32 %v10723_v46  ;;  %v10709_v37 = vmul.f32 0.0078125, %v10683_v49  ;;  %v10724_v45 = vadd.f32 1e-05, %v10708_v41 }
0x1caa   : > { %v10685_v43 = vpop.xlane.xlu0 %10684 }
0x1cab   : > { %v10725_v15 = vadd.f32 1e-05, %v10709_v37  ;;  %v10710_v27 = vmul.f32 0.0078125, %v10685_v43 }
0x1cac   : > { %v10687_v24 = vpop.xlane.xlu1 %10686 }
0x1cad   : > { %v15233_v20 = vpop.eup %15232  ;;  %15240 = vrsqrt.f32 %v10725_v15  ;;  %v10711_v7 = vmul.f32 0.0078125, %v10687_v24  ;;  %v10726_v10 = vadd.f32 1e-05, %v10710_v27 }
0x1cae   : > { %v10752_v56 = vmul.f32 %v15233_v20, %v19320_v1  ;;  %15242 = vrsqrt.f32 %v10724_v45 }
0x1caf   : > { %v15235_v8 = vpop.eup %15234  ;;  %v10727_v51 = vadd.f32 1e-05, %v10711_v7 }
0x1cb0   : > { %v10775_v58 = vmul.f32 %v19411_v42, %v10752_v56  ;;  %v10753_v63 = vmul.f32 %v15235_v8, %v19327_v14 }
0x1cb1   : > { %v15237_v34 = vpop.eup %15236  ;;  %15244 = vrsqrt.f32 %v10727_v51 }
0x1cb2   : > { %v10776_v29 = vmul.f32 %v19411_v42, %v10753_v63  ;;  %v10798_v1 = vadd.f32 %v19419_v54, %v10775_v58  ;;  %v10754_v55 = vmul.f32 %v15237_v34, %v19334_v44  ;;  %15246 = vrsqrt.f32 %v10726_v10 }
0x1cb3   : > { %v15239_v48 = vpop.eup %15238 }
0x1cb4   : > { %v10799_v12 = vadd.f32 %v19419_v54, %v10776_v29  ;;  %v10755_v28 = vmul.f32 %v15239_v48, %v19340_v9  ;;  %v10777_v31 = vmul.f32 %v19411_v42, %v10754_v55 }
0x1cb6   : > { %v10814_v14 = vpack.c.bf16 %v10799_v12, %v10798_v1  ;;  %v10778_v32 = vmul.f32 %v19411_v42, %v10755_v28  ;;  %v10800_v9 = vadd.f32 %v19419_v54, %v10777_v31 }
0x1cb7   : > { %v15241_v61 = vpop.eup %15240 }
0x1cb8   : > { %11069 = vmatmul.mubr.bf16.vlgmr.msra.gmra.mrb[80].mxu1 %v10814_v14  ;;  %11182 = vmatmul.mubr.bf16.vlgmr.msra.gmra.mrb[240].mxu0 %v10814_v14  ;;  %v15243_v30 = vpop.eup %15242  ;;  %v10801_v6 = vadd.f32 %v19419_v54, %v10778_v32  ;;  %v10757_v44 = vmul.f32 %v15241_v61, %v19350_v52 }
0x1cb9   : > { %11078 = vmatprep.mubr.bf16.mxu1 %v20587_v59  ;;  %11191 = vmatprep.mubr.bf16.mxu0 %v20587_v59  ;;  %v10756_v19 = vmul.f32 %v15243_v30, %v19345_v17 }
0x1cba   : > { %v10815_v46 = vpack.c.bf16 %v10801_v6, %v10800_v9  ;;  %v10780_v41 = vmul.f32 %v19411_v42, %v10757_v44 }
0x1cbb   : > { %v15245_v49 = vpop.eup %15244  ;;  %v10779_v37 = vmul.f32 %v19411_v42, %v10756_v19 }
0x1cbc   : > { %v15247_v45 = vpop.eup %15246  ;;  %v10803_v15 = vadd.f32 %v19419_v54, %v10780_v41  ;;  %v10759_v52 = vmul.f32 %v15245_v49, %v19360_v22  ;;  %v14656_v49 = vld [vmem:[#allocation13 + $0x40] sm:$0xff]  }
0x1cbd   : > { %v10802_v43 = vadd.f32 %v19419_v54, %v10779_v37  ;;  %v10758_v17 = vmul.f32 %v15247_v45, %v19355_v38  ;;  %v14657_v37 = vld [vmem:[#allocation13 + $0xc0] sm:$0xff]   ;;  %13259 = vmatprep.subr.bf16.mxu1 %v14656_v49 }
0x1cbe   : > { %v10782_v20 = vmul.f32 %v19411_v42, %v10759_v52  ;;  %13323 = vmatprep.subr.bf16.mxu0 %v14657_v37  ;;  %v14680_v37 = vld [vmem:[#allocation13 + $0x70] sm:$0xff]  }
0x1cbf   : > { %v10816_v24 = vpack.c.bf16 %v10803_v15, %v10802_v43  ;;  %v10781_v7 = vmul.f32 %v19411_v42, %v10758_v17  ;;  %v14659_v15 = vld [vmem:[#allocation13 + $0x80] sm:$0xff]   ;;  %v14661_v43 = vld [vmem:[#allocation13 + $0xc8] sm:$0xff]  }
0x1cc0   : > { %11079 = vmatmul.mubr.bf16.gmra.mrb[84].mxu1 %v10815_v46  ;;  %11192 = vmatmul.mubr.bf16.gmra.mrb[244].mxu0 %v10815_v46  ;;  %v10805_v56 = vadd.f32 %v19419_v54, %v10782_v20  ;;  %v14662_v17 = vld [vmem:[#allocation13 + $0x8] sm:$0xff]  }
0x1cc1   : > { %11088 = vmatprep.mubr.bf16.mxu1 %v20587_v59  ;;  %11201 = vmatprep.mubr.bf16.mxu0 %v20587_v59  ;;  %v10804_v8 = vadd.f32 %v19419_v54, %v10781_v7 }
0x1cc2   : > { %13324 = vmatpush3.bf16.msra.mxu0 %v14659_v15 }
0x1cc3   : > { %v10817_v22 = vpack.c.bf16 %v10805_v56, %v10804_v8  ;;  %13325 = vmatprep.subr.bf16.mxu0 %v14661_v43  ;;  %v14664_v56 = vld [vmem:[#allocation13 + $0x50] sm:$0xff]  }
0x1cc4   : > { %v14665_v8 = vld [vmem:[#allocation13 + $0xd0] sm:$0xff]  }
0x1cc5   : > { %v14683_v43 = vld [vmem:[#allocation13 + $0xb0] sm:$0xff]  }
0x1cc8   : > { %11089 = vmatmul.mubr.bf16.gmra.mrb[88].mxu1 %v10816_v24  ;;  %11202 = vmatmul.mubr.bf16.gmra.mrb[248].mxu0 %v10816_v24  ;;  %v14663_v24 = vld [vmem:[#allocation13 + $0x88] sm:$0xff]  }
0x1cc9   : > { %11098 = vmatprep.mubr.bf16.mxu1 %v20587_v59  ;;  %11211 = vmatprep.mubr.bf16.mxu0 %v20587_v59 }
0x1cca   : > { %13326 = vmatpush3.bf16.msra.mxu0 %v14663_v24 }
0x1ccb   : > { %13327 = vmatprep.subr.bf16.mxu0 %v14665_v8 }
0x1cd0   : > { %11099 = vmatmul.mubr.bf16.gmra.mrb[92].mxu1 %v10817_v22  ;;  %11212 = vmatmul.mubr.bf16.gmra.mrb[252].mxu0 %v10817_v22  ;;  %v14666_v22 = vld [vmem:[#allocation13 + $0x10] sm:$0xff]  }
0x1cd1   : > { %11108 = vmatprep.mubr.bf16.mxu1 %v20587_v59  ;;  %11221 = vmatprep.mubr.bf16.mxu0 %v20587_v59 }
0x1cf5   : > { %v10689_v38 = vpop.xlane.xlu0 %10688 }
0x1cf6   : > { %v10712_v27 = vmul.f32 0.0078125, %v10689_v38  ;;  %v14667_v38 = vld [vmem:[#allocation13 + $0x90] sm:$0xff]  }
0x1cf7   : > { %v10691_v58 = vpop.xlane.xlu1 %10690  ;;  %13328 = vmatpush3.bf16.msra.mxu0 %v14667_v38 }
0x1cf8   : > { %v10728_v63 = vadd.f32 1e-05, %v10712_v27  ;;  %v10713_v34 = vmul.f32 0.0078125, %v10691_v58  ;;  %v14668_v27 = vld [vmem:[#allocation13 + $0x58] sm:$0xff]  }
0x1cf9   : > { %v10693_v51 = vpop.xlane.xlu0 %10692  ;;  %v14669_v58 = vld [vmem:[#allocation13 + $0xd8] sm:$0xff]  }
0x1cfa   : > { %15248 = vrsqrt.f32 %v10728_v63  ;;  %v10729_v29 = vadd.f32 1e-05, %v10713_v34  ;;  %v10714_v48 = vmul.f32 0.0078125, %v10693_v51  ;;  %v14670_v63 = vld [vmem:[#allocation13 + $0x18] sm:$0xff]   ;;  %13329 = vmatprep.subr.bf16.mxu0 %v14669_v58  ;;  %v14672_v51 = vld [vmem:[#allocation13 + $0x60] sm:$0xff]  }
0x1cfb   : > { %v10695_v10 = vpop.xlane.xlu1 %10694  ;;  %v14671_v34 = vld [vmem:[#allocation13 + $0x98] sm:$0xff]  }
0x1cfc   : > { %15250 = vrsqrt.f32 %v10729_v29  ;;  %v10730_v1 = vadd.f32 1e-05, %v10714_v48  ;;  %v10715_v12 = vmul.f32 0.0078125, %v10695_v10  ;;  %13330 = vmatpush3.bf16.msra.mxu0 %v14671_v34  ;;  %v14673_v29 = vld [vmem:[#allocation13 + $0xe0] sm:$0xff]  }
0x1cfd   : > { %13331 = vmatprep.subr.bf16.mxu0 %v14673_v29  ;;  %v10854_v29 = vld [vmem:[%s20607_s21] sm:$0xf] }
0x1cfe   : > { %15252 = vrsqrt.f32 %v10730_v1  ;;  %v10731_v55 = vadd.f32 1e-05, %v10715_v12 }
0x1d00   : > { %15254 = vrsqrt.f32 %v10731_v55 }
0x1d04   : > { %v15249_v28 = vpop.eup %15248 }
0x1d05   : > { %v10760_v14 = vmul.f32 %v15249_v28, %v19369_v39  ;;  %v14674_v28 = vld [vmem:[#allocation13 + $0x20] sm:$0xff]  }
0x1d06   : > { %v15251_v32 = vpop.eup %15250 }
0x1d07   : > { %v10783_v61 = vmul.f32 %v19411_v42, %v10760_v14  ;;  %v10761_v31 = vmul.f32 %v15251_v32, %v19372_v53  ;;  %v14658_v53 = vld [vmem:[#allocation13] sm:$0xff]  }
0x1d08   : > { %v15253_v30 = vpop.eup %15252  ;;  %13260 = vmatpush3.bf16.msra.mxu1 %v14658_v53  ;;  %v14675_v14 = vld [vmem:[#allocation13 + $0xa0] sm:$0xff]  }
0x1d09   : > { %v10784_v6 = vmul.f32 %v19411_v42, %v10761_v31  ;;  %v10806_v9 = vadd.f32 %v19419_v54, %v10783_v61  ;;  %v10762_v46 = vmul.f32 %v15253_v30, %v19377_v47  ;;  %13332 = vmatpush3.bf16.msra.mxu0 %v14675_v14 }
0x1d0a   : > { %v15255_v44 = vpop.eup %15254 }
0x1d0b   : > { %v10807_v19 = vadd.f32 %v19419_v54, %v10784_v6  ;;  %v10763_v41 = vmul.f32 %v15255_v44, %v19382_v21  ;;  %v10785_v52 = vmul.f32 %v19411_v42, %v10762_v46  ;;  %v14660_v21 = vld [vmem:[#allocation13 + $0x48] sm:$0xff]  }
0x1d0c   : > { %13261 = vmatprep.subr.bf16.mxu1 %v14660_v21  ;;  %v14676_v6 = vld [vmem:[#allocation13 + $0x68] sm:$0xff]   ;;  %v14682_v21 = vld [vmem:[#allocation13 + $0x30] sm:$0xff]  }
0x1d0d   : > { %v10818_v39 = vpack.c.bf16 %v10807_v19, %v10806_v9  ;;  %v10786_v45 = vmul.f32 %v19411_v42, %v10763_v41  ;;  %v10808_v20 = vadd.f32 %v19419_v54, %v10785_v52  ;;  %13262 = vmatpush3.bf16.msra.mxu1 %v14662_v17  ;;  %v14677_v44 = vld [vmem:[#allocation13 + $0xe8] sm:$0xff]  }
0x1d0e   : > { %13263 = vmatprep.subr.bf16.mxu1 %v14664_v56  ;;  %v14678_v46 = vld [vmem:[#allocation13 + $0x28] sm:$0xff]   ;;  %13333 = vmatprep.subr.bf16.mxu0 %v14677_v44  ;;  %v14685_v56 = vld [vmem:[#allocation13 + $0xf8] sm:$0xff]  }
0x1d0f   : > { %11109 = vmatmul.mubr.bf16.gmra.mrb[96].mxu1 %v10818_v39  ;;  %11222 = vmatmul.mubr.bf16.gmra.mrb[0].mxu0 %v10818_v39  ;;  %v10809_v47 = vadd.f32 %v19419_v54, %v10786_v45  ;;  %v14679_v41 = vld [vmem:[#allocation13 + $0xa8] sm:$0xff]   ;;  %v14681_v39 = vld [vmem:[#allocation13 + $0xf0] sm:$0xff]  }
0x1d10   : > { %11118 = vmatprep.mubr.bf16.mxu1 %v20587_v59  ;;  %11231 = vmatprep.mubr.bf16.mxu0 %v20587_v59 }
0x1d11   : > { %v10819_v7 = vpack.c.bf16 %v10809_v47, %v10808_v20  ;;  %13264 = vmatpush3.bf16.msra.mxu1 %v14666_v22  ;;  %13334 = vmatpush3.bf16.msra.mxu0 %v14679_v41 }
0x1d12   : > { %13265 = vmatprep.subr.bf16.mxu1 %v14668_v27  ;;  %13335 = vmatprep.subr.bf16.mxu0 %v14681_v39  ;;  %v14686_v27 = vld [vmem:[#allocation13 + $0x38] sm:$0xff]  }
0x1d15   : > { %13266 = vmatpush3.bf16.msra.mxu1 %v14670_v63  ;;  %13336 = vmatpush3.bf16.msra.mxu0 %v14683_v43 }
0x1d16   : > { %13267 = vmatprep.subr.bf16.mxu1 %v14672_v51  ;;  %13337 = vmatprep.subr.bf16.mxu0 %v14685_v56 }
0x1d17   : > { %11119 = vmatmul.mubr.bf16.gmra.mrb[100].mxu1 %v10819_v7  ;;  %11232 = vmatmul.mubr.bf16.gmra.mrb[4].mxu0 %v10819_v7  ;;  %v14684_v7 = vld [vmem:[#allocation13 + $0x78] sm:$0xff]  }
0x1d18   : > { %11128 = vmatprep.mubr.bf16.mxu1 %v20587_v59  ;;  %11241 = vmatprep.mubr.bf16.mxu0 %v20587_v59 }
0x1d19   : > { %13268 = vmatpush3.bf16.msra.mxu1 %v14674_v28 }
0x1d1a   : > { %13269 = vmatprep.subr.bf16.mxu1 %v14676_v6 }
0x1d1d   : > { %13270 = vmatpush3.bf16.msra.mxu1 %v14678_v46 }
0x1d1e   : > { %13271 = vmatprep.subr.bf16.mxu1 %v14680_v37 }
0x1d21   : > { %13272 = vmatpush3.bf16.msra.mxu1 %v14682_v21 }
0x1d22   : > { %13273 = vmatprep.subr.bf16.mxu1 %v14684_v7 }
0x1d25   : > { %13274 = vmatpush3.bf16.msra.mxu1 %v14686_v27 }
0x1d2a   : > { %v10697_v48 = vpop.xlane.xlu0 %10696 }
0x1d2b   : > { %v10716_v10 = vmul.f32 0.0078125, %v10697_v48  ;;  %v20608_v48 = vld [vmem:[#allocation29_spill] sm:$0xff] }
0x1d2c   : > { %v10699_v1 = vpop.xlane.xlu1 %10698 }
0x1d2d   : > { %v10732_v12 = vadd.f32 1e-05, %v10716_v10  ;;  %v10717_v55 = vmul.f32 0.0078125, %v10699_v1  ;;  %v10870_v10 = vsub.s32 3, %v20608_v48 }
0x1d2e   : > { %v10701_v32 = vpop.xlane.xlu0 %10700 }
0x1d2f   : > { %15256 = vrsqrt.f32 %v10732_v12  ;;  %v10733_v61 = vadd.f32 1e-05, %v10717_v55  ;;  %v10718_v31 = vmul.f32 0.0078125, %v10701_v32  ;;  %v20611_v12 = vld [vmem:[#allocation30_spill] sm:$0xff] }
0x1d30   : > { %v10703_v30 = vpop.xlane.xlu1 %10702  ;;  %v19489_v55 = vrot.slane %v10854_v29, %v20611_v12 }
0x1d31   : > { %15258 = vrsqrt.f32 %v10733_v61  ;;  %v10734_v9 = vadd.f32 1e-05, %v10718_v31  ;;  %v10719_v19 = vmul.f32 0.0078125, %v10703_v30 }
0x1d33   : > { %15260 = vrsqrt.f32 %v10734_v9  ;;  %v10735_v49 = vadd.f32 1e-05, %v10719_v19 }
0x1d35   : > { %15262 = vrsqrt.f32 %v10735_v49 }
0x1d39   : > { %v15257_v45 = vpop.eup %15256 }
0x1d3a   : > { %v10764_v53 = vmul.f32 %v15257_v45, %v19389_v60 }
0x1d3b   : > { %v15259_v15 = vpop.eup %15258 }
0x1d3c   : > { %v10787_v52 = vmul.f32 %v19411_v42, %v10764_v53  ;;  %v10765_v47 = vmul.f32 %v15259_v15, %v19392_v33  ;;  %v14687_v33 = vld [vmem:[#allocation13 + $0xb8] sm:$0xff]  }
0x1d3d   : > { %v15261_v17 = vpop.eup %15260  ;;  %13338 = vmatpush3.bf16.msra.mxu0 %v14687_v33 }
0x1d3e   : > { %v10788_v24 = vmul.f32 %v19411_v42, %v10765_v47  ;;  %v10810_v8 = vadd.f32 %v19419_v54, %v10787_v52  ;;  %v10766_v22 = vmul.f32 %v15261_v17, %v19397_v5 }
0x1d3f   : > { %v15263_v20 = vpop.eup %15262 }
0x1d40   : > { %v10811_v60 = vadd.f32 %v19419_v54, %v10788_v24  ;;  %v10767_v38 = vmul.f32 %v15263_v20, %v19402_v25  ;;  %v10789_v34 = vmul.f32 %v19411_v42, %v10766_v22 }
0x1d42   : > { %v10820_v58 = vpack.c.bf16 %v10811_v60, %v10810_v8  ;;  %v10790_v63 = vmul.f32 %v19411_v42, %v10767_v38  ;;  %v10812_v25 = vadd.f32 %v19419_v54, %v10789_v34  ;;  %v20609_v42 = vsub.s32 2, %v20608_v48 }
0x1d44   : > { %11129 = vmatmul.mubr.bf16.gmra.mrb[104].mxu1 %v10820_v58  ;;  %11242 = vmatmul.mubr.bf16.gmra.mrb[8].mxu0 %v10820_v58  ;;  %v10813_v5 = vadd.f32 %v19419_v54, %v10790_v63  ;;  %v19486_v1 = vrot.slane %v10854_v29, %v20609_v42  ;;  %v19495_v54 = vrot.slane %v10854_v29, %v10870_v10 }
0x1d45   : > { %11138 = vmatprep.mubr.bf16.mxu1 %v20587_v59  ;;  %11251 = vmatprep.mubr.bf16.mxu0 %v20587_v59  ;;  %v20612_v59 = vsub.s32 1, %v20608_v48 }
0x1d46   : > { %v10821_v51 = vpack.c.bf16 %v10813_v5, %v10812_v25  ;;  %20610 = vst [vmem:[#allocation48_spill] sm:$0xff] %v19486_v1  ;;  %20614 = vst [vmem:[#allocation64_spill] sm:$0xff] %v19495_v54 }
0x1d47   : > { %v19493_v28 = vrot.slane %v10854_v29, %v20612_v59 }
0x1d49   : > { %20613 = vst [vmem:[#allocation49_spill] sm:$0xff] %v19493_v28 }
0x1d4c   : > { %11139 = vmatmul.mubr.bf16.gmra.mrb[108].mxu1 %v10821_v51  ;;  %11252 = vmatmul.mubr.bf16.gmra.mrb[12].mxu0 %v10821_v51 }
0x1d8b   : > { %v11070_v14 = vpop.f32.mrb[80].mxu1  ;;  %v11183_v32 = vpop.f32.mrb[240].mxu0 }
0x1d8c   : > { %v11071_v61 = vadd.f32 %v11070_v14, %v19489_v55  ;;  %v11184_v31 = vadd.f32 %v11183_v32, %v19486_v1  ;;  %v11072_v30 = vpop.f32.mrb[81].mxu1  ;;  %v11185_v6 = vpop.f32.mrb[241].mxu0 }
0x1d8d   : > { %v11074_v44 = vpop.f32.mrb[82].mxu1  ;;  %v11187_v9 = vpop.f32.mrb[242].mxu0  ;;  %v19500_v41 = vadd.f32 %v11072_v30, %v19493_v28  ;;  %v19503_v49 = vadd.f32 %v11185_v6, %v19495_v54 }
0x1d8e   : > { %v11326_v19 = vmul.f32 0.044715, %v11071_v61  ;;  %v11328_v46 = vmul.f32 0.044715, %v11184_v31  ;;  %v11075_v37 = vadd.f32 %v11074_v44, %v19489_v55  ;;  %v11188_v39 = vadd.f32 %v11187_v9, %v19486_v1  ;;  %v11076_v45 = vpop.f32.mrb[83].mxu1  ;;  %v11189_v53 = vpop.f32.mrb[243].mxu0 }
0x1d8f   : > { %v19508_v21 = vadd.f32 %v11076_v45, %v19493_v28  ;;  %v19510_v43 = vmul.f32 0.5, %v11071_v61  ;;  %v11327_v7 = vmul.f32 0.044715, %v19500_v41  ;;  %v11329_v56 = vmul.f32 0.044715, %v19503_v49 }
0x1d90   : > { %v11390_v15 = vmul.f32 %v11326_v19, %v11071_v61  ;;  %v11392_v52 = vmul.f32 %v11328_v46, %v11184_v31  ;;  %v11330_v47 = vmul.f32 0.044715, %v11075_v37  ;;  %v11332_v20 = vmul.f32 0.044715, %v11188_v39 }
0x1d91   : > { %v19514_v27 = vmul.f32 0.5, %v11184_v31  ;;  %v11331_v25 = vmul.f32 0.044715, %v19508_v21  ;;  %v19520_v14 = vadd.f32 %v11189_v53, %v19495_v54  ;;  %v11393_v30 = vmul.f32 %v11329_v56, %v19503_v49 }
0x1d92   : > { %v11454_v17 = vmul.f32 %v11390_v15, %v11071_v61  ;;  %v11456_v24 = vmul.f32 %v11392_v52, %v11184_v31  ;;  %v11394_v8 = vmul.f32 %v11330_v47, %v11075_v37  ;;  %v11396_v58 = vmul.f32 %v11332_v20, %v11188_v39 }
0x1d93   : > { %v11080_v60 = vpop.f32.mrb[84].mxu1  ;;  %v11193_v22 = vpop.f32.mrb[244].mxu0  ;;  %v19524_v9 = vmul.f32 0.5, %v11075_v37  ;;  %v19526_v19 = vmul.f32 0.5, %v11188_v39  ;;  %v11395_v47 = vmul.f32 %v11331_v25, %v19508_v21 }
0x1d94   : > { %v11518_v38 = vadd.f32 %v11454_v17, %v11071_v61  ;;  %v11520_v33 = vadd.f32 %v11456_v24, %v11184_v31  ;;  %v11082_v63 = vpop.f32.mrb[85].mxu1  ;;  %v11195_v34 = vpop.f32.mrb[245].mxu0  ;;  %v11458_v5 = vmul.f32 %v11394_v8, %v11075_v37  ;;  %v11081_v51 = vadd.f32 %v11080_v60, %v19489_v55 }
0x1d95   : > { %v11194_v29 = vadd.f32 %v11193_v22, %v19486_v1  ;;  %v11084_v48 = vpop.f32.mrb[86].mxu1  ;;  %v11197_v10 = vpop.f32.mrb[246].mxu0  ;;  %v11460_v59 = vmul.f32 %v11396_v58, %v11188_v39  ;;  %v11391_v31 = vmul.f32 %v11327_v7, %v19500_v41  ;;  %v11333_v17 = vmul.f32 0.044715, %v19520_v14 }
0x1d96   : > { %v11582_v42 = vmul.f32 0.7978846, %v11518_v38  ;;  %v11584_v12 = vmul.f32 0.7978846, %v11520_v33  ;;  %v11086_v32 = vpop.f32.mrb[87].mxu1  ;;  %v11199_v61 = vpop.f32.mrb[247].mxu0  ;;  %v11522_v6 = vadd.f32 %v11458_v5, %v11075_v37  ;;  %v11085_v24 = vadd.f32 %v11084_v48, %v19489_v55 }
0x1d97   : > { %v11334_v44 = vmul.f32 0.044715, %v11081_v51  ;;  %v11524_v46 = vadd.f32 %v11460_v59, %v11188_v39  ;;  %v11336_v52 = vmul.f32 0.044715, %v11194_v29  ;;  %v11198_v37 = vadd.f32 %v11197_v10, %v19486_v1 }
0x1d98   : > { %15264 = vtanh.f32 %v11582_v42  ;;  %v11586_v45 = vmul.f32 0.7978846, %v11522_v6  ;;  %v19533_v39 = vmul.f32 %v11391_v31, %v19500_v41  ;;  %v19536_v60 = vmul.f32 %v11393_v30, %v19503_v49 }
0x1d99   : > { %15266 = vtanh.f32 %v11584_v12  ;;  %v11398_v15 = vmul.f32 %v11334_v44, %v11081_v51  ;;  %v11588_v53 = vmul.f32 0.7978846, %v11524_v46  ;;  %v11400_v7 = vmul.f32 %v11336_v52, %v11194_v29 }
0x1d9a   : > { %15268 = vtanh.f32 %v11586_v45  ;;  %v19539_v22 = vadd.f32 %v11082_v63, %v19493_v28  ;;  %v19544_v5 = vadd.f32 %v11195_v34, %v19495_v54  ;;  %v11338_v25 = vmul.f32 0.044715, %v11085_v24 }
0x1d9b   : > { %v11462_v20 = vmul.f32 %v11398_v15, %v11081_v51  ;;  %v11090_v56 = vpop.f32.mrb[88].mxu1  ;;  %v11203_v8 = vpop.f32.mrb[248].mxu0  ;;  %15270 = vtanh.f32 %v11588_v53  ;;  %v11464_v58 = vmul.f32 %v11400_v7, %v11194_v29  ;;  %v19551_v42 = vmul.f32 %v11395_v47, %v19508_v21 }
0x1d9c   : > { %v19541_v38 = vpop.f32.mrb[89].mxu1  ;;  %v19546_v48 = vpop.f32.mrb[249].mxu0  ;;  %v11397_v12 = vmul.f32 %v11333_v17, %v19520_v14  ;;  %v11340_v59 = vmul.f32 0.044715, %v11198_v37  ;;  %v19555_v63 = vadd.f32 %v11086_v32, %v19493_v28  ;;  %v19559_v6 = vmul.f32 0.5, %v11081_v51 }
0x1d9d   : > { %v11526_v33 = vadd.f32 %v11462_v20, %v11081_v51  ;;  %v19548_v10 = vpop.f32.mrb[90].mxu1  ;;  %v11207_v31 = vpop.f32.mrb[250].mxu0  ;;  %v11528_v44 = vadd.f32 %v11464_v58, %v11194_v29  ;;  %v11402_v46 = vmul.f32 %v11338_v25, %v11085_v24  ;;  %v19563_v15 = vmul.f32 0.5, %v11194_v29 }
0x1d9e   : > { %v19557_v30 = vpop.f32.mrb[91].mxu1  ;;  %v19561_v45 = vpop.f32.mrb[251].mxu0  ;;  %v11335_v52 = vmul.f32 0.044715, %v19539_v22  ;;  %v11404_v53 = vmul.f32 %v11340_v59, %v11198_v37  ;;  %v19567_v47 = vadd.f32 %v11199_v61, %v19495_v54  ;;  %v11337_v17 = vmul.f32 0.044715, %v19544_v5 }
0x1d9f   : > { %v11590_v34 = vmul.f32 0.7978846, %v11526_v33  ;;  %v11592_v32 = vmul.f32 0.7978846, %v11528_v44  ;;  %v11466_v20 = vmul.f32 %v11402_v46, %v11085_v24  ;;  %v19570_v7 = vmul.f32 0.5, %v11085_v24 }
0x1da0   : > { %v11468_v33 = vmul.f32 %v11404_v53, %v11198_v37  ;;  %v11339_v58 = vmul.f32 0.044715, %v19555_v63  ;;  %v11091_v29 = vadd.f32 %v11090_v56, %v19489_v55  ;;  %v19574_v59 = vmul.f32 0.5, %v11198_v37 }
0x1da1   : > { %15272 = vtanh.f32 %v11590_v34  ;;  %v11530_v0 = vadd.f32 %v11466_v20, %v11085_v24  ;;  %v11204_v61 = vadd.f32 %v11203_v8, %v19486_v1  ;;  %v11341_v53 = vmul.f32 0.044715, %v19567_v47 }
0x1da2   : > { %v15265_v51 = vpop.eup %15264  ;;  %15274 = vtanh.f32 %v11592_v32  ;;  %v11532_v3 = vadd.f32 %v11468_v33, %v11198_v37  ;;  %v19587_v24 = vmul.f32 %v11397_v12, %v19520_v14  ;;  %v11399_v32 = vmul.f32 %v11335_v52, %v19539_v22 }
0x1da3   : > { %v15267_v25 = vpop.eup %15266  ;;  %v19577_v34 = vpop.f32.mrb[92].mxu1  ;;  %v11710_v46 = vadd.f32 1.0, %v15265_v51  ;;  %v11594_v8 = vmul.f32 0.7978846, %v11530_v0  ;;  %v11342_v20 = vmul.f32 0.044715, %v11091_v29  ;;  %v11401_v33 = vmul.f32 %v11337_v17, %v19544_v5 }
0x1da4   : > { %v19579_v44 = vpop.f32.mrb[252].mxu0  ;;  %v11712_v16 = vadd.f32 1.0, %v15267_v25  ;;  %v19582_v11 = vpop.f32.mrb[93].mxu1  ;;  %v11596_v25 = vmul.f32 0.7978846, %v11532_v3  ;;  %v11403_v40 = vmul.f32 %v11339_v58, %v19555_v63 }
0x1da5   : > { %v19584_v50 = vpop.f32.mrb[253].mxu0  ;;  %v15269_v56 = vpop.eup %15268  ;;  %15276 = vtanh.f32 %v11594_v8  ;;  %v11406_v52 = vmul.f32 %v11342_v20, %v11091_v29  ;;  %v11344_v0 = vmul.f32 0.044715, %v11204_v61  ;;  %v19601_v23 = vmul.f32 %v11710_v46, %v19510_v43 }
0x1da6   : > { %v19590_v35 = vpop.f32.mrb[94].mxu1  ;;  %v19592_v36 = vpop.f32.mrb[254].mxu0  ;;  %v11714_v37 = vadd.f32 1.0, %v15269_v56  ;;  %v19604_v57 = vmul.f32 %v11712_v16, %v19514_v27  ;;  %15278 = vtanh.f32 %v11596_v25  ;;  %v11095_v8 = vadd.f32 %v19548_v10, %v19489_v55 }
0x1da7   : > { %v15271_v51 = vpop.eup %15270  ;;  %v19596_v26 = vpop.f32.mrb[95].mxu1  ;;  %v11470_v17 = vmul.f32 %v11406_v52, %v11091_v29  ;;  %v11408_v58 = vmul.f32 %v11344_v0, %v11204_v61  ;;  %v11405_v43 = vmul.f32 %v11341_v53, %v19567_v47  ;;  %v19619_v16 = vadd.f32 %v19541_v38, %v19493_v28 }
0x1da8   : > { %v19598_v2 = vpop.f32.mrb[255].mxu0  ;;  %v11716_v12 = vadd.f32 1.0, %v15271_v51  ;;  %v19607_v56 = vmul.f32 %v11714_v37, %v19524_v9  ;;  %v11208_v27 = vadd.f32 %v11207_v31, %v19486_v1  ;;  %v19625_v46 = vmul.f32 %v11399_v32, %v19539_v22 }
0x1da9   : > { %v11534_v51 = vadd.f32 %v11470_v17, %v11091_v29  ;;  %v11472_v10 = vmul.f32 %v11408_v58, %v11204_v61  ;;  %v19628_v37 = vmul.f32 %v11401_v33, %v19544_v5  ;;  %v19631_v53 = vmul.f32 %v11403_v40, %v19555_v63 }
0x1daa   : > { %v19610_v3 = vmul.f32 %v11716_v12, %v19526_v19  ;;  %v19633_v25 = vmul.f32 0.5, %v11091_v29  ;;  %v11346_v38 = vmul.f32 0.044715, %v11095_v8  ;;  %v19637_v0 = vadd.f32 %v19546_v48, %v19495_v54 }
0x1dab   : > { %v15273_v9 = vpop.eup %15272  ;;  %v11598_v31 = vmul.f32 0.7978846, %v11534_v51  ;;  %v11536_v52 = vadd.f32 %v11472_v10, %v11204_v61  ;;  %v11348_v32 = vmul.f32 0.044715, %v11208_v27  ;;  %v19640_v17 = vmul.f32 %v11405_v43, %v19567_v47 }
0x1dac   : > { %v15275_v12 = vpop.eup %15274  ;;  %v11718_v19 = vadd.f32 1.0, %v15273_v9  ;;  %v19642_v33 = vmul.f32 0.5, %v11204_v61  ;;  %v11343_v40 = vmul.f32 0.044715, %v19619_v16  ;;  %v11410_v58 = vmul.f32 %v11346_v38, %v11095_v8 }
0x1dad   : > { %15280 = vtanh.f32 %v11598_v31  ;;  %v11600_v29 = vmul.f32 0.7978846, %v11536_v52  ;;  %v11412_v20 = vmul.f32 %v11348_v32, %v11208_v27  ;;  %v11720_v62 = vadd.f32 1.0, %v15275_v12 }
0x1dae   : > { %v19647_v51 = vadd.f32 %v19557_v30, %v19493_v28  ;;  %v19651_v48 = vadd.f32 %v19561_v45, %v19495_v54  ;;  %v11101_v43 = vadd.f32 %v19577_v34, %v19489_v55  ;;  %v11345_v9 = vmul.f32 0.044715, %v19637_v0 }
0x1daf   : > { %v15277_v61 = vpop.eup %15276  ;;  %15282 = vtanh.f32 %v11600_v29  ;;  %v11474_v10 = vmul.f32 %v11410_v58, %v11095_v8  ;;  %v11476_v31 = vmul.f32 %v11412_v20, %v11208_v27  ;;  %v19657_v12 = vmul.f32 %v11718_v19, %v19559_v6 }
0x1db0   : > { %v15279_v38 = vpop.eup %15278  ;;  %v11722_v52 = vadd.f32 1.0, %v15277_v61  ;;  %v19659_v30 = vmul.f32 0.5, %v11095_v8  ;;  %v11214_v45 = vadd.f32 %v19579_v44, %v19486_v1  ;;  %v11350_v34 = vmul.f32 0.044715, %v11101_v43 }
0x1db1   : > { %v11724_v32 = vadd.f32 1.0, %v15279_v38  ;;  %v11538_v18 = vadd.f32 %v11474_v10, %v11095_v8  ;;  %v11540_v4 = vadd.f32 %v11476_v31, %v11208_v27  ;;  %v19664_v29 = vmul.f32 %v11720_v62, %v19563_v15 }
0x1db2   : > { %v19667_v58 = vmul.f32 %v11722_v52, %v19570_v7  ;;  %v11347_v20 = vmul.f32 0.044715, %v19647_v51  ;;  %v11349_v6 = vmul.f32 0.044715, %v19651_v48  ;;  %v11414_v44 = vmul.f32 %v11350_v34, %v11101_v43 }
0x1db3   : > { %20615 = vst [vmem:[#allocation65_spill] sm:$0xff] %v19664_v29  ;;  %v19672_v19 = vmul.f32 %v11724_v32, %v19574_v59  ;;  %v11602_v61 = vmul.f32 0.7978846, %v11538_v18  ;;  %v11604_v13 = vmul.f32 0.7978846, %v11540_v4  ;;  %v11407_v10 = vmul.f32 %v11343_v40, %v19619_v16 }
0x1db4   : > { %v11409_v62 = vmul.f32 %v11345_v9, %v19637_v0  ;;  %v11352_v15 = vmul.f32 0.044715, %v11214_v45  ;;  %v11478_v31 = vmul.f32 %v11414_v44, %v11101_v43  ;;  %v19682_v59 = vadd.f32 %v19582_v11, %v19493_v28 }
0x1db5   : > { %20616 = vst [vmem:[#allocation50_spill] sm:$0xff] %v19672_v19  ;;  %15284 = vtanh.f32 %v11602_v61  ;;  %v11411_v4 = vmul.f32 %v11347_v20, %v19647_v51  ;;  %v11105_v38 = vadd.f32 %v19590_v35, %v19489_v55  ;;  %v11284_v52 = vmul.f32 0.5, %v11208_v27 }
0x1db6   : > { %15286 = vtanh.f32 %v11604_v13  ;;  %v11416_v18 = vmul.f32 %v11352_v15, %v11214_v45  ;;  %v11413_v9 = vmul.f32 %v11349_v6, %v19651_v48  ;;  %v11542_v32 = vadd.f32 %v11478_v31, %v11101_v43 }
0x1db7   : > { %v15281_v40 = vpop.eup %15280  ;;  %v11218_v34 = vadd.f32 %v19592_v36, %v19486_v1  ;;  %v19691_v61 = vmul.f32 %v11407_v10, %v19619_v16  ;;  %v11351_v13 = vmul.f32 0.044715, %v19682_v59  ;;  %v19696_v20 = vadd.f32 %v19584_v50, %v19495_v54 }
0x1db8   : > { %v11480_v11 = vmul.f32 %v11416_v18, %v11214_v45  ;;  %v19699_v35 = vmul.f32 %v11409_v62, %v19637_v0  ;;  %v19701_v27 = vmul.f32 0.5, %v11101_v43  ;;  %v19703_v6 = vmul.f32 0.5, %v11214_v45 }
0x1db9   : > { %v15283_v44 = vpop.eup %15282  ;;  %v11354_v15 = vmul.f32 0.044715, %v11105_v38  ;;  %v11726_v36 = vadd.f32 1.0, %v15281_v40  ;;  %v19706_v10 = vmul.f32 %v11411_v4, %v19647_v51  ;;  %v11606_v31 = vmul.f32 0.7978846, %v11542_v32 }
0x1dba   : > { %v11544_v18 = vadd.f32 %v11480_v11, %v11214_v45  ;;  %v19709_v7 = vmul.f32 %v11413_v9, %v19651_v48  ;;  %v11356_v8 = vmul.f32 0.044715, %v11218_v34  ;;  %v19713_v62 = vadd.f32 %v19596_v26, %v19493_v28 }
0x1dbb   : > { %v11418_v50 = vmul.f32 %v11354_v15, %v11105_v38  ;;  %v11728_v43 = vadd.f32 1.0, %v15283_v44  ;;  %v11415_v29 = vmul.f32 %v11351_v13, %v19682_v59  ;;  %v11353_v19 = vmul.f32 0.044715, %v19696_v20 }
0x1dbc   : > { %v19717_v40 = vmul.f32 0.5, %v11105_v38  ;;  %v11608_v4 = vmul.f32 0.7978846, %v11544_v18  ;;  %v19719_v32 = vmul.f32 0.5, %v11218_v34  ;;  %v11420_v45 = vmul.f32 %v11356_v8, %v11218_v34 }
0x1dbd   : > { %v11482_v1 = vmul.f32 %v11418_v50, %v11105_v38  ;;  %v19722_v9 = vmul.f32 %v11726_v36, %v19633_v25  ;;  %15288 = vtanh.f32 %v11606_v31  ;;  %v19726_v26 = vadd.f32 %v19598_v2, %v19495_v54 }
0x1dbe   : > { %v11519_v11 = vadd.f32 %v19533_v39, %v19500_v41  ;;  %v11484_v15 = vmul.f32 %v11420_v45, %v11218_v34  ;;  %v11355_v18 = vmul.f32 0.044715, %v19713_v62  ;;  %v11523_v50 = vadd.f32 %v19551_v42, %v19508_v21 }
0x1dbf   : > { %v15285_v13 = vpop.eup %15284  ;;  %v11546_v44 = vadd.f32 %v11482_v1, %v11105_v38  ;;  %v19734_v25 = vmul.f32 %v11728_v43, %v19642_v33  ;;  %v11417_v31 = vmul.f32 %v11353_v19, %v19696_v20  ;;  %15290 = vtanh.f32 %v11608_v4 }
0x1dc0   : > { %v15287_v8 = vpop.eup %15286  ;;  %v11730_v36 = vadd.f32 1.0, %v15285_v13  ;;  %v11583_v2 = vmul.f32 0.7978846, %v11519_v11  ;;  %v11548_v39 = vadd.f32 %v11484_v15, %v11218_v34  ;;  %v11357_v38 = vmul.f32 0.044715, %v19726_v26 }
0x1dc1   : > { %v11732_v54 = vadd.f32 1.0, %v15287_v8  ;;  %v11610_v28 = vmul.f32 0.7978846, %v11546_v44  ;;  %v11587_v45 = vmul.f32 0.7978846, %v11523_v50  ;;  %v11419_v43 = vmul.f32 %v11355_v18, %v19713_v62 }
0x1dc2   : > { %v19738_v1 = vmul.f32 %v11730_v36, %v19659_v30  ;;  %15292 = vtanh.f32 %v11583_v2  ;;  %v11612_v33 = vmul.f32 0.7978846, %v11548_v39  ;;  %v11521_v34 = vadd.f32 %v19536_v60, %v19503_v49 }
0x1dc3   : > { %v19741_v42 = vmul.f32 %v11732_v54, %v11284_v52  ;;  %15294 = vtanh.f32 %v11610_v28  ;;  %v11525_v30 = vadd.f32 %v19587_v24, %v19520_v14  ;;  %v11479_v54 = vmul.f32 %v11415_v29, %v19682_v59 }
0x1dc4   : > { %v11846_v19 = vpack.c.bf16 %v19738_v1, %v19722_v9  ;;  %15296 = vtanh.f32 %v11587_v45  ;;  %v19754_v28 = vmul.f32 %v11417_v31, %v19696_v20  ;;  %v11421_v52 = vmul.f32 %v11357_v38, %v19726_v26 }
0x1dc5   : > { %v11848_v4 = vpack.c.bf16 %v19741_v42, %v19734_v25  ;;  %15298 = vtanh.f32 %v11612_v33  ;;  %v11585_v11 = vmul.f32 0.7978846, %v11521_v34  ;;  %v11589_v13 = vmul.f32 0.7978846, %v11525_v30 }
0x1dc6   : > { %v11527_v44 = vadd.f32 %v19625_v46, %v19539_v22  ;;  %v11263_v60 = vmul.f32 0.5, %v19500_v41  ;;  %v11267_v24 = vmul.f32 0.5, %v19508_v21  ;;  %v11531_v15 = vadd.f32 %v19631_v53, %v19555_v63 }
0x1dc7   : > { %v11529_v29 = vadd.f32 %v19628_v37, %v19544_v5  ;;  %v15289_v18 = vpop.eup %15288  ;;  %v11483_v50 = vmul.f32 %v11419_v43, %v19713_v62  ;;  %15300 = vtanh.f32 %v11585_v11  ;;  %v11533_v36 = vadd.f32 %v19640_v17, %v19567_v47 }
0x1dc8   : > { %v11591_v8 = vmul.f32 0.7978846, %v11527_v44  ;;  %v11265_v46 = vmul.f32 0.5, %v19503_v49  ;;  %15302 = vtanh.f32 %v11589_v13  ;;  %v11595_v41 = vmul.f32 0.7978846, %v11531_v15 }
0x1dc9   : > { %v11593_v31 = vmul.f32 0.7978846, %v11529_v29  ;;  %v11485_v21 = vmul.f32 %v11421_v52, %v19726_v26  ;;  %v11269_v53 = vmul.f32 0.5, %v19520_v14  ;;  %v11597_v2 = vmul.f32 0.7978846, %v11533_v36  ;;  %v15291_v37 = vpop.eup %15290 }
0x1dca   : > { %15304 = vtanh.f32 %v11591_v8  ;;  %v11734_v39 = vadd.f32 1.0, %v15289_v18  ;;  %v11535_v38 = vadd.f32 %v19691_v61, %v19619_v16  ;;  %v11539_v17 = vadd.f32 %v19706_v10, %v19647_v51 }
0x1dcb   : > { %15306 = vtanh.f32 %v11595_v41  ;;  %v11271_v49 = vmul.f32 0.5, %v19539_v22  ;;  %v11275_v33 = vmul.f32 0.5, %v19555_v63  ;;  %v11537_v14 = vadd.f32 %v19699_v35, %v19637_v0 }
0x1dcc   : > { %v15293_v45 = vpop.eup %15292  ;;  %15308 = vtanh.f32 %v11593_v31  ;;  %v11599_v30 = vmul.f32 0.7978846, %v11535_v38  ;;  %v11603_v52 = vmul.f32 0.7978846, %v11539_v17  ;;  %v11736_v13 = vadd.f32 1.0, %v15291_v37 }
0x1dcd   : > { %v15295_v43 = vpop.eup %15294  ;;  %v11711_v34 = vadd.f32 1.0, %v15293_v45  ;;  %15310 = vtanh.f32 %v11597_v2  ;;  %v11541_v10 = vadd.f32 %v19709_v7, %v19651_v48  ;;  %v11601_v44 = vmul.f32 0.7978846, %v11537_v14 }
0x1dce   : > { %v15297_v11 = vpop.eup %15296  ;;  %v11738_v61 = vadd.f32 1.0, %v15295_v43  ;;  %v19782_v22 = vmul.f32 %v11734_v39, %v19701_v27  ;;  %15312 = vtanh.f32 %v11599_v30  ;;  %v11543_v41 = vadd.f32 %v11479_v54, %v19682_v59 }
0x1dcf   : > { %v15299_v15 = vpop.eup %15298  ;;  %v11715_v63 = vadd.f32 1.0, %v15297_v11  ;;  %v11775_v29 = vmul.f32 %v11711_v34, %v11263_v60  ;;  %15314 = vtanh.f32 %v11603_v52  ;;  %v11605_v8 = vmul.f32 0.7978846, %v11541_v10 }
0x1dd0   : > { %v19785_v35 = vmul.f32 %v11738_v61, %v19717_v40  ;;  %v11740_v18 = vadd.f32 1.0, %v15299_v15  ;;  %15316 = vtanh.f32 %v11601_v44  ;;  %v11547_v7 = vadd.f32 %v11483_v50, %v19713_v62 }
0x1dd1   : > { %v11779_v36 = vmul.f32 %v11715_v63, %v11267_v24  ;;  %v15301_v31 = vpop.eup %15300  ;;  %v19790_v2 = vmul.f32 %v11736_v13, %v19703_v6  ;;  %15318 = vtanh.f32 %v11605_v8  ;;  %v11607_v24 = vmul.f32 0.7978846, %v11543_v41 }
0x1dd2   : > { %v11850_v27 = vpack.c.bf16 %v19785_v35, %v19782_v22  ;;  %v19795_v60 = vmul.f32 %v11740_v18, %v19719_v32  ;;  %v15303_v40 = vpop.eup %15302  ;;  %v11713_v39 = vadd.f32 1.0, %v15301_v31  ;;  %v11611_v38 = vmul.f32 0.7978846, %v11547_v7 }
0x1dd3   : > { %v11839_v37 = vpack.c.bf16 %v11779_v36, %v11775_v29  ;;  %v11717_v50 = vadd.f32 1.0, %v15303_v40  ;;  %v11273_v6 = vmul.f32 0.5, %v19544_v5  ;;  %v11545_v45 = vadd.f32 %v19754_v28, %v19696_v20 }
0x1dd4   : > { %v15305_v17 = vpop.eup %15304  ;;  %v11852_v54 = vpack.c.bf16 %v19795_v60, %v19790_v2  ;;  %v11777_v32 = vmul.f32 %v11713_v39, %v11265_v46  ;;  %15320 = vtanh.f32 %v11607_v24  ;;  %v11549_v34 = vadd.f32 %v11485_v21, %v19726_v26 }
0x1dd5   : > { %v15307_v14 = vpop.eup %15306  ;;  %12165 = vmatprep.mubr.bf16.mxu1 %v11839_v37  ;;  %v11719_v43 = vadd.f32 1.0, %v15305_v17  ;;  %v11781_v52 = vmul.f32 %v11717_v50, %v11269_v53  ;;  %v20617_v11 = vpack.c.bf16 %v19607_v56, %v19601_v23  ;;  %15322 = vtanh.f32 %v11611_v38 }
0x1dd6   : > { %v15309_v30 = vpop.eup %15308  ;;  %v11723_v13 = vadd.f32 1.0, %v15307_v14  ;;  %v11609_v61 = vmul.f32 0.7978846, %v11545_v45  ;;  %v11277_v28 = vmul.f32 0.5, %v19567_v47  ;;  %v11613_v15 = vmul.f32 0.7978846, %v11549_v34 }
0x1dd7   : > { %12166 = vmatmul.mubr.bf16.vlgmr.msra.gmra.mrb[112].mxu1 %v20617_v11  ;;  %v15311_v5 = vpop.eup %15310  ;;  %v11783_v10 = vmul.f32 %v11719_v43, %v11271_v49  ;;  %v11721_v44 = vadd.f32 1.0, %v15309_v30  ;;  %v11841_v46 = vpack.c.bf16 %v11781_v52, %v11777_v32  ;;  %v20618_v49 = vpack.c.bf16 %v19610_v3, %v19604_v57 }
0x1dd8   : > { %v11787_v63 = vmul.f32 %v11723_v13, %v11275_v33  ;;  %v11725_v29 = vadd.f32 1.0, %v15311_v5  ;;  %15324 = vtanh.f32 %v11609_v61  ;;  %v15313_v21 = vpop.eup %15312  ;;  %v11279_v47 = vmul.f32 0.5, %v19619_v16  ;;  %v20621_v5 = vld [vmem:[#allocation50_spill] sm:$0xff] }
0x1dd9   : > { %15326 = vtanh.f32 %v11613_v15  ;;  %v15315_v53 = vpop.eup %15314  ;;  %12262 = vmatprep.mubr.bf16.mxu0 %v11841_v46  ;;  %v11785_v23 = vmul.f32 %v11721_v44, %v11273_v6  ;;  %v11727_v8 = vadd.f32 1.0, %v15313_v21  ;;  %v11283_v41 = vmul.f32 0.5, %v19647_v51 }
0x1dda   : > { %v11843_v18 = vpack.c.bf16 %v11787_v63, %v11783_v10  ;;  %v11789_v56 = vmul.f32 %v11725_v29, %v11277_v28  ;;  %v15317_v36 = vpop.eup %15316  ;;  %12263 = vmatmul.mubr.bf16.vlgmr.msra.gmra.mrb[16].mxu0 %v20618_v49  ;;  %v11731_v33 = vadd.f32 1.0, %v15315_v53  ;;  %v11281_v40 = vmul.f32 0.5, %v19637_v0  ;;  %v20622_v10 = vld [vmem:[#allocation65_spill] sm:$0xff]  ;;  %v20625_v49 = vld [vmem:[#allocation64_spill] sm:$0xff] }
0x1ddb   : > { %v15319_v7 = vpop.eup %15318  ;;  %v11729_v37 = vadd.f32 1.0, %v15317_v36  ;;  %v11791_v39 = vmul.f32 %v11727_v8, %v11279_v47  ;;  %v11285_v38 = vmul.f32 0.5, %v19651_v48  ;;  %v20619_v57 = vpack.c.bf16 %v19667_v58, %v19657_v12  ;;  %v20620_v12 = vld [vmem:[#allocation48_spill] sm:$0xff]  ;;  %v20624_v8 = vld [vmem:[#allocation49_spill] sm:$0xff] }
0x1ddc   : > { %12173 = vmatprep.mubr.bf16.mxu1 %v11843_v18  ;;  %v11845_v31 = vpack.c.bf16 %v11789_v56, %v11785_v23  ;;  %v11795_v24 = vmul.f32 %v11731_v33, %v11283_v41  ;;  %v11733_v17 = vadd.f32 1.0, %v15319_v7  ;;  %v11287_v0 = vmul.f32 0.5, %v19682_v59 }
0x1ddd   : > { %v11793_v51 = vmul.f32 %v11729_v37, %v11281_v40  ;;  %v11291_v32 = vmul.f32 0.5, %v19713_v62  ;;  %v20623_v28 = vpack.c.bf16 %v20621_v5, %v20622_v10  ;;  %v11289_v63 = vmul.f32 0.5, %v19696_v20 }
0x1dde   : > { %12270 = vmatprep.mubr.bf16.mxu0 %v11845_v31  ;;  %v15321_v3 = vpop.eup %15320  ;;  %v11847_v16 = vpack.c.bf16 %v11795_v24, %v11791_v39  ;;  %v11797_v50 = vmul.f32 %v11733_v17, %v11285_v38  ;;  %v11293_v29 = vmul.f32 0.5, %v19726_v26 }
0x1ddf   : > { %12174 = vmatmul.mubr.bf16.gmra.mrb[116].mxu1 %v20619_v57  ;;  %v15323_v6 = vpop.eup %15322  ;;  %v11735_v45 = vadd.f32 1.0, %v15321_v3 }
0x1de0   : > { %12181 = vmatprep.mubr.bf16.mxu1 %v11847_v16  ;;  %v11849_v14 = vpack.c.bf16 %v11797_v50, %v11793_v51  ;;  %v11739_v43 = vadd.f32 1.0, %v15323_v6 }
0x1de1   : > { %v11799_v44 = vmul.f32 %v11735_v45, %v11287_v0 }
0x1de2   : > { %v11110_v48 = vpop.f32.mrb[96].mxu1  ;;  %v11223_v34 = vpop.f32.mrb[0].mxu0  ;;  %12271 = vmatmul.mubr.bf16.gmra.mrb[20].mxu0 %v20623_v28  ;;  %v11803_v15 = vmul.f32 %v11739_v43, %v11291_v32 }
0x1de3   : > { %v15325_v30 = vpop.eup %15324  ;;  %v11111_v52 = vadd.f32 %v11110_v48, %v19489_v55  ;;  %v11224_v58 = vadd.f32 %v11223_v34, %v20620_v12  ;;  %v11112_v11 = vpop.f32.mrb[97].mxu1  ;;  %12278 = vmatprep.mubr.bf16.mxu0 %v11849_v14 }
0x1de4   : > { %v11225_v13 = vpop.f32.mrb[1].mxu0  ;;  %v15327_v61 = vpop.eup %15326  ;;  %v11737_v59 = vadd.f32 1.0, %v15325_v30  ;;  %v11851_v23 = vpack.c.bf16 %v11803_v15, %v11799_v44  ;;  %v19827_v36 = vadd.f32 %v11112_v11, %v20624_v8 }
0x1de5   : > { %v11114_v46 = vpop.f32.mrb[98].mxu1  ;;  %v11227_v62 = vpop.f32.mrb[2].mxu0  ;;  %v11741_v21 = vadd.f32 1.0, %v15327_v61  ;;  %v11358_v53 = vmul.f32 0.044715, %v11111_v52  ;;  %v19830_v47 = vadd.f32 %v11225_v13, %v20625_v49  ;;  %v19851_v43 = vmul.f32 0.5, %v11111_v52 }
0x1de6   : > { %v11116_v18 = vpop.f32.mrb[99].mxu1  ;;  %v11360_v56 = vmul.f32 0.044715, %v11224_v58  ;;  %v11229_v41 = vpop.f32.mrb[3].mxu0  ;;  %v11801_v33 = vmul.f32 %v11737_v59, %v11289_v63  ;;  %v11115_v26 = vadd.f32 %v11114_v46, %v19489_v55  ;;  %v19837_v40 = vadd.f32 %v11227_v62, %v20620_v12 }
0x1de7   : > { %12182 = vmatmul.mubr.bf16.gmra.mrb[120].mxu1 %v11846_v19  ;;  %v11805_v20 = vmul.f32 %v11741_v21, %v11293_v29  ;;  %v11422_v7 = vmul.f32 %v11358_v53, %v11111_v52  ;;  %v11359_v38 = vmul.f32 0.044715, %v19827_v36  ;;  %v11361_v1 = vmul.f32 0.044715, %v19830_v47 }
0x1de8   : > { %12189 = vmatprep.mubr.bf16.mxu1 %v11851_v23  ;;  %v11424_v31 = vmul.f32 %v11360_v56, %v11224_v58  ;;  %v11362_v17 = vmul.f32 0.044715, %v11115_v26  ;;  %v11364_v19 = vmul.f32 0.044715, %v19837_v40  ;;  %v19846_v45 = vadd.f32 %v11116_v18, %v20624_v8 }
0x1de9   : > { %v11853_v37 = vpack.c.bf16 %v11805_v20, %v11801_v33  ;;  %v11486_v39 = vmul.f32 %v11422_v7, %v11111_v52  ;;  %v11423_v13 = vmul.f32 %v11359_v38, %v19827_v36  ;;  %v19865_v5 = vadd.f32 %v11229_v41, %v20625_v49 }
0x1dea   : > { %v11488_v24 = vmul.f32 %v11424_v31, %v11224_v58  ;;  %v11120_v57 = vpop.f32.mrb[100].mxu1  ;;  %v11233_v3 = vpop.f32.mrb[4].mxu0  ;;  %12279 = vmatmul.mubr.bf16.gmra.mrb[24].mxu0 %v11848_v4  ;;  %v11426_v6 = vmul.f32 %v11362_v17, %v11115_v26  ;;  %v11428_v34 = vmul.f32 %v11364_v19, %v19837_v40  ;;  %v19857_v4 = vmul.f32 0.5, %v11224_v58 }
0x1deb   : > { %v11550_v9 = vadd.f32 %v11486_v39, %v11111_v52  ;;  %v11122_v16 = vpop.f32.mrb[101].mxu1  ;;  %v11235_v51 = vpop.f32.mrb[5].mxu0  ;;  %v19849_v14 = vadd.f32 %v11120_v57, %v19489_v55  ;;  %12286 = vmatprep.mubr.bf16.mxu0 %v11853_v37  ;;  %v19855_v30 = vadd.f32 %v11233_v3, %v20620_v12  ;;  %v11363_v44 = vmul.f32 0.044715, %v19846_v45 }
0x1dec   : > { %v11552_v50 = vadd.f32 %v11488_v24, %v11224_v58  ;;  %v11124_v0 = vpop.f32.mrb[102].mxu1  ;;  %v11237_v32 = vpop.f32.mrb[6].mxu0  ;;  %v11490_v61 = vmul.f32 %v11426_v6, %v11115_v26  ;;  %v11492_v52 = vmul.f32 %v11428_v34, %v19837_v40  ;;  %v11425_v58 = vmul.f32 %v11361_v1, %v19830_v47 }
0x1ded   : > { %v11614_v48 = vmul.f32 0.7978846, %v11550_v9  ;;  %v11126_v25 = vpop.f32.mrb[103].mxu1  ;;  %v11239_v42 = vpop.f32.mrb[7].mxu0  ;;  %v11366_v10 = vmul.f32 0.044715, %v19849_v14  ;;  %v19874_v35 = vadd.f32 %v11122_v16, %v20624_v8  ;;  %v19879_v62 = vadd.f32 %v11235_v51, %v20625_v49 }
0x1dee   : > { %v11616_v11 = vmul.f32 0.7978846, %v11552_v50  ;;  %v11554_v28 = vadd.f32 %v11490_v61, %v11115_v26  ;;  %v11556_v15 = vadd.f32 %v11492_v52, %v19837_v40  ;;  %v11368_v22 = vmul.f32 0.044715, %v19855_v30 }
0x1def   : > { %12190 = vmatmul.mubr.bf16.gmra.mrb[124].mxu1 %v11850_v27  ;;  %15328 = vtanh.f32 %v11614_v48  ;;  %v11430_v59 = vmul.f32 %v11366_v10, %v19849_v14  ;;  %v19876_v27 = vmul.f32 0.5, %v11115_v26  ;;  %v19882_v63 = vadd.f32 %v11124_v0, %v19489_v55 }
0x1df0   : > { %15330 = vtanh.f32 %v11616_v11  ;;  %v11618_v46 = vmul.f32 0.7978846, %v11554_v28  ;;  %v11620_v29 = vmul.f32 0.7978846, %v11556_v15  ;;  %v11365_v21 = vmul.f32 0.044715, %v19865_v5 }
0x1df1   : > { %v11494_v53 = vmul.f32 %v11430_v59, %v19849_v14  ;;  %v11432_v18 = vmul.f32 %v11368_v22, %v19855_v30  ;;  %v11367_v23 = vmul.f32 0.044715, %v19874_v35  ;;  %v11369_v56 = vmul.f32 0.044715, %v19879_v62 }
0x1df2   : > { %12287 = vmatmul.mubr.bf16.gmra.mrb[28].mxu0 %v11852_v54  ;;  %15332 = vtanh.f32 %v11618_v46  ;;  %v11370_v41 = vmul.f32 0.044715, %v19882_v63  ;;  %v11427_v33 = vmul.f32 %v11363_v44, %v19846_v45  ;;  %v11487_v26 = vmul.f32 %v11423_v13, %v19827_v36 }
0x1df3   : > { %15334 = vtanh.f32 %v11620_v29  ;;  %v11558_v20 = vadd.f32 %v11494_v53, %v19849_v14  ;;  %v11496_v7 = vmul.f32 %v11432_v18, %v19855_v30  ;;  %v19899_v2 = vadd.f32 %v11237_v32, %v20620_v12 }
0x1df4   : > { %v11434_v31 = vmul.f32 %v11370_v41, %v19882_v63  ;;  %v19902_v60 = vadd.f32 %v11126_v25, %v20624_v8  ;;  %v11429_v54 = vmul.f32 %v11365_v21, %v19865_v5  ;;  %v19907_v24 = vadd.f32 %v11239_v42, %v20625_v49 }
0x1df5   : > { %v11622_v37 = vmul.f32 0.7978846, %v11558_v20  ;;  %v11560_v39 = vadd.f32 %v11496_v7, %v19855_v30  ;;  %v11431_v38 = vmul.f32 %v11367_v23, %v19874_v35  ;;  %v11433_v17 = vmul.f32 %v11369_v56, %v19879_v62 }
0x1df6   : > { %v11498_v57 = vmul.f32 %v11434_v31, %v19882_v63  ;;  %v11372_v3 = vmul.f32 0.044715, %v19899_v2  ;;  %v11491_v1 = vmul.f32 %v11427_v33, %v19846_v45  ;;  %v11371_v16 = vmul.f32 0.044715, %v19902_v60 }
0x1df7   : > { %v11624_v19 = vmul.f32 0.7978846, %v11560_v39  ;;  %v11373_v51 = vmul.f32 0.044715, %v19907_v24  ;;  %15336 = vtanh.f32 %v11622_v37  ;;  %v11489_v48 = vmul.f32 %v11425_v58, %v19830_v47 }
0x1df8   : > { %v11562_v0 = vadd.f32 %v11498_v57, %v19882_v63  ;;  %v11436_v32 = vmul.f32 %v11372_v3, %v19899_v2  ;;  %v11300_v34 = vmul.f32 0.5, %v19837_v40  ;;  %v11493_v25 = vmul.f32 %v11429_v54, %v19865_v5 }
0x1df9   : > { %v15329_v9 = vpop.eup %15328  ;;  %v11435_v42 = vmul.f32 %v11371_v16, %v19902_v60  ;;  %v11495_v11 = vmul.f32 %v11431_v38, %v19874_v35  ;;  %v11497_v13 = vmul.f32 %v11433_v17, %v19879_v62  ;;  %15338 = vtanh.f32 %v11624_v19 }
0x1dfa   : > { %v15331_v50 = vpop.eup %15330  ;;  %v11742_v6 = vadd.f32 1.0, %v15329_v9  ;;  %v11626_v61 = vmul.f32 0.7978846, %v11562_v0  ;;  %v11500_v52 = vmul.f32 %v11436_v32, %v19899_v2  ;;  %v11437_v28 = vmul.f32 %v11373_v51, %v19907_v24 }
0x1dfb   : > { %v11744_v10 = vadd.f32 1.0, %v15331_v50  ;;  %v11551_v44 = vadd.f32 %v11487_v26, %v19827_v36  ;;  %v11555_v59 = vadd.f32 %v11491_v1, %v19846_v45  ;;  %v11499_v29 = vmul.f32 %v11435_v42, %v19902_v60 }
0x1dfc   : > { %v15333_v58 = vpop.eup %15332  ;;  %v19928_v40 = vmul.f32 %v11742_v6, %v19851_v43  ;;  %15340 = vtanh.f32 %v11626_v61  ;;  %v11564_v15 = vadd.f32 %v11500_v52, %v19899_v2  ;;  %v11553_v53 = vadd.f32 %v11489_v48, %v19830_v47 }
0x1dfd   : > { %v15335_v22 = vpop.eup %15334  ;;  %v11746_v46 = vadd.f32 1.0, %v15333_v58  ;;  %v11615_v21 = vmul.f32 0.7978846, %v11551_v44  ;;  %v11619_v56 = vmul.f32 0.7978846, %v11555_v59  ;;  %v11557_v41 = vadd.f32 %v11493_v25, %v19865_v5 }
0x1dfe   : > { %v11748_v18 = vadd.f32 1.0, %v15335_v22  ;;  %v11628_v23 = vmul.f32 0.7978846, %v11564_v15  ;;  %v19936_v43 = vmul.f32 %v11744_v10, %v19857_v4  ;;  %v11617_v20 = vmul.f32 0.7978846, %v11553_v53 }
0x1dff   : > { %v19939_v33 = vmul.f32 %v11746_v46, %v19876_v27  ;;  %15342 = vtanh.f32 %v11615_v21  ;;  %v11501_v26 = vmul.f32 %v11437_v28, %v19907_v24  ;;  %v11621_v31 = vmul.f32 0.7978846, %v11557_v41 }
0x1e00   : > { %v19941_v7 = vmul.f32 %v11748_v18, %v11300_v34  ;;  %15344 = vtanh.f32 %v11628_v23  ;;  %v11559_v37 = vadd.f32 %v11495_v11, %v19874_v35  ;;  %v11563_v4 = vadd.f32 %v11499_v29, %v19902_v60 }
0x1e01   : > { %v11854_v54 = vpack.c.bf16 %v19939_v33, %v19928_v40  ;;  %15346 = vtanh.f32 %v11619_v56  ;;  %v15337_v39 = vpop.eup %15336  ;;  %v11561_v57 = vadd.f32 %v11497_v13, %v19879_v62  ;;  %v11565_v3 = vadd.f32 %v11501_v26, %v19907_v24 }
0x1e02   : > { %v11856_v27 = vpack.c.bf16 %v19941_v7, %v19936_v43  ;;  %15348 = vtanh.f32 %v11617_v20  ;;  %v11623_v38 = vmul.f32 0.7978846, %v11559_v37  ;;  %v11627_v17 = vmul.f32 0.7978846, %v11563_v4 }
0x1e03   : > { %15350 = vtanh.f32 %v11621_v31  ;;  %v15339_v9 = vpop.eup %15338  ;;  %v11750_v1 = vadd.f32 1.0, %v15337_v39  ;;  %v11625_v16 = vmul.f32 0.7978846, %v11561_v57  ;;  %v11629_v51 = vmul.f32 0.7978846, %v11565_v3 }
0x1e04   : > { %15352 = vtanh.f32 %v11623_v38  ;;  %v11302_v50 = vmul.f32 0.5, %v19849_v14  ;;  %v11306_v6 = vmul.f32 0.5, %v19882_v63  ;;  %v11752_v34 = vadd.f32 1.0, %v15339_v9 }
0x1e05   : > { %15354 = vtanh.f32 %v11627_v17  ;;  %v11304_v61 = vmul.f32 0.5, %v19855_v30  ;;  %v11308_v14 = vmul.f32 0.5, %v19899_v2  ;;  %v11295_v28 = vmul.f32 0.5, %v19827_v36 }
0x1e06   : > { %v15341_v19 = vpop.eup %15340  ;;  %15356 = vtanh.f32 %v11625_v16  ;;  %v19954_v48 = vmul.f32 %v11750_v1, %v11302_v50  ;;  %v11299_v44 = vmul.f32 0.5, %v19846_v45  ;;  %v11297_v22 = vmul.f32 0.5, %v19830_v47 }
0x1e07   : > { %v11754_v0 = vadd.f32 1.0, %v15341_v19  ;;  %15358 = vtanh.f32 %v11629_v51  ;;  %v19964_v15 = vmul.f32 %v11752_v34, %v11304_v61  ;;  %v11301_v21 = vmul.f32 0.5, %v19865_v5 }
0x1e08   : > { %v11303_v33 = vmul.f32 0.5, %v19874_v35  ;;  %v11307_v20 = vmul.f32 0.5, %v19902_v60  ;;  %v11305_v38 = vmul.f32 0.5, %v19879_v62  ;;  %v11309_v17 = vmul.f32 0.5, %v19907_v24 }
0x1e09   : > { %v15343_v32 = vpop.eup %15342  ;;  %v19956_v25 = vmul.f32 %v11754_v0, %v11306_v6 }
0x1e0a   : > { %v15345_v42 = vpop.eup %15344  ;;  %v11743_v11 = vadd.f32 1.0, %v15343_v32 }
0x1e0b   : > { %v15347_v13 = vpop.eup %15346  ;;  %v11858_v52 = vpack.c.bf16 %v19956_v25, %v19954_v48  ;;  %v11756_v63 = vadd.f32 1.0, %v15345_v42 }
0x1e0c   : > { %v15349_v10 = vpop.eup %15348  ;;  %v11747_v58 = vadd.f32 1.0, %v15347_v13  ;;  %v11807_v46 = vmul.f32 %v11743_v11, %v11295_v28 }
0x1e0d   : > { %v15351_v40 = vpop.eup %15350  ;;  %v19966_v59 = vmul.f32 %v11756_v63, %v11308_v14  ;;  %v11745_v30 = vadd.f32 1.0, %v15349_v10 }
0x1e0e   : > { %v11811_v29 = vmul.f32 %v11747_v58, %v11299_v44  ;;  %v11749_v2 = vadd.f32 1.0, %v15351_v40  ;;  %v15353_v53 = vpop.eup %15352 }
0x1e0f   : > { %v11860_v36 = vpack.c.bf16 %v19966_v59, %v19964_v15  ;;  %v15355_v18 = vpop.eup %15354  ;;  %v11809_v23 = vmul.f32 %v11745_v30, %v11297_v22  ;;  %v11751_v41 = vadd.f32 1.0, %v15353_v53 }
0x1e10   : > { %v11855_v45 = vpack.c.bf16 %v11811_v29, %v11807_v46  ;;  %v11813_v56 = vmul.f32 %v11749_v2, %v11301_v21  ;;  %v11755_v47 = vadd.f32 1.0, %v15355_v18  ;;  %v15357_v26 = vpop.eup %15356 }
0x1e11   : > { %v15359_v37 = vpop.eup %15358  ;;  %v11815_v5 = vmul.f32 %v11751_v41, %v11303_v33  ;;  %v11753_v39 = vadd.f32 1.0, %v15357_v26 }
0x1e12   : > { %12197 = vmatprep.mubr.bf16.mxu1 %v11855_v45  ;;  %v11857_v31 = vpack.c.bf16 %v11813_v56, %v11809_v23  ;;  %v11819_v4 = vmul.f32 %v11755_v47, %v11307_v20  ;;  %v11757_v57 = vadd.f32 1.0, %v15359_v37 }
0x1e13   : > { %12198 = vmatmul.mubr.bf16.gmra.mrb[128].mxu1 %v11854_v54  ;;  %v11817_v16 = vmul.f32 %v11753_v39, %v11305_v38 }
0x1e14   : > { %12294 = vmatprep.mubr.bf16.mxu0 %v11857_v31  ;;  %v11859_v35 = vpack.c.bf16 %v11819_v4, %v11815_v5  ;;  %v11821_v51 = vmul.f32 %v11757_v57, %v11309_v17 }
0x1e15   : > { %12295 = vmatmul.mubr.bf16.gmra.mrb[32].mxu0 %v11856_v27 }
0x1e16   : > { %12205 = vmatprep.mubr.bf16.mxu1 %v11859_v35  ;;  %v11861_v32 = vpack.c.bf16 %v11821_v51, %v11817_v16 }
0x1e17   : > { %v11130_v3 = vpop.f32.mrb[104].mxu1  ;;  %v11243_v9 = vpop.f32.mrb[8].mxu0 }
0x1e18   : > { %v11131_v60 = vadd.f32 %v11130_v3, %v19489_v55  ;;  %v11244_v54 = vadd.f32 %v11243_v9, %v20620_v12  ;;  %v11132_v1 = vpop.f32.mrb[105].mxu1  ;;  %v11245_v19 = vpop.f32.mrb[9].mxu0  ;;  %12302 = vmatprep.mubr.bf16.mxu0 %v11861_v32 }
0x1e19   : > { %v19982_v62 = vadd.f32 %v11132_v1, %v20624_v8  ;;  %v11134_v24 = vpop.f32.mrb[106].mxu1  ;;  %v11247_v50 = vpop.f32.mrb[10].mxu0  ;;  %v19985_v43 = vadd.f32 %v11245_v19, %v20625_v49 }
0x1e1a   : > { %v11374_v6 = vmul.f32 0.044715, %v11131_v60  ;;  %v11376_v0 = vmul.f32 0.044715, %v11244_v54  ;;  %v11135_v7 = vadd.f32 %v11134_v24, %v19489_v55  ;;  %v11136_v27 = vpop.f32.mrb[107].mxu1  ;;  %v11249_v34 = vpop.f32.mrb[11].mxu0  ;;  %v11248_v13 = vadd.f32 %v11247_v50, %v20620_v12 }
0x1e1b   : > { %v11375_v61 = vmul.f32 0.044715, %v19982_v62  ;;  %12206 = vmatmul.mubr.bf16.gmra.mrb[132].mxu1 %v11858_v52  ;;  %v19993_v44 = vmul.f32 0.5, %v11131_v60  ;;  %v19995_v58 = vmul.f32 0.5, %v11244_v54  ;;  %v11377_v40 = vmul.f32 0.044715, %v19985_v43 }
0x1e1c   : > { %v11438_v42 = vmul.f32 %v11374_v6, %v11131_v60  ;;  %v11440_v11 = vmul.f32 %v11376_v0, %v11244_v54  ;;  %v11378_v14 = vmul.f32 0.044715, %v11135_v7  ;;  %v11380_v28 = vmul.f32 0.044715, %v11248_v13 }
0x1e1d   : > { %12303 = vmatmul.mubr.bf16.gmra.mrb[36].mxu0 %v11860_v36  ;;  %v19999_v21 = vadd.f32 %v11136_v27, %v20624_v8  ;;  %v11439_v52 = vmul.f32 %v11375_v61, %v19982_v62  ;;  %v20009_v33 = vadd.f32 %v11249_v34, %v20625_v49  ;;  %v11441_v20 = vmul.f32 %v11377_v40, %v19985_v43 }
0x1e1e   : > { %v11502_v63 = vmul.f32 %v11438_v42, %v11131_v60  ;;  %v11504_v10 = vmul.f32 %v11440_v11, %v11244_v54  ;;  %v11442_v15 = vmul.f32 %v11378_v14, %v11135_v7  ;;  %v11444_v29 = vmul.f32 %v11380_v28, %v11248_v13 }
0x1e1f   : > { %v11140_v59 = vpop.f32.mrb[108].mxu1  ;;  %v11253_v22 = vpop.f32.mrb[12].mxu0  ;;  %v20012_v47 = vmul.f32 0.5, %v11135_v7  ;;  %v20015_v4 = vmul.f32 0.5, %v11248_v13  ;;  %v11379_v38 = vmul.f32 0.044715, %v19999_v21  ;;  %v11503_v27 = vmul.f32 %v11439_v52, %v19982_v62 }
0x1e20   : > { %v11566_v30 = vadd.f32 %v11502_v63, %v11131_v60  ;;  %v11568_v46 = vadd.f32 %v11504_v10, %v11244_v54  ;;  %v11142_v48 = vpop.f32.mrb[109].mxu1  ;;  %v11255_v25 = vpop.f32.mrb[13].mxu0  ;;  %v11506_v2 = vmul.f32 %v11442_v15, %v11135_v7  ;;  %v20003_v53 = vadd.f32 %v11140_v59, %v19489_v55 }
0x1e21   : > { %v20006_v18 = vadd.f32 %v11253_v22, %v20620_v12  ;;  %v11144_v45 = vpop.f32.mrb[110].mxu1  ;;  %v11257_v23 = vpop.f32.mrb[14].mxu0  ;;  %v11508_v41 = vmul.f32 %v11444_v29, %v11248_v13  ;;  %v11381_v35 = vmul.f32 0.044715, %v20009_v33  ;;  %v20022_v60 = vadd.f32 %v11142_v48, %v20624_v8 }
0x1e22   : > { %v11630_v36 = vmul.f32 0.7978846, %v11566_v30  ;;  %v11632_v56 = vmul.f32 0.7978846, %v11568_v46  ;;  %v11570_v26 = vadd.f32 %v11506_v2, %v11135_v7  ;;  %v11382_v31 = vmul.f32 0.044715, %v20003_v53 }
0x1e23   : > { %v11146_v37 = vpop.f32.mrb[111].mxu1  ;;  %v11259_v5 = vpop.f32.mrb[15].mxu0  ;;  %v11572_v39 = vadd.f32 %v11508_v41, %v11248_v13  ;;  %v11384_v3 = vmul.f32 0.044715, %v20006_v18  ;;  %v20025_v54 = vadd.f32 %v11255_v25, %v20625_v49  ;;  %v20030_v16 = vadd.f32 %v11144_v45, %v19489_v55 }
0x1e24   : > { %15360 = vtanh.f32 %v11630_v36  ;;  %v11634_v17 = vmul.f32 0.7978846, %v11570_v26  ;;  %v11446_v57 = vmul.f32 %v11382_v31, %v20003_v53  ;;  %v11443_v51 = vmul.f32 %v11379_v38, %v19999_v21 }
0x1e25   : > { %15362 = vtanh.f32 %v11632_v56  ;;  %v11636_v9 = vmul.f32 0.7978846, %v11572_v39  ;;  %v11448_v19 = vmul.f32 %v11384_v3, %v20006_v18  ;;  %v11383_v24 = vmul.f32 0.044715, %v20022_v60 }
0x1e26   : > { %15364 = vtanh.f32 %v11634_v17  ;;  %v11510_v1 = vmul.f32 %v11446_v57, %v20003_v53  ;;  %v20035_v50 = vadd.f32 %v11257_v23, %v20620_v12  ;;  %v11385_v32 = vmul.f32 0.044715, %v20025_v54 }
0x1e27   : > { %15366 = vtanh.f32 %v11636_v9  ;;  %v11512_v0 = vmul.f32 %v11448_v19, %v20006_v18  ;;  %v11386_v7 = vmul.f32 0.044715, %v20030_v16  ;;  %v11505_v55 = vmul.f32 %v11441_v20, %v19985_v43 }
0x1e28   : > { %v11574_v6 = vadd.f32 %v11510_v1, %v20003_v53  ;;  %v11445_v34 = vmul.f32 %v11381_v35, %v20009_v33  ;;  %v11388_v42 = vmul.f32 0.044715, %v20035_v50  ;;  %v20048_v61 = vadd.f32 %v11146_v37, %v20624_v8 }
0x1e29   : > { %v11576_v12 = vadd.f32 %v11512_v0, %v20006_v18  ;;  %v11450_v13 = vmul.f32 %v11386_v7, %v20030_v16  ;;  %v11507_v14 = vmul.f32 %v11443_v51, %v19999_v21  ;;  %v11447_v63 = vmul.f32 %v11383_v24, %v20022_v60 }
0x1e2a   : > { %v11638_v11 = vmul.f32 0.7978846, %v11574_v6  ;;  %v11452_v10 = vmul.f32 %v11388_v42, %v20035_v50  ;;  %v20054_v28 = vadd.f32 %v11259_v5, %v20625_v49  ;;  %v11449_v15 = vmul.f32 %v11385_v32, %v20025_v54 }
0x1e2b   : > { %v11640_v40 = vmul.f32 0.7978846, %v11576_v12  ;;  %v11514_v59 = vmul.f32 %v11450_v13, %v20030_v16  ;;  %v11387_v22 = vmul.f32 0.044715, %v20048_v61  ;;  %v11509_v8 = vmul.f32 %v11445_v34, %v20009_v33 }
0x1e2c   : > { %15368 = vtanh.f32 %v11638_v11  ;;  %v11516_v46 = vmul.f32 %v11452_v10, %v20035_v50  ;;  %v11389_v29 = vmul.f32 0.044715, %v20054_v28  ;;  %v11567_v36 = vadd.f32 %v11503_v27, %v19982_v62 }
0x1e2d   : > { %15370 = vtanh.f32 %v11640_v40  ;;  %v11578_v49 = vadd.f32 %v11514_v59, %v20030_v16  ;;  %v11451_v52 = vmul.f32 %v11387_v22, %v20048_v61  ;;  %v11511_v41 = vmul.f32 %v11447_v63, %v20022_v60 }
0x1e2e   : > { %v15361_v30 = vpop.eup %15360  ;;  %v11580_v45 = vadd.f32 %v11516_v46, %v20035_v50  ;;  %v11453_v23 = vmul.f32 %v11389_v29, %v20054_v28  ;;  %v11513_v20 = vmul.f32 %v11449_v15, %v20025_v54  ;;  %v11571_v31 = vadd.f32 %v11507_v14, %v19999_v21 }
0x1e2f   : > { %v15363_v48 = vpop.eup %15362  ;;  %v11758_v25 = vadd.f32 1.0, %v15361_v30  ;;  %v11642_v26 = vmul.f32 0.7978846, %v11578_v49  ;;  %v11515_v17 = vmul.f32 %v11451_v52, %v20048_v61  ;;  %v11631_v3 = vmul.f32 0.7978846, %v11567_v36 }
0x1e30   : > { %v11760_v2 = vadd.f32 1.0, %v15363_v48  ;;  %v15365_v56 = vpop.eup %15364  ;;  %v11644_v38 = vmul.f32 0.7978846, %v11580_v45  ;;  %v11635_v9 = vmul.f32 0.7978846, %v11571_v31  ;;  %v11517_v19 = vmul.f32 %v11453_v23, %v20054_v28 }
0x1e31   : > { %v15367_v37 = vpop.eup %15366  ;;  %v20071_v5 = vmul.f32 %v11758_v25, %v19993_v44  ;;  %v11762_v39 = vadd.f32 1.0, %v15365_v56  ;;  %15372 = vtanh.f32 %v11642_v26  ;;  %v11569_v51 = vadd.f32 %v11505_v55, %v19985_v43 }
0x1e32   : > { %v11764_v57 = vadd.f32 1.0, %v15367_v37  ;;  %v20075_v35 = vmul.f32 %v11760_v2, %v19995_v58  ;;  %15374 = vtanh.f32 %v11644_v38  ;;  %v11573_v24 = vadd.f32 %v11509_v8, %v20009_v33 }
0x1e33   : > { %v20078_v1 = vmul.f32 %v11762_v39, %v20012_v47  ;;  %15376 = vtanh.f32 %v11631_v3  ;;  %v11633_v47 = vmul.f32 0.7978846, %v11569_v51  ;;  %v11575_v32 = vadd.f32 %v11511_v41, %v20022_v60 }
0x1e34   : > { %v20082_v44 = vmul.f32 %v11764_v57, %v20015_v4  ;;  %15378 = vtanh.f32 %v11635_v9  ;;  %v11637_v0 = vmul.f32 0.7978846, %v11573_v24  ;;  %v11579_v4 = vadd.f32 %v11515_v17, %v20048_v61 }
0x1e35   : > { %v11862_v6 = vpack.c.bf16 %v20078_v1, %v20071_v5  ;;  %15380 = vtanh.f32 %v11633_v47  ;;  %v11639_v34 = vmul.f32 0.7978846, %v11575_v32  ;;  %v11577_v55 = vadd.f32 %v11513_v20, %v20025_v54 }
0x1e36   : > { %v11864_v58 = vpack.c.bf16 %v20082_v44, %v20075_v35  ;;  %v15369_v7 = vpop.eup %15368  ;;  %v11581_v42 = vadd.f32 %v11517_v19, %v20054_v28  ;;  %15382 = vtanh.f32 %v11637_v0  ;;  %v11643_v11 = vmul.f32 0.7978846, %v11579_v4 }
0x1e37   : > { %v15371_v27 = vpop.eup %15370  ;;  %15384 = vtanh.f32 %v11639_v34  ;;  %v11641_v12 = vmul.f32 0.7978846, %v11577_v55  ;;  %v11766_v14 = vadd.f32 1.0, %v15369_v7  ;;  %v11318_v15 = vmul.f32 0.5, %v20003_v53 }
0x1e38   : > { %v11645_v13 = vmul.f32 0.7978846, %v11581_v42  ;;  %15386 = vtanh.f32 %v11643_v11  ;;  %v11768_v10 = vadd.f32 1.0, %v15371_v27  ;;  %v11322_v59 = vmul.f32 0.5, %v20030_v16 }
0x1e39   : > { %15388 = vtanh.f32 %v11641_v12  ;;  %v11320_v8 = vmul.f32 0.5, %v20006_v18  ;;  %v11324_v46 = vmul.f32 0.5, %v20035_v50  ;;  %v11830_v25 = vmul.f32 %v11766_v14, %v11318_v15 }
0x1e3a   : > { %15390 = vtanh.f32 %v11645_v13  ;;  %v11311_v52 = vmul.f32 0.5, %v19982_v62  ;;  %v11315_v53 = vmul.f32 0.5, %v19999_v21  ;;  %v11313_v5 = vmul.f32 0.5, %v19985_v43 }
0x1e3b   : > { %v15373_v63 = vpop.eup %15372  ;;  %v11832_v45 = vmul.f32 %v11768_v10, %v11320_v8  ;;  %v11317_v39 = vmul.f32 0.5, %v20009_v33  ;;  %v11319_v17 = vmul.f32 0.5, %v20022_v60  ;;  %v11323_v1 = vmul.f32 0.5, %v20048_v61  ;;  %v20629_v8 = vld [vmem:[#allocation35_spill] sm:$0xff] }
0x1e3c   : > { %v15375_v40 = vpop.eup %15374  ;;  %v11770_v22 = vadd.f32 1.0, %v15373_v63  ;;  %v11321_v24 = vmul.f32 0.5, %v20025_v54  ;;  %v11325_v43 = vmul.f32 0.5, %v20054_v28 }
0x1e3d   : > { %v15377_v30 = vpop.eup %15376  ;;  %v11772_v29 = vadd.f32 1.0, %v15375_v40 }
0x1e3e   : > { %v15379_v48 = vpop.eup %15378  ;;  %v11834_v49 = vmul.f32 %v11770_v22, %v11322_v59  ;;  %v11759_v2 = vadd.f32 1.0, %v15377_v30 }
0x1e3f   : > { %v11836_v23 = vmul.f32 %v11772_v29, %v11324_v46  ;;  %v11763_v36 = vadd.f32 1.0, %v15379_v48  ;;  %v15381_v56 = vpop.eup %15380 }
0x1e40   : > { %v11866_v16 = vpack.c.bf16 %v11834_v49, %v11830_v25  ;;  %v11823_v20 = vmul.f32 %v11759_v2, %v11311_v52  ;;  %v15383_v18 = vpop.eup %15382  ;;  %v11761_v31 = vadd.f32 1.0, %v15381_v56 }
0x1e41   : > { %v11868_v41 = vpack.c.bf16 %v11836_v23, %v11832_v45  ;;  %v11827_v26 = vmul.f32 %v11763_v36, %v11315_v53  ;;  %v15385_v50 = vpop.eup %15384  ;;  %v11765_v62 = vadd.f32 1.0, %v15383_v18 }
0x1e42   : > { %v15387_v38 = vpop.eup %15386  ;;  %v11767_v57 = vadd.f32 1.0, %v15385_v50  ;;  %v11825_v3 = vmul.f32 %v11761_v31, %v11313_v5 }
0x1e43   : > { %v11863_v37 = vpack.c.bf16 %v11827_v26, %v11823_v20  ;;  %v15389_v21 = vpop.eup %15388  ;;  %v11829_v9 = vmul.f32 %v11765_v62, %v11317_v39  ;;  %v11771_v19 = vadd.f32 1.0, %v15387_v38 }
0x1e44   : > { %v15391_v51 = vpop.eup %15390  ;;  %v11769_v47 = vadd.f32 1.0, %v15389_v21  ;;  %v11831_v0 = vmul.f32 %v11767_v57, %v11319_v17 }
0x1e45   : > { %12213 = vmatprep.mubr.bf16.mxu1 %v11863_v37  ;;  %v11865_v33 = vpack.c.bf16 %v11829_v9, %v11825_v3  ;;  %v11835_v32 = vmul.f32 %v11771_v19, %v11323_v1  ;;  %v11773_v7 = vadd.f32 1.0, %v15391_v51 }
0x1e46   : > { %12214 = vmatmul.mubr.bf16.gmra.mrb[136].mxu1 %v11862_v6  ;;  %v11833_v4 = vmul.f32 %v11769_v47, %v11321_v24  ;;  %v20112_v6 = vld [vmem:[%s20626_s1] ss:$0 sm:$0xff] }
0x1e47   : > { %12310 = vmatprep.mubr.bf16.mxu0 %v11865_v33  ;;  %v11867_v60 = vpack.c.bf16 %v11835_v32, %v11831_v0  ;;  %v11837_v27 = vmul.f32 %v11773_v7, %v11325_v43 }
0x1e48   : > { %12311 = vmatmul.mubr.bf16.gmra.mrb[40].mxu0 %v11864_v58 }
0x1e49   : > { %12221 = vmatprep.mubr.bf16.mxu1 %v11867_v60  ;;  %v11869_v61 = vpack.c.bf16 %v11837_v27, %v11833_v4 }
0x1e4b   : > { %12318 = vmatprep.mubr.bf16.mxu0 %v11869_v61 }
0x1e4e   : > { %12222 = vmatmul.mubr.bf16.gmra.mrb[140].mxu1 %v11866_v16 }
0x1e50   : > { %12319 = vmatmul.mubr.bf16.gmra.mrb[44].mxu0 %v11868_v41 }
0x1eaa   : > { %v13275_v54 = vpop.f32.mrb[112].mxu1 }
0x1eab   : > { %v13276_v28 = vpop.f32.mrb[113].mxu1 }
0x1eac   : > { %v13277_v34 = vadd.f32 %v13276_v28, %v13275_v54  ;;  %v13278_v55 = vpop.f32.mrb[114].mxu1 }
0x1ead   : > { %v13279_v42 = vpop.f32.mrb[115].mxu1  ;;  %v13339_v35 = vpop.f32.mrb[16].mxu0 }
0x1eae   : > { %v13280_v11 = vadd.f32 %v13279_v42, %v13278_v55  ;;  %v12168_v44 = vadd.f32 %v13277_v34, %v20112_v6  ;;  %v13340_v58 = vpop.f32.mrb[17].mxu0 }
0x1eaf   : > { %v13341_v12 = vadd.f32 %v13340_v58, %v13339_v35  ;;  %v13342_v13 = vpop.f32.mrb[18].mxu0 }
0x1eb0   : > { %v12171_v14 = vadd.f32 %v13280_v11, %v20112_v6  ;;  %v13343_v63 = vpop.f32.mrb[19].mxu0 }
0x1eb1   : > { %v12265_v40 = vadd.f32 %v13341_v12, %v12168_v44  ;;  %v13344_v15 = vadd.f32 %v13343_v63, %v13342_v13 }
0x1eb2   : > { %v13281_v10 = vpop.f32.mrb[116].mxu1 }
0x1eb3   : > { %v13282_v59 = vpop.f32.mrb[117].mxu1  ;;  %v12327_v46 = vadd.f32 %v12265_v40, %v20629_v8  ;;  %v12268_v29 = vadd.f32 %v13344_v15, %v12171_v14 }
0x1eb4   : > { %v13283_v22 = vadd.f32 %v13282_v59, %v13281_v10  ;;  %v13284_v30 = vpop.f32.mrb[118].mxu1 }
0x1eb5   : > { %v13285_v48 = vpop.f32.mrb[119].mxu1 }
0x1eb6   : > { %v13286_v25 = vadd.f32 %v13285_v48, %v13284_v30 }
0x1eb7   : > { %15623 = shalt.err (!%p15620_p7)
}
0x1eb8   : > { %s15624_s17 = scalar_lea.hbm %s20122_s25, 2048  ;;  %s15628_s12 = scalar_lea.hbm %s20628_s9, 4096 }
0x1eb9   : > { %p15625_p3 = scmp.ne.s32.totalorder %s20122_s25, %s15624_s17  ;;  %p15629_p12 = scmp.lt.u32.totalorder %s20122_s25, %s20628_s9 }
0x1eba   : > { %p15630_p2 = scmp.lt.u32.totalorder %s15628_s12, %s15624_s17  ;;  %p15632_p4 = scmp.lt.u32.totalorder %s15624_s17, %s20122_s25 }
0x1ebb   : > { %p15626_p10 = pnand %p15625_p3, %p20630_p0 }
0x1ebc   : > { %p15631_p9 = por %p15630_p2, %p15629_p12 }
0x1ebd   : > { %p15627_p13 = pneg %p15626_p10 }
0x1ebe   : > { %p15633_p1 = por %p15632_p4, %p15631_p9 }
0x1ec0   : > { %p15634_p6 = pnand %p15633_p1, %p15627_p13 }
0x1ec2   : > { %15637 = shalt.err (!%p15634_p6)
}
0x1ec3   : > { %s15749_s23 = smov 128   ;;  %s15750_s28 = smov 8   ;;  %v20631_v49 = vld [vmem:[#allocation40_spill] sm:$0xff]  ;;  %v13345_v2 = vpop.f32.mrb[20].mxu0  ;;  %v12176_v45 = vadd.f32 %v13283_v22, %v20112_v6  ;;  %v12179_v16 = vadd.f32 %v13286_v25, %v20112_v6  ;;  %v13287_v41 = vpop.f32.mrb[120].mxu1  ;;  %v20632_v37 = vld [vmem:[#allocation58_spill] sm:$0xff] }
0x1ec4   : > { %14466 = dma.vmem_to_hbm [thread:$0]  (%p20630_p0), %s20126_s24, 2048, %s20122_s25, %s12365_s22, %s15749_s23, %s15749_s23, %s15750_s28   ;;  %v12328_v52 = vadd.f32 %v12268_v29, %v20631_v49  ;;  %v13346_v23 = vpop.f32.mrb[21].mxu0  ;;  %v13288_v18 = vpop.f32.mrb[121].mxu1  ;;  %v20633_v17 = vld [vmem:[#allocation59_spill] sm:$0xff]  ;;  %v20634_v60 = vld [vmem:[#allocation73_spill] sm:$0xff]  ;;  %v20635_v28 = vld [vmem:[#allocation72_spill] sm:$0xff] }
0x1ec5   : > { %s20156_s1 = scalar_lea.vmem [#allocation14], %s16129_s8  ;;  %v13347_v53 = vadd.f32 %v13346_v23, %v13345_v2  ;;  %v13348_v36 = vpop.f32.mrb[22].mxu0  ;;  %v13289_v31 = vadd.f32 %v13288_v18, %v13287_v41  ;;  %v13290_v50 = vpop.f32.mrb[122].mxu1  ;;  %v20636_v63 = vld [vmem:[#allocation39_spill] sm:$0xff]  ;;  %v20637_v15 = vld [vmem:[#allocation44_spill] sm:$0xff]  ;;  %s20646_s25 = sld [smem:[#allocation88_spill]] }
0x1ec6   : > { %12343 = vst [vmem:[%s20156_s1] sm:$0xff] %v12327_v46  ;;  %12344 = vst [vmem:[%s20156_s1 + $0x8] sm:$0xff] %v12328_v52  ;;  %v13349_v56 = vpop.f32.mrb[23].mxu0  ;;  %v13291_v62 = vpop.f32.mrb[123].mxu1  ;;  %s12379_s8 = sshll.u32 %s20156_s1, 4  ;;  %s12360_s22 = scalar_lea.sflag [#allocation4], %s16111_s18  ;;  %s20210_s8 = int_to_ptr.vmem [resolvable:$true] %s12379_s8 }
0x1ec7   : > { %v12273_v20 = vadd.f32 %v13347_v53, %v12176_v45  ;;  %v13350_v26 = vadd.f32 %v13349_v56, %v13348_v36  ;;  %v13292_v38 = vadd.f32 %v13291_v62, %v13290_v50  ;;  %v13351_v21 = vpop.f32.mrb[24].mxu0  ;;  %v12184_v3 = vadd.f32 %v13289_v31, %v20112_v6  ;;  %v13293_v43 = vpop.f32.mrb[124].mxu1  ;;  %v20638_v56 = vld [vmem:[#allocation45_spill] sm:$0xff]  ;;  %v20639_v31 = vld [vmem:[#allocation43_spill] sm:$0xff]  ;;  %s15638_s13 = scalar_lea.vmem %s20210_s8, 2048  ;;  %s15751_s6 = smov [#allocation14]  }
0x1ec8   : > { %v13352_v9 = vpop.f32.mrb[25].mxu0  ;;  %v13294_v0 = vpop.f32.mrb[125].mxu1  ;;  %p15639_p8 = scmp.ne.s32.totalorder %s20210_s8, %s15638_s13  ;;  %s15642_s7 = sshll.u32 %s15751_s6, 4  ;;  %s15643_s7 = int_to_ptr.vmem [resolvable:$false] %s15642_s7 }
0x1ec9   : > { %v12329_v5 = vadd.f32 %v12273_v20, %v20632_v37  ;;  %v12276_v39 = vadd.f32 %v13350_v26, %v12179_v16  ;;  %v13353_v1 = vadd.f32 %v13352_v9, %v13351_v21  ;;  %v13354_v19 = vpop.f32.mrb[26].mxu0  ;;  %v12187_v51 = vadd.f32 %v13292_v38, %v20112_v6  ;;  %v13296_v7 = vpop.f32.mrb[126].mxu1  ;;  %s15644_s19 = scalar_lea.vmem %s15643_s7, 4096  ;;  %p15645_p7 = scmp.lt.s32.totalorder %s20210_s8, %s15643_s7 }
0x1eca   : > { %v13355_v24 = vpop.f32.mrb[27].mxu0  ;;  %v13295_v32 = vadd.f32 %v13294_v0, %v13293_v43  ;;  %v13297_v61 = vpop.f32.mrb[127].mxu1  ;;  %p15640_p5 = pnand %p15639_p8, %p20630_p0  ;;  %p15646_p3 = scmp.lt.s32.totalorder %s15644_s19, %s15638_s13 }
0x1ecb   : > { %12345 = vst [vmem:[%s20156_s1 + $0x10] sm:$0xff] %v12329_v5  ;;  %v12330_v57 = vadd.f32 %v12276_v39, %v20633_v17  ;;  %v12281_v47 = vadd.f32 %v13353_v1, %v12184_v3  ;;  %v13356_v33 = vadd.f32 %v13355_v24, %v13354_v19  ;;  %v13298_v54 = vadd.f32 %v13297_v61, %v13296_v7  ;;  %v13357_v55 = vpop.f32.mrb[28].mxu0  ;;  %v20640_v24 = vld [vmem:[#allocation61_spill] sm:$0xff]  ;;  %s20208_s24 = scalar_lea.hbm %s20646_s25, %s12912_s29 }
0x1ecc   : > { %v12192_v42 = vadd.f32 %v13295_v32, %v20112_v6  ;;  %v13358_v11 = vpop.f32.mrb[29].mxu0  ;;  %p15641_p11 = pneg %p15640_p5  ;;  %p15647_p10 = por %p15646_p3, %p15645_p7 }
0x1ecd   : > { %12346 = vst [vmem:[%s20156_s1 + $0x18] sm:$0xff] %v12330_v57  ;;  %v12331_v4 = vadd.f32 %v12281_v47, %v20634_v60  ;;  %v12284_v27 = vadd.f32 %v13356_v33, %v12187_v51  ;;  %v13359_v35 = vadd.f32 %v13358_v11, %v13357_v55  ;;  %v13360_v44 = vpop.f32.mrb[30].mxu0  ;;  %v12195_v58 = vadd.f32 %v13298_v54, %v20112_v6  ;;  %v20641_v33 = vld [vmem:[#allocation60_spill] sm:$0xff] }
0x1ece   : > { %v13361_v12 = vpop.f32.mrb[31].mxu0  ;;  %p15648_p13 = pnand %p15647_p10, %p15641_p11 }
0x1ecf   : > { %12347 = vst [vmem:[%s20156_s1 + $0x20] sm:$0xff] %v12331_v4  ;;  %v12332_v34 = vadd.f32 %v12284_v27, %v20635_v28  ;;  %v12289_v13 = vadd.f32 %v13359_v35, %v12192_v42  ;;  %v13362_v14 = vadd.f32 %v13361_v12, %v13360_v44 }
0x1ed1   : > { %12348 = vst [vmem:[%s20156_s1 + $0x28] sm:$0xff] %v12332_v34  ;;  %v12333_v10 = vadd.f32 %v12289_v13, %v20636_v63  ;;  %v12292_v40 = vadd.f32 %v13362_v14, %v12195_v58  ;;  %v20642_v14 = vld [vmem:[#allocation46_spill] sm:$0xff] }
0x1ed3   : > { %12349 = vst [vmem:[%s20156_s1 + $0x30] sm:$0xff] %v12333_v10  ;;  %v12334_v59 = vadd.f32 %v12292_v40, %v20637_v15 }
0x1ed5   : > { %12350 = vst [vmem:[%s20156_s1 + $0x38] sm:$0xff] %v12334_v59 }
0x1ee6   : > { %v13299_v22 = vpop.f32.mrb[128].mxu1 }
0x1ee7   : > { %v13300_v30 = vpop.f32.mrb[129].mxu1 }
0x1ee8   : > { %v13363_v8 = vpop.f32.mrb[32].mxu0  ;;  %v13301_v46 = vadd.f32 %v13300_v30, %v13299_v22  ;;  %v13302_v29 = vpop.f32.mrb[130].mxu1  ;;  %v20643_v22 = vld [vmem:[#allocation47_spill] sm:$0xff] }
0x1ee9   : > { %v13364_v48 = vpop.f32.mrb[33].mxu0  ;;  %v13303_v25 = vpop.f32.mrb[131].mxu1 }
0x1eea   : > { %v12200_v49 = vadd.f32 %v13301_v46, %v20112_v6  ;;  %v13365_v52 = vadd.f32 %v13364_v48, %v13363_v8  ;;  %v13366_v2 = vpop.f32.mrb[34].mxu0  ;;  %v13304_v45 = vadd.f32 %v13303_v25, %v13302_v29 }
0x1eeb   : > { %v13367_v23 = vpop.f32.mrb[35].mxu0 }
0x1eec   : > { %v12297_v53 = vadd.f32 %v13365_v52, %v12200_v49  ;;  %v12203_v36 = vadd.f32 %v13304_v45, %v20112_v6  ;;  %v13368_v16 = vadd.f32 %v13367_v23, %v13366_v2 }
0x1eee   : > { %v12335_v41 = vadd.f32 %v12297_v53, %v20638_v56  ;;  %v12300_v20 = vadd.f32 %v13368_v16, %v12203_v36  ;;  %v13305_v26 = vpop.f32.mrb[132].mxu1  ;;  %v20644_v53 = vld [vmem:[#allocation62_spill] sm:$0xff]  ;;  %v20645_v56 = vld [vmem:[#allocation63_spill] sm:$0xff] }
0x1eef   : > { %v13306_v18 = vpop.f32.mrb[133].mxu1 }
0x1ef0   : > { %12351 = vst [vmem:[%s20156_s1 + $0x40] sm:$0xff] %v12335_v41  ;;  %v12336_v50 = vadd.f32 %v12300_v20, %v20639_v31  ;;  %v13369_v37 = vpop.f32.mrb[36].mxu0  ;;  %v13307_v5 = vadd.f32 %v13306_v18, %v13305_v26  ;;  %v13308_v39 = vpop.f32.mrb[134].mxu1 }
0x1ef1   : > { %v13370_v62 = vpop.f32.mrb[37].mxu0  ;;  %v13309_v38 = vpop.f32.mrb[135].mxu1 }
0x1ef2   : > { %12352 = vst [vmem:[%s20156_s1 + $0x48] sm:$0xff] %v12336_v50  ;;  %v12208_v17 = vadd.f32 %v13307_v5, %v20112_v6  ;;  %v13371_v57 = vadd.f32 %v13370_v62, %v13369_v37  ;;  %v13372_v21 = vpop.f32.mrb[38].mxu0  ;;  %v13310_v3 = vadd.f32 %v13309_v38, %v13308_v39 }
0x1ef3   : > { %v13373_v9 = vpop.f32.mrb[39].mxu0 }
0x1ef4   : > { %v12305_v1 = vadd.f32 %v13371_v57, %v12208_v17  ;;  %v12211_v19 = vadd.f32 %v13310_v3, %v20112_v6  ;;  %v13374_v51 = vadd.f32 %v13373_v9, %v13372_v21 }
0x1ef6   : > { %v12337_v43 = vadd.f32 %v12305_v1, %v20640_v24  ;;  %v12308_v47 = vadd.f32 %v13374_v51, %v12211_v19 }
0x1ef8   : > { %12353 = vst [vmem:[%s20156_s1 + $0x50] sm:$0xff] %v12337_v43  ;;  %v12338_v0 = vadd.f32 %v12308_v47, %v20641_v33 }
0x1efa   : > { %12354 = vst [vmem:[%s20156_s1 + $0x58] sm:$0xff] %v12338_v0 }
0x1f19   : > { %v13311_v32 = vpop.f32.mrb[136].mxu1 }
0x1f1a   : > { %v13312_v7 = vpop.f32.mrb[137].mxu1 }
0x1f1b   : > { %v13313_v60 = vadd.f32 %v13312_v7, %v13311_v32  ;;  %v13314_v4 = vpop.f32.mrb[138].mxu1  ;;  %v13375_v61 = vpop.f32.mrb[40].mxu0 }
0x1f1c   : > { %v13315_v27 = vpop.f32.mrb[139].mxu1  ;;  %v13376_v34 = vpop.f32.mrb[41].mxu0 }
0x1f1d   : > { %v12216_v54 = vadd.f32 %v13313_v60, %v20112_v6  ;;  %v13316_v28 = vadd.f32 %v13315_v27, %v13314_v4  ;;  %v13377_v55 = vadd.f32 %v13376_v34, %v13375_v61  ;;  %v13378_v42 = vpop.f32.mrb[42].mxu0 }
0x1f1e   : > { %v13379_v35 = vpop.f32.mrb[43].mxu0 }
0x1f1f   : > { %v12219_v11 = vadd.f32 %v13316_v28, %v20112_v6  ;;  %v12313_v44 = vadd.f32 %v13377_v55, %v12216_v54  ;;  %v13380_v58 = vadd.f32 %v13379_v35, %v13378_v42 }
0x1f21   : > { %v13317_v12 = vpop.f32.mrb[140].mxu1  ;;  %v12339_v63 = vadd.f32 %v12313_v44, %v20642_v14  ;;  %v12316_v10 = vadd.f32 %v13380_v58, %v12219_v11 }
0x1f22   : > { %v13318_v13 = vpop.f32.mrb[141].mxu1 }
0x1f23   : > { %v13319_v40 = vadd.f32 %v13318_v13, %v13317_v12  ;;  %v13320_v15 = vpop.f32.mrb[142].mxu1  ;;  %12355 = vst [vmem:[%s20156_s1 + $0x60] sm:$0xff] %v12339_v63  ;;  %v12340_v30 = vadd.f32 %v12316_v10, %v20643_v22  ;;  %v13381_v8 = vpop.f32.mrb[44].mxu0 }
0x1f24   : > { %v13321_v59 = vpop.f32.mrb[143].mxu1  ;;  %v13382_v48 = vpop.f32.mrb[45].mxu0 }
0x1f25   : > { %v12224_v46 = vadd.f32 %v13319_v40, %v20112_v6  ;;  %v13322_v29 = vadd.f32 %v13321_v59, %v13320_v15  ;;  %12356 = vst [vmem:[%s20156_s1 + $0x68] sm:$0xff] %v12340_v30  ;;  %v13383_v25 = vadd.f32 %v13382_v48, %v13381_v8  ;;  %v13384_v49 = vpop.f32.mrb[46].mxu0 }
0x1f26   : > { %v13385_v2 = vpop.f32.mrb[47].mxu0 }
0x1f27   : > { %v12227_v52 = vadd.f32 %v13322_v29, %v20112_v6  ;;  %v12321_v45 = vadd.f32 %v13383_v25, %v12224_v46  ;;  %v13386_v23 = vadd.f32 %v13385_v2, %v13384_v49 }
0x1f29   : > { %v12341_v36 = vadd.f32 %v12321_v45, %v20644_v53  ;;  %v12324_v16 = vadd.f32 %v13386_v23, %v12227_v52 }
0x1f2b   : > { %12357 = vst [vmem:[%s20156_s1 + $0x70] sm:$0xff] %v12341_v36  ;;  %v12342_v41 = vadd.f32 %v12324_v16, %v20645_v56 }
0x1f2d   : > { %12358 = vst [vmem:[%s20156_s1 + $0x78] sm:$0xff] %v12342_v41 }
0x1f2e   : > { %15651 = shalt.err (!%p15648_p13)
}
0x1f2f   : > { %s15652_s29 = scalar_lea.hbm %s20208_s24, 2048  ;;  %s15656_s15 = scalar_lea.hbm %s20646_s25, 4096 }
0x1f30   : > { %p15653_p12 = scmp.ne.s32.totalorder %s20208_s24, %s15652_s29  ;;  %p15657_p4 = scmp.lt.u32.totalorder %s20208_s24, %s20646_s25 }
0x1f31   : > { %p15658_p1 = scmp.lt.u32.totalorder %s15656_s15, %s15652_s29  ;;  %p15660_p8 = scmp.lt.u32.totalorder %s15652_s29, %s20208_s24 }
0x1f32   : > { %p15654_p2 = pnand %p15653_p12, %p20630_p0 }
0x1f33   : > { %p15659_p6 = por %p15658_p1, %p15657_p4 }
0x1f34   : > { %p15655_p9 = pneg %p15654_p2 }
0x1f35   : > { %p15661_p5 = por %p15660_p8, %p15659_p6 }
0x1f37   : > { %p15662_p11 = pnand %p15661_p5, %p15655_p9 }
0x1f39   : > { %15665 = shalt.err (!%p15662_p11)
}
0x1f3a   : > { %14465 = dma.vmem_to_hbm [thread:$0]  (%p20630_p0), %s20210_s8, 2048, %s20208_s24, %s12360_s22, %s15749_s23, %s15749_s23, %s15750_s28  }
0x1f3b PF: > { %s20647_s14 = sld [smem:[#allocation23_spill]]  ;;  %s20648_s21 = sld [smem:[#allocation28_spill]] }
0x1f3c   : > { %p20650_p3 = scmp.ge.s32.totalorder %s15720_s16, 2 }
0x1f41   : > { %s12411_s1 = sand.u32 1, %s20647_s14   ;;  %p20649_p7 = scmp.ne.s32.totalorder %s20648_s21, 0 }
0x1f42   : > { %s12412_s3 = scalar_lea.sflag [#allocation4], %s12411_s1 }
0x1f43   : > { %p14493_p10 = pnand %p20650_p3, %p20649_p7 }
0x1f45   : > { %15699 = dma.done.wait (!%p14493_p10), %s12412_s3, 2048  }
0x1f46   : > { %15701 = vsyncadd (!%p14493_p10), %s12412_s3, 4294965248  ;;  %s12421_s26 = scalar_lea.sflag [#allocation16], %s12411_s1 }
0x1f47   : > { %15703 = dma.done.wait (!%p14493_p10), %s12421_s26, 2048  }
0x1f48   : > { %15705 = vsyncadd (!%p14493_p10), %s12421_s26, 4294965248  ;;  %s20651_s16 = sld [smem:[#allocation25_spill]]  ;;  %s20652_s18 = sld [smem:[#allocation24_spill]] }
0x1f49   : > { %s20653_s15 = sld [smem:[#allocation26_spill]]  ;;  %s20654_s29 = smov %s15712_s30 }
0x1f4e   : > { %p36_p0 = scmp.ge.s32.totalorder %s20651_s16, 4   ;;  %s20655_s30 = smov %s20652_s18 }
0x1f50   :  { %38 = sbr.rel (!%p36_p0) target bundleno = 22 (0x16), region = 181 }
0x1f57   :  { %12426 = vsyncpa [#allocation3], 1 }
0x1f58   :  { %12428 = vsyncpa [#allocation3 + $0x1], 1 }
0x1f59   :  { %12429 = vsyncpa [#allocation6], 1 }
0x1f5a   :  { %12431 = vsyncpa [#allocation6 + $0x1], 1 }
0x1f5b   :  { %12432 = vsyncpa [#allocation9], 1 }
0x1f5c   :  { %12433 = vsyncpa [#allocation12], 1 }
0x1f5d   :  { %12434 = vsyncpa [#allocation4], 1 }
0x1f5e   :  { %12436 = vsyncpa [#allocation4 + $0x1], 1 }
0x1f5f   :  { %12437 = vsyncpa [#allocation16], 1 }
0x1f60   :  { %12439 = vsyncpa [#allocation16 + $0x1], 1 }

</bundles_post_ra>
